<compile_context>
chip_gen: v7x
topology: tpu7x:2x2x1
jax: 0.10.0
libtpu: 0.0.40
codegen_flags: <defaults>
</compile_context>

<pallas_src>
import functools

import jax
import jax.numpy as jnp
from jax.experimental import pallas as pl
from jax.experimental.pallas import tpu as pltpu


def _geometry_prior_kernel(x_ref, w1_ref, b1_ref, w2_ref, b2_ref, o_ref):
    # x_ref : (C_in, KK_t, 128)   VMEM spatial tile (dense minor dims)
    # w1_ref: (C_mid, C_in) SMEM    b1_ref: (C_mid,)  SMEM
    # w2_ref: (C_out, C_mid) SMEM   b2_ref: (C_out,)  SMEM
    # o_ref : (C_out, KK_t, 128)  VMEM lane-dense output tile
    c_mid, c_in = w1_ref.shape
    c_out = w2_ref.shape[0]

    x = [x_ref[c] for c in range(c_in)]                # C_in slabs of (KK_t, 128)
    acc = [jnp.zeros_like(x[0]) for _ in range(c_out)]

    # Layer 1 (K = C_in = 2) and layer 2 (K = C_mid) as scalar-broadcast FMAs on
    # the VPU.  The h slabs are consumed immediately, so they never have to be
    # materialized all at once; any accumulator spill goes to VMEM (on-chip).
    for m in range(c_mid):
        h = b1_ref[m] + w1_ref[m, 0] * x[0]
        for c in range(1, c_in):
            h = h + w1_ref[m, c] * x[c]
        h = jnp.maximum(h, 0.0)                        # ReLU
        for o in range(c_out):
            acc[o] = acc[o] + w2_ref[o, m] * h

    for o in range(c_out):
        o_ref[o] = (acc[o] + b2_ref[o]).astype(o_ref.dtype)


def _tensorcores_per_device() -> int:
    """Best-effort TensorCores-per-device count (2 on v7x-class chips)."""
    candidates = ("num_cores", "num_tensorcores", "tensorcores_per_chip",
                  "cores_per_chip")
    objs = []
    try:
        objs.append(jax.devices()[0])
    except Exception:
        pass
    try:
        objs.append(pltpu.get_tpu_info())
    except Exception:
        pass
    for obj in objs:
        for attr in candidates:
            v = getattr(obj, attr, None)
            if isinstance(v, int) and 1 <= v <= 8:
                return v
    return 1


@functools.partial(jax.jit, static_argnames=("num_steps",))
def geometry_prior(position, w1, b1, w2, b2, *, num_steps=None):
    """Fused GeometryPrior forward.

    position : (1, 2, k, k, 128) float32  (torch NCDHW layout)
    w1       : (C_mid, 2)     float32  (torch l1.weight squeezed from (C_mid,2,1,1,1))
    b1       : (C_mid,)       float32
    w2       : (C_out, C_mid) float32  (torch l2.weight squeezed)
    b2       : (C_out,)       float32
    returns  : (1, C_out, 1, k*k*128) float32  -- matches the torch .view()

    Note: the torch forward ignores its runtime input x; only `position` and
    the conv parameters participate, so they are the kernel inputs here.
    """
    _, c_in, k1, k2, last = position.shape
    c_mid = w1.shape[0]
    c_out = w2.shape[0]
    kk = k1 * k2
    s = kk * last

    # Channel-major view with dense minor dims; for k % 8 == 0 this is a pure
    # relabelling of the NCDHW buffer (no relayout copy, no sublane padding).
    x = position.reshape(c_in, kk, last)

    if num_steps is None:
        # 1 grid step on single-TensorCore chips (v5e / v6e): ~0.35us per-step
        # overhead dominates at these sizes and the full block is << VMEM.
        # 2 steps (one per TensorCore) when a multi-core chip (v7x) is found.
        num_steps = 2 if (_tensorcores_per_device() >= 2 and kk % 16 == 0) else 1
    if num_steps != 1 and kk % (num_steps * 8) != 0:
        num_steps = 1                      # keep the sublane dim a multiple of 8
    kk_t = kk // num_steps

    smem = pl.BlockSpec(memory_space=pltpu.MemorySpace.SMEM)

    cost = pl.CostEstimate(
        flops=2 * s * (c_in * c_mid + c_mid * c_out),
        transcendentals=0,
        bytes_accessed=4 * (s * (c_in + c_out)
                            + c_in * c_mid + c_mid * c_out + c_mid + c_out),
    )

    out = pl.pallas_call(
        _geometry_prior_kernel,
        out_shape=jax.ShapeDtypeStruct((c_out, kk, last), position.dtype),
        grid_spec=pltpu.PrefetchScalarGridSpec(
            num_scalar_prefetch=0,
            grid=(num_steps,),
            in_specs=[
                pl.BlockSpec((c_in, kk_t, last), lambda i: (0, i, 0)),  # X tile
                smem,   # W1 (SMEM-resident scalars)
                smem,   # b1
                smem,   # W2
                smem,   # b2
            ],
            out_specs=pl.BlockSpec((c_out, kk_t, last), lambda i: (0, i, 0)),
        ),
        compiler_params=pltpu.CompilerParams(
            # Shards the (at most 2) steps across TensorCores on multi-core
            # chips; measured no-op on single-core v5e / v6e.
            dimension_semantics=("parallel",),
        ),
        cost_estimate=cost,
    )(x, w1, b1, w2, b2)

    # (C_out, k*k, 128) is already channel-major spatial order, so this reshape
    # is exactly the torch .view(1, C, 1, k*k*128).
    return out.reshape(1, c_out, 1, s)


if __name__ == "__main__":
    # Module config: k=8, channels=8, multiplier=2 -> Conv3d(2,16,1), Conv3d(16,8,1)
    k, channels, multiplier = 8, 8, 2
    c_mid = multiplier * channels
    s = k * k * 128

    key = jax.random.PRNGKey(0)
    kp, kw1, kb1, kw2, kb2 = jax.random.split(key, 5)

    # position = 2 * rand(1, 2, k, k, 128) - 1
    position = jax.random.uniform(
        kp, (1, 2, k, k, 128), minval=-1.0, maxval=1.0, dtype=jnp.float32)

    # Deterministic params mimicking torch Conv3d default init: U(+-1/sqrt(fan_in)).
    bound1 = 1.0 / (2.0 ** 0.5)
    w1 = jax.random.uniform(kw1, (c_mid, 2), minval=-bound1, maxval=bound1,
                            dtype=jnp.float32)
    b1 = jax.random.uniform(kb1, (c_mid,), minval=-bound1, maxval=bound1,
                            dtype=jnp.float32)
    bound2 = 1.0 / (c_mid ** 0.5)
    w2 = jax.random.uniform(kw2, (channels, c_mid), minval=-bound2, maxval=bound2,
                            dtype=jnp.float32)
    b2 = jax.random.uniform(kb2, (channels,), minval=-bound2, maxval=bound2,
                            dtype=jnp.float32)

    y = geometry_prior(position, w1, b1, w2, b2)
    jax.block_until_ready(y)

    # Pure-JAX reference (full-precision matmuls).
    x2 = position.reshape(2, s)
    h_ref = jnp.maximum(
        jnp.einsum("oc,cs->os", w1, x2, precision=jax.lax.Precision.HIGHEST)
        + b1[:, None], 0.0)
    y_ref = (jnp.einsum("oc,cs->os", w2, h_ref, precision=jax.lax.Precision.HIGHEST)
             + b2[:, None]).reshape(1, channels, 1, s)

    assert y.shape == (1, channels, 1, s)
    assert jnp.allclose(y, y_ref, atol=1e-4, rtol=1e-5)

    print("KERNEL_OK")
</pallas_src>

<mosaic_0001>
module attributes {stable_mosaic.version = 11 : i64} {
  func.func @_geometry_prior_kernel(%arg0: i32, %arg1: memref<2x64x128xf32, #tpu.memory_space<vmem>>, %arg2: memref<16x2xf32, #tpu.memory_space<smem>>, %arg3: memref<16xf32, #tpu.memory_space<smem>>, %arg4: memref<8x16xf32, #tpu.memory_space<smem>>, %arg5: memref<8xf32, #tpu.memory_space<smem>>, %arg6: memref<8x64x128xf32, #tpu.memory_space<vmem>>) attributes {dimension_semantics = [#tpu.dimension_semantics<parallel>], iteration_bounds = array<i64: 1>, scalar_prefetch = 0 : i64, scratch_operands = 0 : i64, tpu.core_type = #tpu.core_type<tc>, window_params = [{transform_indices = @transform_0, window_bounds = array<i64: 2, 64, 128>}, {transform_indices = @transform_1, window_bounds = array<i64: 16, 2>}, {transform_indices = @transform_2, window_bounds = array<i64: 16>}, {transform_indices = @transform_3, window_bounds = array<i64: 8, 16>}, {transform_indices = @transform_4, window_bounds = array<i64: 8>}, {transform_indices = @transform_5, window_bounds = array<i64: 8, 64, 128>}]} {
    %c0 = arith.constant 0 : index
    %c0_0 = arith.constant 0 : index
    %c0_1 = arith.constant 0 : index
    %0 = vector.load %arg1[%c0, %c0_0, %c0_1] : memref<2x64x128xf32, #tpu.memory_space<vmem>>, vector<1x64x128xf32>
    %1 = vector.shape_cast %0 : vector<1x64x128xf32> to vector<64x128xf32>
    %c1 = arith.constant 1 : index
    %c0_2 = arith.constant 0 : index
    %c0_3 = arith.constant 0 : index
    %2 = vector.load %arg1[%c1, %c0_2, %c0_3] : memref<2x64x128xf32, #tpu.memory_space<vmem>>, vector<1x64x128xf32>
    %3 = vector.shape_cast %2 : vector<1x64x128xf32> to vector<64x128xf32>
    %cst = arith.constant 0.000000e+00 : f32
    %4 = vector.broadcast %cst : f32 to vector<64x128xf32>
    %cst_4 = arith.constant 0.000000e+00 : f32
    %5 = vector.broadcast %cst_4 : f32 to vector<64x128xf32>
    %cst_5 = arith.constant 0.000000e+00 : f32
    %6 = vector.broadcast %cst_5 : f32 to vector<64x128xf32>
    %cst_6 = arith.constant 0.000000e+00 : f32
    %7 = vector.broadcast %cst_6 : f32 to vector<64x128xf32>
    %cst_7 = arith.constant 0.000000e+00 : f32
    %8 = vector.broadcast %cst_7 : f32 to vector<64x128xf32>
    %cst_8 = arith.constant 0.000000e+00 : f32
    %9 = vector.broadcast %cst_8 : f32 to vector<64x128xf32>
    %cst_9 = arith.constant 0.000000e+00 : f32
    %10 = vector.broadcast %cst_9 : f32 to vector<64x128xf32>
    %cst_10 = arith.constant 0.000000e+00 : f32
    %11 = vector.broadcast %cst_10 : f32 to vector<64x128xf32>
    %c0_11 = arith.constant 0 : index
    %12 = memref.load %arg3[%c0_11] : memref<16xf32, #tpu.memory_space<smem>>
    %c0_12 = arith.constant 0 : index
    %c0_13 = arith.constant 0 : index
    %13 = memref.load %arg2[%c0_12, %c0_13] : memref<16x2xf32, #tpu.memory_space<smem>>
    %14 = vector.broadcast %13 : f32 to vector<64x128xf32>
    %15 = arith.mulf %14, %1 : vector<64x128xf32>
    %16 = vector.broadcast %12 : f32 to vector<64x128xf32>
    %17 = arith.addf %16, %15 : vector<64x128xf32>
    %c0_14 = arith.constant 0 : index
    %c1_15 = arith.constant 1 : index
    %18 = memref.load %arg2[%c0_14, %c1_15] : memref<16x2xf32, #tpu.memory_space<smem>>
    %19 = vector.broadcast %18 : f32 to vector<64x128xf32>
    %20 = arith.mulf %19, %3 : vector<64x128xf32>
    %21 = arith.addf %17, %20 : vector<64x128xf32>
    %cst_16 = arith.constant 0.000000e+00 : f32
    %22 = vector.broadcast %cst_16 : f32 to vector<64x128xf32>
    %23 = arith.maximumf %21, %22 : vector<64x128xf32>
    %c0_17 = arith.constant 0 : index
    %c0_18 = arith.constant 0 : index
    %24 = memref.load %arg4[%c0_17, %c0_18] : memref<8x16xf32, #tpu.memory_space<smem>>
    %25 = vector.broadcast %24 : f32 to vector<64x128xf32>
    %26 = arith.mulf %25, %23 : vector<64x128xf32>
    %27 = arith.addf %4, %26 : vector<64x128xf32>
    %c1_19 = arith.constant 1 : index
    %c0_20 = arith.constant 0 : index
    %28 = memref.load %arg4[%c1_19, %c0_20] : memref<8x16xf32, #tpu.memory_space<smem>>
    %29 = vector.broadcast %28 : f32 to vector<64x128xf32>
    %30 = arith.mulf %29, %23 : vector<64x128xf32>
    %31 = arith.addf %5, %30 : vector<64x128xf32>
    %c2 = arith.constant 2 : index
    %c0_21 = arith.constant 0 : index
    %32 = memref.load %arg4[%c2, %c0_21] : memref<8x16xf32, #tpu.memory_space<smem>>
    %33 = vector.broadcast %32 : f32 to vector<64x128xf32>
    %34 = arith.mulf %33, %23 : vector<64x128xf32>
    %35 = arith.addf %6, %34 : vector<64x128xf32>
    %c3 = arith.constant 3 : index
    %c0_22 = arith.constant 0 : index
    %36 = memref.load %arg4[%c3, %c0_22] : memref<8x16xf32, #tpu.memory_space<smem>>
    %37 = vector.broadcast %36 : f32 to vector<64x128xf32>
    %38 = arith.mulf %37, %23 : vector<64x128xf32>
    %39 = arith.addf %7, %38 : vector<64x128xf32>
    %c4 = arith.constant 4 : index
    %c0_23 = arith.constant 0 : index
    %40 = memref.load %arg4[%c4, %c0_23] : memref<8x16xf32, #tpu.memory_space<smem>>
    %41 = vector.broadcast %40 : f32 to vector<64x128xf32>
    %42 = arith.mulf %41, %23 : vector<64x128xf32>
    %43 = arith.addf %8, %42 : vector<64x128xf32>
    %c5 = arith.constant 5 : index
    %c0_24 = arith.constant 0 : index
    %44 = memref.load %arg4[%c5, %c0_24] : memref<8x16xf32, #tpu.memory_space<smem>>
    %45 = vector.broadcast %44 : f32 to vector<64x128xf32>
    %46 = arith.mulf %45, %23 : vector<64x128xf32>
    %47 = arith.addf %9, %46 : vector<64x128xf32>
    %c6 = arith.constant 6 : index
    %c0_25 = arith.constant 0 : index
    %48 = memref.load %arg4[%c6, %c0_25] : memref<8x16xf32, #tpu.memory_space<smem>>
    %49 = vector.broadcast %48 : f32 to vector<64x128xf32>
    %50 = arith.mulf %49, %23 : vector<64x128xf32>
    %51 = arith.addf %10, %50 : vector<64x128xf32>
    %c7 = arith.constant 7 : index
    %c0_26 = arith.constant 0 : index
    %52 = memref.load %arg4[%c7, %c0_26] : memref<8x16xf32, #tpu.memory_space<smem>>
    %53 = vector.broadcast %52 : f32 to vector<64x128xf32>
    %54 = arith.mulf %53, %23 : vector<64x128xf32>
    %55 = arith.addf %11, %54 : vector<64x128xf32>
    %c1_27 = arith.constant 1 : index
    %56 = memref.load %arg3[%c1_27] : memref<16xf32, #tpu.memory_space<smem>>
    %c1_28 = arith.constant 1 : index
    %c0_29 = arith.constant 0 : index
    %57 = memref.load %arg2[%c1_28, %c0_29] : memref<16x2xf32, #tpu.memory_space<smem>>
    %58 = vector.broadcast %57 : f32 to vector<64x128xf32>
    %59 = arith.mulf %58, %1 : vector<64x128xf32>
    %60 = vector.broadcast %56 : f32 to vector<64x128xf32>
    %61 = arith.addf %60, %59 : vector<64x128xf32>
    %c1_30 = arith.constant 1 : index
    %c1_31 = arith.constant 1 : index
    %62 = memref.load %arg2[%c1_30, %c1_31] : memref<16x2xf32, #tpu.memory_space<smem>>
    %63 = vector.broadcast %62 : f32 to vector<64x128xf32>
    %64 = arith.mulf %63, %3 : vector<64x128xf32>
    %65 = arith.addf %61, %64 : vector<64x128xf32>
    %cst_32 = arith.constant 0.000000e+00 : f32
    %66 = vector.broadcast %cst_32 : f32 to vector<64x128xf32>
    %67 = arith.maximumf %65, %66 : vector<64x128xf32>
    %c0_33 = arith.constant 0 : index
    %c1_34 = arith.constant 1 : index
    %68 = memref.load %arg4[%c0_33, %c1_34] : memref<8x16xf32, #tpu.memory_space<smem>>
    %69 = vector.broadcast %68 : f32 to vector<64x128xf32>
    %70 = arith.mulf %69, %67 : vector<64x128xf32>
    %71 = arith.addf %27, %70 : vector<64x128xf32>
    %c1_35 = arith.constant 1 : index
    %c1_36 = arith.constant 1 : index
    %72 = memref.load %arg4[%c1_35, %c1_36] : memref<8x16xf32, #tpu.memory_space<smem>>
    %73 = vector.broadcast %72 : f32 to vector<64x128xf32>
    %74 = arith.mulf %73, %67 : vector<64x128xf32>
    %75 = arith.addf %31, %74 : vector<64x128xf32>
    %c2_37 = arith.constant 2 : index
    %c1_38 = arith.constant 1 : index
    %76 = memref.load %arg4[%c2_37, %c1_38] : memref<8x16xf32, #tpu.memory_space<smem>>
    %77 = vector.broadcast %76 : f32 to vector<64x128xf32>
    %78 = arith.mulf %77, %67 : vector<64x128xf32>
    %79 = arith.addf %35, %78 : vector<64x128xf32>
    %c3_39 = arith.constant 3 : index
    %c1_40 = arith.constant 1 : index
    %80 = memref.load %arg4[%c3_39, %c1_40] : memref<8x16xf32, #tpu.memory_space<smem>>
    %81 = vector.broadcast %80 : f32 to vector<64x128xf32>
    %82 = arith.mulf %81, %67 : vector<64x128xf32>
    %83 = arith.addf %39, %82 : vector<64x128xf32>
    %c4_41 = arith.constant 4 : index
    %c1_42 = arith.constant 1 : index
    %84 = memref.load %arg4[%c4_41, %c1_42] : memref<8x16xf32, #tpu.memory_space<smem>>
    %85 = vector.broadcast %84 : f32 to vector<64x128xf32>
    %86 = arith.mulf %85, %67 : vector<64x128xf32>
    %87 = arith.addf %43, %86 : vector<64x128xf32>
    %c5_43 = arith.constant 5 : index
    %c1_44 = arith.constant 1 : index
    %88 = memref.load %arg4[%c5_43, %c1_44] : memref<8x16xf32, #tpu.memory_space<smem>>
    %89 = vector.broadcast %88 : f32 to vector<64x128xf32>
    %90 = arith.mulf %89, %67 : vector<64x128xf32>
    %91 = arith.addf %47, %90 : vector<64x128xf32>
    %c6_45 = arith.constant 6 : index
    %c1_46 = arith.constant 1 : index
    %92 = memref.load %arg4[%c6_45, %c1_46] : memref<8x16xf32, #tpu.memory_space<smem>>
    %93 = vector.broadcast %92 : f32 to vector<64x128xf32>
    %94 = arith.mulf %93, %67 : vector<64x128xf32>
    %95 = arith.addf %51, %94 : vector<64x128xf32>
    %c7_47 = arith.constant 7 : index
    %c1_48 = arith.constant 1 : index
    %96 = memref.load %arg4[%c7_47, %c1_48] : memref<8x16xf32, #tpu.memory_space<smem>>
    %97 = vector.broadcast %96 : f32 to vector<64x128xf32>
    %98 = arith.mulf %97, %67 : vector<64x128xf32>
    %99 = arith.addf %55, %98 : vector<64x128xf32>
    %c2_49 = arith.constant 2 : index
    %100 = memref.load %arg3[%c2_49] : memref<16xf32, #tpu.memory_space<smem>>
    %c2_50 = arith.constant 2 : index
    %c0_51 = arith.constant 0 : index
    %101 = memref.load %arg2[%c2_50, %c0_51] : memref<16x2xf32, #tpu.memory_space<smem>>
    %102 = vector.broadcast %101 : f32 to vector<64x128xf32>
    %103 = arith.mulf %102, %1 : vector<64x128xf32>
    %104 = vector.broadcast %100 : f32 to vector<64x128xf32>
    %105 = arith.addf %104, %103 : vector<64x128xf32>
    %c2_52 = arith.constant 2 : index
    %c1_53 = arith.constant 1 : index
    %106 = memref.load %arg2[%c2_52, %c1_53] : memref<16x2xf32, #tpu.memory_space<smem>>
    %107 = vector.broadcast %106 : f32 to vector<64x128xf32>
    %108 = arith.mulf %107, %3 : vector<64x128xf32>
    %109 = arith.addf %105, %108 : vector<64x128xf32>
    %cst_54 = arith.constant 0.000000e+00 : f32
    %110 = vector.broadcast %cst_54 : f32 to vector<64x128xf32>
    %111 = arith.maximumf %109, %110 : vector<64x128xf32>
    %c0_55 = arith.constant 0 : index
    %c2_56 = arith.constant 2 : index
    %112 = memref.load %arg4[%c0_55, %c2_56] : memref<8x16xf32, #tpu.memory_space<smem>>
    %113 = vector.broadcast %112 : f32 to vector<64x128xf32>
    %114 = arith.mulf %113, %111 : vector<64x128xf32>
    %115 = arith.addf %71, %114 : vector<64x128xf32>
    %c1_57 = arith.constant 1 : index
    %c2_58 = arith.constant 2 : index
    %116 = memref.load %arg4[%c1_57, %c2_58] : memref<8x16xf32, #tpu.memory_space<smem>>
    %117 = vector.broadcast %116 : f32 to vector<64x128xf32>
    %118 = arith.mulf %117, %111 : vector<64x128xf32>
    %119 = arith.addf %75, %118 : vector<64x128xf32>
    %c2_59 = arith.constant 2 : index
    %c2_60 = arith.constant 2 : index
    %120 = memref.load %arg4[%c2_59, %c2_60] : memref<8x16xf32, #tpu.memory_space<smem>>
    %121 = vector.broadcast %120 : f32 to vector<64x128xf32>
    %122 = arith.mulf %121, %111 : vector<64x128xf32>
    %123 = arith.addf %79, %122 : vector<64x128xf32>
    %c3_61 = arith.constant 3 : index
    %c2_62 = arith.constant 2 : index
    %124 = memref.load %arg4[%c3_61, %c2_62] : memref<8x16xf32, #tpu.memory_space<smem>>
    %125 = vector.broadcast %124 : f32 to vector<64x128xf32>
    %126 = arith.mulf %125, %111 : vector<64x128xf32>
    %127 = arith.addf %83, %126 : vector<64x128xf32>
    %c4_63 = arith.constant 4 : index
    %c2_64 = arith.constant 2 : index
    %128 = memref.load %arg4[%c4_63, %c2_64] : memref<8x16xf32, #tpu.memory_space<smem>>
    %129 = vector.broadcast %128 : f32 to vector<64x128xf32>
    %130 = arith.mulf %129, %111 : vector<64x128xf32>
    %131 = arith.addf %87, %130 : vector<64x128xf32>
    %c5_65 = arith.constant 5 : index
    %c2_66 = arith.constant 2 : index
    %132 = memref.load %arg4[%c5_65, %c2_66] : memref<8x16xf32, #tpu.memory_space<smem>>
    %133 = vector.broadcast %132 : f32 to vector<64x128xf32>
    %134 = arith.mulf %133, %111 : vector<64x128xf32>
    %135 = arith.addf %91, %134 : vector<64x128xf32>
    %c6_67 = arith.constant 6 : index
    %c2_68 = arith.constant 2 : index
    %136 = memref.load %arg4[%c6_67, %c2_68] : memref<8x16xf32, #tpu.memory_space<smem>>
    %137 = vector.broadcast %136 : f32 to vector<64x128xf32>
    %138 = arith.mulf %137, %111 : vector<64x128xf32>
    %139 = arith.addf %95, %138 : vector<64x128xf32>
    %c7_69 = arith.constant 7 : index
    %c2_70 = arith.constant 2 : index
    %140 = memref.load %arg4[%c7_69, %c2_70] : memref<8x16xf32, #tpu.memory_space<smem>>
    %141 = vector.broadcast %140 : f32 to vector<64x128xf32>
    %142 = arith.mulf %141, %111 : vector<64x128xf32>
    %143 = arith.addf %99, %142 : vector<64x128xf32>
    %c3_71 = arith.constant 3 : index
    %144 = memref.load %arg3[%c3_71] : memref<16xf32, #tpu.memory_space<smem>>
    %c3_72 = arith.constant 3 : index
    %c0_73 = arith.constant 0 : index
    %145 = memref.load %arg2[%c3_72, %c0_73] : memref<16x2xf32, #tpu.memory_space<smem>>
    %146 = vector.broadcast %145 : f32 to vector<64x128xf32>
    %147 = arith.mulf %146, %1 : vector<64x128xf32>
    %148 = vector.broadcast %144 : f32 to vector<64x128xf32>
    %149 = arith.addf %148, %147 : vector<64x128xf32>
    %c3_74 = arith.constant 3 : index
    %c1_75 = arith.constant 1 : index
    %150 = memref.load %arg2[%c3_74, %c1_75] : memref<16x2xf32, #tpu.memory_space<smem>>
    %151 = vector.broadcast %150 : f32 to vector<64x128xf32>
    %152 = arith.mulf %151, %3 : vector<64x128xf32>
    %153 = arith.addf %149, %152 : vector<64x128xf32>
    %cst_76 = arith.constant 0.000000e+00 : f32
    %154 = vector.broadcast %cst_76 : f32 to vector<64x128xf32>
    %155 = arith.maximumf %153, %154 : vector<64x128xf32>
    %c0_77 = arith.constant 0 : index
    %c3_78 = arith.constant 3 : index
    %156 = memref.load %arg4[%c0_77, %c3_78] : memref<8x16xf32, #tpu.memory_space<smem>>
    %157 = vector.broadcast %156 : f32 to vector<64x128xf32>
    %158 = arith.mulf %157, %155 : vector<64x128xf32>
    %159 = arith.addf %115, %158 : vector<64x128xf32>
    %c1_79 = arith.constant 1 : index
    %c3_80 = arith.constant 3 : index
    %160 = memref.load %arg4[%c1_79, %c3_80] : memref<8x16xf32, #tpu.memory_space<smem>>
    %161 = vector.broadcast %160 : f32 to vector<64x128xf32>
    %162 = arith.mulf %161, %155 : vector<64x128xf32>
    %163 = arith.addf %119, %162 : vector<64x128xf32>
    %c2_81 = arith.constant 2 : index
    %c3_82 = arith.constant 3 : index
    %164 = memref.load %arg4[%c2_81, %c3_82] : memref<8x16xf32, #tpu.memory_space<smem>>
    %165 = vector.broadcast %164 : f32 to vector<64x128xf32>
    %166 = arith.mulf %165, %155 : vector<64x128xf32>
    %167 = arith.addf %123, %166 : vector<64x128xf32>
    %c3_83 = arith.constant 3 : index
    %c3_84 = arith.constant 3 : index
    %168 = memref.load %arg4[%c3_83, %c3_84] : memref<8x16xf32, #tpu.memory_space<smem>>
    %169 = vector.broadcast %168 : f32 to vector<64x128xf32>
    %170 = arith.mulf %169, %155 : vector<64x128xf32>
    %171 = arith.addf %127, %170 : vector<64x128xf32>
    %c4_85 = arith.constant 4 : index
    %c3_86 = arith.constant 3 : index
    %172 = memref.load %arg4[%c4_85, %c3_86] : memref<8x16xf32, #tpu.memory_space<smem>>
    %173 = vector.broadcast %172 : f32 to vector<64x128xf32>
    %174 = arith.mulf %173, %155 : vector<64x128xf32>
    %175 = arith.addf %131, %174 : vector<64x128xf32>
    %c5_87 = arith.constant 5 : index
    %c3_88 = arith.constant 3 : index
    %176 = memref.load %arg4[%c5_87, %c3_88] : memref<8x16xf32, #tpu.memory_space<smem>>
    %177 = vector.broadcast %176 : f32 to vector<64x128xf32>
    %178 = arith.mulf %177, %155 : vector<64x128xf32>
    %179 = arith.addf %135, %178 : vector<64x128xf32>
    %c6_89 = arith.constant 6 : index
    %c3_90 = arith.constant 3 : index
    %180 = memref.load %arg4[%c6_89, %c3_90] : memref<8x16xf32, #tpu.memory_space<smem>>
    %181 = vector.broadcast %180 : f32 to vector<64x128xf32>
    %182 = arith.mulf %181, %155 : vector<64x128xf32>
    %183 = arith.addf %139, %182 : vector<64x128xf32>
    %c7_91 = arith.constant 7 : index
    %c3_92 = arith.constant 3 : index
    %184 = memref.load %arg4[%c7_91, %c3_92] : memref<8x16xf32, #tpu.memory_space<smem>>
    %185 = vector.broadcast %184 : f32 to vector<64x128xf32>
    %186 = arith.mulf %185, %155 : vector<64x128xf32>
    %187 = arith.addf %143, %186 : vector<64x128xf32>
    %c4_93 = arith.constant 4 : index
    %188 = memref.load %arg3[%c4_93] : memref<16xf32, #tpu.memory_space<smem>>
    %c4_94 = arith.constant 4 : index
    %c0_95 = arith.constant 0 : index
    %189 = memref.load %arg2[%c4_94, %c0_95] : memref<16x2xf32, #tpu.memory_space<smem>>
    %190 = vector.broadcast %189 : f32 to vector<64x128xf32>
    %191 = arith.mulf %190, %1 : vector<64x128xf32>
    %192 = vector.broadcast %188 : f32 to vector<64x128xf32>
    %193 = arith.addf %192, %191 : vector<64x128xf32>
    %c4_96 = arith.constant 4 : index
    %c1_97 = arith.constant 1 : index
    %194 = memref.load %arg2[%c4_96, %c1_97] : memref<16x2xf32, #tpu.memory_space<smem>>
    %195 = vector.broadcast %194 : f32 to vector<64x128xf32>
    %196 = arith.mulf %195, %3 : vector<64x128xf32>
    %197 = arith.addf %193, %196 : vector<64x128xf32>
    %cst_98 = arith.constant 0.000000e+00 : f32
    %198 = vector.broadcast %cst_98 : f32 to vector<64x128xf32>
    %199 = arith.maximumf %197, %198 : vector<64x128xf32>
    %c0_99 = arith.constant 0 : index
    %c4_100 = arith.constant 4 : index
    %200 = memref.load %arg4[%c0_99, %c4_100] : memref<8x16xf32, #tpu.memory_space<smem>>
    %201 = vector.broadcast %200 : f32 to vector<64x128xf32>
    %202 = arith.mulf %201, %199 : vector<64x128xf32>
    %203 = arith.addf %159, %202 : vector<64x128xf32>
    %c1_101 = arith.constant 1 : index
    %c4_102 = arith.constant 4 : index
    %204 = memref.load %arg4[%c1_101, %c4_102] : memref<8x16xf32, #tpu.memory_space<smem>>
    %205 = vector.broadcast %204 : f32 to vector<64x128xf32>
    %206 = arith.mulf %205, %199 : vector<64x128xf32>
    %207 = arith.addf %163, %206 : vector<64x128xf32>
    %c2_103 = arith.constant 2 : index
    %c4_104 = arith.constant 4 : index
    %208 = memref.load %arg4[%c2_103, %c4_104] : memref<8x16xf32, #tpu.memory_space<smem>>
    %209 = vector.broadcast %208 : f32 to vector<64x128xf32>
    %210 = arith.mulf %209, %199 : vector<64x128xf32>
    %211 = arith.addf %167, %210 : vector<64x128xf32>
    %c3_105 = arith.constant 3 : index
    %c4_106 = arith.constant 4 : index
    %212 = memref.load %arg4[%c3_105, %c4_106] : memref<8x16xf32, #tpu.memory_space<smem>>
    %213 = vector.broadcast %212 : f32 to vector<64x128xf32>
    %214 = arith.mulf %213, %199 : vector<64x128xf32>
    %215 = arith.addf %171, %214 : vector<64x128xf32>
    %c4_107 = arith.constant 4 : index
    %c4_108 = arith.constant 4 : index
    %216 = memref.load %arg4[%c4_107, %c4_108] : memref<8x16xf32, #tpu.memory_space<smem>>
    %217 = vector.broadcast %216 : f32 to vector<64x128xf32>
    %218 = arith.mulf %217, %199 : vector<64x128xf32>
    %219 = arith.addf %175, %218 : vector<64x128xf32>
    %c5_109 = arith.constant 5 : index
    %c4_110 = arith.constant 4 : index
    %220 = memref.load %arg4[%c5_109, %c4_110] : memref<8x16xf32, #tpu.memory_space<smem>>
    %221 = vector.broadcast %220 : f32 to vector<64x128xf32>
    %222 = arith.mulf %221, %199 : vector<64x128xf32>
    %223 = arith.addf %179, %222 : vector<64x128xf32>
    %c6_111 = arith.constant 6 : index
    %c4_112 = arith.constant 4 : index
    %224 = memref.load %arg4[%c6_111, %c4_112] : memref<8x16xf32, #tpu.memory_space<smem>>
    %225 = vector.broadcast %224 : f32 to vector<64x128xf32>
    %226 = arith.mulf %225, %199 : vector<64x128xf32>
    %227 = arith.addf %183, %226 : vector<64x128xf32>
    %c7_113 = arith.constant 7 : index
    %c4_114 = arith.constant 4 : index
    %228 = memref.load %arg4[%c7_113, %c4_114] : memref<8x16xf32, #tpu.memory_space<smem>>
    %229 = vector.broadcast %228 : f32 to vector<64x128xf32>
    %230 = arith.mulf %229, %199 : vector<64x128xf32>
    %231 = arith.addf %187, %230 : vector<64x128xf32>
    %c5_115 = arith.constant 5 : index
    %232 = memref.load %arg3[%c5_115] : memref<16xf32, #tpu.memory_space<smem>>
    %c5_116 = arith.constant 5 : index
    %c0_117 = arith.constant 0 : index
    %233 = memref.load %arg2[%c5_116, %c0_117] : memref<16x2xf32, #tpu.memory_space<smem>>
    %234 = vector.broadcast %233 : f32 to vector<64x128xf32>
    %235 = arith.mulf %234, %1 : vector<64x128xf32>
    %236 = vector.broadcast %232 : f32 to vector<64x128xf32>
    %237 = arith.addf %236, %235 : vector<64x128xf32>
    %c5_118 = arith.constant 5 : index
    %c1_119 = arith.constant 1 : index
    %238 = memref.load %arg2[%c5_118, %c1_119] : memref<16x2xf32, #tpu.memory_space<smem>>
    %239 = vector.broadcast %238 : f32 to vector<64x128xf32>
    %240 = arith.mulf %239, %3 : vector<64x128xf32>
    %241 = arith.addf %237, %240 : vector<64x128xf32>
    %cst_120 = arith.constant 0.000000e+00 : f32
    %242 = vector.broadcast %cst_120 : f32 to vector<64x128xf32>
    %243 = arith.maximumf %241, %242 : vector<64x128xf32>
    %c0_121 = arith.constant 0 : index
    %c5_122 = arith.constant 5 : index
    %244 = memref.load %arg4[%c0_121, %c5_122] : memref<8x16xf32, #tpu.memory_space<smem>>
    %245 = vector.broadcast %244 : f32 to vector<64x128xf32>
    %246 = arith.mulf %245, %243 : vector<64x128xf32>
    %247 = arith.addf %203, %246 : vector<64x128xf32>
    %c1_123 = arith.constant 1 : index
    %c5_124 = arith.constant 5 : index
    %248 = memref.load %arg4[%c1_123, %c5_124] : memref<8x16xf32, #tpu.memory_space<smem>>
    %249 = vector.broadcast %248 : f32 to vector<64x128xf32>
    %250 = arith.mulf %249, %243 : vector<64x128xf32>
    %251 = arith.addf %207, %250 : vector<64x128xf32>
    %c2_125 = arith.constant 2 : index
    %c5_126 = arith.constant 5 : index
    %252 = memref.load %arg4[%c2_125, %c5_126] : memref<8x16xf32, #tpu.memory_space<smem>>
    %253 = vector.broadcast %252 : f32 to vector<64x128xf32>
    %254 = arith.mulf %253, %243 : vector<64x128xf32>
    %255 = arith.addf %211, %254 : vector<64x128xf32>
    %c3_127 = arith.constant 3 : index
    %c5_128 = arith.constant 5 : index
    %256 = memref.load %arg4[%c3_127, %c5_128] : memref<8x16xf32, #tpu.memory_space<smem>>
    %257 = vector.broadcast %256 : f32 to vector<64x128xf32>
    %258 = arith.mulf %257, %243 : vector<64x128xf32>
    %259 = arith.addf %215, %258 : vector<64x128xf32>
    %c4_129 = arith.constant 4 : index
    %c5_130 = arith.constant 5 : index
    %260 = memref.load %arg4[%c4_129, %c5_130] : memref<8x16xf32, #tpu.memory_space<smem>>
    %261 = vector.broadcast %260 : f32 to vector<64x128xf32>
    %262 = arith.mulf %261, %243 : vector<64x128xf32>
    %263 = arith.addf %219, %262 : vector<64x128xf32>
    %c5_131 = arith.constant 5 : index
    %c5_132 = arith.constant 5 : index
    %264 = memref.load %arg4[%c5_131, %c5_132] : memref<8x16xf32, #tpu.memory_space<smem>>
    %265 = vector.broadcast %264 : f32 to vector<64x128xf32>
    %266 = arith.mulf %265, %243 : vector<64x128xf32>
    %267 = arith.addf %223, %266 : vector<64x128xf32>
    %c6_133 = arith.constant 6 : index
    %c5_134 = arith.constant 5 : index
    %268 = memref.load %arg4[%c6_133, %c5_134] : memref<8x16xf32, #tpu.memory_space<smem>>
    %269 = vector.broadcast %268 : f32 to vector<64x128xf32>
    %270 = arith.mulf %269, %243 : vector<64x128xf32>
    %271 = arith.addf %227, %270 : vector<64x128xf32>
    %c7_135 = arith.constant 7 : index
    %c5_136 = arith.constant 5 : index
    %272 = memref.load %arg4[%c7_135, %c5_136] : memref<8x16xf32, #tpu.memory_space<smem>>
    %273 = vector.broadcast %272 : f32 to vector<64x128xf32>
    %274 = arith.mulf %273, %243 : vector<64x128xf32>
    %275 = arith.addf %231, %274 : vector<64x128xf32>
    %c6_137 = arith.constant 6 : index
    %276 = memref.load %arg3[%c6_137] : memref<16xf32, #tpu.memory_space<smem>>
    %c6_138 = arith.constant 6 : index
    %c0_139 = arith.constant 0 : index
    %277 = memref.load %arg2[%c6_138, %c0_139] : memref<16x2xf32, #tpu.memory_space<smem>>
    %278 = vector.broadcast %277 : f32 to vector<64x128xf32>
    %279 = arith.mulf %278, %1 : vector<64x128xf32>
    %280 = vector.broadcast %276 : f32 to vector<64x128xf32>
    %281 = arith.addf %280, %279 : vector<64x128xf32>
    %c6_140 = arith.constant 6 : index
    %c1_141 = arith.constant 1 : index
    %282 = memref.load %arg2[%c6_140, %c1_141] : memref<16x2xf32, #tpu.memory_space<smem>>
    %283 = vector.broadcast %282 : f32 to vector<64x128xf32>
    %284 = arith.mulf %283, %3 : vector<64x128xf32>
    %285 = arith.addf %281, %284 : vector<64x128xf32>
    %cst_142 = arith.constant 0.000000e+00 : f32
    %286 = vector.broadcast %cst_142 : f32 to vector<64x128xf32>
    %287 = arith.maximumf %285, %286 : vector<64x128xf32>
    %c0_143 = arith.constant 0 : index
    %c6_144 = arith.constant 6 : index
    %288 = memref.load %arg4[%c0_143, %c6_144] : memref<8x16xf32, #tpu.memory_space<smem>>
    %289 = vector.broadcast %288 : f32 to vector<64x128xf32>
    %290 = arith.mulf %289, %287 : vector<64x128xf32>
    %291 = arith.addf %247, %290 : vector<64x128xf32>
    %c1_145 = arith.constant 1 : index
    %c6_146 = arith.constant 6 : index
    %292 = memref.load %arg4[%c1_145, %c6_146] : memref<8x16xf32, #tpu.memory_space<smem>>
    %293 = vector.broadcast %292 : f32 to vector<64x128xf32>
    %294 = arith.mulf %293, %287 : vector<64x128xf32>
    %295 = arith.addf %251, %294 : vector<64x128xf32>
    %c2_147 = arith.constant 2 : index
    %c6_148 = arith.constant 6 : index
    %296 = memref.load %arg4[%c2_147, %c6_148] : memref<8x16xf32, #tpu.memory_space<smem>>
    %297 = vector.broadcast %296 : f32 to vector<64x128xf32>
    %298 = arith.mulf %297, %287 : vector<64x128xf32>
    %299 = arith.addf %255, %298 : vector<64x128xf32>
    %c3_149 = arith.constant 3 : index
    %c6_150 = arith.constant 6 : index
    %300 = memref.load %arg4[%c3_149, %c6_150] : memref<8x16xf32, #tpu.memory_space<smem>>
    %301 = vector.broadcast %300 : f32 to vector<64x128xf32>
    %302 = arith.mulf %301, %287 : vector<64x128xf32>
    %303 = arith.addf %259, %302 : vector<64x128xf32>
    %c4_151 = arith.constant 4 : index
    %c6_152 = arith.constant 6 : index
    %304 = memref.load %arg4[%c4_151, %c6_152] : memref<8x16xf32, #tpu.memory_space<smem>>
    %305 = vector.broadcast %304 : f32 to vector<64x128xf32>
    %306 = arith.mulf %305, %287 : vector<64x128xf32>
    %307 = arith.addf %263, %306 : vector<64x128xf32>
    %c5_153 = arith.constant 5 : index
    %c6_154 = arith.constant 6 : index
    %308 = memref.load %arg4[%c5_153, %c6_154] : memref<8x16xf32, #tpu.memory_space<smem>>
    %309 = vector.broadcast %308 : f32 to vector<64x128xf32>
    %310 = arith.mulf %309, %287 : vector<64x128xf32>
    %311 = arith.addf %267, %310 : vector<64x128xf32>
    %c6_155 = arith.constant 6 : index
    %c6_156 = arith.constant 6 : index
    %312 = memref.load %arg4[%c6_155, %c6_156] : memref<8x16xf32, #tpu.memory_space<smem>>
    %313 = vector.broadcast %312 : f32 to vector<64x128xf32>
    %314 = arith.mulf %313, %287 : vector<64x128xf32>
    %315 = arith.addf %271, %314 : vector<64x128xf32>
    %c7_157 = arith.constant 7 : index
    %c6_158 = arith.constant 6 : index
    %316 = memref.load %arg4[%c7_157, %c6_158] : memref<8x16xf32, #tpu.memory_space<smem>>
    %317 = vector.broadcast %316 : f32 to vector<64x128xf32>
    %318 = arith.mulf %317, %287 : vector<64x128xf32>
    %319 = arith.addf %275, %318 : vector<64x128xf32>
    %c7_159 = arith.constant 7 : index
    %320 = memref.load %arg3[%c7_159] : memref<16xf32, #tpu.memory_space<smem>>
    %c7_160 = arith.constant 7 : index
    %c0_161 = arith.constant 0 : index
    %321 = memref.load %arg2[%c7_160, %c0_161] : memref<16x2xf32, #tpu.memory_space<smem>>
    %322 = vector.broadcast %321 : f32 to vector<64x128xf32>
    %323 = arith.mulf %322, %1 : vector<64x128xf32>
    %324 = vector.broadcast %320 : f32 to vector<64x128xf32>
    %325 = arith.addf %324, %323 : vector<64x128xf32>
    %c7_162 = arith.constant 7 : index
    %c1_163 = arith.constant 1 : index
    %326 = memref.load %arg2[%c7_162, %c1_163] : memref<16x2xf32, #tpu.memory_space<smem>>
    %327 = vector.broadcast %326 : f32 to vector<64x128xf32>
    %328 = arith.mulf %327, %3 : vector<64x128xf32>
    %329 = arith.addf %325, %328 : vector<64x128xf32>
    %cst_164 = arith.constant 0.000000e+00 : f32
    %330 = vector.broadcast %cst_164 : f32 to vector<64x128xf32>
    %331 = arith.maximumf %329, %330 : vector<64x128xf32>
    %c0_165 = arith.constant 0 : index
    %c7_166 = arith.constant 7 : index
    %332 = memref.load %arg4[%c0_165, %c7_166] : memref<8x16xf32, #tpu.memory_space<smem>>
    %333 = vector.broadcast %332 : f32 to vector<64x128xf32>
    %334 = arith.mulf %333, %331 : vector<64x128xf32>
    %335 = arith.addf %291, %334 : vector<64x128xf32>
    %c1_167 = arith.constant 1 : index
    %c7_168 = arith.constant 7 : index
    %336 = memref.load %arg4[%c1_167, %c7_168] : memref<8x16xf32, #tpu.memory_space<smem>>
    %337 = vector.broadcast %336 : f32 to vector<64x128xf32>
    %338 = arith.mulf %337, %331 : vector<64x128xf32>
    %339 = arith.addf %295, %338 : vector<64x128xf32>
    %c2_169 = arith.constant 2 : index
    %c7_170 = arith.constant 7 : index
    %340 = memref.load %arg4[%c2_169, %c7_170] : memref<8x16xf32, #tpu.memory_space<smem>>
    %341 = vector.broadcast %340 : f32 to vector<64x128xf32>
    %342 = arith.mulf %341, %331 : vector<64x128xf32>
    %343 = arith.addf %299, %342 : vector<64x128xf32>
    %c3_171 = arith.constant 3 : index
    %c7_172 = arith.constant 7 : index
    %344 = memref.load %arg4[%c3_171, %c7_172] : memref<8x16xf32, #tpu.memory_space<smem>>
    %345 = vector.broadcast %344 : f32 to vector<64x128xf32>
    %346 = arith.mulf %345, %331 : vector<64x128xf32>
    %347 = arith.addf %303, %346 : vector<64x128xf32>
    %c4_173 = arith.constant 4 : index
    %c7_174 = arith.constant 7 : index
    %348 = memref.load %arg4[%c4_173, %c7_174] : memref<8x16xf32, #tpu.memory_space<smem>>
    %349 = vector.broadcast %348 : f32 to vector<64x128xf32>
    %350 = arith.mulf %349, %331 : vector<64x128xf32>
    %351 = arith.addf %307, %350 : vector<64x128xf32>
    %c5_175 = arith.constant 5 : index
    %c7_176 = arith.constant 7 : index
    %352 = memref.load %arg4[%c5_175, %c7_176] : memref<8x16xf32, #tpu.memory_space<smem>>
    %353 = vector.broadcast %352 : f32 to vector<64x128xf32>
    %354 = arith.mulf %353, %331 : vector<64x128xf32>
    %355 = arith.addf %311, %354 : vector<64x128xf32>
    %c6_177 = arith.constant 6 : index
    %c7_178 = arith.constant 7 : index
    %356 = memref.load %arg4[%c6_177, %c7_178] : memref<8x16xf32, #tpu.memory_space<smem>>
    %357 = vector.broadcast %356 : f32 to vector<64x128xf32>
    %358 = arith.mulf %357, %331 : vector<64x128xf32>
    %359 = arith.addf %315, %358 : vector<64x128xf32>
    %c7_179 = arith.constant 7 : index
    %c7_180 = arith.constant 7 : index
    %360 = memref.load %arg4[%c7_179, %c7_180] : memref<8x16xf32, #tpu.memory_space<smem>>
    %361 = vector.broadcast %360 : f32 to vector<64x128xf32>
    %362 = arith.mulf %361, %331 : vector<64x128xf32>
    %363 = arith.addf %319, %362 : vector<64x128xf32>
    %c8 = arith.constant 8 : index
    %364 = memref.load %arg3[%c8] : memref<16xf32, #tpu.memory_space<smem>>
    %c8_181 = arith.constant 8 : index
    %c0_182 = arith.constant 0 : index
    %365 = memref.load %arg2[%c8_181, %c0_182] : memref<16x2xf32, #tpu.memory_space<smem>>
    %366 = vector.broadcast %365 : f32 to vector<64x128xf32>
    %367 = arith.mulf %366, %1 : vector<64x128xf32>
    %368 = vector.broadcast %364 : f32 to vector<64x128xf32>
    %369 = arith.addf %368, %367 : vector<64x128xf32>
    %c8_183 = arith.constant 8 : index
    %c1_184 = arith.constant 1 : index
    %370 = memref.load %arg2[%c8_183, %c1_184] : memref<16x2xf32, #tpu.memory_space<smem>>
    %371 = vector.broadcast %370 : f32 to vector<64x128xf32>
    %372 = arith.mulf %371, %3 : vector<64x128xf32>
    %373 = arith.addf %369, %372 : vector<64x128xf32>
    %cst_185 = arith.constant 0.000000e+00 : f32
    %374 = vector.broadcast %cst_185 : f32 to vector<64x128xf32>
    %375 = arith.maximumf %373, %374 : vector<64x128xf32>
    %c0_186 = arith.constant 0 : index
    %c8_187 = arith.constant 8 : index
    %376 = memref.load %arg4[%c0_186, %c8_187] : memref<8x16xf32, #tpu.memory_space<smem>>
    %377 = vector.broadcast %376 : f32 to vector<64x128xf32>
    %378 = arith.mulf %377, %375 : vector<64x128xf32>
    %379 = arith.addf %335, %378 : vector<64x128xf32>
    %c1_188 = arith.constant 1 : index
    %c8_189 = arith.constant 8 : index
    %380 = memref.load %arg4[%c1_188, %c8_189] : memref<8x16xf32, #tpu.memory_space<smem>>
    %381 = vector.broadcast %380 : f32 to vector<64x128xf32>
    %382 = arith.mulf %381, %375 : vector<64x128xf32>
    %383 = arith.addf %339, %382 : vector<64x128xf32>
    %c2_190 = arith.constant 2 : index
    %c8_191 = arith.constant 8 : index
    %384 = memref.load %arg4[%c2_190, %c8_191] : memref<8x16xf32, #tpu.memory_space<smem>>
    %385 = vector.broadcast %384 : f32 to vector<64x128xf32>
    %386 = arith.mulf %385, %375 : vector<64x128xf32>
    %387 = arith.addf %343, %386 : vector<64x128xf32>
    %c3_192 = arith.constant 3 : index
    %c8_193 = arith.constant 8 : index
    %388 = memref.load %arg4[%c3_192, %c8_193] : memref<8x16xf32, #tpu.memory_space<smem>>
    %389 = vector.broadcast %388 : f32 to vector<64x128xf32>
    %390 = arith.mulf %389, %375 : vector<64x128xf32>
    %391 = arith.addf %347, %390 : vector<64x128xf32>
    %c4_194 = arith.constant 4 : index
    %c8_195 = arith.constant 8 : index
    %392 = memref.load %arg4[%c4_194, %c8_195] : memref<8x16xf32, #tpu.memory_space<smem>>
    %393 = vector.broadcast %392 : f32 to vector<64x128xf32>
    %394 = arith.mulf %393, %375 : vector<64x128xf32>
    %395 = arith.addf %351, %394 : vector<64x128xf32>
    %c5_196 = arith.constant 5 : index
    %c8_197 = arith.constant 8 : index
    %396 = memref.load %arg4[%c5_196, %c8_197] : memref<8x16xf32, #tpu.memory_space<smem>>
    %397 = vector.broadcast %396 : f32 to vector<64x128xf32>
    %398 = arith.mulf %397, %375 : vector<64x128xf32>
    %399 = arith.addf %355, %398 : vector<64x128xf32>
    %c6_198 = arith.constant 6 : index
    %c8_199 = arith.constant 8 : index
    %400 = memref.load %arg4[%c6_198, %c8_199] : memref<8x16xf32, #tpu.memory_space<smem>>
    %401 = vector.broadcast %400 : f32 to vector<64x128xf32>
    %402 = arith.mulf %401, %375 : vector<64x128xf32>
    %403 = arith.addf %359, %402 : vector<64x128xf32>
    %c7_200 = arith.constant 7 : index
    %c8_201 = arith.constant 8 : index
    %404 = memref.load %arg4[%c7_200, %c8_201] : memref<8x16xf32, #tpu.memory_space<smem>>
    %405 = vector.broadcast %404 : f32 to vector<64x128xf32>
    %406 = arith.mulf %405, %375 : vector<64x128xf32>
    %407 = arith.addf %363, %406 : vector<64x128xf32>
    %c9 = arith.constant 9 : index
    %408 = memref.load %arg3[%c9] : memref<16xf32, #tpu.memory_space<smem>>
    %c9_202 = arith.constant 9 : index
    %c0_203 = arith.constant 0 : index
    %409 = memref.load %arg2[%c9_202, %c0_203] : memref<16x2xf32, #tpu.memory_space<smem>>
    %410 = vector.broadcast %409 : f32 to vector<64x128xf32>
    %411 = arith.mulf %410, %1 : vector<64x128xf32>
    %412 = vector.broadcast %408 : f32 to vector<64x128xf32>
    %413 = arith.addf %412, %411 : vector<64x128xf32>
    %c9_204 = arith.constant 9 : index
    %c1_205 = arith.constant 1 : index
    %414 = memref.load %arg2[%c9_204, %c1_205] : memref<16x2xf32, #tpu.memory_space<smem>>
    %415 = vector.broadcast %414 : f32 to vector<64x128xf32>
    %416 = arith.mulf %415, %3 : vector<64x128xf32>
    %417 = arith.addf %413, %416 : vector<64x128xf32>
    %cst_206 = arith.constant 0.000000e+00 : f32
    %418 = vector.broadcast %cst_206 : f32 to vector<64x128xf32>
    %419 = arith.maximumf %417, %418 : vector<64x128xf32>
    %c0_207 = arith.constant 0 : index
    %c9_208 = arith.constant 9 : index
    %420 = memref.load %arg4[%c0_207, %c9_208] : memref<8x16xf32, #tpu.memory_space<smem>>
    %421 = vector.broadcast %420 : f32 to vector<64x128xf32>
    %422 = arith.mulf %421, %419 : vector<64x128xf32>
    %423 = arith.addf %379, %422 : vector<64x128xf32>
    %c1_209 = arith.constant 1 : index
    %c9_210 = arith.constant 9 : index
    %424 = memref.load %arg4[%c1_209, %c9_210] : memref<8x16xf32, #tpu.memory_space<smem>>
    %425 = vector.broadcast %424 : f32 to vector<64x128xf32>
    %426 = arith.mulf %425, %419 : vector<64x128xf32>
    %427 = arith.addf %383, %426 : vector<64x128xf32>
    %c2_211 = arith.constant 2 : index
    %c9_212 = arith.constant 9 : index
    %428 = memref.load %arg4[%c2_211, %c9_212] : memref<8x16xf32, #tpu.memory_space<smem>>
    %429 = vector.broadcast %428 : f32 to vector<64x128xf32>
    %430 = arith.mulf %429, %419 : vector<64x128xf32>
    %431 = arith.addf %387, %430 : vector<64x128xf32>
    %c3_213 = arith.constant 3 : index
    %c9_214 = arith.constant 9 : index
    %432 = memref.load %arg4[%c3_213, %c9_214] : memref<8x16xf32, #tpu.memory_space<smem>>
    %433 = vector.broadcast %432 : f32 to vector<64x128xf32>
    %434 = arith.mulf %433, %419 : vector<64x128xf32>
    %435 = arith.addf %391, %434 : vector<64x128xf32>
    %c4_215 = arith.constant 4 : index
    %c9_216 = arith.constant 9 : index
    %436 = memref.load %arg4[%c4_215, %c9_216] : memref<8x16xf32, #tpu.memory_space<smem>>
    %437 = vector.broadcast %436 : f32 to vector<64x128xf32>
    %438 = arith.mulf %437, %419 : vector<64x128xf32>
    %439 = arith.addf %395, %438 : vector<64x128xf32>
    %c5_217 = arith.constant 5 : index
    %c9_218 = arith.constant 9 : index
    %440 = memref.load %arg4[%c5_217, %c9_218] : memref<8x16xf32, #tpu.memory_space<smem>>
    %441 = vector.broadcast %440 : f32 to vector<64x128xf32>
    %442 = arith.mulf %441, %419 : vector<64x128xf32>
    %443 = arith.addf %399, %442 : vector<64x128xf32>
    %c6_219 = arith.constant 6 : index
    %c9_220 = arith.constant 9 : index
    %444 = memref.load %arg4[%c6_219, %c9_220] : memref<8x16xf32, #tpu.memory_space<smem>>
    %445 = vector.broadcast %444 : f32 to vector<64x128xf32>
    %446 = arith.mulf %445, %419 : vector<64x128xf32>
    %447 = arith.addf %403, %446 : vector<64x128xf32>
    %c7_221 = arith.constant 7 : index
    %c9_222 = arith.constant 9 : index
    %448 = memref.load %arg4[%c7_221, %c9_222] : memref<8x16xf32, #tpu.memory_space<smem>>
    %449 = vector.broadcast %448 : f32 to vector<64x128xf32>
    %450 = arith.mulf %449, %419 : vector<64x128xf32>
    %451 = arith.addf %407, %450 : vector<64x128xf32>
    %c10 = arith.constant 10 : index
    %452 = memref.load %arg3[%c10] : memref<16xf32, #tpu.memory_space<smem>>
    %c10_223 = arith.constant 10 : index
    %c0_224 = arith.constant 0 : index
    %453 = memref.load %arg2[%c10_223, %c0_224] : memref<16x2xf32, #tpu.memory_space<smem>>
    %454 = vector.broadcast %453 : f32 to vector<64x128xf32>
    %455 = arith.mulf %454, %1 : vector<64x128xf32>
    %456 = vector.broadcast %452 : f32 to vector<64x128xf32>
    %457 = arith.addf %456, %455 : vector<64x128xf32>
    %c10_225 = arith.constant 10 : index
    %c1_226 = arith.constant 1 : index
    %458 = memref.load %arg2[%c10_225, %c1_226] : memref<16x2xf32, #tpu.memory_space<smem>>
    %459 = vector.broadcast %458 : f32 to vector<64x128xf32>
    %460 = arith.mulf %459, %3 : vector<64x128xf32>
    %461 = arith.addf %457, %460 : vector<64x128xf32>
    %cst_227 = arith.constant 0.000000e+00 : f32
    %462 = vector.broadcast %cst_227 : f32 to vector<64x128xf32>
    %463 = arith.maximumf %461, %462 : vector<64x128xf32>
    %c0_228 = arith.constant 0 : index
    %c10_229 = arith.constant 10 : index
    %464 = memref.load %arg4[%c0_228, %c10_229] : memref<8x16xf32, #tpu.memory_space<smem>>
    %465 = vector.broadcast %464 : f32 to vector<64x128xf32>
    %466 = arith.mulf %465, %463 : vector<64x128xf32>
    %467 = arith.addf %423, %466 : vector<64x128xf32>
    %c1_230 = arith.constant 1 : index
    %c10_231 = arith.constant 10 : index
    %468 = memref.load %arg4[%c1_230, %c10_231] : memref<8x16xf32, #tpu.memory_space<smem>>
    %469 = vector.broadcast %468 : f32 to vector<64x128xf32>
    %470 = arith.mulf %469, %463 : vector<64x128xf32>
    %471 = arith.addf %427, %470 : vector<64x128xf32>
    %c2_232 = arith.constant 2 : index
    %c10_233 = arith.constant 10 : index
    %472 = memref.load %arg4[%c2_232, %c10_233] : memref<8x16xf32, #tpu.memory_space<smem>>
    %473 = vector.broadcast %472 : f32 to vector<64x128xf32>
    %474 = arith.mulf %473, %463 : vector<64x128xf32>
    %475 = arith.addf %431, %474 : vector<64x128xf32>
    %c3_234 = arith.constant 3 : index
    %c10_235 = arith.constant 10 : index
    %476 = memref.load %arg4[%c3_234, %c10_235] : memref<8x16xf32, #tpu.memory_space<smem>>
    %477 = vector.broadcast %476 : f32 to vector<64x128xf32>
    %478 = arith.mulf %477, %463 : vector<64x128xf32>
    %479 = arith.addf %435, %478 : vector<64x128xf32>
    %c4_236 = arith.constant 4 : index
    %c10_237 = arith.constant 10 : index
    %480 = memref.load %arg4[%c4_236, %c10_237] : memref<8x16xf32, #tpu.memory_space<smem>>
    %481 = vector.broadcast %480 : f32 to vector<64x128xf32>
    %482 = arith.mulf %481, %463 : vector<64x128xf32>
    %483 = arith.addf %439, %482 : vector<64x128xf32>
    %c5_238 = arith.constant 5 : index
    %c10_239 = arith.constant 10 : index
    %484 = memref.load %arg4[%c5_238, %c10_239] : memref<8x16xf32, #tpu.memory_space<smem>>
    %485 = vector.broadcast %484 : f32 to vector<64x128xf32>
    %486 = arith.mulf %485, %463 : vector<64x128xf32>
    %487 = arith.addf %443, %486 : vector<64x128xf32>
    %c6_240 = arith.constant 6 : index
    %c10_241 = arith.constant 10 : index
    %488 = memref.load %arg4[%c6_240, %c10_241] : memref<8x16xf32, #tpu.memory_space<smem>>
    %489 = vector.broadcast %488 : f32 to vector<64x128xf32>
    %490 = arith.mulf %489, %463 : vector<64x128xf32>
    %491 = arith.addf %447, %490 : vector<64x128xf32>
    %c7_242 = arith.constant 7 : index
    %c10_243 = arith.constant 10 : index
    %492 = memref.load %arg4[%c7_242, %c10_243] : memref<8x16xf32, #tpu.memory_space<smem>>
    %493 = vector.broadcast %492 : f32 to vector<64x128xf32>
    %494 = arith.mulf %493, %463 : vector<64x128xf32>
    %495 = arith.addf %451, %494 : vector<64x128xf32>
    %c11 = arith.constant 11 : index
    %496 = memref.load %arg3[%c11] : memref<16xf32, #tpu.memory_space<smem>>
    %c11_244 = arith.constant 11 : index
    %c0_245 = arith.constant 0 : index
    %497 = memref.load %arg2[%c11_244, %c0_245] : memref<16x2xf32, #tpu.memory_space<smem>>
    %498 = vector.broadcast %497 : f32 to vector<64x128xf32>
    %499 = arith.mulf %498, %1 : vector<64x128xf32>
    %500 = vector.broadcast %496 : f32 to vector<64x128xf32>
    %501 = arith.addf %500, %499 : vector<64x128xf32>
    %c11_246 = arith.constant 11 : index
    %c1_247 = arith.constant 1 : index
    %502 = memref.load %arg2[%c11_246, %c1_247] : memref<16x2xf32, #tpu.memory_space<smem>>
    %503 = vector.broadcast %502 : f32 to vector<64x128xf32>
    %504 = arith.mulf %503, %3 : vector<64x128xf32>
    %505 = arith.addf %501, %504 : vector<64x128xf32>
    %cst_248 = arith.constant 0.000000e+00 : f32
    %506 = vector.broadcast %cst_248 : f32 to vector<64x128xf32>
    %507 = arith.maximumf %505, %506 : vector<64x128xf32>
    %c0_249 = arith.constant 0 : index
    %c11_250 = arith.constant 11 : index
    %508 = memref.load %arg4[%c0_249, %c11_250] : memref<8x16xf32, #tpu.memory_space<smem>>
    %509 = vector.broadcast %508 : f32 to vector<64x128xf32>
    %510 = arith.mulf %509, %507 : vector<64x128xf32>
    %511 = arith.addf %467, %510 : vector<64x128xf32>
    %c1_251 = arith.constant 1 : index
    %c11_252 = arith.constant 11 : index
    %512 = memref.load %arg4[%c1_251, %c11_252] : memref<8x16xf32, #tpu.memory_space<smem>>
    %513 = vector.broadcast %512 : f32 to vector<64x128xf32>
    %514 = arith.mulf %513, %507 : vector<64x128xf32>
    %515 = arith.addf %471, %514 : vector<64x128xf32>
    %c2_253 = arith.constant 2 : index
    %c11_254 = arith.constant 11 : index
    %516 = memref.load %arg4[%c2_253, %c11_254] : memref<8x16xf32, #tpu.memory_space<smem>>
    %517 = vector.broadcast %516 : f32 to vector<64x128xf32>
    %518 = arith.mulf %517, %507 : vector<64x128xf32>
    %519 = arith.addf %475, %518 : vector<64x128xf32>
    %c3_255 = arith.constant 3 : index
    %c11_256 = arith.constant 11 : index
    %520 = memref.load %arg4[%c3_255, %c11_256] : memref<8x16xf32, #tpu.memory_space<smem>>
    %521 = vector.broadcast %520 : f32 to vector<64x128xf32>
    %522 = arith.mulf %521, %507 : vector<64x128xf32>
    %523 = arith.addf %479, %522 : vector<64x128xf32>
    %c4_257 = arith.constant 4 : index
    %c11_258 = arith.constant 11 : index
    %524 = memref.load %arg4[%c4_257, %c11_258] : memref<8x16xf32, #tpu.memory_space<smem>>
    %525 = vector.broadcast %524 : f32 to vector<64x128xf32>
    %526 = arith.mulf %525, %507 : vector<64x128xf32>
    %527 = arith.addf %483, %526 : vector<64x128xf32>
    %c5_259 = arith.constant 5 : index
    %c11_260 = arith.constant 11 : index
    %528 = memref.load %arg4[%c5_259, %c11_260] : memref<8x16xf32, #tpu.memory_space<smem>>
    %529 = vector.broadcast %528 : f32 to vector<64x128xf32>
    %530 = arith.mulf %529, %507 : vector<64x128xf32>
    %531 = arith.addf %487, %530 : vector<64x128xf32>
    %c6_261 = arith.constant 6 : index
    %c11_262 = arith.constant 11 : index
    %532 = memref.load %arg4[%c6_261, %c11_262] : memref<8x16xf32, #tpu.memory_space<smem>>
    %533 = vector.broadcast %532 : f32 to vector<64x128xf32>
    %534 = arith.mulf %533, %507 : vector<64x128xf32>
    %535 = arith.addf %491, %534 : vector<64x128xf32>
    %c7_263 = arith.constant 7 : index
    %c11_264 = arith.constant 11 : index
    %536 = memref.load %arg4[%c7_263, %c11_264] : memref<8x16xf32, #tpu.memory_space<smem>>
    %537 = vector.broadcast %536 : f32 to vector<64x128xf32>
    %538 = arith.mulf %537, %507 : vector<64x128xf32>
    %539 = arith.addf %495, %538 : vector<64x128xf32>
    %c12 = arith.constant 12 : index
    %540 = memref.load %arg3[%c12] : memref<16xf32, #tpu.memory_space<smem>>
    %c12_265 = arith.constant 12 : index
    %c0_266 = arith.constant 0 : index
    %541 = memref.load %arg2[%c12_265, %c0_266] : memref<16x2xf32, #tpu.memory_space<smem>>
    %542 = vector.broadcast %541 : f32 to vector<64x128xf32>
    %543 = arith.mulf %542, %1 : vector<64x128xf32>
    %544 = vector.broadcast %540 : f32 to vector<64x128xf32>
    %545 = arith.addf %544, %543 : vector<64x128xf32>
    %c12_267 = arith.constant 12 : index
    %c1_268 = arith.constant 1 : index
    %546 = memref.load %arg2[%c12_267, %c1_268] : memref<16x2xf32, #tpu.memory_space<smem>>
    %547 = vector.broadcast %546 : f32 to vector<64x128xf32>
    %548 = arith.mulf %547, %3 : vector<64x128xf32>
    %549 = arith.addf %545, %548 : vector<64x128xf32>
    %cst_269 = arith.constant 0.000000e+00 : f32
    %550 = vector.broadcast %cst_269 : f32 to vector<64x128xf32>
    %551 = arith.maximumf %549, %550 : vector<64x128xf32>
    %c0_270 = arith.constant 0 : index
    %c12_271 = arith.constant 12 : index
    %552 = memref.load %arg4[%c0_270, %c12_271] : memref<8x16xf32, #tpu.memory_space<smem>>
    %553 = vector.broadcast %552 : f32 to vector<64x128xf32>
    %554 = arith.mulf %553, %551 : vector<64x128xf32>
    %555 = arith.addf %511, %554 : vector<64x128xf32>
    %c1_272 = arith.constant 1 : index
    %c12_273 = arith.constant 12 : index
    %556 = memref.load %arg4[%c1_272, %c12_273] : memref<8x16xf32, #tpu.memory_space<smem>>
    %557 = vector.broadcast %556 : f32 to vector<64x128xf32>
    %558 = arith.mulf %557, %551 : vector<64x128xf32>
    %559 = arith.addf %515, %558 : vector<64x128xf32>
    %c2_274 = arith.constant 2 : index
    %c12_275 = arith.constant 12 : index
    %560 = memref.load %arg4[%c2_274, %c12_275] : memref<8x16xf32, #tpu.memory_space<smem>>
    %561 = vector.broadcast %560 : f32 to vector<64x128xf32>
    %562 = arith.mulf %561, %551 : vector<64x128xf32>
    %563 = arith.addf %519, %562 : vector<64x128xf32>
    %c3_276 = arith.constant 3 : index
    %c12_277 = arith.constant 12 : index
    %564 = memref.load %arg4[%c3_276, %c12_277] : memref<8x16xf32, #tpu.memory_space<smem>>
    %565 = vector.broadcast %564 : f32 to vector<64x128xf32>
    %566 = arith.mulf %565, %551 : vector<64x128xf32>
    %567 = arith.addf %523, %566 : vector<64x128xf32>
    %c4_278 = arith.constant 4 : index
    %c12_279 = arith.constant 12 : index
    %568 = memref.load %arg4[%c4_278, %c12_279] : memref<8x16xf32, #tpu.memory_space<smem>>
    %569 = vector.broadcast %568 : f32 to vector<64x128xf32>
    %570 = arith.mulf %569, %551 : vector<64x128xf32>
    %571 = arith.addf %527, %570 : vector<64x128xf32>
    %c5_280 = arith.constant 5 : index
    %c12_281 = arith.constant 12 : index
    %572 = memref.load %arg4[%c5_280, %c12_281] : memref<8x16xf32, #tpu.memory_space<smem>>
    %573 = vector.broadcast %572 : f32 to vector<64x128xf32>
    %574 = arith.mulf %573, %551 : vector<64x128xf32>
    %575 = arith.addf %531, %574 : vector<64x128xf32>
    %c6_282 = arith.constant 6 : index
    %c12_283 = arith.constant 12 : index
    %576 = memref.load %arg4[%c6_282, %c12_283] : memref<8x16xf32, #tpu.memory_space<smem>>
    %577 = vector.broadcast %576 : f32 to vector<64x128xf32>
    %578 = arith.mulf %577, %551 : vector<64x128xf32>
    %579 = arith.addf %535, %578 : vector<64x128xf32>
    %c7_284 = arith.constant 7 : index
    %c12_285 = arith.constant 12 : index
    %580 = memref.load %arg4[%c7_284, %c12_285] : memref<8x16xf32, #tpu.memory_space<smem>>
    %581 = vector.broadcast %580 : f32 to vector<64x128xf32>
    %582 = arith.mulf %581, %551 : vector<64x128xf32>
    %583 = arith.addf %539, %582 : vector<64x128xf32>
    %c13 = arith.constant 13 : index
    %584 = memref.load %arg3[%c13] : memref<16xf32, #tpu.memory_space<smem>>
    %c13_286 = arith.constant 13 : index
    %c0_287 = arith.constant 0 : index
    %585 = memref.load %arg2[%c13_286, %c0_287] : memref<16x2xf32, #tpu.memory_space<smem>>
    %586 = vector.broadcast %585 : f32 to vector<64x128xf32>
    %587 = arith.mulf %586, %1 : vector<64x128xf32>
    %588 = vector.broadcast %584 : f32 to vector<64x128xf32>
    %589 = arith.addf %588, %587 : vector<64x128xf32>
    %c13_288 = arith.constant 13 : index
    %c1_289 = arith.constant 1 : index
    %590 = memref.load %arg2[%c13_288, %c1_289] : memref<16x2xf32, #tpu.memory_space<smem>>
    %591 = vector.broadcast %590 : f32 to vector<64x128xf32>
    %592 = arith.mulf %591, %3 : vector<64x128xf32>
    %593 = arith.addf %589, %592 : vector<64x128xf32>
    %cst_290 = arith.constant 0.000000e+00 : f32
    %594 = vector.broadcast %cst_290 : f32 to vector<64x128xf32>
    %595 = arith.maximumf %593, %594 : vector<64x128xf32>
    %c0_291 = arith.constant 0 : index
    %c13_292 = arith.constant 13 : index
    %596 = memref.load %arg4[%c0_291, %c13_292] : memref<8x16xf32, #tpu.memory_space<smem>>
    %597 = vector.broadcast %596 : f32 to vector<64x128xf32>
    %598 = arith.mulf %597, %595 : vector<64x128xf32>
    %599 = arith.addf %555, %598 : vector<64x128xf32>
    %c1_293 = arith.constant 1 : index
    %c13_294 = arith.constant 13 : index
    %600 = memref.load %arg4[%c1_293, %c13_294] : memref<8x16xf32, #tpu.memory_space<smem>>
    %601 = vector.broadcast %600 : f32 to vector<64x128xf32>
    %602 = arith.mulf %601, %595 : vector<64x128xf32>
    %603 = arith.addf %559, %602 : vector<64x128xf32>
    %c2_295 = arith.constant 2 : index
    %c13_296 = arith.constant 13 : index
    %604 = memref.load %arg4[%c2_295, %c13_296] : memref<8x16xf32, #tpu.memory_space<smem>>
    %605 = vector.broadcast %604 : f32 to vector<64x128xf32>
    %606 = arith.mulf %605, %595 : vector<64x128xf32>
    %607 = arith.addf %563, %606 : vector<64x128xf32>
    %c3_297 = arith.constant 3 : index
    %c13_298 = arith.constant 13 : index
    %608 = memref.load %arg4[%c3_297, %c13_298] : memref<8x16xf32, #tpu.memory_space<smem>>
    %609 = vector.broadcast %608 : f32 to vector<64x128xf32>
    %610 = arith.mulf %609, %595 : vector<64x128xf32>
    %611 = arith.addf %567, %610 : vector<64x128xf32>
    %c4_299 = arith.constant 4 : index
    %c13_300 = arith.constant 13 : index
    %612 = memref.load %arg4[%c4_299, %c13_300] : memref<8x16xf32, #tpu.memory_space<smem>>
    %613 = vector.broadcast %612 : f32 to vector<64x128xf32>
    %614 = arith.mulf %613, %595 : vector<64x128xf32>
    %615 = arith.addf %571, %614 : vector<64x128xf32>
    %c5_301 = arith.constant 5 : index
    %c13_302 = arith.constant 13 : index
    %616 = memref.load %arg4[%c5_301, %c13_302] : memref<8x16xf32, #tpu.memory_space<smem>>
    %617 = vector.broadcast %616 : f32 to vector<64x128xf32>
    %618 = arith.mulf %617, %595 : vector<64x128xf32>
    %619 = arith.addf %575, %618 : vector<64x128xf32>
    %c6_303 = arith.constant 6 : index
    %c13_304 = arith.constant 13 : index
    %620 = memref.load %arg4[%c6_303, %c13_304] : memref<8x16xf32, #tpu.memory_space<smem>>
    %621 = vector.broadcast %620 : f32 to vector<64x128xf32>
    %622 = arith.mulf %621, %595 : vector<64x128xf32>
    %623 = arith.addf %579, %622 : vector<64x128xf32>
    %c7_305 = arith.constant 7 : index
    %c13_306 = arith.constant 13 : index
    %624 = memref.load %arg4[%c7_305, %c13_306] : memref<8x16xf32, #tpu.memory_space<smem>>
    %625 = vector.broadcast %624 : f32 to vector<64x128xf32>
    %626 = arith.mulf %625, %595 : vector<64x128xf32>
    %627 = arith.addf %583, %626 : vector<64x128xf32>
    %c14 = arith.constant 14 : index
    %628 = memref.load %arg3[%c14] : memref<16xf32, #tpu.memory_space<smem>>
    %c14_307 = arith.constant 14 : index
    %c0_308 = arith.constant 0 : index
    %629 = memref.load %arg2[%c14_307, %c0_308] : memref<16x2xf32, #tpu.memory_space<smem>>
    %630 = vector.broadcast %629 : f32 to vector<64x128xf32>
    %631 = arith.mulf %630, %1 : vector<64x128xf32>
    %632 = vector.broadcast %628 : f32 to vector<64x128xf32>
    %633 = arith.addf %632, %631 : vector<64x128xf32>
    %c14_309 = arith.constant 14 : index
    %c1_310 = arith.constant 1 : index
    %634 = memref.load %arg2[%c14_309, %c1_310] : memref<16x2xf32, #tpu.memory_space<smem>>
    %635 = vector.broadcast %634 : f32 to vector<64x128xf32>
    %636 = arith.mulf %635, %3 : vector<64x128xf32>
    %637 = arith.addf %633, %636 : vector<64x128xf32>
    %cst_311 = arith.constant 0.000000e+00 : f32
    %638 = vector.broadcast %cst_311 : f32 to vector<64x128xf32>
    %639 = arith.maximumf %637, %638 : vector<64x128xf32>
    %c0_312 = arith.constant 0 : index
    %c14_313 = arith.constant 14 : index
    %640 = memref.load %arg4[%c0_312, %c14_313] : memref<8x16xf32, #tpu.memory_space<smem>>
    %641 = vector.broadcast %640 : f32 to vector<64x128xf32>
    %642 = arith.mulf %641, %639 : vector<64x128xf32>
    %643 = arith.addf %599, %642 : vector<64x128xf32>
    %c1_314 = arith.constant 1 : index
    %c14_315 = arith.constant 14 : index
    %644 = memref.load %arg4[%c1_314, %c14_315] : memref<8x16xf32, #tpu.memory_space<smem>>
    %645 = vector.broadcast %644 : f32 to vector<64x128xf32>
    %646 = arith.mulf %645, %639 : vector<64x128xf32>
    %647 = arith.addf %603, %646 : vector<64x128xf32>
    %c2_316 = arith.constant 2 : index
    %c14_317 = arith.constant 14 : index
    %648 = memref.load %arg4[%c2_316, %c14_317] : memref<8x16xf32, #tpu.memory_space<smem>>
    %649 = vector.broadcast %648 : f32 to vector<64x128xf32>
    %650 = arith.mulf %649, %639 : vector<64x128xf32>
    %651 = arith.addf %607, %650 : vector<64x128xf32>
    %c3_318 = arith.constant 3 : index
    %c14_319 = arith.constant 14 : index
    %652 = memref.load %arg4[%c3_318, %c14_319] : memref<8x16xf32, #tpu.memory_space<smem>>
    %653 = vector.broadcast %652 : f32 to vector<64x128xf32>
    %654 = arith.mulf %653, %639 : vector<64x128xf32>
    %655 = arith.addf %611, %654 : vector<64x128xf32>
    %c4_320 = arith.constant 4 : index
    %c14_321 = arith.constant 14 : index
    %656 = memref.load %arg4[%c4_320, %c14_321] : memref<8x16xf32, #tpu.memory_space<smem>>
    %657 = vector.broadcast %656 : f32 to vector<64x128xf32>
    %658 = arith.mulf %657, %639 : vector<64x128xf32>
    %659 = arith.addf %615, %658 : vector<64x128xf32>
    %c5_322 = arith.constant 5 : index
    %c14_323 = arith.constant 14 : index
    %660 = memref.load %arg4[%c5_322, %c14_323] : memref<8x16xf32, #tpu.memory_space<smem>>
    %661 = vector.broadcast %660 : f32 to vector<64x128xf32>
    %662 = arith.mulf %661, %639 : vector<64x128xf32>
    %663 = arith.addf %619, %662 : vector<64x128xf32>
    %c6_324 = arith.constant 6 : index
    %c14_325 = arith.constant 14 : index
    %664 = memref.load %arg4[%c6_324, %c14_325] : memref<8x16xf32, #tpu.memory_space<smem>>
    %665 = vector.broadcast %664 : f32 to vector<64x128xf32>
    %666 = arith.mulf %665, %639 : vector<64x128xf32>
    %667 = arith.addf %623, %666 : vector<64x128xf32>
    %c7_326 = arith.constant 7 : index
    %c14_327 = arith.constant 14 : index
    %668 = memref.load %arg4[%c7_326, %c14_327] : memref<8x16xf32, #tpu.memory_space<smem>>
    %669 = vector.broadcast %668 : f32 to vector<64x128xf32>
    %670 = arith.mulf %669, %639 : vector<64x128xf32>
    %671 = arith.addf %627, %670 : vector<64x128xf32>
    %c15 = arith.constant 15 : index
    %672 = memref.load %arg3[%c15] : memref<16xf32, #tpu.memory_space<smem>>
    %c15_328 = arith.constant 15 : index
    %c0_329 = arith.constant 0 : index
    %673 = memref.load %arg2[%c15_328, %c0_329] : memref<16x2xf32, #tpu.memory_space<smem>>
    %674 = vector.broadcast %673 : f32 to vector<64x128xf32>
    %675 = arith.mulf %674, %1 : vector<64x128xf32>
    %676 = vector.broadcast %672 : f32 to vector<64x128xf32>
    %677 = arith.addf %676, %675 : vector<64x128xf32>
    %c15_330 = arith.constant 15 : index
    %c1_331 = arith.constant 1 : index
    %678 = memref.load %arg2[%c15_330, %c1_331] : memref<16x2xf32, #tpu.memory_space<smem>>
    %679 = vector.broadcast %678 : f32 to vector<64x128xf32>
    %680 = arith.mulf %679, %3 : vector<64x128xf32>
    %681 = arith.addf %677, %680 : vector<64x128xf32>
    %cst_332 = arith.constant 0.000000e+00 : f32
    %682 = vector.broadcast %cst_332 : f32 to vector<64x128xf32>
    %683 = arith.maximumf %681, %682 : vector<64x128xf32>
    %c0_333 = arith.constant 0 : index
    %c15_334 = arith.constant 15 : index
    %684 = memref.load %arg4[%c0_333, %c15_334] : memref<8x16xf32, #tpu.memory_space<smem>>
    %685 = vector.broadcast %684 : f32 to vector<64x128xf32>
    %686 = arith.mulf %685, %683 : vector<64x128xf32>
    %687 = arith.addf %643, %686 : vector<64x128xf32>
    %c1_335 = arith.constant 1 : index
    %c15_336 = arith.constant 15 : index
    %688 = memref.load %arg4[%c1_335, %c15_336] : memref<8x16xf32, #tpu.memory_space<smem>>
    %689 = vector.broadcast %688 : f32 to vector<64x128xf32>
    %690 = arith.mulf %689, %683 : vector<64x128xf32>
    %691 = arith.addf %647, %690 : vector<64x128xf32>
    %c2_337 = arith.constant 2 : index
    %c15_338 = arith.constant 15 : index
    %692 = memref.load %arg4[%c2_337, %c15_338] : memref<8x16xf32, #tpu.memory_space<smem>>
    %693 = vector.broadcast %692 : f32 to vector<64x128xf32>
    %694 = arith.mulf %693, %683 : vector<64x128xf32>
    %695 = arith.addf %651, %694 : vector<64x128xf32>
    %c3_339 = arith.constant 3 : index
    %c15_340 = arith.constant 15 : index
    %696 = memref.load %arg4[%c3_339, %c15_340] : memref<8x16xf32, #tpu.memory_space<smem>>
    %697 = vector.broadcast %696 : f32 to vector<64x128xf32>
    %698 = arith.mulf %697, %683 : vector<64x128xf32>
    %699 = arith.addf %655, %698 : vector<64x128xf32>
    %c4_341 = arith.constant 4 : index
    %c15_342 = arith.constant 15 : index
    %700 = memref.load %arg4[%c4_341, %c15_342] : memref<8x16xf32, #tpu.memory_space<smem>>
    %701 = vector.broadcast %700 : f32 to vector<64x128xf32>
    %702 = arith.mulf %701, %683 : vector<64x128xf32>
    %703 = arith.addf %659, %702 : vector<64x128xf32>
    %c5_343 = arith.constant 5 : index
    %c15_344 = arith.constant 15 : index
    %704 = memref.load %arg4[%c5_343, %c15_344] : memref<8x16xf32, #tpu.memory_space<smem>>
    %705 = vector.broadcast %704 : f32 to vector<64x128xf32>
    %706 = arith.mulf %705, %683 : vector<64x128xf32>
    %707 = arith.addf %663, %706 : vector<64x128xf32>
    %c6_345 = arith.constant 6 : index
    %c15_346 = arith.constant 15 : index
    %708 = memref.load %arg4[%c6_345, %c15_346] : memref<8x16xf32, #tpu.memory_space<smem>>
    %709 = vector.broadcast %708 : f32 to vector<64x128xf32>
    %710 = arith.mulf %709, %683 : vector<64x128xf32>
    %711 = arith.addf %667, %710 : vector<64x128xf32>
    %c7_347 = arith.constant 7 : index
    %c15_348 = arith.constant 15 : index
    %712 = memref.load %arg4[%c7_347, %c15_348] : memref<8x16xf32, #tpu.memory_space<smem>>
    %713 = vector.broadcast %712 : f32 to vector<64x128xf32>
    %714 = arith.mulf %713, %683 : vector<64x128xf32>
    %715 = arith.addf %671, %714 : vector<64x128xf32>
    %c0_349 = arith.constant 0 : index
    %716 = memref.load %arg5[%c0_349] : memref<8xf32, #tpu.memory_space<smem>>
    %717 = vector.broadcast %716 : f32 to vector<64x128xf32>
    %718 = arith.addf %687, %717 : vector<64x128xf32>
    %c0_350 = arith.constant 0 : index
    %c0_351 = arith.constant 0 : index
    %c0_352 = arith.constant 0 : index
    %719 = vector.load %arg6[%c0_350, %c0_351, %c0_352] : memref<8x64x128xf32, #tpu.memory_space<vmem>>, vector<1x64x128xf32>
    %720 = vector.shape_cast %719 : vector<1x64x128xf32> to vector<64x128xf32>
    %721 = vector.shape_cast %718 : vector<64x128xf32> to vector<1x64x128xf32>
    tpu.vector_store %arg6[%c0_350, %c0_351, %c0_352], %721 {strides = array<i32>} : memref<8x64x128xf32, #tpu.memory_space<vmem>>, vector<1x64x128xf32>,
    %c1_353 = arith.constant 1 : index
    %722 = memref.load %arg5[%c1_353] : memref<8xf32, #tpu.memory_space<smem>>
    %723 = vector.broadcast %722 : f32 to vector<64x128xf32>
    %724 = arith.addf %691, %723 : vector<64x128xf32>
    %c1_354 = arith.constant 1 : index
    %c0_355 = arith.constant 0 : index
    %c0_356 = arith.constant 0 : index
    %725 = vector.load %arg6[%c1_354, %c0_355, %c0_356] : memref<8x64x128xf32, #tpu.memory_space<vmem>>, vector<1x64x128xf32>
    %726 = vector.shape_cast %725 : vector<1x64x128xf32> to vector<64x128xf32>
    %727 = vector.shape_cast %724 : vector<64x128xf32> to vector<1x64x128xf32>
    tpu.vector_store %arg6[%c1_354, %c0_355, %c0_356], %727 {strides = array<i32>} : memref<8x64x128xf32, #tpu.memory_space<vmem>>, vector<1x64x128xf32>,
    %c2_357 = arith.constant 2 : index
    %728 = memref.load %arg5[%c2_357] : memref<8xf32, #tpu.memory_space<smem>>
    %729 = vector.broadcast %728 : f32 to vector<64x128xf32>
    %730 = arith.addf %695, %729 : vector<64x128xf32>
    %c2_358 = arith.constant 2 : index
    %c0_359 = arith.constant 0 : index
    %c0_360 = arith.constant 0 : index
    %731 = vector.load %arg6[%c2_358, %c0_359, %c0_360] : memref<8x64x128xf32, #tpu.memory_space<vmem>>, vector<1x64x128xf32>
    %732 = vector.shape_cast %731 : vector<1x64x128xf32> to vector<64x128xf32>
    %733 = vector.shape_cast %730 : vector<64x128xf32> to vector<1x64x128xf32>
    tpu.vector_store %arg6[%c2_358, %c0_359, %c0_360], %733 {strides = array<i32>} : memref<8x64x128xf32, #tpu.memory_space<vmem>>, vector<1x64x128xf32>,
    %c3_361 = arith.constant 3 : index
    %734 = memref.load %arg5[%c3_361] : memref<8xf32, #tpu.memory_space<smem>>
    %735 = vector.broadcast %734 : f32 to vector<64x128xf32>
    %736 = arith.addf %699, %735 : vector<64x128xf32>
    %c3_362 = arith.constant 3 : index
    %c0_363 = arith.constant 0 : index
    %c0_364 = arith.constant 0 : index
    %737 = vector.load %arg6[%c3_362, %c0_363, %c0_364] : memref<8x64x128xf32, #tpu.memory_space<vmem>>, vector<1x64x128xf32>
    %738 = vector.shape_cast %737 : vector<1x64x128xf32> to vector<64x128xf32>
    %739 = vector.shape_cast %736 : vector<64x128xf32> to vector<1x64x128xf32>
    tpu.vector_store %arg6[%c3_362, %c0_363, %c0_364], %739 {strides = array<i32>} : memref<8x64x128xf32, #tpu.memory_space<vmem>>, vector<1x64x128xf32>,
    %c4_365 = arith.constant 4 : index
    %740 = memref.load %arg5[%c4_365] : memref<8xf32, #tpu.memory_space<smem>>
    %741 = vector.broadcast %740 : f32 to vector<64x128xf32>
    %742 = arith.addf %703, %741 : vector<64x128xf32>
    %c4_366 = arith.constant 4 : index
    %c0_367 = arith.constant 0 : index
    %c0_368 = arith.constant 0 : index
    %743 = vector.load %arg6[%c4_366, %c0_367, %c0_368] : memref<8x64x128xf32, #tpu.memory_space<vmem>>, vector<1x64x128xf32>
    %744 = vector.shape_cast %743 : vector<1x64x128xf32> to vector<64x128xf32>
    %745 = vector.shape_cast %742 : vector<64x128xf32> to vector<1x64x128xf32>
    tpu.vector_store %arg6[%c4_366, %c0_367, %c0_368], %745 {strides = array<i32>} : memref<8x64x128xf32, #tpu.memory_space<vmem>>, vector<1x64x128xf32>,
    %c5_369 = arith.constant 5 : index
    %746 = memref.load %arg5[%c5_369] : memref<8xf32, #tpu.memory_space<smem>>
    %747 = vector.broadcast %746 : f32 to vector<64x128xf32>
    %748 = arith.addf %707, %747 : vector<64x128xf32>
    %c5_370 = arith.constant 5 : index
    %c0_371 = arith.constant 0 : index
    %c0_372 = arith.constant 0 : index
    %749 = vector.load %arg6[%c5_370, %c0_371, %c0_372] : memref<8x64x128xf32, #tpu.memory_space<vmem>>, vector<1x64x128xf32>
    %750 = vector.shape_cast %749 : vector<1x64x128xf32> to vector<64x128xf32>
    %751 = vector.shape_cast %748 : vector<64x128xf32> to vector<1x64x128xf32>
    tpu.vector_store %arg6[%c5_370, %c0_371, %c0_372], %751 {strides = array<i32>} : memref<8x64x128xf32, #tpu.memory_space<vmem>>, vector<1x64x128xf32>,
    %c6_373 = arith.constant 6 : index
    %752 = memref.load %arg5[%c6_373] : memref<8xf32, #tpu.memory_space<smem>>
    %753 = vector.broadcast %752 : f32 to vector<64x128xf32>
    %754 = arith.addf %711, %753 : vector<64x128xf32>
    %c6_374 = arith.constant 6 : index
    %c0_375 = arith.constant 0 : index
    %c0_376 = arith.constant 0 : index
    %755 = vector.load %arg6[%c6_374, %c0_375, %c0_376] : memref<8x64x128xf32, #tpu.memory_space<vmem>>, vector<1x64x128xf32>
    %756 = vector.shape_cast %755 : vector<1x64x128xf32> to vector<64x128xf32>
    %757 = vector.shape_cast %754 : vector<64x128xf32> to vector<1x64x128xf32>
    tpu.vector_store %arg6[%c6_374, %c0_375, %c0_376], %757 {strides = array<i32>} : memref<8x64x128xf32, #tpu.memory_space<vmem>>, vector<1x64x128xf32>,
    %c7_377 = arith.constant 7 : index
    %758 = memref.load %arg5[%c7_377] : memref<8xf32, #tpu.memory_space<smem>>
    %759 = vector.broadcast %758 : f32 to vector<64x128xf32>
    %760 = arith.addf %715, %759 : vector<64x128xf32>
    %c7_378 = arith.constant 7 : index
    %c0_379 = arith.constant 0 : index
    %c0_380 = arith.constant 0 : index
    %761 = vector.load %arg6[%c7_378, %c0_379, %c0_380] : memref<8x64x128xf32, #tpu.memory_space<vmem>>, vector<1x64x128xf32>
    %762 = vector.shape_cast %761 : vector<1x64x128xf32> to vector<64x128xf32>
    %763 = vector.shape_cast %760 : vector<64x128xf32> to vector<1x64x128xf32>
    tpu.vector_store %arg6[%c7_378, %c0_379, %c0_380], %763 {strides = array<i32>} : memref<8x64x128xf32, #tpu.memory_space<vmem>>, vector<1x64x128xf32>,
    return
  }
  func.func @transform_0(%arg0: i32) -> (i32, i32, i32) {
    %c0_i32 = arith.constant 0 : i32
    %c0_i32_0 = arith.constant 0 : i32
    %c0_i32_1 = arith.constant 0 : i32
    return %c0_i32, %arg0, %c0_i32_0 : i32, i32, i32
  }
  func.func @transform_1(%arg0: i32) -> (i32, i32) {
    %c0_i32 = arith.constant 0 : i32
    %c0_i32_0 = arith.constant 0 : i32
    %c0_i32_1 = arith.constant 0 : i32
    return %c0_i32, %c0_i32_0 : i32, i32
  }
  func.func @transform_2(%arg0: i32) -> i32 {
    %c0_i32 = arith.constant 0 : i32
    %c0_i32_0 = arith.constant 0 : i32
    return %c0_i32 : i32
  }
  func.func @transform_3(%arg0: i32) -> (i32, i32) {
    %c0_i32 = arith.constant 0 : i32
    %c0_i32_0 = arith.constant 0 : i32
    %c0_i32_1 = arith.constant 0 : i32
    return %c0_i32, %c0_i32_0 : i32, i32
  }
  func.func @transform_4(%arg0: i32) -> i32 {
    %c0_i32 = arith.constant 0 : i32
    %c0_i32_0 = arith.constant 0 : i32
    return %c0_i32 : i32
  }
  func.func @transform_5(%arg0: i32) -> (i32, i32, i32) {
    %c0_i32 = arith.constant 0 : i32
    %c0_i32_0 = arith.constant 0 : i32
    %c0_i32_1 = arith.constant 0 : i32
    return %c0_i32, %arg0, %c0_i32_0 : i32, i32, i32
  }
}

</mosaic_0001>

<bundles_post_ra>
// kernel: geometry_prior.1
= control target key start
LH: loop header
LB: loop body
LE: loop exit
PB: predicated region body
PF: predicated region fallthrough
CT: control target
= control target key end

     0   :  { %10 = vsyncpa [#allocation3], 0  ;;  %s7625_s0 = inlined_call_operand.hbm [shape: f32[2,64,128], index: 0, kind: input, shape index: {}]   ;;  %s7626_s1 = inlined_call_operand.vmem [shape: f32[16,2], index: 1, kind: input, shape index: {}]   ;;  %s7627_s2 = inlined_call_operand.vmem [shape: f32[16], index: 2, kind: input, shape index: {}]   ;;  %s7628_s3 = inlined_call_operand.vmem [shape: f32[8,16], index: 3, kind: input, shape index: {}]   ;;  %s7629_s4 = inlined_call_operand.vmem [shape: f32[8], index: 4, kind: input, shape index: {}]   ;;  %s7630_s5 = inlined_call_operand.hbm [shape: f32[8,64,128], index: 5, kind: output, shape index: {}]  }
   0x1   :  { %11 = vsyncpa [#allocation5], 0 }
   0x2   :  { %12 = vsyncpa [#allocation8], 0 }
   0x3   :  { %13 = vsyncpa [#allocation11], 0  ;;  %s45_s20 = sshll.u32 %s7627_s2, 4  ;;  %s46_s20 = int_to_ptr.vmem [resolvable:$true] %s45_s20 }
   0x4   :  { %14 = vsyncpa [#allocation4], 0  ;;  %s3501_s21 = scalar_lea.vmem %s46_s20, 16  ;;  %p3506_p1 = scmp.lt.s32.totalorder %s46_s20, %s46_s20 }
   0x5   :  { %p3502_p0 = scmp.ne.s32.totalorder %s46_s20, %s3501_s21  ;;  %p3507_p2 = scmp.lt.s32.totalorder %s3501_s21, %s3501_s21 }
   0x7   :  { %p3508_p3 = por %p3507_p2, %p3506_p1 }
   0x9   :  { %p3509_p4 = pnand %p3508_p3, %p3502_p0 }
   0xb   :  { %3512 = shalt.err (!%p3509_p4)
}
   0xc   :  { %s3603_s22 = smov [#allocation7]   ;;  %s3604_s23 = smov [#allocation2]  }
   0xd   :  { %48 = dma.vmem_to_smem %s46_s20, 16, %s3603_s22, [#allocation8]  }
   0xe   :  { %s20_s24 = sshll.u32 %s3604_s23, 4  ;;  %s3513_s27 = scalar_lea.hbm %s7625_s0, 2048  ;;  %s21_s24 = int_to_ptr.vmem [resolvable:$true] %s20_s24 }
   0xf   :  { %p3514_p5 = scmp.ne.s32.totalorder %s7625_s0, %s3513_s27  ;;  %p3517_p6 = scmp.lt.u32.totalorder %s3513_s27, %s7625_s0 }
  0x11   :  { %p3519_p7 = pnand %p3517_p6, %p3514_p5 }
  0x13   :  { %3522 = shalt.err (!%p3519_p7)
}
  0x14   :  { %s3523_s6 = scalar_lea.vmem %s21_s24, 2048  ;;  %p3528_p9 = scmp.lt.s32.totalorder %s21_s24, %s21_s24 }
  0x15   :  { %p3524_p8 = scmp.ne.s32.totalorder %s21_s24, %s3523_s6  ;;  %p3529_p10 = scmp.lt.s32.totalorder %s3523_s6, %s3523_s6 }
  0x17   :  { %p3530_p11 = por %p3529_p10, %p3528_p9 }
  0x19   :  { %p3531_p12 = pnand %p3530_p11, %p3524_p8 }
  0x1b   :  { %3534 = shalt.err (!%p3531_p12)
}
  0x1c   :  { %s3605_s7 = smov 128   ;;  %s3606_s8 = smov 8  }
  0x1d   :  { %26 = dma.hbm_to_vmem [thread:$0]  %s7625_s0, 2048, %s21_s24, [#allocation3], %s3605_s7, %s3605_s7, %s3606_s8  }
  0x1e   :  { %s32_s13 = sshll.u32 %s7626_s1, 4  ;;  %s55_s16 = sshll.u32 %s7628_s3, 4  ;;  %s33_s13 = int_to_ptr.vmem [resolvable:$true] %s32_s13  ;;  %s56_s16 = int_to_ptr.vmem [resolvable:$true] %s55_s16 }
  0x1f   :  { %s3535_s17 = scalar_lea.vmem %s33_s13, 256  ;;  %p3540_p0 = scmp.lt.s32.totalorder %s33_s13, %s33_s13 }
  0x20   :  { %p3536_p13 = scmp.ne.s32.totalorder %s33_s13, %s3535_s17  ;;  %p3541_p1 = scmp.lt.s32.totalorder %s3535_s17, %s3535_s17 }
  0x22   :  { %p3542_p2 = por %p3541_p1, %p3540_p0 }
  0x24   :  { %p3543_p3 = pnand %p3542_p2, %p3536_p13 }
  0x26   :  { %3546 = shalt.err (!%p3543_p3)
}
  0x27   :  { %s3607_s18 = smov [#allocation6]   ;;  %s3547_s0 = scalar_lea.vmem %s56_s16, 128 }
  0x28   :  { %38 = dma.vmem_to_smem %s33_s13, 256, %s3607_s18, [#allocation5], %s3605_s7, %s3605_s7, %s3606_s8  }
  0x29   :  { %p3548_p4 = scmp.ne.s32.totalorder %s56_s16, %s3547_s0  ;;  %p3552_p5 = scmp.lt.s32.totalorder %s56_s16, %s56_s16 }
  0x2a   :  { %p3553_p6 = scmp.lt.s32.totalorder %s3547_s0, %s3547_s0 }
  0x2c   :  { %p3554_p7 = por %p3553_p6, %p3552_p5 }
  0x2e   :  { %p3555_p8 = pnand %p3554_p7, %p3548_p4 }
  0x30   :  { %3558 = shalt.err (!%p3555_p8)
}
  0x31   :  { %s3608_s1 = smov [#allocation9]   ;;  %s65_s20 = sshll.u32 %s7629_s4, 4  ;;  %s66_s20 = int_to_ptr.vmem [resolvable:$true] %s65_s20 }
  0x32   :  { %58 = dma.vmem_to_smem %s56_s16, 128, %s3608_s1, [#allocation8]  }
  0x33   :  { %s3559_s21 = scalar_lea.vmem %s66_s20, 16  ;;  %p3564_p10 = scmp.lt.s32.totalorder %s66_s20, %s66_s20 }
  0x34   :  { %p3560_p9 = scmp.ne.s32.totalorder %s66_s20, %s3559_s21  ;;  %p3565_p11 = scmp.lt.s32.totalorder %s3559_s21, %s3559_s21 }
  0x36   :  { %p3566_p12 = por %p3565_p11, %p3564_p10 }
  0x38   :  { %p3567_p13 = pnand %p3566_p12, %p3560_p9 }
  0x3a   :  { %3570 = shalt.err (!%p3567_p13)
}
  0x3b   :  { %s3609_s22 = smov [#allocation10]  }
  0x3c   :  { %68 = dma.vmem_to_smem %s66_s20, 16, %s3609_s22, [#allocation11]  }
  0x3d   :  { %3593 = dma.done.wait [#allocation3], 2048  }
  0x3e   :  { %3594 = vsyncadd [#allocation3], 4294965248 }
  0x3f   :  { %3595 = dma.done.wait [#allocation5], 256  }
  0x40   :  { %3596 = vsyncadd [#allocation5], 4294967040 }
  0x41   :  { %3597 = dma.done.wait [#allocation8], 144  }
  0x42   :  { %3598 = vsyncadd [#allocation8], 4294967152 }
  0x43   :  { %3599 = dma.done.wait [#allocation11], 16  }
  0x44   :  { %3600 = vsyncadd [#allocation11], 4294967280 }
  0x45   :  { %84 = sfence }
  0x46   :  { %s102_s4 = sld [smem:[#allocation7]]  ;;  %s3313_s24 = sld [smem:[#allocation6 + $0x1]]  ;;  %v3671_v0 = vld [vmem:[#allocation2] sm:$0xff]  ;;  %v3675_v1 = vld [vmem:[#allocation2 + $0x8] sm:$0xff] }
  0x47   :  { %s103_s23 = sld [smem:[#allocation6]]  ;;  %s3321_s26 = sld [smem:[#allocation7 + $0x1]]  ;;  %v3677_v2 = vld [vmem:[#allocation2 + $0x40] sm:$0xff]  ;;  %v3683_v3 = vld [vmem:[#allocation2 + $0x48] sm:$0xff] }
  0x48   :  { %s148_s25 = sld [smem:[#allocation9]]  ;;  %s3323_s28 = sld [smem:[#allocation6 + $0x81]] }
  0x49   :  { %s3322_s27 = sld [smem:[#allocation6 + $0x80]]  ;;  %s3324_s2 = sld [smem:[#allocation9 + $0x1]] }
  0x4a   :  { %s3673_s29 = sld [smem:[#allocation7 + $0x2]]  ;;  %s3333_s30 = sld [smem:[#allocation6 + $0x100]] }
  0x4b   :  { %s3679_s6 = sld [smem:[#allocation6 + $0x101]]  ;;  %s3681_s9 = sld [smem:[#allocation9 + $0x2]] }
  0x4c   :  { %v3687_v5 = vstv %s102_s4  ;;  %s3689_s10 = sld [smem:[#allocation7 + $0x3]]  ;;  %s3691_s11 = sld [smem:[#allocation6 + $0x180]]  ;;  %v3695_v7 = vstv %s3313_s24 }
  0x4d   :  { %v3685_v4 = vstv %s103_s23  ;;  %8051 = vst [vmem:[#allocation19_spill] sm:$0xff] %v3687_v5  ;;  %8052 = vst [vmem:[#allocation20_spill] sm:$0xff] %v3695_v7  ;;  %s3699_s12 = sld [smem:[#allocation6 + $0x181]]  ;;  %s3701_s13 = sld [smem:[#allocation9 + $0x3]]  ;;  %v124_v10 = vmul.f32 %v3695_v7, %v3677_v2  ;;  %v3709_v12 = vstv %s3321_s26  ;;  %v3717_v13 = vmul.f32 %v3695_v7, %v3683_v3 }
  0x4e   :  { %8050 = vst [vmem:[#allocation18_spill] sm:$0xff] %v3685_v4  ;;  %v105_v6 = vmul.f32 %v3685_v4, %v3671_v0  ;;  %v3697_v8 = vstv %s148_s25  ;;  %v106_v9 = vmul.f32 %v3685_v4, %v3675_v1  ;;  %8055 = vst [vmem:[#allocation23_spill] sm:$0xff] %v3709_v12  ;;  %s3711_s14 = sld [smem:[#allocation7 + $0x4]]  ;;  %s3713_s15 = sld [smem:[#allocation6 + $0x200]]  ;;  %v3722_v16 = vstv %s3323_s28 }
  0x4f   :  { %8053 = vst [vmem:[#allocation21_spill] sm:$0xff] %v3697_v8  ;;  %v3707_v11 = vstv %s3322_s27  ;;  %8056 = vst [vmem:[#allocation24_spill] sm:$0xff] %v3722_v16  ;;  %v3724_v17 = vstv %s3324_s2  ;;  %s3726_s16 = sld [smem:[#allocation6 + $0x201]]  ;;  %s3728_s17 = sld [smem:[#allocation9 + $0x4]]  ;;  %v314_v18 = vmul.f32 %v3722_v16, %v3677_v2 }
  0x50   :  { %8054 = vst [vmem:[#allocation22_spill] sm:$0xff] %v3707_v11  ;;  %v114_v14 = vadd.f32 %v3687_v5, %v105_v6  ;;  %v295_v15 = vmul.f32 %v3707_v11, %v3671_v0  ;;  %v3732_v19 = vstv %s3333_s30  ;;  %v3735_v20 = vstv %s3673_s29  ;;  %s3737_s18 = sld [smem:[#allocation7 + $0x5]]  ;;  %s3739_s0 = sld [smem:[#allocation6 + $0x280]] }
  0x51   :  { %8057 = vst [vmem:[#allocation25_spill] sm:$0xff] %v3732_v19  ;;  %v3742_v21 = vadd.f32 %v3687_v5, %v106_v9  ;;  %v485_v24 = vmul.f32 %v3732_v19, %v3671_v0  ;;  %v3748_v25 = vstv %s3679_s6  ;;  %s3750_s1 = sld [smem:[#allocation6 + $0x281]]  ;;  %s3752_s3 = sld [smem:[#allocation9 + $0x5]]  ;;  %v3757_v27 = vstv %s3681_s9 }
  0x52   :  { %v132_v22 = vadd.f32 %v124_v10, %v114_v14  ;;  %v304_v23 = vadd.f32 %v3709_v12, %v295_v15  ;;  %8058 = vst [vmem:[#allocation26_spill] sm:$0xff] %v3748_v25  ;;  %v504_v26 = vmul.f32 %v3748_v25, %v3677_v2  ;;  %v3760_v28 = vstv %s3691_s11  ;;  %s3765_s19 = sld [smem:[#allocation7 + $0x6]]  ;;  %s3772_s20 = sld [smem:[#allocation6 + $0x300]] }
  0x53   :  { %8059 = vst [vmem:[#allocation27_spill] sm:$0xff] %v3760_v28  ;;  %v3763_v29 = vstv %s3689_s10  ;;  %v494_v32 = vadd.f32 %v3735_v20, %v485_v24  ;;  %v675_v33 = vmul.f32 %v3760_v28, %v3671_v0  ;;  %s3774_s21 = sld [smem:[#allocation6 + $0x301]]  ;;  %v3777_v34 = vstv %s3699_s12  ;;  %s3788_s22 = sld [smem:[#allocation9 + $0x6]] }
  0x54   :  { %v3767_v30 = vmax.f32 %v132_v22, 0.0  ;;  %v322_v31 = vadd.f32 %v314_v18, %v304_v23  ;;  %8061 = vst [vmem:[#allocation29_spill] sm:$0xff] %v3777_v34  ;;  %v3780_v35 = vstv %s3701_s13  ;;  %v3783_v36 = vstv %s3713_s15  ;;  %s3795_s4 = sld [smem:[#allocation7 + $0x7]]  ;;  %s3797_s23 = sld [smem:[#allocation6 + $0x380]] }
  0x55   :  { %v3786_v37 = vstv %s3711_s14  ;;  %v512_v40 = vadd.f32 %v504_v26, %v494_v32  ;;  %v684_v41 = vadd.f32 %v3763_v29, %v675_v33  ;;  %v694_v42 = vmul.f32 %v3777_v34, %v3677_v2  ;;  %s3809_s24 = sld [smem:[#allocation6 + $0x381]]  ;;  %s3820_s25 = sld [smem:[#allocation9 + $0x7]] }
  0x56   :  { %8060 = vst [vmem:[#allocation28_spill] sm:$0xff] %v3767_v30  ;;  %v150_v38 = vmul.f32 %v3697_v8, %v3767_v30  ;;  %v3792_v39 = vmax.f32 %v322_v31, 0.0  ;;  %v865_v43 = vmul.f32 %v3783_v36, %v3671_v0  ;;  %v3804_v44 = vstv %s3726_s16  ;;  %s3822_s26 = sld [smem:[#allocation6 + $0x400]]  ;;  %s3840_s28 = sld [smem:[#allocation6 + $0x401]] }
  0x57   :  { %8063 = vst [vmem:[#allocation31_spill] sm:$0xff] %v3804_v44  ;;  %v3807_v45 = vstv %s3728_s17  ;;  %v3813_v47 = vmax.f32 %v512_v40, 0.0  ;;  %v884_v48 = vmul.f32 %v3804_v44, %v3677_v2  ;;  %v3818_v49 = vstv %s3739_s0  ;;  %s3838_s27 = sld [smem:[#allocation7 + $0x8]]  ;;  %s3858_s29 = sld [smem:[#allocation7 + $0x9]] }
  0x58   :  { %8062 = vst [vmem:[#allocation30_spill] sm:$0xff] %v3792_v39  ;;  %8064 = vst [vmem:[#allocation32_spill] sm:$0xff] %v3807_v45  ;;  %v340_v46 = vmul.f32 %v3724_v17, %v3792_v39  ;;  %v702_v50 = vadd.f32 %v694_v42, %v684_v41  ;;  %v874_v51 = vadd.f32 %v3786_v37, %v865_v43  ;;  %v3828_v53 = vstv %s3737_s18  ;;  %s3847_s2 = sld [smem:[#allocation9 + $0x8]]  ;;  %s3868_s6 = sld [smem:[#allocation6 + $0x481]] }
  0x59   :  { %8065 = vst [vmem:[#allocation33_spill] sm:$0xff] %v3813_v47  ;;  %8066 = vst [vmem:[#allocation34_spill] sm:$0xff] %v3818_v49  ;;  %v1055_v52 = vmul.f32 %v3818_v49, %v3671_v0  ;;  %v530_v55 = vmul.f32 %v3757_v27, %v3813_v47  ;;  %v3833_v56 = vstv %s3750_s1  ;;  %v3836_v57 = vstv %s3752_s3  ;;  %s3860_s30 = sld [smem:[#allocation6 + $0x480]]  ;;  %s3870_s9 = sld [smem:[#allocation9 + $0x9]] }
  0x5a   :  { %8067 = vst [vmem:[#allocation35_spill] sm:$0xff] %v3828_v53  ;;  %v348_v54 = vadd.f32 %v340_v46, %v150_v38  ;;  %8068 = vst [vmem:[#allocation36_spill] sm:$0xff] %v3833_v56  ;;  %v3842_v58 = vmax.f32 %v702_v50, 0.0  ;;  %v892_v59 = vadd.f32 %v884_v48, %v874_v51  ;;  %v1074_v61 = vmul.f32 %v3833_v56, %v3677_v2  ;;  %s3883_s10 = sld [smem:[#allocation6 + $0x500]]  ;;  %s3890_s11 = sld [smem:[#allocation7 + $0xa]] }
  0x5b   :  { %8069 = vst [vmem:[#allocation37_spill] sm:$0xff] %v3836_v57  ;;  %v1064_v60 = vadd.f32 %v3828_v53, %v1055_v52  ;;  %v3850_v63 = vstv %s3772_s20  ;;  %v3853_v6 = vstv %s3765_s19  ;;  %v3856_v9 = vstv %s3774_s21  ;;  %s3903_s12 = sld [smem:[#allocation6 + $0x501]]  ;;  %s3905_s13 = sld [smem:[#allocation9 + $0xa]] }
  0x5c   :  { %8070 = vst [vmem:[#allocation38_spill] sm:$0xff] %v3842_v58  ;;  %v538_v62 = vadd.f32 %v530_v55, %v348_v54  ;;  %8071 = vst [vmem:[#allocation39_spill] sm:$0xff] %v3850_v63  ;;  %v720_v10 = vmul.f32 %v3780_v35, %v3842_v58  ;;  %v3864_v14 = vmax.f32 %v892_v59, 0.0  ;;  %v1245_v18 = vmul.f32 %v3850_v63, %v3671_v0  ;;  %s3911_s14 = sld [smem:[#allocation6 + $0x580]]  ;;  %s3922_s15 = sld [smem:[#allocation7 + $0xb]] }
  0x5d   :  { %v1082_v15 = vadd.f32 %v1074_v61, %v1064_v60  ;;  %v1264_v22 = vmul.f32 %v3856_v9, %v3677_v2  ;;  %v3875_v23 = vstv %s3788_s22  ;;  %v3878_v24 = vstv %s3797_s23  ;;  %s3931_s16 = sld [smem:[#allocation6 + $0x581]]  ;;  %s3933_s17 = sld [smem:[#allocation9 + $0xb]] }
  0x5e   :  { %8072 = vst [vmem:[#allocation40_spill] sm:$0xff] %v3864_v14  ;;  %8073 = vst [vmem:[#allocation41_spill] sm:$0xff] %v3875_v23  ;;  %v3881_v26 = vstv %s3795_s4  ;;  %v728_v31 = vadd.f32 %v720_v10, %v538_v62  ;;  %v910_v32 = vmul.f32 %v3807_v45, %v3864_v14  ;;  %v1254_v38 = vadd.f32 %v3853_v6, %v1245_v18  ;;  %s3942_s18 = sld [smem:[#allocation6 + $0x600]]  ;;  %s3954_s0 = sld [smem:[#allocation7 + $0xc]] }
  0x5f   :  { %8074 = vst [vmem:[#allocation42_spill] sm:$0xff] %v3878_v24  ;;  %8075 = vst [vmem:[#allocation43_spill] sm:$0xff] %v3881_v26  ;;  %v3887_v33 = vmax.f32 %v1082_v15, 0.0  ;;  %v1435_v40 = vmul.f32 %v3878_v24, %v3671_v0  ;;  %v3895_v41 = vstv %s3809_s24  ;;  %v3898_v42 = vstv %s3820_s25  ;;  %s3956_s1 = sld [smem:[#allocation6 + $0x601]]  ;;  %s3965_s3 = sld [smem:[#allocation9 + $0xc]] }
  0x60   :  { %8077 = vst [vmem:[#allocation45_spill] sm:$0xff] %v3895_v41  ;;  %8078 = vst [vmem:[#allocation46_spill] sm:$0xff] %v3898_v42  ;;  %v3901_v43 = vstv %s3822_s26  ;;  %v918_v46 = vadd.f32 %v910_v32, %v728_v31  ;;  %v1272_v50 = vadd.f32 %v1264_v22, %v1254_v38  ;;  %v1454_v51 = vmul.f32 %v3895_v41, %v3677_v2  ;;  %s3967_s19 = sld [smem:[#allocation6 + $0x680]]  ;;  %s3985_s20 = sld [smem:[#allocation7 + $0xd]] }
  0x61   :  { %8076 = vst [vmem:[#allocation44_spill] sm:$0xff] %v3887_v33  ;;  %8079 = vst [vmem:[#allocation47_spill] sm:$0xff] %v3901_v43  ;;  %v1100_v48 = vmul.f32 %v3836_v57, %v3887_v33  ;;  %v1444_v52 = vadd.f32 %v3881_v26, %v1435_v40  ;;  %v1625_v54 = vmul.f32 %v3901_v43, %v3671_v0  ;;  %v3917_v55 = vstv %s3838_s27  ;;  %s3987_s21 = sld [smem:[#allocation6 + $0x681]]  ;;  %s3995_s22 = sld [smem:[#allocation9 + $0xd]] }
  0x62   :  { %8080 = vst [vmem:[#allocation48_spill] sm:$0xff] %v3917_v55  ;;  %v3920_v59 = vstv %s3840_s28  ;;  %v3924_v61 = vmax.f32 %v1272_v50, 0.0  ;;  %v3929_v10 = vstv %s3847_s2  ;;  %v3937_v22 = vstv %s3860_s30  ;;  %s4004_s4 = sld [smem:[#allocation7 + $0xe]]  ;;  %s4006_s23 = sld [smem:[#allocation6 + $0x700]] }
  0x63   :  { %8081 = vst [vmem:[#allocation49_spill] sm:$0xff] %v3920_v59  ;;  %v1108_v60 = vadd.f32 %v1100_v48, %v918_v46  ;;  %v1644_v62 = vmul.f32 %v3920_v59, %v3677_v2  ;;  %8083 = vst [vmem:[#allocation51_spill] sm:$0xff] %v3929_v10  ;;  %v1462_v15 = vadd.f32 %v1454_v51, %v1444_v52  ;;  %v3940_v31 = vstv %s3858_s29  ;;  %s4016_s24 = sld [smem:[#allocation6 + $0x701]]  ;;  %s4018_s25 = sld [smem:[#allocation9 + $0xe]] }
  0x64   :  { %8082 = vst [vmem:[#allocation50_spill] sm:$0xff] %v3924_v61  ;;  %v1634_v18 = vadd.f32 %v3917_v55, %v1625_v54  ;;  %8084 = vst [vmem:[#allocation52_spill] sm:$0xff] %v3937_v22  ;;  %v1290_v32 = vmul.f32 %v3875_v23, %v3924_v61  ;;  %v1815_v38 = vmul.f32 %v3937_v22, %v3671_v0  ;;  %v3949_v40 = vstv %s3868_s6  ;;  %s4026_s26 = sld [smem:[#allocation6 + $0x780]]  ;;  %s4037_s27 = sld [smem:[#allocation7 + $0xf]] }
  0x65   :  { %8085 = vst [vmem:[#allocation53_spill] sm:$0xff] %v3940_v31  ;;  %8086 = vst [vmem:[#allocation54_spill] sm:$0xff] %v3949_v40  ;;  %v3952_v46 = vstv %s3870_s9  ;;  %v3958_v48 = vmax.f32 %v1462_v15, 0.0  ;;  %v1834_v51 = vmul.f32 %v3949_v40, %v3677_v2  ;;  %v3963_v52 = vstv %s3883_s10  ;;  %s4039_s28 = sld [smem:[#allocation6 + $0x781]]  ;;  %s4050_s2 = sld [smem:[#allocation9 + $0xf]] }
  0x66   :  { %8087 = vst [vmem:[#allocation55_spill] sm:$0xff] %v3952_v46  ;;  %v1652_v50 = vadd.f32 %v1644_v62, %v1634_v18  ;;  %8089 = vst [vmem:[#allocation57_spill] sm:$0xff] %v3963_v52  ;;  %v1298_v54 = vadd.f32 %v1290_v32, %v1108_v60  ;;  %v1824_v61 = vadd.f32 %v3940_v31, %v1815_v38  ;;  %v3973_v15 = vstv %s3890_s11  ;;  %s4052_s29 = sld [smem:[#allocation10]]  ;;  %s5124_s6 = sld [smem:[#allocation9 + $0x81]] }
  0x67   :  { %8088 = vst [vmem:[#allocation56_spill] sm:$0xff] %v3958_v48  ;;  %v2005_v33 = vmul.f32 %v3963_v52, %v3671_v0  ;;  %8090 = vst [vmem:[#allocation58_spill] sm:$0xff] %v3973_v15  ;;  %v1480_v62 = vmul.f32 %v3898_v42, %v3958_v48  ;;  %v3980_v14 = vstv %s3903_s12  ;;  %v3983_v58 = vstv %s3905_s13  ;;  %s5111_s30 = sld [smem:[#allocation9 + $0x80]]  ;;  %s5126_s9 = sld [smem:[#allocation9 + $0x82]] }
  0x68   :  { %v3977_v18 = vmax.f32 %v1652_v50, 0.0  ;;  %8092 = vst [vmem:[#allocation60_spill] sm:$0xff] %v3980_v14  ;;  %8093 = vst [vmem:[#allocation61_spill] sm:$0xff] %v3983_v58  ;;  %v1842_v60 = vadd.f32 %v1834_v51, %v1824_v61  ;;  %v2024_v38 = vmul.f32 %v3980_v14, %v3677_v2  ;;  %v3993_v47 = vstv %s3911_s14  ;;  %s5139_s10 = sld [smem:[#allocation9 + $0x83]]  ;;  %s5141_s11 = sld [smem:[#allocation9 + $0x84]] }
  0x69   :  { %v2014_v32 = vadd.f32 %v3973_v15, %v2005_v33  ;;  %8094 = vst [vmem:[#allocation62_spill] sm:$0xff] %v3993_v47  ;;  %v1488_v50 = vadd.f32 %v1480_v62, %v1298_v54  ;;  %v2195_v39 = vmul.f32 %v3993_v47, %v3671_v0  ;;  %v4002_v30 = vstv %s3922_s15  ;;  %s5154_s12 = sld [smem:[#allocation9 + $0x85]]  ;;  %s5167_s13 = sld [smem:[#allocation9 + $0x86]] }
  0x6a   :  { %8091 = vst [vmem:[#allocation59_spill] sm:$0xff] %v3977_v18  ;;  %v1670_v48 = vmul.f32 %v3929_v10, %v3977_v18  ;;  %8095 = vst [vmem:[#allocation63_spill] sm:$0xff] %v4002_v30  ;;  %v4008_v33 = vmax.f32 %v1842_v60, 0.0  ;;  %v4011_v51 = vstv %s3931_s16  ;;  %v4014_v54 = vstv %s3933_s17  ;;  %s5169_s14 = sld [smem:[#allocation9 + $0x87]]  ;;  %s5183_s15 = sld [smem:[#allocation9 + $0x88]] }
  0x6b   :  { %v2032_v61 = vadd.f32 %v2024_v38, %v2014_v32  ;;  %8097 = vst [vmem:[#allocation65_spill] sm:$0xff] %v4011_v51  ;;  %8098 = vst [vmem:[#allocation66_spill] sm:$0xff] %v4014_v54  ;;  %v2204_v18 = vadd.f32 %v4002_v30, %v2195_v39  ;;  %v2214_v5 = vmul.f32 %v4011_v51, %v3677_v2  ;;  %v4024_v60 = vstv %s3942_s18  ;;  %s5193_s16 = sld [smem:[#allocation9 + $0x89]]  ;;  %s5195_s17 = sld [smem:[#allocation9 + $0x8a]] }
  0x6c   :  { %8096 = vst [vmem:[#allocation64_spill] sm:$0xff] %v4008_v33  ;;  %v1678_v62 = vadd.f32 %v1670_v48, %v1488_v50  ;;  %8099 = vst [vmem:[#allocation67_spill] sm:$0xff] %v4024_v60  ;;  %v1860_v32 = vmul.f32 %v3952_v46, %v4008_v33  ;;  %v2385_v7 = vmul.f32 %v4024_v60, %v3671_v0  ;;  %v4035_v4 = vstv %s3954_s0  ;;  %s3435_s18 = sld [smem:[#allocation9 + $0x8b]]  ;;  %s3446_s0 = sld [smem:[#allocation9 + $0x8c]] }
  0x6d   :  { %v4030_v38 = vmax.f32 %v2032_v61, 0.0  ;;  %8101 = vst [vmem:[#allocation69_spill] sm:$0xff] %v4035_v4  ;;  %v2222_v39 = vadd.f32 %v2214_v5, %v2204_v18  ;;  %v4042_v48 = vstv %s3956_s1  ;;  %v4045_v50 = vstv %s3965_s3  ;;  %s3457_s1 = sld [smem:[#allocation9 + $0x8d]]  ;;  %s3468_s3 = sld [smem:[#allocation9 + $0x8e]] }
  0x6e   :  { %8102 = vst [vmem:[#allocation70_spill] sm:$0xff] %v4042_v48  ;;  %8103 = vst [vmem:[#allocation71_spill] sm:$0xff] %v4045_v50  ;;  %v4048_v33 = vstv %s3967_s19  ;;  %v1868_v61 = vadd.f32 %v1860_v32, %v1678_v62  ;;  %v2394_v10 = vadd.f32 %v4035_v4, %v2385_v7  ;;  %v2404_v5 = vmul.f32 %v4042_v48, %v3677_v2  ;;  %s3479_s19 = sld [smem:[#allocation9 + $0x8f]] }
  0x6f   :  { %8100 = vst [vmem:[#allocation68_spill] sm:$0xff] %v4030_v38  ;;  %8104 = vst [vmem:[#allocation72_spill] sm:$0xff] %v4048_v33  ;;  %v2050_v46 = vmul.f32 %v3983_v58, %v4030_v38  ;;  %v4059_v18 = vmax.f32 %v2222_v39, 0.0  ;;  %v2575_v42 = vmul.f32 %v4048_v33, %v3671_v0  ;;  %v4064_v60 = vstv %s3985_s20  ;;  %s5224_s20 = sld [smem:[#allocation10 + $0x1]] }
  0x70   :  { %8106 = vst [vmem:[#allocation74_spill] sm:$0xff] %v4064_v60  ;;  %v4067_v30 = vstv %s3987_s21  ;;  %v2412_v32 = vadd.f32 %v2404_v5, %v2394_v10  ;;  %v4072_v38 = vstv %s3995_s22  ;;  %v4078_v33 = vstv %s4006_s23  ;;  %s5461_s21 = sld [smem:[#allocation9 + $0x100]]  ;;  %s5463_s22 = sld [smem:[#allocation9 + $0x101]] }
  0x71   :  { %8105 = vst [vmem:[#allocation73_spill] sm:$0xff] %v4059_v18  ;;  %8107 = vst [vmem:[#allocation75_spill] sm:$0xff] %v4067_v30  ;;  %v2058_v62 = vadd.f32 %v2050_v46, %v1868_v61  ;;  %v2594_v7 = vmul.f32 %v4067_v30, %v3677_v2  ;;  %v2240_v39 = vmul.f32 %v4014_v54, %v4059_v18  ;;  %v4081_v4 = vstv %s4004_s4  ;;  %s5469_s4 = sld [smem:[#allocation9 + $0x102]]  ;;  %s5477_s23 = sld [smem:[#allocation9 + $0x103]] }
  0x72   :  { %8108 = vst [vmem:[#allocation76_spill] sm:$0xff] %v4072_v38  ;;  %v2584_v58 = vadd.f32 %v4064_v60, %v2575_v42  ;;  %8109 = vst [vmem:[#allocation77_spill] sm:$0xff] %v4078_v33  ;;  %v4083_v46 = vmax.f32 %v2412_v32, 0.0  ;;  %v2765_v10 = vmul.f32 %v4078_v33, %v3671_v0  ;;  %v4088_v61 = vstv %s4016_s24  ;;  %s5479_s24 = sld [smem:[#allocation9 + $0x104]] }
  0x73   :  { %8110 = vst [vmem:[#allocation78_spill] sm:$0xff] %v4081_v4  ;;  %8112 = vst [vmem:[#allocation80_spill] sm:$0xff] %v4088_v61  ;;  %v4091_v5 = vstv %s4018_s25  ;;  %v2248_v30 = vadd.f32 %v2240_v39, %v2058_v62  ;;  %v2784_v42 = vmul.f32 %v4088_v61, %v3677_v2  ;;  %v4096_v54 = vstv %s4026_s26  ;;  %s5489_s25 = sld [smem:[#allocation9 + $0x105]]  ;;  %s5499_s26 = sld [smem:[#allocation9 + $0x106]] }
  0x74   :  { %8111 = vst [vmem:[#allocation79_spill] sm:$0xff] %v4083_v46  ;;  %8113 = vst [vmem:[#allocation81_spill] sm:$0xff] %v4091_v5  ;;  %v2602_v18 = vadd.f32 %v2594_v7, %v2584_v58  ;;  %v2430_v60 = vmul.f32 %v4045_v50, %v4083_v46  ;;  %v2774_v32 = vadd.f32 %v4081_v4, %v2765_v10  ;;  %v4104_v33 = vstv %s4037_s27  ;;  %s5512_s27 = sld [smem:[#allocation9 + $0x107]] }
  0x75   :  { %8114 = vst [vmem:[#allocation82_spill] sm:$0xff] %v4096_v54  ;;  %v2955_v48 = vmul.f32 %v4096_v54, %v3671_v0  ;;  %8115 = vst [vmem:[#allocation83_spill] sm:$0xff] %v4104_v33  ;;  %v4109_v47 = vstv %s4039_s28  ;;  %v4112_v58 = vstv %s4050_s2  ;;  %v4115_v62 = vstv %s4052_s29  ;;  %s5514_s28 = sld [smem:[#allocation9 + $0x108]]  ;;  %s5529_s2 = sld [smem:[#allocation9 + $0x109]] }
  0x76   :  { %v4106_v51 = vmax.f32 %v2602_v18, 0.0  ;;  %v2438_v7 = vadd.f32 %v2430_v60, %v2248_v30  ;;  %v2792_v39 = vadd.f32 %v2784_v42, %v2774_v32  ;;  %v2974_v10 = vmul.f32 %v4109_v47, %v3677_v2  ;;  %s5550_s29 = sld [smem:[#allocation9 + $0x10a]] }
  0x77   :  { %v2964_v61 = vadd.f32 %v4104_v33, %v2955_v48  ;;  %v133_v18 = vadd.f32 %v3717_v13, %v3742_v21  ;;  %v296_v46 = vmul.f32 %v3707_v11, %v3675_v1  ;;  %v315_v50 = vmul.f32 %v3722_v16, %v3683_v3 }
  0x78   :  { %8116 = vst [vmem:[#allocation84_spill] sm:$0xff] %v4106_v51  ;;  %v2620_v0 = vmul.f32 %v4072_v38, %v4106_v51  ;;  %v4128_v54 = vmax.f32 %v2792_v39, 0.0  ;;  %v486_v60 = vmul.f32 %v3732_v19, %v3675_v1  ;;  %v505_v2 = vmul.f32 %v3748_v25, %v3683_v3 }
  0x79   :  { %v2982_v30 = vadd.f32 %v2974_v10, %v2964_v61  ;;  %v4134_v42 = vmax.f32 %v133_v18, 0.0  ;;  %v305_v13 = vadd.f32 %v3709_v12, %v296_v46  ;;  %v676_v21 = vmul.f32 %v3760_v28, %v3675_v1 }
  0x7a   :  { %8117 = vst [vmem:[#allocation85_spill] sm:$0xff] %v4128_v54  ;;  %v2628_v48 = vadd.f32 %v2620_v0, %v2438_v7  ;;  %v2810_v32 = vmul.f32 %v4091_v5, %v4128_v54  ;;  %v495_v61 = vadd.f32 %v3735_v20, %v486_v60  ;;  %v695_v10 = vmul.f32 %v3777_v34, %v3683_v3 }
  0x7b   :  { %8118 = vst [vmem:[#allocation86_spill] sm:$0xff] %v4134_v42  ;;  %v4141_v39 = vmax.f32 %v2982_v30, 0.0  ;;  %v151_v7 = vmul.f32 %v3697_v8, %v4134_v42  ;;  %v323_v0 = vadd.f32 %v315_v50, %v305_v13  ;;  %v685_v18 = vadd.f32 %v3763_v29, %v676_v21 }
  0x7c   :  { %v866_v46 = vmul.f32 %v3783_v36, %v3675_v1  ;;  %v2818_v51 = vadd.f32 %v2810_v32, %v2628_v48  ;;  %v513_v30 = vadd.f32 %v505_v2, %v495_v61  ;;  %v885_v60 = vmul.f32 %v3804_v44, %v3683_v3 }
  0x7d   :  { %8119 = vst [vmem:[#allocation87_spill] sm:$0xff] %v4141_v39  ;;  %v3000_v54 = vmul.f32 %v4112_v58, %v4141_v39  ;;  %v4155_v28 = vmax.f32 %v323_v0, 0.0  ;;  %v703_v34 = vadd.f32 %v695_v10, %v685_v18  ;;  %v1056_v50 = vmul.f32 %v3818_v49, %v3675_v1 }
  0x7e   :  { %v875_v25 = vadd.f32 %v3786_v37, %v866_v46  ;;  %v4160_v21 = vmax.f32 %v513_v30, 0.0  ;;  %v1075_v48 = vmul.f32 %v3833_v56, %v3683_v3  ;;  %v1246_v2 = vmul.f32 %v3850_v63, %v3675_v1 }
  0x7f   :  { %8120 = vst [vmem:[#allocation88_spill] sm:$0xff] %v4155_v28  ;;  %v3008_v13 = vadd.f32 %v3000_v54, %v2818_v51  ;;  %v341_v32 = vmul.f32 %v3724_v17, %v4155_v28  ;;  %v4168_v61 = vmax.f32 %v703_v34, 0.0  ;;  %v1065_v0 = vadd.f32 %v3828_v53, %v1056_v50 }
  0x80   :  { %8121 = vst [vmem:[#allocation89_spill] sm:$0xff] %v4160_v21  ;;  %v893_v10 = vadd.f32 %v885_v60, %v875_v25  ;;  %v531_v51 = vmul.f32 %v3757_v27, %v4160_v21  ;;  %v1255_v54 = vadd.f32 %v3853_v6, %v1246_v2  ;;  %v1265_v46 = vmul.f32 %v3856_v9, %v3683_v3 }
  0x81   :  { %8122 = vst [vmem:[#allocation90_spill] sm:$0xff] %v4168_v61  ;;  %v3144_v18 = vadd.f32 %v4115_v62, %v3008_v13  ;;  %v349_v30 = vadd.f32 %v341_v32, %v151_v7  ;;  %v721_v39 = vmul.f32 %v3780_v35, %v4168_v61  ;;  %v1083_v34 = vadd.f32 %v1075_v48, %v1065_v0 }
  0x82   :  { %v4179_v28 = vmax.f32 %v893_v10, 0.0  ;;  %v1273_v25 = vadd.f32 %v1265_v46, %v1255_v54  ;;  %v1436_v60 = vmul.f32 %v3878_v24, %v3675_v1  ;;  %v1455_v50 = vmul.f32 %v3895_v41, %v3683_v3 }
  0x83   :  { %3152 = vst [vmem:[#allocation12] sm:$0xff] %v3144_v18  ;;  %v1626_v13 = vmul.f32 %v3901_v43, %v3675_v1  ;;  %v539_v2 = vadd.f32 %v531_v51, %v349_v30  ;;  %v4189_v32 = vmax.f32 %v1083_v34, 0.0  ;;  %v1645_v48 = vmul.f32 %v3920_v59, %v3683_v3 }
  0x84   :  { %8123 = vst [vmem:[#allocation91_spill] sm:$0xff] %v4179_v28  ;;  %v911_v7 = vmul.f32 %v3807_v45, %v4179_v28  ;;  %v4193_v10 = vmax.f32 %v1273_v25, 0.0  ;;  %v1445_v0 = vadd.f32 %v3881_v26, %v1436_v60  ;;  %v1816_v54 = vmul.f32 %v3937_v22, %v3675_v1 }
  0x85   :  { %8124 = vst [vmem:[#allocation92_spill] sm:$0xff] %v4189_v32  ;;  %v1635_v18 = vadd.f32 %v3917_v55, %v1626_v13  ;;  %v729_v46 = vadd.f32 %v721_v39, %v539_v2  ;;  %v1101_v51 = vmul.f32 %v3836_v57, %v4189_v32  ;;  %v1835_v30 = vmul.f32 %v3949_v40, %v3683_v3  ;;  %v8126_v2 = vld [vmem:[#allocation62_spill] sm:$0xff] }
  0x86   :  { %8125 = vst [vmem:[#allocation93_spill] sm:$0xff] %v4193_v10  ;;  %v2006_v34 = vmul.f32 %v3963_v52, %v3675_v1  ;;  %v1291_v25 = vmul.f32 %v3875_v23, %v4193_v10  ;;  %v1463_v28 = vadd.f32 %v1455_v50, %v1445_v0  ;;  %v1825_v13 = vadd.f32 %v3940_v31, %v1816_v54  ;;  %v8129_v10 = vld [vmem:[#allocation65_spill] sm:$0xff]  ;;  %v8131_v54 = vld [vmem:[#allocation67_spill] sm:$0xff] }
  0x87   :  { %v1653_v60 = vadd.f32 %v1645_v48, %v1635_v18  ;;  %v919_v61 = vadd.f32 %v911_v7, %v729_v46  ;;  %v2025_v39 = vmul.f32 %v3980_v14, %v3683_v3  ;;  %v2196_v32 = vmul.f32 %v8126_v2, %v3675_v1  ;;  %v8130_v18 = vld [vmem:[#allocation63_spill] sm:$0xff] }
  0x88   :  { %v2015_v21 = vadd.f32 %v3973_v15, %v2006_v34  ;;  %v4213_v42 = vmax.f32 %v1463_v28, 0.0  ;;  %v1843_v52 = vadd.f32 %v1835_v30, %v1825_v13  ;;  %v2215_v50 = vmul.f32 %v8129_v10, %v3683_v3  ;;  %v8132_v34 = vld [vmem:[#allocation46_spill] sm:$0xff]  ;;  %v8133_v2 = vld [vmem:[#allocation51_spill] sm:$0xff] }
  0x89   :  { %v4215_v40 = vmax.f32 %v1653_v60, 0.0  ;;  %v1109_v48 = vadd.f32 %v1101_v51, %v919_v61  ;;  %v2205_v7 = vadd.f32 %v8130_v18, %v2196_v32  ;;  %v2386_v46 = vmul.f32 %v8131_v54, %v3675_v1  ;;  %v8135_v30 = vld [vmem:[#allocation70_spill] sm:$0xff]  ;;  %v8137_v61 = vld [vmem:[#allocation69_spill] sm:$0xff]  ;;  %v8138_v51 = vld [vmem:[#allocation55_spill] sm:$0xff] }
  0x8a   :  { %8127 = vst [vmem:[#allocation94_spill] sm:$0xff] %v4213_v42  ;;  %v2033_v0 = vadd.f32 %v2025_v39, %v2015_v21  ;;  %v1481_v15 = vmul.f32 %v8132_v34, %v4213_v42  ;;  %v4226_v31 = vmax.f32 %v1843_v52, 0.0  ;;  %v2405_v60 = vmul.f32 %v8135_v30, %v3683_v3  ;;  %v8139_v18 = vld [vmem:[#allocation72_spill] sm:$0xff]  ;;  %v8140_v34 = vld [vmem:[#allocation75_spill] sm:$0xff]  ;;  %v8141_v52 = vld [vmem:[#allocation77_spill] sm:$0xff] }
  0x8b   :  { %8128 = vst [vmem:[#allocation95_spill] sm:$0xff] %v4215_v40  ;;  %v1671_v28 = vmul.f32 %v8133_v2, %v4215_v40  ;;  %v1299_v13 = vadd.f32 %v1291_v25, %v1109_v48  ;;  %v2223_v21 = vadd.f32 %v2215_v50, %v2205_v7  ;;  %v2395_v32 = vadd.f32 %v8137_v61, %v2386_v46  ;;  %v8142_v25 = vld [vmem:[#allocation61_spill] sm:$0xff]  ;;  %v4245_v7 = vld [vmem:[#allocation2 + $0x10] sm:$0xff]  ;;  %v8144_v46 = vld [vmem:[#allocation74_spill] sm:$0xff] }
  0x8c   :  { %8134 = vst [vmem:[#allocation96_spill] sm:$0xff] %v4226_v31  ;;  %v4230_v10 = vmax.f32 %v2033_v0, 0.0  ;;  %v1861_v39 = vmul.f32 %v8138_v51, %v4226_v31  ;;  %v2576_v42 = vmul.f32 %v8139_v18, %v3675_v1  ;;  %v2595_v40 = vmul.f32 %v8140_v34, %v3683_v3  ;;  %v8145_v18 = vld [vmem:[#allocation80_spill] sm:$0xff]  ;;  %v8146_v34 = vld [vmem:[#allocation82_spill] sm:$0xff] }
  0x8d   :  { %v2766_v2 = vmul.f32 %v8141_v52, %v3675_v1  ;;  %v1489_v54 = vadd.f32 %v1481_v15, %v1299_v13  ;;  %v4243_v0 = vmax.f32 %v2223_v21, 0.0  ;;  %v2413_v50 = vadd.f32 %v2405_v60, %v2395_v32  ;;  %v4253_v52 = vld [vmem:[#allocation2 + $0x50] sm:$0xff]  ;;  %v8147_v13 = vld [vmem:[#allocation66_spill] sm:$0xff] }
  0x8e   :  { %8136 = vst [vmem:[#allocation97_spill] sm:$0xff] %v4230_v10  ;;  %v2051_v48 = vmul.f32 %v8142_v25, %v4230_v10  ;;  %v2585_v31 = vadd.f32 %v8144_v46, %v2576_v42  ;;  %v2785_v30 = vmul.f32 %v8145_v18, %v3683_v3  ;;  %v2956_v61 = vmul.f32 %v8146_v34, %v3675_v1  ;;  %v8150_v1 = vld [vmem:[#allocation71_spill] sm:$0xff] }
  0x8f   :  { %8143 = vst [vmem:[#allocation98_spill] sm:$0xff] %v4243_v0  ;;  %v2775_v51 = vadd.f32 %v4081_v4, %v2766_v2  ;;  %v1679_v15 = vadd.f32 %v1671_v28, %v1489_v54  ;;  %v2241_v21 = vmul.f32 %v8147_v13, %v4243_v0  ;;  %v4257_v10 = vmax.f32 %v2413_v50, 0.0  ;;  %v8149_v4 = vld [vmem:[#allocation18_spill] sm:$0xff]  ;;  %v8151_v54 = vld [vmem:[#allocation20_spill] sm:$0xff] }
  0x90   :  { %v2975_v60 = vmul.f32 %v4109_v47, %v3683_v3  ;;  %v2603_v42 = vadd.f32 %v2595_v40, %v2585_v31  ;;  %v2965_v2 = vadd.f32 %v4104_v33, %v2956_v61  ;;  %v107_v18 = vmul.f32 %v8149_v4, %v4245_v7  ;;  %v8154_v40 = vld [vmem:[#allocation19_spill] sm:$0xff] }
  0x91   :  { %8148 = vst [vmem:[#allocation66_spill] sm:$0xff] %v4257_v10  ;;  %v2793_v32 = vadd.f32 %v2785_v30, %v2775_v51  ;;  %v1869_v25 = vadd.f32 %v1861_v39, %v1679_v15  ;;  %v2431_v34 = vmul.f32 %v8150_v1, %v4257_v10  ;;  %v126_v28 = vmul.f32 %v8151_v54, %v4253_v52 }
  0x92   :  { %v297_v50 = vmul.f32 %v3707_v11, %v4245_v7  ;;  %v4270_v0 = vmax.f32 %v2603_v42, 0.0  ;;  %v2983_v31 = vadd.f32 %v2975_v60, %v2965_v2  ;;  %v116_v30 = vadd.f32 %v8154_v40, %v107_v18 }
  0x93   :  { %v4272_v3 = vmax.f32 %v2793_v32, 0.0  ;;  %v2059_v61 = vadd.f32 %v2051_v48, %v1869_v25  ;;  %v316_v39 = vmul.f32 %v3722_v16, %v4253_v52  ;;  %v487_v15 = vmul.f32 %v3732_v19, %v4245_v7  ;;  %v8156_v48 = vld [vmem:[#allocation26_spill] sm:$0xff] }
  0x94   :  { %8152 = vst [vmem:[#allocation71_spill] sm:$0xff] %v4270_v0  ;;  %v306_v51 = vadd.f32 %v3709_v12, %v297_v50  ;;  %v2621_v10 = vmul.f32 %v4072_v38, %v4270_v0  ;;  %v4284_v32 = vmax.f32 %v2983_v31, 0.0  ;;  %v134_v60 = vadd.f32 %v126_v28, %v116_v30  ;;  %v8158_v0 = vld [vmem:[#allocation27_spill] sm:$0xff] }
  0x95   :  { %8153 = vst [vmem:[#allocation99_spill] sm:$0xff] %v4272_v3  ;;  %v2811_v42 = vmul.f32 %v4091_v5, %v4272_v3  ;;  %v2249_v2 = vadd.f32 %v2241_v21, %v2059_v61  ;;  %v496_v25 = vadd.f32 %v3735_v20, %v487_v15  ;;  %v506_v50 = vmul.f32 %v8156_v48, %v4253_v52  ;;  %v8159_v3 = vld [vmem:[#allocation29_spill] sm:$0xff] }
  0x96   :  { %8155 = vst [vmem:[#allocation100_spill] sm:$0xff] %v4284_v32  ;;  %v324_v18 = vadd.f32 %v316_v39, %v306_v51  ;;  %v3001_v12 = vmul.f32 %v4112_v58, %v4284_v32  ;;  %v4291_v19 = vmax.f32 %v134_v60, 0.0  ;;  %v677_v38 = vmul.f32 %v8158_v0, %v4245_v7 }
  0x97   :  { %v696_v31 = vmul.f32 %v8159_v3, %v4253_v52  ;;  %v2439_v5 = vadd.f32 %v2431_v34, %v2249_v2  ;;  %v514_v21 = vadd.f32 %v506_v50, %v496_v25  ;;  %v867_v30 = vmul.f32 %v3783_v36, %v4245_v7 }
  0x98   :  { %8157 = vst [vmem:[#allocation101_spill] sm:$0xff] %v4291_v19  ;;  %v4297_v28 = vmax.f32 %v324_v18, 0.0  ;;  %v152_v61 = vmul.f32 %v3697_v8, %v4291_v19  ;;  %v686_v51 = vadd.f32 %v3763_v29, %v677_v38  ;;  %v886_v39 = vmul.f32 %v3804_v44, %v4253_v52 }
  0x99   :  { %v1057_v15 = vmul.f32 %v3818_v49, %v4245_v7  ;;  %v2629_v60 = vadd.f32 %v2621_v10, %v2439_v5  ;;  %v4310_v2 = vmax.f32 %v514_v21, 0.0  ;;  %v876_v18 = vadd.f32 %v3786_v37, %v867_v30 }
  0x9a   :  { %8160 = vst [vmem:[#allocation29_spill] sm:$0xff] %v4297_v28  ;;  %v342_v34 = vmul.f32 %v3724_v17, %v4297_v28  ;;  %v704_v25 = vadd.f32 %v696_v31, %v686_v51  ;;  %v1076_v38 = vmul.f32 %v3833_v56, %v4253_v52  ;;  %v1247_v32 = vmul.f32 %v3850_v63, %v4245_v7 }
  0x9b   :  { %8161 = vst [vmem:[#allocation102_spill] sm:$0xff] %v4310_v2  ;;  %v1066_v50 = vadd.f32 %v3828_v53, %v1057_v15  ;;  %v2819_v19 = vadd.f32 %v2811_v42, %v2629_v60  ;;  %v532_v5 = vmul.f32 %v3757_v27, %v4310_v2  ;;  %v894_v10 = vadd.f32 %v886_v39, %v876_v18  ;;  %v8171_v2 = vld [vmem:[#allocation58_spill] sm:$0xff] }
  0x9c   :  { %v350_v44 = vadd.f32 %v342_v34, %v152_v61  ;;  %v4320_v28 = vmax.f32 %v704_v25, 0.0  ;;  %v1256_v30 = vadd.f32 %v3853_v6, %v1247_v32  ;;  %v1266_v31 = vmul.f32 %v3856_v9, %v4253_v52 }
  0x9d   :  { %v1084_v21 = vadd.f32 %v1076_v38, %v1066_v50  ;;  %v3009_v51 = vadd.f32 %v3001_v12, %v2819_v19  ;;  %v4325_v53 = vmax.f32 %v894_v10, 0.0  ;;  %v1437_v42 = vmul.f32 %v3878_v24, %v4245_v7 }
  0x9e   :  { %8162 = vst [vmem:[#allocation103_spill] sm:$0xff] %v4320_v28  ;;  %v540_v15 = vadd.f32 %v532_v5, %v350_v44  ;;  %v722_v61 = vmul.f32 %v3780_v35, %v4320_v28  ;;  %v1274_v39 = vadd.f32 %v1266_v31, %v1256_v30  ;;  %v1456_v34 = vmul.f32 %v3895_v41, %v4253_v52  ;;  %v8166_v30 = vld [vmem:[#allocation54_spill] sm:$0xff] }
  0x9f   :  { %8163 = vst [vmem:[#allocation104_spill] sm:$0xff] %v4325_v53  ;;  %v4331_v60 = vmax.f32 %v1084_v21, 0.0  ;;  %v3145_v32 = vadd.f32 %v4115_v62, %v3009_v51  ;;  %v912_v12 = vmul.f32 %v3807_v45, %v4325_v53  ;;  %v1446_v19 = vadd.f32 %v3881_v26, %v1437_v42  ;;  %v8167_v42 = vld [vmem:[#allocation57_spill] sm:$0xff] }
  0xa0   :  { %v1627_v44 = vmul.f32 %v3901_v43, %v4245_v7  ;;  %v730_v18 = vadd.f32 %v722_v61, %v540_v15  ;;  %v4343_v50 = vmax.f32 %v1274_v39, 0.0  ;;  %v1646_v38 = vmul.f32 %v3920_v59, %v4253_v52 }
  0xa1   :  { %8164 = vst [vmem:[#allocation105_spill] sm:$0xff] %v4331_v60  ;;  %v1102_v25 = vmul.f32 %v3836_v57, %v4331_v60  ;;  %3153 = vst [vmem:[#allocation12 + $0x8] sm:$0xff] %v3145_v32  ;;  %v1464_v5 = vadd.f32 %v1456_v34, %v1446_v19  ;;  %v1817_v21 = vmul.f32 %v3937_v22, %v4245_v7  ;;  %v8169_v19 = vld [vmem:[#allocation53_spill] sm:$0xff]  ;;  %v8170_v60 = vld [vmem:[#allocation62_spill] sm:$0xff] }
  0xa2   :  { %8165 = vst [vmem:[#allocation106_spill] sm:$0xff] %v4343_v50  ;;  %v1636_v10 = vadd.f32 %v3917_v55, %v1627_v44  ;;  %v1836_v31 = vmul.f32 %v8166_v30, %v4253_v52  ;;  %v920_v51 = vadd.f32 %v912_v12, %v730_v18  ;;  %v1292_v15 = vmul.f32 %v3875_v23, %v4343_v50  ;;  %v8172_v18 = vld [vmem:[#allocation65_spill] sm:$0xff]  ;;  %v8173_v23 = vld [vmem:[#allocation67_spill] sm:$0xff]  ;;  %v8174_v30 = vld [vmem:[#allocation46_spill] sm:$0xff] }
  0xa3   :  { %v2007_v61 = vmul.f32 %v8167_v42, %v4245_v7  ;;  %v2026_v39 = vmul.f32 %v3980_v14, %v4253_v52  ;;  %v4358_v32 = vmax.f32 %v1464_v5, 0.0  ;;  %v1826_v44 = vadd.f32 %v8169_v19, %v1817_v21 }
  0xa4   :  { %v1654_v34 = vadd.f32 %v1646_v38, %v1636_v10  ;;  %v2197_v53 = vmul.f32 %v8170_v60, %v4245_v7  ;;  %v1110_v28 = vadd.f32 %v1102_v25, %v920_v51  ;;  %v2216_v50 = vmul.f32 %v8172_v18, %v4253_v52  ;;  %v8176_v10 = vld [vmem:[#allocation63_spill] sm:$0xff]  ;;  %v8177_v60 = vld [vmem:[#allocation69_spill] sm:$0xff]  ;;  %v8178_v51 = vld [vmem:[#allocation70_spill] sm:$0xff] }
  0xa5   :  { %8168 = vst [vmem:[#allocation107_spill] sm:$0xff] %v4358_v32  ;;  %v2016_v12 = vadd.f32 %v8171_v2, %v2007_v61  ;;  %v2387_v42 = vmul.f32 %v8173_v23, %v4245_v7  ;;  %v1482_v14 = vmul.f32 %v8174_v30, %v4358_v32  ;;  %v1844_v38 = vadd.f32 %v1836_v31, %v1826_v44  ;;  %v8179_v18 = vld [vmem:[#allocation51_spill] sm:$0xff]  ;;  %v8181_v32 = vld [vmem:[#allocation72_spill] sm:$0xff] }
  0xa6   :  { %v4370_v5 = vmax.f32 %v1654_v34, 0.0  ;;  %v2206_v21 = vadd.f32 %v8176_v10, %v2197_v53  ;;  %v1300_v19 = vadd.f32 %v1292_v15, %v1110_v28  ;;  %v2406_v61 = vmul.f32 %v8178_v51, %v4253_v52  ;;  %v8183_v28 = vld [vmem:[#allocation75_spill] sm:$0xff] }
  0xa7   :  { %v2034_v55 = vadd.f32 %v2026_v39, %v2016_v12  ;;  %v2396_v25 = vadd.f32 %v8177_v60, %v2387_v42  ;;  %v4378_v57 = vmax.f32 %v1844_v38, 0.0  ;;  %v2577_v34 = vmul.f32 %v8181_v32, %v4245_v7  ;;  %v8184_v42 = vld [vmem:[#allocation55_spill] sm:$0xff]  ;;  %v8186_v38 = vld [vmem:[#allocation77_spill] sm:$0xff] }
  0xa8   :  { %8175 = vst [vmem:[#allocation108_spill] sm:$0xff] %v4370_v5  ;;  %v1672_v2 = vmul.f32 %v8179_v18, %v4370_v5  ;;  %v2224_v23 = vadd.f32 %v2216_v50, %v2206_v21  ;;  %v1490_v30 = vadd.f32 %v1482_v14, %v1300_v19  ;;  %v2596_v15 = vmul.f32 %v8183_v28, %v4253_v52  ;;  %v4393_v21 = vld [vmem:[#allocation2 + $0x18] sm:$0xff] }
  0xa9   :  { %8180 = vst [vmem:[#allocation69_spill] sm:$0xff] %v4378_v57  ;;  %v4382_v31 = vmax.f32 %v2034_v55, 0.0  ;;  %v2414_v53 = vadd.f32 %v2406_v61, %v2396_v25  ;;  %v1862_v39 = vmul.f32 %v8184_v42, %v4378_v57  ;;  %v2586_v12 = vadd.f32 %v8144_v46, %v2577_v34  ;;  %v8187_v14 = vld [vmem:[#allocation61_spill] sm:$0xff]  ;;  %v8189_v25 = vld [vmem:[#allocation80_spill] sm:$0xff]  ;;  %v8190_v57 = vld [vmem:[#allocation78_spill] sm:$0xff] }
  0xaa   :  { %v4388_v44 = vmax.f32 %v2224_v23, 0.0  ;;  %v2767_v50 = vmul.f32 %v8186_v38, %v4245_v7  ;;  %v1680_v5 = vadd.f32 %v1672_v2, %v1490_v30  ;;  %v2786_v61 = vmul.f32 %v8189_v25, %v4253_v52  ;;  %v4401_v28 = vld [vmem:[#allocation2 + $0x58] sm:$0xff]  ;;  %v8191_v38 = vld [vmem:[#allocation82_spill] sm:$0xff] }
  0xab   :  { %8182 = vst [vmem:[#allocation51_spill] sm:$0xff] %v4382_v31  ;;  %v2052_v55 = vmul.f32 %v8187_v14, %v4382_v31  ;;  %v4397_v19 = vmax.f32 %v2414_v53, 0.0  ;;  %v2604_v34 = vadd.f32 %v2596_v15, %v2586_v12  ;;  %v2957_v42 = vmul.f32 %v8191_v38, %v4245_v7 }
  0xac   :  { %8185 = vst [vmem:[#allocation109_spill] sm:$0xff] %v4388_v44  ;;  %v2242_v23 = vmul.f32 %v8147_v13, %v4388_v44  ;;  %v2776_v46 = vadd.f32 %v8190_v57, %v2767_v50  ;;  %v1870_v2 = vadd.f32 %v1862_v39, %v1680_v5  ;;  %v2976_v53 = vmul.f32 %v4109_v47, %v4253_v52  ;;  %v8193_v39 = vld [vmem:[#allocation76_spill] sm:$0xff] }
  0xad   :  { %8188 = vst [vmem:[#allocation110_spill] sm:$0xff] %v4397_v19  ;;  %v2432_v30 = vmul.f32 %v8150_v1, %v4397_v19  ;;  %v108_v31 = vmul.f32 %v8149_v4, %v4393_v21  ;;  %v4414_v25 = vmax.f32 %v2604_v34, 0.0  ;;  %v2966_v15 = vadd.f32 %v4104_v33, %v2957_v42  ;;  %v8195_v42 = vld [vmem:[#allocation25_spill] sm:$0xff] }
  0xae   :  { %v2794_v14 = vadd.f32 %v2786_v61, %v2776_v46  ;;  %v127_v12 = vmul.f32 %v8151_v54, %v4401_v28  ;;  %v2060_v50 = vadd.f32 %v2052_v55, %v1870_v2  ;;  %v298_v5 = vmul.f32 %v3707_v11, %v4393_v21  ;;  %v8196_v55 = vld [vmem:[#allocation23_spill] sm:$0xff]  ;;  %v8197_v11 = vld [vmem:[#allocation81_spill] sm:$0xff] }
  0xaf   :  { %8192 = vst [vmem:[#allocation78_spill] sm:$0xff] %v4414_v25  ;;  %v117_v7 = vadd.f32 %v8154_v40, %v108_v31  ;;  %v317_v52 = vmul.f32 %v3722_v16, %v4401_v28  ;;  %v2622_v19 = vmul.f32 %v8193_v39, %v4414_v25  ;;  %v2984_v46 = vadd.f32 %v2976_v53, %v2966_v15 }
  0xb0   :  { %v4426_v34 = vmax.f32 %v2794_v14, 0.0  ;;  %v488_v61 = vmul.f32 %v8195_v42, %v4393_v21  ;;  %v2250_v44 = vadd.f32 %v2242_v23, %v2060_v50  ;;  %v307_v2 = vadd.f32 %v8196_v55, %v298_v5 }
  0xb1   :  { %v135_v54 = vadd.f32 %v127_v12, %v117_v7  ;;  %v507_v31 = vmul.f32 %v8156_v48, %v4401_v28  ;;  %v4435_v16 = vmax.f32 %v2984_v46, 0.0  ;;  %v678_v14 = vmul.f32 %v8158_v0, %v4393_v21 }
  0xb2   :  { %8194 = vst [vmem:[#allocation76_spill] sm:$0xff] %v4426_v34  ;;  %v2812_v40 = vmul.f32 %v8197_v11, %v4426_v34  ;;  %v497_v25 = vadd.f32 %v3735_v20, %v488_v61  ;;  %v2440_v53 = vadd.f32 %v2432_v30, %v2250_v44  ;;  %v325_v23 = vadd.f32 %v317_v52, %v307_v2 }
  0xb3   :  { %8198 = vst [vmem:[#allocation25_spill] sm:$0xff] %v4435_v16  ;;  %v4440_v15 = vmax.f32 %v135_v54, 0.0  ;;  %v697_v12 = vmul.f32 %v8159_v3, %v4401_v28  ;;  %v3002_v50 = vmul.f32 %v4112_v58, %v4435_v16  ;;  %v687_v5 = vadd.f32 %v3763_v29, %v678_v14  ;;  %v8201_v54 = vld [vmem:[#allocation31_spill] sm:$0xff] }
  0xb4   :  { %v515_v7 = vadd.f32 %v507_v31, %v497_v25  ;;  %v868_v46 = vmul.f32 %v3783_v36, %v4393_v21  ;;  %v2630_v61 = vadd.f32 %v2622_v19, %v2440_v53  ;;  %v4451_v44 = vmax.f32 %v325_v23, 0.0 }
  0xb5   :  { %8199 = vst [vmem:[#allocation23_spill] sm:$0xff] %v4440_v15  ;;  %v153_v34 = vmul.f32 %v3697_v8, %v4440_v15  ;;  %v887_v30 = vmul.f32 %v8201_v54, %v4401_v28  ;;  %v705_v2 = vadd.f32 %v697_v12, %v687_v5  ;;  %v1058_v25 = vmul.f32 %v3818_v49, %v4393_v21  ;;  %v8204_v5 = vld [vmem:[#allocation35_spill] sm:$0xff] }
  0xb6   :  { %8200 = vst [vmem:[#allocation81_spill] sm:$0xff] %v4451_v44  ;;  %v4455_v52 = vmax.f32 %v515_v7, 0.0  ;;  %v877_v16 = vadd.f32 %v3786_v37, %v868_v46  ;;  %v2820_v31 = vadd.f32 %v2812_v40, %v2630_v61  ;;  %v343_v19 = vmul.f32 %v3724_v17, %v4451_v44 }
  0xb7   :  { %v1077_v14 = vmul.f32 %v3833_v56, %v4401_v28  ;;  %v1248_v53 = vmul.f32 %v3850_v63, %v4393_v21  ;;  %v4468_v7 = vmax.f32 %v705_v2, 0.0  ;;  %v1067_v46 = vadd.f32 %v8204_v5, %v1058_v25 }
  0xb8   :  { %8202 = vst [vmem:[#allocation111_spill] sm:$0xff] %v4455_v52  ;;  %v533_v23 = vmul.f32 %v3757_v27, %v4455_v52  ;;  %v895_v12 = vadd.f32 %v887_v30, %v877_v16  ;;  %v3010_v15 = vadd.f32 %v3002_v50, %v2820_v31  ;;  %v351_v49 = vadd.f32 %v343_v19, %v153_v34  ;;  %v8213_v52 = vld [vmem:[#allocation57_spill] sm:$0xff] }
  0xb9   :  { %8203 = vst [vmem:[#allocation112_spill] sm:$0xff] %v4468_v7  ;;  %v1257_v40 = vadd.f32 %v3853_v6, %v1248_v53  ;;  %v1267_v61 = vmul.f32 %v3856_v9, %v4401_v28  ;;  %v723_v44 = vmul.f32 %v3780_v35, %v4468_v7  ;;  %v1085_v63 = vadd.f32 %v1077_v14, %v1067_v46 }
  0xba   :  { %v4476_v56 = vmax.f32 %v895_v12, 0.0  ;;  %v1438_v2 = vmul.f32 %v3878_v24, %v4393_v21  ;;  %v3146_v16 = vadd.f32 %v4115_v62, %v3010_v15  ;;  %v541_v30 = vadd.f32 %v533_v23, %v351_v49  ;;  %v8208_v23 = vld [vmem:[#allocation37_spill] sm:$0xff] }
  0xbb   :  { %v1275_v25 = vadd.f32 %v1267_v61, %v1257_v40  ;;  %v1457_v34 = vmul.f32 %v3895_v41, %v4401_v28  ;;  %v4485_v31 = vmax.f32 %v1085_v63, 0.0  ;;  %v1628_v14 = vmul.f32 %v3901_v43, %v4393_v21  ;;  %v8209_v40 = vld [vmem:[#allocation48_spill] sm:$0xff] }
  0xbc   :  { %8205 = vst [vmem:[#allocation35_spill] sm:$0xff] %v4476_v56  ;;  %v913_v50 = vmul.f32 %v3807_v45, %v4476_v56  ;;  %v1447_v19 = vadd.f32 %v3881_v26, %v1438_v2  ;;  %3154 = vst [vmem:[#allocation12 + $0x10] sm:$0xff] %v3146_v16  ;;  %v731_v53 = vadd.f32 %v723_v44, %v541_v30  ;;  %v8210_v2 = vld [vmem:[#allocation54_spill] sm:$0xff]  ;;  %v8211_v44 = vld [vmem:[#allocation41_spill] sm:$0xff] }
  0xbd   :  { %8206 = vst [vmem:[#allocation113_spill] sm:$0xff] %v4485_v31  ;;  %v4490_v12 = vmax.f32 %v1275_v25, 0.0  ;;  %v1647_v49 = vmul.f32 %v3920_v59, %v4401_v28  ;;  %v1818_v15 = vmul.f32 %v3937_v22, %v4393_v21  ;;  %v1103_v46 = vmul.f32 %v8208_v23, %v4485_v31  ;;  %v8212_v30 = vld [vmem:[#allocation53_spill] sm:$0xff]  ;;  %v8215_v31 = vld [vmem:[#allocation60_spill] sm:$0xff] }
  0xbe   :  { %v1465_v63 = vadd.f32 %v1457_v34, %v1447_v19  ;;  %v1637_v61 = vadd.f32 %v8209_v40, %v1628_v14  ;;  %v1837_v56 = vmul.f32 %v8210_v2, %v4401_v28  ;;  %v921_v7 = vadd.f32 %v913_v50, %v731_v53  ;;  %v8216_v19 = vld [vmem:[#allocation62_spill] sm:$0xff] }
  0xbf   :  { %8207 = vst [vmem:[#allocation114_spill] sm:$0xff] %v4490_v12  ;;  %v1293_v16 = vmul.f32 %v8211_v44, %v4490_v12  ;;  %v1827_v25 = vadd.f32 %v8212_v30, %v1818_v15  ;;  %v2008_v59 = vmul.f32 %v8213_v52, %v4393_v21  ;;  %v2027_v34 = vmul.f32 %v8215_v31, %v4401_v28  ;;  %v8217_v50 = vld [vmem:[#allocation58_spill] sm:$0xff]  ;;  %v8218_v12 = vld [vmem:[#allocation65_spill] sm:$0xff] }
  0xc0   :  { %v4506_v43 = vmax.f32 %v1465_v63, 0.0  ;;  %v1655_v22 = vadd.f32 %v1647_v49, %v1637_v61  ;;  %v2198_v14 = vmul.f32 %v8216_v19, %v4393_v21  ;;  %v1111_v40 = vadd.f32 %v1103_v46, %v921_v7  ;;  %v8219_v15 = vld [vmem:[#allocation46_spill] sm:$0xff]  ;;  %v8221_v63 = vld [vmem:[#allocation67_spill] sm:$0xff] }
  0xc1   :  { %v1845_v2 = vadd.f32 %v1837_v56, %v1827_v25  ;;  %v2017_v53 = vadd.f32 %v8217_v50, %v2008_v59  ;;  %v2217_v44 = vmul.f32 %v8218_v12, %v4401_v28  ;;  %v2388_v61 = vmul.f32 %v8221_v63, %v4393_v21 }
  0xc2   :  { %8214 = vst [vmem:[#allocation115_spill] sm:$0xff] %v4506_v43  ;;  %v1483_v30 = vmul.f32 %v8219_v15, %v4506_v43  ;;  %v4517_v52 = vmax.f32 %v1655_v22, 0.0  ;;  %v2207_v49 = vadd.f32 %v8176_v10, %v2198_v14  ;;  %v1301_v31 = vadd.f32 %v1293_v16, %v1111_v40  ;;  %v8223_v43 = vld [vmem:[#allocation55_spill] sm:$0xff] }
  0xc3   :  { %v4522_v23 = vmax.f32 %v1845_v2, 0.0  ;;  %v2035_v7 = vadd.f32 %v2027_v34, %v2017_v53  ;;  %v2407_v56 = vmul.f32 %v8178_v51, %v4401_v28  ;;  %v2397_v25 = vadd.f32 %v8177_v60, %v2388_v61  ;;  %v8225_v2 = vld [vmem:[#allocation75_spill] sm:$0xff]  ;;  %v8227_v51 = vld [vmem:[#allocation74_spill] sm:$0xff] }
  0xc4   :  { %8220 = vst [vmem:[#allocation62_spill] sm:$0xff] %v4517_v52  ;;  %v1673_v59 = vmul.f32 %v8179_v18, %v4517_v52  ;;  %v2225_v46 = vadd.f32 %v2217_v44, %v2207_v49  ;;  %v2578_v22 = vmul.f32 %v8181_v32, %v4393_v21  ;;  %v1491_v14 = vadd.f32 %v1483_v30, %v1301_v31  ;;  %v8228_v44 = vld [vmem:[#allocation77_spill] sm:$0xff]  ;;  %v4542_v61 = vld [vmem:[#allocation2 + $0x20] sm:$0xff] }
  0xc5   :  { %8222 = vst [vmem:[#allocation58_spill] sm:$0xff] %v4522_v23  ;;  %v1863_v63 = vmul.f32 %v8223_v43, %v4522_v23  ;;  %v4533_v40 = vmax.f32 %v2035_v7, 0.0  ;;  %v2597_v16 = vmul.f32 %v8225_v2, %v4401_v28  ;;  %v2415_v53 = vadd.f32 %v2407_v56, %v2397_v25  ;;  %v8229_v31 = vld [vmem:[#allocation61_spill] sm:$0xff]  ;;  %v8230_v7 = vld [vmem:[#allocation80_spill] sm:$0xff] }
  0xc6   :  { %v4537_v34 = vmax.f32 %v2225_v46, 0.0  ;;  %v2587_v52 = vadd.f32 %v8227_v51, %v2578_v22  ;;  %v2768_v49 = vmul.f32 %v8228_v44, %v4393_v21  ;;  %v1681_v32 = vadd.f32 %v1673_v59, %v1491_v14  ;;  %v4550_v46 = vld [vmem:[#allocation2 + $0x60] sm:$0xff] }
  0xc7   :  { %8224 = vst [vmem:[#allocation65_spill] sm:$0xff] %v4533_v40  ;;  %v2053_v30 = vmul.f32 %v8229_v31, %v4533_v40  ;;  %v2787_v23 = vmul.f32 %v8230_v7, %v4401_v28  ;;  %v2958_v2 = vmul.f32 %v8191_v38, %v4393_v21  ;;  %v4554_v25 = vmax.f32 %v2415_v53, 0.0  ;;  %v8233_v53 = vld [vmem:[#allocation20_spill] sm:$0xff] }
  0xc8   :  { %8226 = vst [vmem:[#allocation116_spill] sm:$0xff] %v4537_v34  ;;  %v2243_v56 = vmul.f32 %v8147_v13, %v4537_v34  ;;  %v2605_v22 = vadd.f32 %v2597_v16, %v2587_v52  ;;  %v2777_v44 = vadd.f32 %v8190_v57, %v2768_v49  ;;  %v1871_v59 = vadd.f32 %v1863_v63, %v1681_v32  ;;  %v8234_v32 = vld [vmem:[#allocation19_spill] sm:$0xff] }
  0xc9   :  { %8231 = vst [vmem:[#allocation117_spill] sm:$0xff] %v4554_v25  ;;  %v2967_v14 = vadd.f32 %v4104_v33, %v2958_v2  ;;  %v2977_v40 = vmul.f32 %v4109_v47, %v4401_v28  ;;  %v109_v7 = vmul.f32 %v8149_v4, %v4542_v61  ;;  %v2433_v21 = vmul.f32 %v8150_v1, %v4554_v25  ;;  %v8235_v2 = vld [vmem:[#allocation22_spill] sm:$0xff]  ;;  %v8237_v25 = vld [vmem:[#allocation24_spill] sm:$0xff] }
  0xca   :  { %v4564_v38 = vmax.f32 %v2605_v22, 0.0  ;;  %v2795_v34 = vadd.f32 %v2787_v23, %v2777_v44  ;;  %v128_v52 = vmul.f32 %v8233_v53, %v4550_v46  ;;  %v2061_v16 = vadd.f32 %v2053_v30, %v1871_v59 }
  0xcb   :  { %v2985_v49 = vadd.f32 %v2977_v40, %v2967_v14  ;;  %v118_v63 = vadd.f32 %v8234_v32, %v109_v7  ;;  %v299_v33 = vmul.f32 %v8235_v2, %v4542_v61  ;;  %v318_v22 = vmul.f32 %v8237_v25, %v4550_v46 }
  0xcc   :  { %8232 = vst [vmem:[#allocation118_spill] sm:$0xff] %v4564_v38  ;;  %v2623_v28 = vmul.f32 %v8193_v39, %v4564_v38  ;;  %v4573_v4 = vmax.f32 %v2795_v34, 0.0  ;;  %v489_v23 = vmul.f32 %v8195_v42, %v4542_v61  ;;  %v2251_v44 = vadd.f32 %v2243_v56, %v2061_v16 }
  0xcd   :  { %v4579_v53 = vmax.f32 %v2985_v49, 0.0  ;;  %v136_v40 = vadd.f32 %v128_v52, %v118_v63  ;;  %v308_v30 = vadd.f32 %v8196_v55, %v299_v33  ;;  %v508_v34 = vmul.f32 %v8156_v48, %v4550_v46 }
  0xce   :  { %8236 = vst [vmem:[#allocation19_spill] sm:$0xff] %v4573_v4  ;;  %v2813_v7 = vmul.f32 %v8197_v11, %v4573_v4  ;;  %v498_v59 = vadd.f32 %v3735_v20, %v489_v23  ;;  %v679_v14 = vmul.f32 %v8158_v0, %v4542_v61  ;;  %v2441_v38 = vadd.f32 %v2433_v21, %v2251_v44 }
  0xcf   :  { %8238 = vst [vmem:[#allocation22_spill] sm:$0xff] %v4579_v53  ;;  %v3003_v56 = vmul.f32 %v4112_v58, %v4579_v53  ;;  %v4591_v16 = vmax.f32 %v136_v40, 0.0  ;;  %v326_v52 = vadd.f32 %v318_v22, %v308_v30  ;;  %v698_v63 = vmul.f32 %v8159_v3, %v4550_v46 }
  0xd0   :  { %v516_v49 = vadd.f32 %v508_v34, %v498_v59  ;;  %v688_v33 = vadd.f32 %v3763_v29, %v679_v14  ;;  %v869_v23 = vmul.f32 %v3783_v36, %v4542_v61  ;;  %v2631_v4 = vadd.f32 %v2623_v28, %v2441_v38  ;;  %v8242_v59 = vld [vmem:[#allocation34_spill] sm:$0xff]  ;;  %v8243_v28 = vld [vmem:[#allocation36_spill] sm:$0xff] }
  0xd1   :  { %8239 = vst [vmem:[#allocation119_spill] sm:$0xff] %v4591_v16  ;;  %v154_v0 = vmul.f32 %v3697_v8, %v4591_v16  ;;  %v4600_v21 = vmax.f32 %v326_v52, 0.0  ;;  %v888_v44 = vmul.f32 %v8201_v54, %v4550_v46  ;;  %v1059_v34 = vmul.f32 %v8242_v59, %v4542_v61  ;;  %v8244_v52 = vld [vmem:[#allocation39_spill] sm:$0xff] }
  0xd2   :  { %v4604_v40 = vmax.f32 %v516_v49, 0.0  ;;  %v706_v22 = vadd.f32 %v698_v63, %v688_v33  ;;  %v878_v30 = vadd.f32 %v3786_v37, %v869_v23  ;;  %v2821_v14 = vadd.f32 %v2813_v7, %v2631_v4 }
  0xd3   :  { %8240 = vst [vmem:[#allocation120_spill] sm:$0xff] %v4600_v21  ;;  %v344_v38 = vmul.f32 %v3724_v17, %v4600_v21  ;;  %v1078_v53 = vmul.f32 %v8243_v28, %v4550_v46  ;;  %v1249_v16 = vmul.f32 %v8244_v52, %v4542_v61  ;;  %v1068_v63 = vadd.f32 %v8204_v5, %v1059_v34 }
  0xd4   :  { %8241 = vst [vmem:[#allocation121_spill] sm:$0xff] %v4604_v40  ;;  %v534_v49 = vmul.f32 %v3757_v27, %v4604_v40  ;;  %v4617_v54 = vmax.f32 %v706_v22, 0.0  ;;  %v896_v33 = vadd.f32 %v888_v44, %v878_v30  ;;  %v3011_v23 = vadd.f32 %v3003_v56, %v2821_v14 }
  0xd5   :  { %v352_v59 = vadd.f32 %v344_v38, %v154_v0  ;;  %v1258_v4 = vadd.f32 %v3853_v6, %v1249_v16  ;;  %v1268_v7 = vmul.f32 %v3856_v9, %v4550_v46  ;;  %v1086_v52 = vadd.f32 %v1078_v53, %v1068_v63  ;;  %v8248_v38 = vld [vmem:[#allocation47_spill] sm:$0xff] }
  0xd6   :  { %8245 = vst [vmem:[#allocation122_spill] sm:$0xff] %v4617_v54  ;;  %v724_v21 = vmul.f32 %v3780_v35, %v4617_v54  ;;  %v4625_v28 = vmax.f32 %v896_v33, 0.0  ;;  %v1439_v22 = vmul.f32 %v3878_v24, %v4542_v61  ;;  %v3147_v44 = vadd.f32 %v4115_v62, %v3011_v23  ;;  %v8251_v23 = vld [vmem:[#allocation52_spill] sm:$0xff] }
  0xd7   :  { %v542_v30 = vadd.f32 %v534_v49, %v352_v59  ;;  %v1276_v34 = vadd.f32 %v1268_v7, %v1258_v4  ;;  %v1458_v0 = vmul.f32 %v3895_v41, %v4550_v46  ;;  %v4634_v16 = vmax.f32 %v1086_v52, 0.0  ;;  %v8250_v59 = vld [vmem:[#allocation49_spill] sm:$0xff]  ;;  %v8253_v54 = vld [vmem:[#allocation48_spill] sm:$0xff] }
  0xd8   :  { %8246 = vst [vmem:[#allocation123_spill] sm:$0xff] %v4625_v28  ;;  %v914_v56 = vmul.f32 %v3807_v45, %v4625_v28  ;;  %v1448_v14 = vadd.f32 %v3881_v26, %v1439_v22  ;;  %v1629_v53 = vmul.f32 %v8248_v38, %v4542_v61  ;;  %3155 = vst [vmem:[#allocation12 + $0x18] sm:$0xff] %v3147_v44  ;;  %v8252_v7 = vld [vmem:[#allocation37_spill] sm:$0xff]  ;;  %v8254_v22 = vld [vmem:[#allocation54_spill] sm:$0xff] }
  0xd9   :  { %8247 = vst [vmem:[#allocation124_spill] sm:$0xff] %v4634_v16  ;;  %v732_v33 = vadd.f32 %v724_v21, %v542_v30  ;;  %v4639_v63 = vmax.f32 %v1276_v34, 0.0  ;;  %v1648_v49 = vmul.f32 %v8250_v59, %v4550_v46  ;;  %v1819_v4 = vmul.f32 %v8251_v23, %v4542_v61  ;;  %v8255_v21 = vld [vmem:[#allocation41_spill] sm:$0xff] }
  0xda   :  { %v1104_v28 = vmul.f32 %v8252_v7, %v4634_v16  ;;  %v1466_v52 = vadd.f32 %v1458_v0, %v1448_v14  ;;  %v1638_v40 = vadd.f32 %v8253_v54, %v1629_v53  ;;  %v1838_v26 = vmul.f32 %v8254_v22, %v4550_v46  ;;  %v8256_v30 = vld [vmem:[#allocation53_spill] sm:$0xff]  ;;  %v8259_v16 = vld [vmem:[#allocation60_spill] sm:$0xff] }
  0xdb   :  { %8249 = vst [vmem:[#allocation125_spill] sm:$0xff] %v4639_v63  ;;  %v922_v38 = vadd.f32 %v914_v56, %v732_v33  ;;  %v1294_v44 = vmul.f32 %v8255_v21, %v4639_v63  ;;  %v1828_v34 = vadd.f32 %v8256_v30, %v1819_v4  ;;  %v8257_v59 = vld [vmem:[#allocation57_spill] sm:$0xff]  ;;  %v2028_v0 = vmul.f32 %v8259_v16, %v4550_v46 }
  0xdc   :  { %v2009_v45 = vmul.f32 %v8257_v59, %v4542_v61  ;;  %v4655_v41 = vmax.f32 %v1466_v52, 0.0  ;;  %v1656_v23 = vadd.f32 %v1648_v49, %v1638_v40  ;;  %v2199_v14 = vmul.f32 %v8216_v19, %v4542_v61  ;;  %v8261_v49 = vld [vmem:[#allocation67_spill] sm:$0xff] }
  0xdd   :  { %v1112_v53 = vadd.f32 %v1104_v28, %v922_v38  ;;  %v1846_v22 = vadd.f32 %v1838_v26, %v1828_v34  ;;  %v2218_v33 = vmul.f32 %v8218_v12, %v4550_v46  ;;  %v2389_v52 = vmul.f32 %v8261_v49, %v4542_v61  ;;  %v8263_v26 = vld [vmem:[#allocation70_spill] sm:$0xff] }
  0xde   :  { %8258 = vst [vmem:[#allocation37_spill] sm:$0xff] %v4655_v41  ;;  %v2018_v56 = vadd.f32 %v8217_v50, %v2009_v45  ;;  %v1484_v4 = vmul.f32 %v8219_v15, %v4655_v41  ;;  %v4666_v63 = vmax.f32 %v1656_v23, 0.0  ;;  %v2208_v40 = vadd.f32 %v8176_v10, %v2199_v14  ;;  %v8264_v23 = vld [vmem:[#allocation72_spill] sm:$0xff] }
  0xdf   :  { %v1302_v16 = vadd.f32 %v1294_v44, %v1112_v53  ;;  %v4671_v59 = vmax.f32 %v1846_v22, 0.0  ;;  %v2408_v45 = vmul.f32 %v8263_v26, %v4550_v46  ;;  %v2398_v41 = vadd.f32 %v8177_v60, %v2389_v52  ;;  %v8266_v22 = vld [vmem:[#allocation75_spill] sm:$0xff] }
  0xe0   :  { %8260 = vst [vmem:[#allocation48_spill] sm:$0xff] %v4666_v63  ;;  %v2036_v28 = vadd.f32 %v2028_v0, %v2018_v56  ;;  %v1674_v38 = vmul.f32 %v8179_v18, %v4666_v63  ;;  %v2226_v34 = vadd.f32 %v2218_v33, %v2208_v40  ;;  %v2579_v15 = vmul.f32 %v8264_v23, %v4542_v61  ;;  %v8268_v33 = vld [vmem:[#allocation77_spill] sm:$0xff]  ;;  %v4691_v52 = vld [vmem:[#allocation2 + $0x28] sm:$0xff] }
  0xe1   :  { %8262 = vst [vmem:[#allocation41_spill] sm:$0xff] %v4671_v59  ;;  %v1492_v14 = vadd.f32 %v1484_v4, %v1302_v16  ;;  %v1864_v49 = vmul.f32 %v8223_v43, %v4671_v59  ;;  %v2598_v0 = vmul.f32 %v8266_v22, %v4550_v46  ;;  %v2416_v56 = vadd.f32 %v2408_v45, %v2398_v41  ;;  %v8269_v4 = vld [vmem:[#allocation80_spill] sm:$0xff]  ;;  %v8270_v59 = vld [vmem:[#allocation82_spill] sm:$0xff] }
  0xe2   :  { %v4682_v44 = vmax.f32 %v2036_v28, 0.0  ;;  %v4686_v53 = vmax.f32 %v2226_v34, 0.0  ;;  %v2588_v63 = vadd.f32 %v8227_v51, %v2579_v15  ;;  %v2769_v40 = vmul.f32 %v8268_v33, %v4542_v61  ;;  %v4699_v34 = vld [vmem:[#allocation2 + $0x68] sm:$0xff] }
  0xe3   :  { %v1682_v23 = vadd.f32 %v1674_v38, %v1492_v14  ;;  %v2788_v28 = vmul.f32 %v8269_v4, %v4550_v46  ;;  %v2959_v22 = vmul.f32 %v8270_v59, %v4542_v61  ;;  %v4703_v15 = vmax.f32 %v2416_v56, 0.0  ;;  %v8272_v14 = vld [vmem:[#allocation83_spill] sm:$0xff]  ;;  %v8273_v4 = vld [vmem:[#allocation18_spill] sm:$0xff]  ;;  %v8275_v56 = vld [vmem:[#allocation20_spill] sm:$0xff] }
  0xe4   :  { %8265 = vst [vmem:[#allocation126_spill] sm:$0xff] %v4682_v44  ;;  %8267 = vst [vmem:[#allocation127_spill] sm:$0xff] %v4686_v53  ;;  %v2054_v16 = vmul.f32 %v8229_v31, %v4682_v44  ;;  %v2244_v41 = vmul.f32 %v8147_v13, %v4686_v53  ;;  %v2606_v45 = vadd.f32 %v2598_v0, %v2588_v63 }
  0xe5   :  { %8271 = vst [vmem:[#allocation128_spill] sm:$0xff] %v4703_v15  ;;  %v2778_v33 = vadd.f32 %v8190_v57, %v2769_v40  ;;  %v1872_v38 = vadd.f32 %v1864_v49, %v1682_v23  ;;  %v2968_v51 = vadd.f32 %v8272_v14, %v2959_v22  ;;  %v2978_v44 = vmul.f32 %v4109_v47, %v4550_v46 }
  0xe6   :  { %v110_v31 = vmul.f32 %v8273_v4, %v4691_v52  ;;  %v2434_v61 = vmul.f32 %v8150_v1, %v4703_v15  ;;  %v4713_v59 = vmax.f32 %v2606_v45, 0.0  ;;  %v129_v63 = vmul.f32 %v8275_v56, %v4699_v34 }
  0xe7   :  { %v2796_v53 = vadd.f32 %v2788_v28, %v2778_v33  ;;  %v2062_v0 = vadd.f32 %v2054_v16, %v1872_v38  ;;  %v2986_v40 = vadd.f32 %v2978_v44, %v2968_v51  ;;  %v300_v23 = vmul.f32 %v8235_v2, %v4691_v52  ;;  %v8278_v38 = vld [vmem:[#allocation27_spill] sm:$0xff] }
  0xe8   :  { %8274 = vst [vmem:[#allocation83_spill] sm:$0xff] %v4713_v59  ;;  %v119_v49 = vadd.f32 %v8234_v32, %v110_v31  ;;  %v2624_v46 = vmul.f32 %v8193_v39, %v4713_v59  ;;  %v319_v45 = vmul.f32 %v8237_v25, %v4699_v34  ;;  %v490_v33 = vmul.f32 %v8195_v42, %v4691_v52 }
  0xe9   :  { %v4722_v22 = vmax.f32 %v2796_v53, 0.0  ;;  %v2252_v28 = vadd.f32 %v2244_v41, %v2062_v0  ;;  %v4728_v15 = vmax.f32 %v2986_v40, 0.0  ;;  %v309_v31 = vadd.f32 %v8196_v55, %v300_v23 }
  0xea   :  { %v137_v51 = vadd.f32 %v129_v63, %v119_v49  ;;  %v499_v16 = vadd.f32 %v3735_v20, %v490_v33  ;;  %v509_v53 = vmul.f32 %v8156_v48, %v4699_v34  ;;  %v680_v59 = vmul.f32 %v8278_v38, %v4691_v52 }
  0xeb   :  { %8276 = vst [vmem:[#allocation18_spill] sm:$0xff] %v4722_v22  ;;  %8277 = vst [vmem:[#allocation20_spill] sm:$0xff] %v4728_v15  ;;  %v2814_v44 = vmul.f32 %v8197_v11, %v4722_v22  ;;  %v2442_v25 = vadd.f32 %v2434_v61, %v2252_v28  ;;  %v3004_v41 = vmul.f32 %v4112_v58, %v4728_v15  ;;  %v8281_v28 = vld [vmem:[#allocation31_spill] sm:$0xff] }
  0xec   :  { %v4740_v0 = vmax.f32 %v137_v51, 0.0  ;;  %v327_v63 = vadd.f32 %v319_v45, %v309_v31  ;;  %v517_v40 = vadd.f32 %v509_v53, %v499_v16  ;;  %v689_v49 = vadd.f32 %v3763_v29, %v680_v59  ;;  %v8283_v31 = vld [vmem:[#allocation34_spill] sm:$0xff] }
  0xed   :  { %v699_v23 = vmul.f32 %v8159_v3, %v4699_v34  ;;  %v870_v33 = vmul.f32 %v3783_v36, %v4691_v52  ;;  %v2632_v22 = vadd.f32 %v2624_v46, %v2442_v25  ;;  %v889_v51 = vmul.f32 %v8281_v28, %v4699_v34  ;;  %v8284_v46 = vld [vmem:[#allocation36_spill] sm:$0xff] }
  0xee   :  { %8279 = vst [vmem:[#allocation129_spill] sm:$0xff] %v4740_v0  ;;  %v155_v38 = vmul.f32 %v3697_v8, %v4740_v0  ;;  %v4749_v61 = vmax.f32 %v327_v63, 0.0  ;;  %v4753_v15 = vmax.f32 %v517_v40, 0.0  ;;  %v1060_v16 = vmul.f32 %v8283_v31, %v4691_v52  ;;  %v8285_v63 = vld [vmem:[#allocation39_spill] sm:$0xff] }
  0xef   :  { %v707_v45 = vadd.f32 %v699_v23, %v689_v49  ;;  %v879_v59 = vadd.f32 %v3786_v37, %v870_v33  ;;  %v2822_v53 = vadd.f32 %v2814_v44, %v2632_v22  ;;  %v1079_v0 = vmul.f32 %v8284_v46, %v4699_v34 }
  0xf0   :  { %8280 = vst [vmem:[#allocation130_spill] sm:$0xff] %v4749_v61  ;;  %8282 = vst [vmem:[#allocation131_spill] sm:$0xff] %v4753_v15  ;;  %v345_v25 = vmul.f32 %v3724_v17, %v4749_v61  ;;  %v1250_v8 = vmul.f32 %v8285_v63, %v4691_v52  ;;  %v535_v40 = vmul.f32 %v3757_v27, %v4753_v15  ;;  %v8291_v15 = vld [vmem:[#allocation43_spill] sm:$0xff] }
  0xf1   :  { %v4766_v28 = vmax.f32 %v707_v45, 0.0  ;;  %v897_v49 = vadd.f32 %v889_v51, %v879_v59  ;;  %v1069_v23 = vadd.f32 %v8204_v5, %v1060_v16  ;;  %v3012_v33 = vadd.f32 %v3004_v41, %v2822_v53 }
  0xf2   :  { %v353_v31 = vadd.f32 %v345_v25, %v155_v38  ;;  %v1259_v22 = vadd.f32 %v3853_v6, %v1250_v8  ;;  %v1269_v44 = vmul.f32 %v3856_v9, %v4699_v34  ;;  %v1440_v45 = vmul.f32 %v3878_v24, %v4691_v52  ;;  %v8288_v38 = vld [vmem:[#allocation45_spill] sm:$0xff]  ;;  %v8289_v8 = vld [vmem:[#allocation32_spill] sm:$0xff] }
  0xf3   :  { %8286 = vst [vmem:[#allocation132_spill] sm:$0xff] %v4766_v28  ;;  %v725_v61 = vmul.f32 %v3780_v35, %v4766_v28  ;;  %v4774_v46 = vmax.f32 %v897_v49, 0.0  ;;  %v1087_v63 = vadd.f32 %v1079_v0, %v1069_v23  ;;  %v3148_v51 = vadd.f32 %v4115_v62, %v3012_v33  ;;  %v8292_v49 = vld [vmem:[#allocation47_spill] sm:$0xff]  ;;  %v8295_v33 = vld [vmem:[#allocation52_spill] sm:$0xff] }
  0xf4   :  { %v543_v59 = vadd.f32 %v535_v40, %v353_v31  ;;  %v1277_v16 = vadd.f32 %v1269_v44, %v1259_v22  ;;  %v1459_v41 = vmul.f32 %v8288_v38, %v4699_v34  ;;  %v1449_v28 = vadd.f32 %v8291_v15, %v1440_v45  ;;  %v8294_v31 = vld [vmem:[#allocation49_spill] sm:$0xff]  ;;  %v8296_v45 = vld [vmem:[#allocation54_spill] sm:$0xff] }
  0xf5   :  { %8287 = vst [vmem:[#allocation133_spill] sm:$0xff] %v4774_v46  ;;  %v915_v53 = vmul.f32 %v8289_v8, %v4774_v46  ;;  %v4783_v25 = vmax.f32 %v1087_v63, 0.0  ;;  %v1630_v0 = vmul.f32 %v8292_v49, %v4691_v52  ;;  %3156 = vst [vmem:[#allocation12 + $0x20] sm:$0xff] %v3148_v51  ;;  %v1649_v40 = vmul.f32 %v8294_v31, %v4699_v34 }
  0xf6   :  { %v733_v23 = vadd.f32 %v725_v61, %v543_v59  ;;  %v4788_v24 = vmax.f32 %v1277_v16, 0.0  ;;  %v1820_v22 = vmul.f32 %v8295_v33, %v4691_v52  ;;  %v1467_v63 = vadd.f32 %v1459_v41, %v1449_v28  ;;  %v8297_v59 = vld [vmem:[#allocation57_spill] sm:$0xff] }
  0xf7   :  { %8290 = vst [vmem:[#allocation45_spill] sm:$0xff] %v4783_v25  ;;  %v1105_v44 = vmul.f32 %v8252_v7, %v4783_v25  ;;  %v1639_v46 = vadd.f32 %v8253_v54, %v1630_v0  ;;  %v1839_v15 = vmul.f32 %v8296_v45, %v4699_v34  ;;  %v2010_v16 = vmul.f32 %v8297_v59, %v4691_v52  ;;  %v8299_v25 = vld [vmem:[#allocation60_spill] sm:$0xff] }
  0xf8   :  { %8293 = vst [vmem:[#allocation134_spill] sm:$0xff] %v4788_v24  ;;  %v923_v49 = vadd.f32 %v915_v53, %v733_v23  ;;  %v1295_v61 = vmul.f32 %v8255_v21, %v4788_v24  ;;  %v1829_v51 = vadd.f32 %v8256_v30, %v1820_v22  ;;  %v4804_v31 = vmax.f32 %v1467_v63, 0.0  ;;  %v8300_v22 = vld [vmem:[#allocation46_spill] sm:$0xff] }
  0xf9   :  { %v1657_v33 = vadd.f32 %v1649_v40, %v1639_v46  ;;  %v2029_v28 = vmul.f32 %v8299_v25, %v4699_v34  ;;  %v2200_v41 = vmul.f32 %v8216_v19, %v4691_v52  ;;  %v2019_v53 = vadd.f32 %v8217_v50, %v2010_v16  ;;  %v8302_v40 = vld [vmem:[#allocation67_spill] sm:$0xff] }
  0xfa   :  { %8298 = vst [vmem:[#allocation135_spill] sm:$0xff] %v4804_v31  ;;  %v1113_v0 = vadd.f32 %v1105_v44, %v923_v49  ;;  %v1847_v45 = vadd.f32 %v1839_v15, %v1829_v51  ;;  %v2219_v23 = vmul.f32 %v8218_v12, %v4699_v34  ;;  %v1485_v24 = vmul.f32 %v8300_v22, %v4804_v31 }
  0xfb   :  { %v4815_v59 = vmax.f32 %v1657_v33, 0.0  ;;  %v2209_v46 = vadd.f32 %v8176_v10, %v2200_v41  ;;  %v2390_v63 = vmul.f32 %v8302_v40, %v4691_v52  ;;  %v2037_v49 = vadd.f32 %v2029_v28, %v2019_v53  ;;  %v8304_v33 = vld [vmem:[#allocation72_spill] sm:$0xff] }
  0xfc   :  { %v1303_v25 = vadd.f32 %v1295_v61, %v1113_v0  ;;  %v4820_v30 = vmax.f32 %v1847_v45, 0.0  ;;  %v2409_v15 = vmul.f32 %v8263_v26, %v4699_v34  ;;  %v2580_v31 = vmul.f32 %v8304_v33, %v4691_v52  ;;  %v8306_v45 = vld [vmem:[#allocation75_spill] sm:$0xff]  ;;  %v8308_v26 = vld [vmem:[#allocation74_spill] sm:$0xff] }
  0xfd   :  { %8301 = vst [vmem:[#allocation136_spill] sm:$0xff] %v4815_v59  ;;  %v1675_v44 = vmul.f32 %v8179_v18, %v4815_v59  ;;  %v2227_v51 = vadd.f32 %v2219_v23, %v2209_v46  ;;  %v2399_v16 = vadd.f32 %v8177_v60, %v2390_v63  ;;  %v4831_v61 = vmax.f32 %v2037_v49, 0.0  ;;  %v8309_v23 = vld [vmem:[#allocation77_spill] sm:$0xff]  ;;  %v4840_v63 = vld [vmem:[#allocation2 + $0x30] sm:$0xff] }
  0xfe   :  { %8303 = vst [vmem:[#allocation137_spill] sm:$0xff] %v4820_v30  ;;  %v1493_v41 = vadd.f32 %v1485_v24, %v1303_v25  ;;  %v1865_v40 = vmul.f32 %v8223_v43, %v4820_v30  ;;  %v2599_v28 = vmul.f32 %v8306_v45, %v4699_v34  ;;  %v2589_v59 = vadd.f32 %v8308_v26, %v2580_v31  ;;  %v8310_v24 = vld [vmem:[#allocation61_spill] sm:$0xff]  ;;  %v8311_v49 = vld [vmem:[#allocation80_spill] sm:$0xff]  ;;  %v8312_v43 = vld [vmem:[#allocation82_spill] sm:$0xff] }
  0xff   :  { %8305 = vst [vmem:[#allocation138_spill] sm:$0xff] %v4831_v61  ;;  %v4835_v0 = vmax.f32 %v2227_v51, 0.0  ;;  %v2417_v53 = vadd.f32 %v2409_v15, %v2399_v16  ;;  %v2770_v46 = vmul.f32 %v8309_v23, %v4691_v52  ;;  %v2055_v25 = vmul.f32 %v8310_v24, %v4831_v61  ;;  %v4848_v51 = vld [vmem:[#allocation2 + $0x70] sm:$0xff] }
 0x100   :  { %v1683_v33 = vadd.f32 %v1675_v44, %v1493_v41  ;;  %v2789_v30 = vmul.f32 %v8311_v49, %v4699_v34  ;;  %v2960_v45 = vmul.f32 %v8312_v43, %v4691_v52  ;;  %v2607_v16 = vadd.f32 %v2599_v28, %v2589_v59 }
 0x101   :  { %8307 = vst [vmem:[#allocation139_spill] sm:$0xff] %v4835_v0  ;;  %v2245_v31 = vmul.f32 %v8147_v13, %v4835_v0  ;;  %v4852_v15 = vmax.f32 %v2417_v53, 0.0  ;;  %v2779_v23 = vadd.f32 %v8190_v57, %v2770_v46  ;;  %v2979_v61 = vmul.f32 %v4109_v47, %v4699_v34  ;;  %v8316_v46 = vld [vmem:[#allocation24_spill] sm:$0xff] }
 0x102   :  { %v1873_v44 = vadd.f32 %v1865_v40, %v1683_v33  ;;  %v2969_v41 = vadd.f32 %v8272_v14, %v2960_v45  ;;  %v111_v49 = vmul.f32 %v8273_v4, %v4840_v63  ;;  %v4862_v43 = vmax.f32 %v2607_v16, 0.0 }
 0x103   :  { %8313 = vst [vmem:[#allocation74_spill] sm:$0xff] %v4852_v15  ;;  %v2435_v52 = vmul.f32 %v8150_v1, %v4852_v15  ;;  %v2797_v0 = vadd.f32 %v2789_v30, %v2779_v23  ;;  %v130_v59 = vmul.f32 %v8275_v56, %v4848_v51  ;;  %v301_v33 = vmul.f32 %v8235_v2, %v4840_v63 }
 0x104   :  { %8314 = vst [vmem:[#allocation61_spill] sm:$0xff] %v4862_v43  ;;  %v2063_v28 = vadd.f32 %v2055_v25, %v1873_v44  ;;  %v2987_v53 = vadd.f32 %v2979_v61, %v2969_v41  ;;  %v120_v40 = vadd.f32 %v8234_v32, %v111_v49  ;;  %v2625_v34 = vmul.f32 %v8193_v39, %v4862_v43  ;;  %v8318_v41 = vld [vmem:[#allocation27_spill] sm:$0xff] }
 0x105   :  { %v4871_v45 = vmax.f32 %v2797_v0, 0.0  ;;  %v320_v16 = vmul.f32 %v8316_v46, %v4848_v51  ;;  %v491_v30 = vmul.f32 %v8195_v42, %v4840_v63  ;;  %v310_v25 = vadd.f32 %v8196_v55, %v301_v33 }
 0x106   :  { %v2253_v23 = vadd.f32 %v2245_v31, %v2063_v28  ;;  %v4877_v15 = vmax.f32 %v2987_v53, 0.0  ;;  %v138_v61 = vadd.f32 %v130_v59, %v120_v40  ;;  %v510_v0 = vmul.f32 %v8156_v48, %v4848_v51  ;;  %v8320_v48 = vld [vmem:[#allocation21_spill] sm:$0xff] }
 0x107   :  { %8315 = vst [vmem:[#allocation140_spill] sm:$0xff] %v4871_v45  ;;  %v2815_v49 = vmul.f32 %v8197_v11, %v4871_v45  ;;  %v500_v44 = vadd.f32 %v3735_v20, %v491_v30  ;;  %v681_v43 = vmul.f32 %v8318_v41, %v4840_v63  ;;  %v328_v59 = vadd.f32 %v320_v16, %v310_v25  ;;  %v8324_v25 = vld [vmem:[#allocation34_spill] sm:$0xff] }
 0x108   :  { %8317 = vst [vmem:[#allocation141_spill] sm:$0xff] %v4877_v15  ;;  %v2443_v46 = vadd.f32 %v2435_v52, %v2253_v23  ;;  %v3005_v31 = vmul.f32 %v4112_v58, %v4877_v15  ;;  %v4889_v28 = vmax.f32 %v138_v61, 0.0  ;;  %v700_v33 = vmul.f32 %v8159_v3, %v4848_v51  ;;  %v8322_v23 = vld [vmem:[#allocation31_spill] sm:$0xff] }
 0x109   :  { %v518_v53 = vadd.f32 %v510_v0, %v500_v44  ;;  %v690_v40 = vadd.f32 %v3763_v29, %v681_v43  ;;  %v871_v30 = vmul.f32 %v3783_v36, %v4840_v63  ;;  %v4898_v52 = vmax.f32 %v328_v59, 0.0  ;;  %v8326_v59 = vld [vmem:[#allocation39_spill] sm:$0xff] }
 0x10a   :  { %8319 = vst [vmem:[#allocation142_spill] sm:$0xff] %v4889_v28  ;;  %v2633_v45 = vadd.f32 %v2625_v34, %v2443_v46  ;;  %v156_v41 = vmul.f32 %v8320_v48, %v4889_v28  ;;  %v890_v61 = vmul.f32 %v8322_v23, %v4848_v51  ;;  %v1061_v44 = vmul.f32 %v8324_v25, %v4840_v63  ;;  %v8325_v46 = vld [vmem:[#allocation36_spill] sm:$0xff] }
 0x10b   :  { %8321 = vst [vmem:[#allocation143_spill] sm:$0xff] %v4898_v52  ;;  %v4902_v15 = vmax.f32 %v518_v53, 0.0  ;;  %v708_v16 = vadd.f32 %v700_v33, %v690_v40  ;;  %v880_v43 = vadd.f32 %v3786_v37, %v871_v30  ;;  %v346_v34 = vmul.f32 %v3724_v17, %v4898_v52 }
 0x10c   :  { %v2823_v0 = vadd.f32 %v2815_v49, %v2633_v45  ;;  %v1080_v28 = vmul.f32 %v8325_v46, %v4848_v51  ;;  %v1251_v48 = vmul.f32 %v8326_v59, %v4840_v63  ;;  %v1070_v33 = vadd.f32 %v8204_v5, %v1061_v44 }
 0x10d   :  { %8323 = vst [vmem:[#allocation144_spill] sm:$0xff] %v4902_v15  ;;  %v536_v53 = vmul.f32 %v3757_v27, %v4902_v15  ;;  %v4915_v23 = vmax.f32 %v708_v16, 0.0  ;;  %v898_v40 = vadd.f32 %v890_v61, %v880_v43  ;;  %v354_v25 = vadd.f32 %v346_v34, %v156_v41  ;;  %v8329_v15 = vld [vmem:[#allocation42_spill] sm:$0xff] }
 0x10e   :  { %v3013_v30 = vadd.f32 %v3005_v31, %v2823_v0  ;;  %v1260_v45 = vadd.f32 %v3853_v6, %v1251_v48  ;;  %v1270_v49 = vmul.f32 %v3856_v9, %v4848_v51  ;;  %v1088_v59 = vadd.f32 %v1080_v28, %v1070_v33  ;;  %v8331_v0 = vld [vmem:[#allocation43_spill] sm:$0xff] }
 0x10f   :  { %8327 = vst [vmem:[#allocation145_spill] sm:$0xff] %v4915_v23  ;;  %v726_v52 = vmul.f32 %v3780_v35, %v4915_v23  ;;  %v4923_v46 = vmax.f32 %v898_v40, 0.0  ;;  %v1441_v16 = vmul.f32 %v8329_v15, %v4840_v63  ;;  %v544_v43 = vadd.f32 %v536_v53, %v354_v25  ;;  %v8332_v40 = vld [vmem:[#allocation47_spill] sm:$0xff]  ;;  %v8334_v25 = vld [vmem:[#allocation49_spill] sm:$0xff] }
 0x110   :  { %v3149_v61 = vadd.f32 %v4115_v62, %v3013_v30  ;;  %v1278_v44 = vadd.f32 %v1270_v49, %v1260_v45  ;;  %v1460_v41 = vmul.f32 %v8288_v38, %v4848_v51  ;;  %v4932_v31 = vmax.f32 %v1088_v59, 0.0  ;;  %v8335_v30 = vld [vmem:[#allocation52_spill] sm:$0xff] }
 0x111   :  { %8328 = vst [vmem:[#allocation146_spill] sm:$0xff] %v4923_v46  ;;  %v916_v48 = vmul.f32 %v8289_v8, %v4923_v46  ;;  %v1450_v34 = vadd.f32 %v8331_v0, %v1441_v16  ;;  %v1631_v28 = vmul.f32 %v8332_v40, %v4840_v63  ;;  %v734_v33 = vadd.f32 %v726_v52, %v544_v43  ;;  %v8336_v16 = vld [vmem:[#allocation54_spill] sm:$0xff] }
 0x112   :  { %8330 = vst [vmem:[#allocation42_spill] sm:$0xff] %v4932_v31  ;;  %3157 = vst [vmem:[#allocation12 + $0x28] sm:$0xff] %v3149_v61  ;;  %v4937_v23 = vmax.f32 %v1278_v44, 0.0  ;;  %v1650_v53 = vmul.f32 %v8334_v25, %v4848_v51  ;;  %v1821_v45 = vmul.f32 %v8335_v30, %v4840_v63  ;;  %v1106_v49 = vmul.f32 %v8252_v7, %v4932_v31  ;;  %v8337_v61 = vld [vmem:[#allocation53_spill] sm:$0xff]  ;;  %v8340_v31 = vld [vmem:[#allocation60_spill] sm:$0xff] }
 0x113   :  { %v1468_v59 = vadd.f32 %v1460_v41, %v1450_v34  ;;  %v1640_v46 = vadd.f32 %v8253_v54, %v1631_v28  ;;  %v1840_v0 = vmul.f32 %v8336_v16, %v4848_v51  ;;  %v924_v40 = vadd.f32 %v916_v48, %v734_v33  ;;  %v8338_v44 = vld [vmem:[#allocation57_spill] sm:$0xff] }
 0x114   :  { %8333 = vst [vmem:[#allocation147_spill] sm:$0xff] %v4937_v23  ;;  %v1296_v52 = vmul.f32 %v8255_v21, %v4937_v23  ;;  %v1830_v43 = vadd.f32 %v8337_v61, %v1821_v45  ;;  %v2011_v25 = vmul.f32 %v8338_v44, %v4840_v63  ;;  %v2030_v41 = vmul.f32 %v8340_v31, %v4848_v51 }
 0x115   :  { %v4953_v8 = vmax.f32 %v1468_v59, 0.0  ;;  %v1658_v30 = vadd.f32 %v1650_v53, %v1640_v46  ;;  %v2201_v34 = vmul.f32 %v8216_v19, %v4840_v63  ;;  %v1114_v28 = vadd.f32 %v1106_v49, %v924_v40  ;;  %v8342_v53 = vld [vmem:[#allocation67_spill] sm:$0xff] }
 0x116   :  { %v1848_v16 = vadd.f32 %v1840_v0, %v1830_v43  ;;  %v2020_v48 = vadd.f32 %v8217_v50, %v2011_v25  ;;  %v2220_v33 = vmul.f32 %v8218_v12, %v4848_v51  ;;  %v2391_v59 = vmul.f32 %v8342_v53, %v4840_v63  ;;  %v8344_v0 = vld [vmem:[#allocation70_spill] sm:$0xff] }
 0x117   :  { %8339 = vst [vmem:[#allocation53_spill] sm:$0xff] %v4953_v8  ;;  %v1486_v45 = vmul.f32 %v8300_v22, %v4953_v8  ;;  %v4964_v23 = vmax.f32 %v1658_v30, 0.0  ;;  %v2210_v46 = vadd.f32 %v8176_v10, %v2201_v34  ;;  %v1304_v31 = vadd.f32 %v1296_v52, %v1114_v28  ;;  %v8345_v30 = vld [vmem:[#allocation72_spill] sm:$0xff]  ;;  %v8346_v10 = vld [vmem:[#allocation55_spill] sm:$0xff] }
 0x118   :  { %v4969_v44 = vmax.f32 %v1848_v16, 0.0  ;;  %v2038_v40 = vadd.f32 %v2030_v41, %v2020_v48  ;;  %v2410_v25 = vmul.f32 %v8344_v0, %v4848_v51  ;;  %v2400_v8 = vadd.f32 %v8177_v60, %v2391_v59  ;;  %v8348_v16 = vld [vmem:[#allocation75_spill] sm:$0xff]  ;;  %v4989_v59 = vld [vmem:[#allocation2 + $0x38] sm:$0xff] }
 0x119   :  { %8341 = vst [vmem:[#allocation148_spill] sm:$0xff] %v4964_v23  ;;  %v1676_v49 = vmul.f32 %v8179_v18, %v4964_v23  ;;  %v2228_v43 = vadd.f32 %v2220_v33, %v2210_v46  ;;  %v2581_v22 = vmul.f32 %v8345_v30, %v4840_v63  ;;  %v1494_v34 = vadd.f32 %v1486_v45, %v1304_v31  ;;  %v8350_v33 = vld [vmem:[#allocation77_spill] sm:$0xff]  ;;  %v8351_v45 = vld [vmem:[#allocation80_spill] sm:$0xff] }
 0x11a   :  { %8343 = vst [vmem:[#allocation149_spill] sm:$0xff] %v4969_v44  ;;  %v1866_v53 = vmul.f32 %v8346_v10, %v4969_v44  ;;  %v4980_v52 = vmax.f32 %v2038_v40, 0.0  ;;  %v2600_v41 = vmul.f32 %v8348_v16, %v4848_v51  ;;  %v2418_v48 = vadd.f32 %v2410_v25, %v2400_v8  ;;  %v8352_v44 = vld [vmem:[#allocation82_spill] sm:$0xff] }
 0x11b   :  { %v4984_v28 = vmax.f32 %v2228_v43, 0.0  ;;  %v2590_v23 = vadd.f32 %v8308_v26, %v2581_v22  ;;  %v2771_v46 = vmul.f32 %v8350_v33, %v4840_v63  ;;  %v1684_v30 = vadd.f32 %v1676_v49, %v1494_v34  ;;  %v4997_v43 = vld [vmem:[#allocation2 + $0x78] sm:$0xff] }
 0x11c   :  { %8347 = vst [vmem:[#allocation70_spill] sm:$0xff] %v4980_v52  ;;  %v2056_v31 = vmul.f32 %v8310_v24, %v4980_v52  ;;  %v2790_v40 = vmul.f32 %v8351_v45, %v4848_v51  ;;  %v2961_v16 = vmul.f32 %v8352_v44, %v4840_v63  ;;  %v5001_v22 = vmax.f32 %v2418_v48, 0.0 }
 0x11d   :  { %8349 = vst [vmem:[#allocation55_spill] sm:$0xff] %v4984_v28  ;;  %v2246_v8 = vmul.f32 %v8147_v13, %v4984_v28  ;;  %v2608_v25 = vadd.f32 %v2600_v41, %v2590_v23  ;;  %v2780_v33 = vadd.f32 %v8190_v57, %v2771_v46  ;;  %v1874_v49 = vadd.f32 %v1866_v53, %v1684_v30 }
 0x11e   :  { %8353 = vst [vmem:[#allocation150_spill] sm:$0xff] %v5001_v22  ;;  %v2970_v34 = vadd.f32 %v8272_v14, %v2961_v16  ;;  %v2980_v52 = vmul.f32 %v4109_v47, %v4848_v51  ;;  %v112_v45 = vmul.f32 %v8273_v4, %v4989_v59  ;;  %v2436_v63 = vmul.f32 %v8150_v1, %v5001_v22  ;;  %v8356_v16 = vld [vmem:[#allocation24_spill] sm:$0xff] }
 0x11f   :  { %v5011_v44 = vmax.f32 %v2608_v25, 0.0  ;;  %v2798_v28 = vadd.f32 %v2790_v40, %v2780_v33  ;;  %v131_v23 = vmul.f32 %v8275_v56, %v4997_v43  ;;  %v2064_v41 = vadd.f32 %v2056_v31, %v1874_v49  ;;  %v8359_v25 = vld [vmem:[#allocation27_spill] sm:$0xff] }
 0x120   :  { %v2988_v48 = vadd.f32 %v2980_v52, %v2970_v34  ;;  %v121_v53 = vadd.f32 %v8234_v32, %v112_v45  ;;  %v302_v30 = vmul.f32 %v8235_v2, %v4989_v59  ;;  %v321_v46 = vmul.f32 %v8356_v16, %v4997_v43 }
 0x121   :  { %8354 = vst [vmem:[#allocation151_spill] sm:$0xff] %v5011_v44  ;;  %v2626_v51 = vmul.f32 %v8193_v39, %v5011_v44  ;;  %v5020_v4 = vmax.f32 %v2798_v28, 0.0  ;;  %v492_v33 = vmul.f32 %v8195_v42, %v4989_v59  ;;  %v2254_v40 = vadd.f32 %v2246_v8, %v2064_v41  ;;  %v8358_v28 = vld [vmem:[#allocation26_spill] sm:$0xff] }
 0x122   :  { %v5026_v56 = vmax.f32 %v2988_v48, 0.0  ;;  %v139_v52 = vadd.f32 %v131_v23, %v121_v53  ;;  %v311_v32 = vadd.f32 %v8196_v55, %v302_v30  ;;  %v511_v45 = vmul.f32 %v8358_v28, %v4997_v43  ;;  %v8361_v30 = vld [vmem:[#allocation21_spill] sm:$0xff] }
 0x123   :  { %8355 = vst [vmem:[#allocation152_spill] sm:$0xff] %v5020_v4  ;;  %v2816_v2 = vmul.f32 %v8197_v11, %v5020_v4  ;;  %v501_v31 = vadd.f32 %v3735_v20, %v492_v33  ;;  %v682_v49 = vmul.f32 %v8359_v25, %v4989_v59  ;;  %v2444_v34 = vadd.f32 %v2436_v63, %v2254_v40  ;;  %v8363_v33 = vld [vmem:[#allocation31_spill] sm:$0xff] }
 0x124   :  { %8357 = vst [vmem:[#allocation24_spill] sm:$0xff] %v5026_v56  ;;  %v3006_v42 = vmul.f32 %v4112_v58, %v5026_v56  ;;  %v5038_v8 = vmax.f32 %v139_v52, 0.0  ;;  %v329_v23 = vadd.f32 %v321_v46, %v311_v32  ;;  %v701_v48 = vmul.f32 %v8159_v3, %v4997_v43  ;;  %v8365_v32 = vld [vmem:[#allocation34_spill] sm:$0xff] }
 0x125   :  { %v519_v41 = vadd.f32 %v511_v45, %v501_v31  ;;  %v691_v55 = vadd.f32 %v3763_v29, %v682_v49  ;;  %v872_v20 = vmul.f32 %v3783_v36, %v4989_v59  ;;  %v2634_v53 = vadd.f32 %v2626_v51, %v2444_v34  ;;  %v8366_v51 = vld [vmem:[#allocation36_spill] sm:$0xff]  ;;  %v8367_v45 = vld [vmem:[#allocation39_spill] sm:$0xff]  ;;  %v8422_v56 = vld [vmem:[#allocation94_spill] sm:$0xff] }
 0x126   :  { %8360 = vst [vmem:[#allocation26_spill] sm:$0xff] %v5038_v8  ;;  %v157_v16 = vmul.f32 %v8361_v30, %v5038_v8  ;;  %v5047_v63 = vmax.f32 %v329_v23, 0.0  ;;  %v891_v40 = vmul.f32 %v8363_v33, %v4997_v43  ;;  %v1062_v3 = vmul.f32 %v8365_v32, %v4989_v59 }
 0x127   :  { %v5051_v52 = vmax.f32 %v519_v41, 0.0  ;;  %v709_v46 = vadd.f32 %v701_v48, %v691_v55  ;;  %v881_v29 = vadd.f32 %v3786_v37, %v872_v20  ;;  %v2824_v31 = vadd.f32 %v2816_v2, %v2634_v53 }
 0x128   :  { %8362 = vst [vmem:[#allocation27_spill] sm:$0xff] %v5047_v63  ;;  %v347_v36 = vmul.f32 %v3724_v17, %v5047_v63  ;;  %v1081_v28 = vmul.f32 %v8366_v51, %v4997_v43  ;;  %v1252_v25 = vmul.f32 %v8367_v45, %v4989_v59  ;;  %v1071_v37 = vadd.f32 %v8204_v5, %v1062_v3  ;;  %v8375_v3 = vld [vmem:[#allocation49_spill] sm:$0xff] }
 0x129   :  { %8364 = vst [vmem:[#allocation21_spill] sm:$0xff] %v5051_v52  ;;  %v537_v49 = vmul.f32 %v3757_v27, %v5051_v52  ;;  %v5064_v34 = vmax.f32 %v709_v46, 0.0  ;;  %v899_v23 = vadd.f32 %v891_v40, %v881_v29  ;;  %v3014_v41 = vadd.f32 %v3006_v42, %v2824_v31  ;;  %v8372_v40 = vld [vmem:[#allocation43_spill] sm:$0xff] }
 0x12a   :  { %v355_v55 = vadd.f32 %v347_v36, %v157_v16  ;;  %v1261_v2 = vadd.f32 %v3853_v6, %v1252_v25  ;;  %v1271_v17 = vmul.f32 %v3856_v9, %v4997_v43  ;;  %v1089_v53 = vadd.f32 %v1081_v28, %v1071_v37  ;;  %v8370_v6 = vld [vmem:[#allocation32_spill] sm:$0xff]  ;;  %v8373_v46 = vld [vmem:[#allocation47_spill] sm:$0xff]  ;;  %v8377_v25 = vld [vmem:[#allocation54_spill] sm:$0xff] }
 0x12b   :  { %8368 = vst [vmem:[#allocation31_spill] sm:$0xff] %v5064_v34  ;;  %v727_v48 = vmul.f32 %v3780_v35, %v5064_v34  ;;  %v5072_v20 = vmax.f32 %v899_v23, 0.0  ;;  %v1442_v27 = vmul.f32 %v8329_v15, %v4989_v59  ;;  %v3150_v30 = vadd.f32 %v4115_v62, %v3014_v41  ;;  %v8376_v36 = vld [vmem:[#allocation52_spill] sm:$0xff] }
 0x12c   :  { %v545_v33 = vadd.f32 %v537_v49, %v355_v55  ;;  %v1279_v5 = vadd.f32 %v1271_v17, %v1261_v2  ;;  %v1461_v42 = vmul.f32 %v8288_v38, %v4997_v43  ;;  %v5081_v9 = vmax.f32 %v1089_v53, 0.0  ;;  %v8378_v55 = vld [vmem:[#allocation57_spill] sm:$0xff] }
 0x12d   :  { %8369 = vst [vmem:[#allocation34_spill] sm:$0xff] %v5072_v20  ;;  %v917_v16 = vmul.f32 %v8370_v6, %v5072_v20  ;;  %v1451_v35 = vadd.f32 %v8372_v40, %v1442_v27  ;;  %v1632_v29 = vmul.f32 %v8373_v46, %v4989_v59  ;;  %3158 = vst [vmem:[#allocation12 + $0x30] sm:$0xff] %v3150_v30  ;;  %v8383_v6 = vld [vmem:[#allocation63_spill] sm:$0xff] }
 0x12e   :  { %8371 = vst [vmem:[#allocation36_spill] sm:$0xff] %v5081_v9  ;;  %v735_v32 = vadd.f32 %v727_v48, %v545_v33  ;;  %v5086_v15 = vmax.f32 %v1279_v5, 0.0  ;;  %v1651_v31 = vmul.f32 %v8375_v3, %v4997_v43  ;;  %v1822_v38 = vmul.f32 %v8376_v36, %v4989_v59  ;;  %v8384_v40 = vld [vmem:[#allocation67_spill] sm:$0xff] }
 0x12f   :  { %v1107_v51 = vmul.f32 %v8252_v7, %v5081_v9  ;;  %v1469_v28 = vadd.f32 %v1461_v42, %v1451_v35  ;;  %v1641_v45 = vadd.f32 %v8253_v54, %v1632_v29  ;;  %v1841_v49 = vmul.f32 %v8377_v25, %v4997_v43  ;;  %v8380_v7 = vld [vmem:[#allocation60_spill] sm:$0xff] }
 0x130   :  { %8374 = vst [vmem:[#allocation39_spill] sm:$0xff] %v5086_v15  ;;  %v925_v23 = vadd.f32 %v917_v16, %v735_v32  ;;  %v1297_v37 = vmul.f32 %v8255_v21, %v5086_v15  ;;  %v1831_v41 = vadd.f32 %v8337_v61, %v1822_v38  ;;  %v2012_v2 = vmul.f32 %v8378_v55, %v4989_v59  ;;  %v8381_v61 = vld [vmem:[#allocation46_spill] sm:$0xff] }
 0x131   :  { %v5102_v17 = vmax.f32 %v1469_v28, 0.0  ;;  %v1659_v48 = vadd.f32 %v1651_v31, %v1641_v45  ;;  %v2031_v53 = vmul.f32 %v8380_v7, %v4997_v43  ;;  %v2202_v54 = vmul.f32 %v8216_v19, %v4989_v59  ;;  %v8386_v31 = vld [vmem:[#allocation72_spill] sm:$0xff] }
 0x132   :  { %v1115_v27 = vadd.f32 %v1107_v51, %v925_v23  ;;  %v1849_v30 = vadd.f32 %v1841_v49, %v1831_v41  ;;  %v2021_v33 = vadd.f32 %v8217_v50, %v2012_v2  ;;  %v2221_v21 = vmul.f32 %v8218_v12, %v4997_v43  ;;  %v8390_v49 = vld [vmem:[#allocation77_spill] sm:$0xff]  ;;  %v8391_v41 = vld [vmem:[#allocation80_spill] sm:$0xff]  ;;  %v8392_v2 = vld [vmem:[#allocation82_spill] sm:$0xff] }
 0x133   :  { %8379 = vst [vmem:[#allocation32_spill] sm:$0xff] %v5102_v17  ;;  %v1487_v5 = vmul.f32 %v8381_v61, %v5102_v17  ;;  %v5115_v42 = vmax.f32 %v1659_v48, 0.0  ;;  %v2211_v16 = vadd.f32 %v8383_v6, %v2202_v54  ;;  %v2392_v35 = vmul.f32 %v8384_v40, %v4989_v59  ;;  %v8443_v17 = vld [vmem:[#allocation51_spill] sm:$0xff] }
 0x134   :  { %v1305_v19 = vadd.f32 %v1297_v37, %v1115_v27  ;;  %v5120_v46 = vmax.f32 %v1849_v30, 0.0  ;;  %v2039_v29 = vadd.f32 %v2031_v53, %v2021_v33  ;;  %v2411_v50 = vmul.f32 %v8344_v0, %v4997_v43  ;;  %v8388_v0 = vld [vmem:[#allocation75_spill] sm:$0xff] }
 0x135   :  { %8382 = vst [vmem:[#allocation43_spill] sm:$0xff] %v5115_v42  ;;  %v1677_v12 = vmul.f32 %v8179_v18, %v5115_v42  ;;  %v2229_v32 = vadd.f32 %v2221_v21, %v2211_v16  ;;  %v2401_v3 = vadd.f32 %v8177_v60, %v2392_v35  ;;  %v2582_v36 = vmul.f32 %v8386_v31, %v4989_v59  ;;  %v8397_v16 = vld [vmem:[#allocation30_spill] sm:$0xff]  ;;  %v8398_v35 = vld [vmem:[#allocation33_spill] sm:$0xff] }
 0x136   :  { %8385 = vst [vmem:[#allocation47_spill] sm:$0xff] %v5120_v46  ;;  %v1495_v38 = vadd.f32 %v1487_v5, %v1305_v19  ;;  %v1867_v51 = vmul.f32 %v8346_v10, %v5120_v46  ;;  %v5135_v28 = vmax.f32 %v2039_v29, 0.0  ;;  %v2601_v45 = vmul.f32 %v8388_v0, %v4997_v43  ;;  %v8428_v46 = vld [vmem:[#allocation98_spill] sm:$0xff] }
 0x137   :  { %v5143_v18 = vmax.f32 %v2229_v32, 0.0  ;;  %v2419_v60 = vadd.f32 %v2411_v50, %v2401_v3  ;;  %v2591_v25 = vadd.f32 %v8308_v26, %v2582_v36  ;;  %v2772_v23 = vmul.f32 %v8390_v49, %v4989_v59  ;;  %v8400_v3 = vld [vmem:[#allocation38_spill] sm:$0xff] }
 0x138   :  { %8387 = vst [vmem:[#allocation49_spill] sm:$0xff] %v5135_v28  ;;  %v1685_v37 = vadd.f32 %v1677_v12, %v1495_v38  ;;  %v2057_v10 = vmul.f32 %v8310_v24, %v5135_v28  ;;  %v2791_v55 = vmul.f32 %v8391_v41, %v4997_v43  ;;  %v2962_v48 = vmul.f32 %v8392_v2, %v4989_v59  ;;  %v8425_v28 = vld [vmem:[#allocation103_spill] sm:$0xff] }
 0x139   :  { %8389 = vst [vmem:[#allocation52_spill] sm:$0xff] %v5143_v18  ;;  %v2247_v7 = vmul.f32 %v8147_v13, %v5143_v18  ;;  %v5158_v26 = vmax.f32 %v2419_v60, 0.0  ;;  %v2609_v53 = vadd.f32 %v2601_v45, %v2591_v25  ;;  %v2781_v54 = vadd.f32 %v8190_v57, %v2772_v23  ;;  %v8395_v57 = vld [vmem:[#allocation28_spill] sm:$0xff]  ;;  %v8421_v18 = vld [vmem:[#allocation93_spill] sm:$0xff] }
 0x13a   :  { %v1875_v27 = vadd.f32 %v1867_v51, %v1685_v37  ;;  %v2971_v24 = vadd.f32 %v8272_v14, %v2962_v48  ;;  %v2981_v30 = vmul.f32 %v4109_v47, %v4997_v43  ;;  %v5165_v33 = vstv %s5111_s30  ;;  %v8401_v45 = vld [vmem:[#allocation40_spill] sm:$0xff]  ;;  %v8403_v48 = vld [vmem:[#allocation50_spill] sm:$0xff]  ;;  %s5552_s30 = sld [smem:[#allocation9 + $0x10b]] }
 0x13b   :  { %8393 = vst [vmem:[#allocation54_spill] sm:$0xff] %v5158_v26  ;;  %v2437_v13 = vmul.f32 %v8150_v1, %v5158_v26  ;;  %v5173_v59 = vmax.f32 %v2609_v53, 0.0  ;;  %v2799_v21 = vadd.f32 %v2791_v55, %v2781_v54  ;;  %v168_v14 = vmul.f32 %v5165_v33, %v8395_v57  ;;  %v8404_v53 = vld [vmem:[#allocation56_spill] sm:$0xff] }
 0x13c   :  { %v2065_v61 = vadd.f32 %v2057_v10, %v1875_v27  ;;  %v2989_v5 = vadd.f32 %v2981_v30, %v2971_v24  ;;  %v5178_v47 = vstv %s5124_s6  ;;  %v5181_v43 = vstv %s5126_s9  ;;  %s5556_s6 = sld [smem:[#allocation9 + $0x10c]]  ;;  %s5567_s9 = sld [smem:[#allocation9 + $0x10d]] }
 0x13d   :  { %8394 = vst [vmem:[#allocation57_spill] sm:$0xff] %v5173_v59  ;;  %v2627_v6 = vmul.f32 %v8193_v39, %v5173_v59  ;;  %v5187_v1 = vmax.f32 %v2799_v21, 0.0  ;;  %v358_v40 = vmul.f32 %v5178_v47, %v8397_v16  ;;  %v548_v19 = vmul.f32 %v5181_v43, %v8398_v35 }
 0x13e   :  { %v2255_v29 = vadd.f32 %v2247_v7, %v2065_v61  ;;  %v5197_v50 = vmax.f32 %v2989_v5, 0.0  ;;  %v5200_v12 = vstv %s5139_s10  ;;  %v5203_v39 = vstv %s5141_s11  ;;  %s5578_s10 = sld [smem:[#allocation9 + $0x10e]]  ;;  %s5590_s11 = sld [smem:[#allocation9 + $0x10f]] }
 0x13f   :  { %8396 = vst [vmem:[#allocation60_spill] sm:$0xff] %v5187_v1  ;;  %v366_v32 = vadd.f32 %v358_v40, %v168_v14  ;;  %v738_v31 = vmul.f32 %v5200_v12, %v8400_v3  ;;  %v2817_v38 = vmul.f32 %v8197_v11, %v5187_v1  ;;  %v5210_v51 = vstv %s5154_s12  ;;  %v8402_v11 = vld [vmem:[#allocation44_spill] sm:$0xff]  ;;  %v8405_v40 = vld [vmem:[#allocation86_spill] sm:$0xff]  ;;  %v8416_v1 = vld [vmem:[#allocation87_spill] sm:$0xff]  ;;  %s5607_s12 = sld [smem:[#allocation10 + $0x2]] }
 0x140   :  { %8399 = vst [vmem:[#allocation46_spill] sm:$0xff] %v5197_v50  ;;  %v2445_v36 = vadd.f32 %v2437_v13, %v2255_v29  ;;  %v928_v60 = vmul.f32 %v5203_v39, %v8401_v45  ;;  %v3007_v49 = vmul.f32 %v4112_v58, %v5197_v50  ;;  %v5217_v23 = vstv %s5167_s13  ;;  %v8406_v29 = vld [vmem:[#allocation88_spill] sm:$0xff]  ;;  %v8412_v50 = vld [vmem:[#allocation90_spill] sm:$0xff]  ;;  %v8437_v45 = vld [vmem:[#allocation81_spill] sm:$0xff]  ;;  %s5808_s13 = sld [smem:[#allocation9 + $0x180]] }
 0x141   :  { %v556_v0 = vadd.f32 %v548_v19, %v366_v32  ;;  %v5220_v37 = vstv %s5169_s14  ;;  %v1118_v41 = vmul.f32 %v5210_v51, %v8402_v11  ;;  %v1308_v7 = vmul.f32 %v5217_v23, %v8403_v48  ;;  %v8438_v3 = vld [vmem:[#allocation111_spill] sm:$0xff]  ;;  %s5815_s14 = sld [smem:[#allocation9 + $0x181]] }
 0x142   :  { %v2635_v25 = vadd.f32 %v2627_v6, %v2445_v36  ;;  %v1498_v54 = vmul.f32 %v5220_v37, %v8404_v53  ;;  %v5231_v27 = vstv %s5183_s15  ;;  %v5234_v24 = vstv %s5193_s16  ;;  %s5821_s15 = sld [smem:[#allocation9 + $0x182]]  ;;  %s5823_s16 = sld [smem:[#allocation9 + $0x183]] }
 0x143   :  { %v746_v10 = vadd.f32 %v738_v31, %v556_v0  ;;  %v5237_v30 = vstv %s5195_s17  ;;  %v5239_v13 = vstv %s3435_s18  ;;  %v5241_v14 = vstv %s3446_s0  ;;  %v8407_v31 = vld [vmem:[#allocation89_spill] sm:$0xff]  ;;  %v8408_v0 = vld [vmem:[#allocation59_spill] sm:$0xff]  ;;  %s5833_s17 = sld [smem:[#allocation9 + $0x184]]  ;;  %s5839_s18 = sld [smem:[#allocation9 + $0x185]] }
 0x144   :  { %v2825_v55 = vadd.f32 %v2817_v38, %v2635_v25  ;;  %v5243_v61 = vstv %s3457_s1  ;;  %v5245_v5 = vstv %s3468_s3  ;;  %v169_v19 = vmul.f32 %v5165_v33, %v8405_v40  ;;  %v8409_v25 = vld [vmem:[#allocation64_spill] sm:$0xff]  ;;  %s5849_s0 = sld [smem:[#allocation9 + $0x186]]  ;;  %s5862_s1 = sld [smem:[#allocation9 + $0x187]] }
 0x145   :  { %v936_v2 = vadd.f32 %v928_v60, %v746_v10  ;;  %v359_v32 = vmul.f32 %v5178_v47, %v8406_v29  ;;  %v549_v36 = vmul.f32 %v5181_v43, %v8407_v31  ;;  %v1688_v60 = vmul.f32 %v5231_v27, %v8408_v0  ;;  %v8414_v40 = vld [vmem:[#allocation84_spill] sm:$0xff]  ;;  %v8415_v0 = vld [vmem:[#allocation85_spill] sm:$0xff]  ;;  %s5872_s3 = sld [smem:[#allocation9 + $0x188]] }
 0x146   :  { %v3015_v58 = vadd.f32 %v3007_v49, %v2825_v55  ;;  %v1878_v49 = vmul.f32 %v5234_v24, %v8409_v25  ;;  %v5258_v10 = vstv %s3479_s19  ;;  %v8411_v55 = vld [vmem:[#allocation73_spill] sm:$0xff]  ;;  %v739_v31 = vmul.f32 %v5200_v12, %v8412_v50  ;;  %s5874_s19 = sld [smem:[#allocation9 + $0x189]] }
 0x147   :  { %v1126_v21 = vadd.f32 %v1118_v41, %v936_v2  ;;  %v2258_v2 = vmul.f32 %v5239_v13, %v8411_v55  ;;  %v2638_v25 = vmul.f32 %v5243_v61, %v8414_v40  ;;  %v5275_v59 = vstv %s5224_s20  ;;  %v8420_v40 = vld [vmem:[#allocation29_spill] sm:$0xff]  ;;  %s5894_s20 = sld [smem:[#allocation9 + $0x18a]] }
 0x148   :  { %v3151_v6 = vadd.f32 %v4115_v62, %v3015_v58  ;;  %v8410_v62 = vld [vmem:[#allocation68_spill] sm:$0xff]  ;;  %v367_v58 = vadd.f32 %v359_v32, %v169_v19  ;;  %v8417_v19 = vld [vmem:[#allocation91_spill] sm:$0xff]  ;;  %v360_v53 = vmul.f32 %v5178_v47, %v8420_v40  ;;  %v551_v42 = vmul.f32 %v5181_v43, %v8438_v3  ;;  %v8447_v3 = vld [vmem:[#allocation78_spill] sm:$0xff] }
 0x149   :  { %v1316_v38 = vadd.f32 %v1308_v7, %v1126_v21  ;;  %v2068_v41 = vmul.f32 %v5237_v30, %v8410_v62  ;;  %v8413_v21 = vld [vmem:[#allocation79_spill] sm:$0xff]  ;;  %v3018_v62 = vmul.f32 %v5258_v10, %v8416_v1  ;;  %v929_v32 = vmul.f32 %v5203_v39, %v8417_v19  ;;  %v8426_v40 = vld [vmem:[#allocation96_spill] sm:$0xff] }
 0x14a   :  { %3159 = vst [vmem:[#allocation12 + $0x38] sm:$0xff] %v3151_v6  ;;  %v2448_v29 = vmul.f32 %v5241_v14, %v8413_v21  ;;  %v2828_v6 = vmul.f32 %v5245_v5, %v8415_v0  ;;  %v557_v55 = vadd.f32 %v549_v36, %v367_v58  ;;  %v8419_v21 = vld [vmem:[#allocation101_spill] sm:$0xff]  ;;  %v1309_v1 = vmul.f32 %v5217_v23, %v8421_v18  ;;  %v8423_v58 = vld [vmem:[#allocation102_spill] sm:$0xff] }
 0x14b   :  { %v1506_v7 = vadd.f32 %v1498_v54, %v1316_v38  ;;  %v8418_v54 = vld [vmem:[#allocation92_spill] sm:$0xff]  ;;  %v170_v26 = vmul.f32 %v5165_v33, %v8419_v21  ;;  %v1499_v36 = vmul.f32 %v5220_v37, %v8422_v56  ;;  %v550_v19 = vmul.f32 %v5181_v43, %v8423_v58  ;;  %v8429_v58 = vld [vmem:[#allocation66_spill] sm:$0xff] }
 0x14c   :  { %v1119_v38 = vmul.f32 %v5210_v51, %v8418_v54  ;;  %v747_v0 = vadd.f32 %v739_v31, %v557_v55  ;;  %v740_v21 = vmul.f32 %v5200_v12, %v8425_v28  ;;  %v1879_v31 = vmul.f32 %v5234_v24, %v8426_v40  ;;  %v8427_v55 = vld [vmem:[#allocation97_spill] sm:$0xff]  ;;  %v8431_v28 = vld [vmem:[#allocation71_spill] sm:$0xff] }
 0x14d   :  { %v1696_v50 = vadd.f32 %v1688_v60, %v1506_v7  ;;  %v8424_v7 = vld [vmem:[#allocation95_spill] sm:$0xff]  ;;  %v368_v48 = vadd.f32 %v360_v53, %v170_v26  ;;  %v2069_v18 = vmul.f32 %v5237_v30, %v8427_v55  ;;  %v2259_v56 = vmul.f32 %v5239_v13, %v8428_v46  ;;  %v8433_v55 = vld [vmem:[#allocation100_spill] sm:$0xff] }
 0x14e   :  { %v1689_v54 = vmul.f32 %v5231_v27, %v8424_v7  ;;  %v937_v11 = vadd.f32 %v929_v32, %v747_v0  ;;  %v8430_v7 = vld [vmem:[#allocation104_spill] sm:$0xff]  ;;  %v5307_v0 = vmul.f32 %v5243_v61, %v8431_v28  ;;  %v8432_v32 = vld [vmem:[#allocation99_spill] sm:$0xff]  ;;  %v5315_v46 = vmul.f32 %v5258_v10, %v8433_v55 }
 0x14f   :  { %v1886_v60 = vadd.f32 %v1878_v49, %v1696_v50  ;;  %v2449_v50 = vmul.f32 %v5241_v14, %v8429_v58  ;;  %v558_v49 = vadd.f32 %v550_v19, %v368_v48  ;;  %v930_v26 = vmul.f32 %v5203_v39, %v8430_v7  ;;  %v8434_v58 = vld [vmem:[#allocation105_spill] sm:$0xff]  ;;  %v8435_v19 = vld [vmem:[#allocation23_spill] sm:$0xff]  ;;  %v8436_v7 = vld [vmem:[#allocation106_spill] sm:$0xff] }
 0x150   :  { %v1127_v53 = vadd.f32 %v1119_v38, %v937_v11  ;;  %v5311_v40 = vmul.f32 %v5245_v5, %v8432_v32  ;;  %v1120_v48 = vmul.f32 %v5210_v51, %v8434_v58  ;;  %v171_v11 = vmul.f32 %v5165_v33, %v8435_v19  ;;  %v8441_v19 = vld [vmem:[#allocation69_spill] sm:$0xff] }
 0x151   :  { %v2076_v4 = vadd.f32 %v2068_v41, %v1886_v60  ;;  %v748_v60 = vadd.f32 %v740_v21, %v558_v49  ;;  %v1310_v28 = vmul.f32 %v5217_v23, %v8436_v7  ;;  %v361_v32 = vmul.f32 %v5178_v47, %v8437_v45  ;;  %v8440_v21 = vld [vmem:[#allocation108_spill] sm:$0xff] }
 0x152   :  { %v1317_v38 = vadd.f32 %v1309_v1, %v1127_v53  ;;  %v1690_v49 = vmul.f32 %v5231_v27, %v8440_v21  ;;  %v1880_v1 = vmul.f32 %v5234_v24, %v8441_v19  ;;  %v8442_v7 = vld [vmem:[#allocation112_spill] sm:$0xff] }
 0x153   :  { %v2266_v41 = vadd.f32 %v2258_v2, %v2076_v4  ;;  %v938_v35 = vadd.f32 %v930_v26, %v748_v60  ;;  %v8439_v4 = vld [vmem:[#allocation107_spill] sm:$0xff]  ;;  %v369_v53 = vadd.f32 %v361_v32, %v171_v11  ;;  %v741_v16 = vmul.f32 %v5200_v12, %v8442_v7  ;;  %v8444_v26 = vld [vmem:[#allocation109_spill] sm:$0xff] }
 0x154   :  { %v1500_v2 = vmul.f32 %v5220_v37, %v8439_v4  ;;  %v1507_v58 = vadd.f32 %v1499_v36, %v1317_v38  ;;  %v8445_v4 = vld [vmem:[#allocation110_spill] sm:$0xff]  ;;  %v8446_v38 = vld [vmem:[#allocation35_spill] sm:$0xff] }
 0x155   :  { %v2456_v55 = vadd.f32 %v2448_v29, %v2266_v41  ;;  %v1128_v57 = vadd.f32 %v1120_v48, %v938_v35  ;;  %v2070_v29 = vmul.f32 %v5237_v30, %v8443_v17  ;;  %v2260_v41 = vmul.f32 %v5239_v13, %v8444_v26  ;;  %v8448_v35 = vld [vmem:[#allocation76_spill] sm:$0xff]  ;;  %v8449_v17 = vld [vmem:[#allocation25_spill] sm:$0xff] }
 0x156   :  { %v1697_v60 = vadd.f32 %v1689_v54, %v1507_v58  ;;  %v2450_v21 = vmul.f32 %v5241_v14, %v8445_v4  ;;  %v559_v36 = vadd.f32 %v551_v42, %v369_v53  ;;  %v931_v19 = vmul.f32 %v5203_v39, %v8446_v38  ;;  %v8450_v58 = vld [vmem:[#allocation113_spill] sm:$0xff]  ;;  %v8451_v38 = vld [vmem:[#allocation119_spill] sm:$0xff] }
 0x157   :  { %v2646_v45 = vadd.f32 %v2638_v25, %v2456_v55  ;;  %v1318_v11 = vadd.f32 %v1310_v28, %v1128_v57  ;;  %v2640_v25 = vmul.f32 %v5243_v61, %v8447_v3  ;;  %v2830_v55 = vmul.f32 %v5245_v5, %v8448_v35  ;;  %v8452_v57 = vld [vmem:[#allocation120_spill] sm:$0xff]  ;;  %v8453_v35 = vld [vmem:[#allocation114_spill] sm:$0xff] }
 0x158   :  { %v1887_v48 = vadd.f32 %v1879_v31, %v1697_v60  ;;  %v5349_v26 = vmul.f32 %v5258_v10, %v8449_v17  ;;  %v749_v54 = vadd.f32 %v741_v16, %v559_v36  ;;  %v1121_v42 = vmul.f32 %v5210_v51, %v8450_v58  ;;  %v8454_v60 = vld [vmem:[#allocation121_spill] sm:$0xff] }
 0x159   :  { %v2836_v32 = vadd.f32 %v2828_v6, %v2646_v45  ;;  %v1508_v4 = vadd.f32 %v1500_v2, %v1318_v11  ;;  %v172_v28 = vmul.f32 %v5165_v33, %v8451_v38  ;;  %v362_v45 = vmul.f32 %v5178_v47, %v8452_v57  ;;  %v8456_v38 = vld [vmem:[#allocation115_spill] sm:$0xff] }
 0x15a   :  { %v2077_v6 = vadd.f32 %v2069_v18, %v1887_v48  ;;  %v939_v3 = vadd.f32 %v931_v19, %v749_v54  ;;  %v1311_v31 = vmul.f32 %v5217_v23, %v8453_v35  ;;  %v552_v17 = vmul.f32 %v5181_v43, %v8454_v60  ;;  %v8457_v18 = vld [vmem:[#allocation62_spill] sm:$0xff] }
 0x15b   :  { %v3026_v53 = vadd.f32 %v3018_v62, %v2836_v32  ;;  %v1698_v36 = vadd.f32 %v1690_v49, %v1508_v4  ;;  %v370_v58 = vadd.f32 %v362_v45, %v172_v28  ;;  %v8455_v62 = vld [vmem:[#allocation122_spill] sm:$0xff]  ;;  %v1501_v57 = vmul.f32 %v5220_v37, %v8456_v38  ;;  %v8460_v45 = vld [vmem:[#allocation65_spill] sm:$0xff] }
 0x15c   :  { %v742_v2 = vmul.f32 %v5200_v12, %v8455_v62  ;;  %v2267_v32 = vadd.f32 %v2259_v56, %v2077_v6  ;;  %v1129_v11 = vadd.f32 %v1121_v42, %v939_v3  ;;  %v1691_v19 = vmul.f32 %v5231_v27, %v8457_v18  ;;  %v8458_v54 = vld [vmem:[#allocation58_spill] sm:$0xff]  ;;  %v8461_v3 = vld [vmem:[#allocation116_spill] sm:$0xff]  ;;  %v8462_v38 = vld [vmem:[#allocation117_spill] sm:$0xff] }
 0x15d   :  { %v3162_v16 = vadd.f32 %v5275_v59, %v3026_v53  ;;  %v1888_v48 = vadd.f32 %v1880_v1, %v1698_v36  ;;  %v1881_v60 = vmul.f32 %v5234_v24, %v8458_v54  ;;  %v560_v35 = vadd.f32 %v552_v17, %v370_v58  ;;  %v8459_v53 = vld [vmem:[#allocation123_spill] sm:$0xff]  ;;  %v8463_v36 = vld [vmem:[#allocation124_spill] sm:$0xff] }
 0x15e   :  { %v932_v4 = vmul.f32 %v5203_v39, %v8459_v53  ;;  %v2457_v49 = vadd.f32 %v2449_v50, %v2267_v32  ;;  %v1319_v28 = vadd.f32 %v1311_v31, %v1129_v11  ;;  %v2071_v56 = vmul.f32 %v5237_v30, %v8460_v45  ;;  %v8464_v53 = vld [vmem:[#allocation118_spill] sm:$0xff]  ;;  %v8465_v31 = vld [vmem:[#allocation19_spill] sm:$0xff] }
 0x15f   :  { %3171 = vst [vmem:[#allocation12 + $0x40] sm:$0xff] %v3162_v16  ;;  %v2261_v42 = vmul.f32 %v5239_v13, %v8461_v3  ;;  %v2078_v6 = vadd.f32 %v2070_v29, %v1888_v48  ;;  %v2451_v16 = vmul.f32 %v5241_v14, %v8462_v38  ;;  %v750_v1 = vadd.f32 %v742_v2, %v560_v35  ;;  %v8466_v3 = vld [vmem:[#allocation125_spill] sm:$0xff]  ;;  %v8468_v38 = vld [vmem:[#allocation130_spill] sm:$0xff] }
 0x160   :  { %v1122_v54 = vmul.f32 %v5210_v51, %v8463_v36  ;;  %v2647_v17 = vadd.f32 %v5307_v0, %v2457_v49  ;;  %v1509_v58 = vadd.f32 %v1501_v57, %v1319_v28  ;;  %v2641_v50 = vmul.f32 %v5243_v61, %v8464_v53  ;;  %v8467_v48 = vld [vmem:[#allocation129_spill] sm:$0xff]  ;;  %v8469_v57 = vld [vmem:[#allocation131_spill] sm:$0xff]  ;;  %v8470_v53 = vld [vmem:[#allocation22_spill] sm:$0xff] }
 0x161   :  { %v2831_v32 = vmul.f32 %v5245_v5, %v8465_v31  ;;  %v2268_v11 = vadd.f32 %v2260_v41, %v2078_v6  ;;  %v940_v45 = vadd.f32 %v932_v4, %v750_v1  ;;  %v1312_v29 = vmul.f32 %v5217_v23, %v8466_v3  ;;  %v8471_v6 = vld [vmem:[#allocation37_spill] sm:$0xff] }
 0x162   :  { %v173_v35 = vmul.f32 %v5165_v33, %v8467_v48  ;;  %v2837_v2 = vadd.f32 %v5311_v40, %v2647_v17  ;;  %v1699_v36 = vadd.f32 %v1691_v19, %v1509_v58  ;;  %v363_v0 = vmul.f32 %v5178_v47, %v8468_v38  ;;  %v8472_v40 = vld [vmem:[#allocation132_spill] sm:$0xff] }
 0x163   :  { %v553_v49 = vmul.f32 %v5181_v43, %v8469_v57  ;;  %v2458_v28 = vadd.f32 %v2450_v21, %v2268_v11  ;;  %v3021_v41 = vmul.f32 %v5258_v10, %v8470_v53  ;;  %v1130_v4 = vadd.f32 %v1122_v54, %v940_v45  ;;  %v8473_v38 = vld [vmem:[#allocation48_spill] sm:$0xff]  ;;  %v8474_v21 = vld [vmem:[#allocation41_spill] sm:$0xff] }
 0x164   :  { %v1502_v1 = vmul.f32 %v5220_v37, %v8471_v6  ;;  %v3027_v31 = vadd.f32 %v5315_v46, %v2837_v2  ;;  %v1889_v48 = vadd.f32 %v1881_v60, %v1699_v36  ;;  %v371_v3 = vadd.f32 %v363_v0, %v173_v35  ;;  %v8475_v6 = vld [vmem:[#allocation133_spill] sm:$0xff]  ;;  %v8476_v35 = vld [vmem:[#allocation126_spill] sm:$0xff] }
 0x165   :  { %v743_v19 = vmul.f32 %v5200_v12, %v8472_v40  ;;  %v2648_v17 = vadd.f32 %v2640_v25, %v2458_v28  ;;  %v1320_v58 = vadd.f32 %v1312_v29, %v1130_v4  ;;  %v1692_v57 = vmul.f32 %v5231_v27, %v8473_v38  ;;  %v8477_v25 = vld [vmem:[#allocation127_spill] sm:$0xff]  ;;  %v8478_v28 = vld [vmem:[#allocation128_spill] sm:$0xff] }
 0x166   :  { %v1882_v11 = vmul.f32 %v5234_v24, %v8474_v21  ;;  %v3163_v54 = vadd.f32 %v5275_v59, %v3027_v31  ;;  %v2079_v45 = vadd.f32 %v2071_v56, %v1889_v48  ;;  %v561_v53 = vadd.f32 %v553_v49, %v371_v3  ;;  %v8479_v31 = vld [vmem:[#allocation45_spill] sm:$0xff] }
 0x167   :  { %v933_v46 = vmul.f32 %v5203_v39, %v8475_v6  ;;  %v2838_v60 = vadd.f32 %v2830_v55, %v2648_v17  ;;  %v1510_v36 = vadd.f32 %v1502_v1, %v1320_v58  ;;  %v2072_v2 = vmul.f32 %v5237_v30, %v8476_v35  ;;  %v8480_v55 = vld [vmem:[#allocation83_spill] sm:$0xff]  ;;  %v8481_v1 = vld [vmem:[#allocation18_spill] sm:$0xff] }
 0x168   :  { %v2262_v29 = vmul.f32 %v5239_v13, %v8477_v25  ;;  %3172 = vst [vmem:[#allocation12 + $0x48] sm:$0xff] %v3163_v54  ;;  %v2269_v0 = vadd.f32 %v2261_v42, %v2079_v45  ;;  %v2452_v4 = vmul.f32 %v5241_v14, %v8478_v28  ;;  %v751_v21 = vadd.f32 %v743_v19, %v561_v53  ;;  %v8482_v54 = vld [vmem:[#allocation134_spill] sm:$0xff] }
 0x169   :  { %v1123_v56 = vmul.f32 %v5210_v51, %v8479_v31  ;;  %v3028_v3 = vadd.f32 %v5349_v26, %v2838_v60  ;;  %v1700_v48 = vadd.f32 %v1692_v57, %v1510_v36  ;;  %v2642_v49 = vmul.f32 %v5243_v61, %v8480_v55  ;;  %v8483_v45 = vld [vmem:[#allocation142_spill] sm:$0xff]  ;;  %v8484_v31 = vld [vmem:[#allocation143_spill] sm:$0xff]  ;;  %v8485_v57 = vld [vmem:[#allocation144_spill] sm:$0xff] }
 0x16a   :  { %v2832_v17 = vmul.f32 %v5245_v5, %v8481_v1  ;;  %v2459_v58 = vadd.f32 %v2451_v16, %v2269_v0  ;;  %v941_v25 = vadd.f32 %v933_v46, %v751_v21  ;;  %v1313_v42 = vmul.f32 %v5217_v23, %v8482_v54  ;;  %v8486_v55 = vld [vmem:[#allocation20_spill] sm:$0xff]  ;;  %v8487_v46 = vld [vmem:[#allocation135_spill] sm:$0xff] }
 0x16b   :  { %v174_v53 = vmul.f32 %v5165_v33, %v8483_v45  ;;  %v3164_v19 = vadd.f32 %v5275_v59, %v3028_v3  ;;  %v1890_v28 = vadd.f32 %v1882_v11, %v1700_v48  ;;  %v364_v26 = vmul.f32 %v5178_v47, %v8484_v31  ;;  %v8488_v45 = vld [vmem:[#allocation136_spill] sm:$0xff]  ;;  %v8489_v48 = vld [vmem:[#allocation145_spill] sm:$0xff] }
 0x16c   :  { %v554_v60 = vmul.f32 %v5181_v43, %v8485_v57  ;;  %v2649_v36 = vadd.f32 %v2641_v50, %v2459_v58  ;;  %v3022_v16 = vmul.f32 %v5258_v10, %v8486_v55  ;;  %v1131_v21 = vadd.f32 %v1123_v56, %v941_v25  ;;  %v8490_v57 = vld [vmem:[#allocation137_spill] sm:$0xff]  ;;  %v8491_v58 = vld [vmem:[#allocation138_spill] sm:$0xff]  ;;  %v8492_v55 = vld [vmem:[#allocation139_spill] sm:$0xff] }
 0x16d   :  { %v1503_v0 = vmul.f32 %v5220_v37, %v8487_v46  ;;  %3173 = vst [vmem:[#allocation12 + $0x50] sm:$0xff] %v3164_v19  ;;  %v2080_v1 = vadd.f32 %v2072_v2, %v1890_v28  ;;  %v1693_v3 = vmul.f32 %v5231_v27, %v8488_v45  ;;  %v372_v11 = vadd.f32 %v364_v26, %v174_v53  ;;  %v8493_v28 = vld [vmem:[#allocation146_spill] sm:$0xff] }
 0x16e   :  { %v744_v31 = vmul.f32 %v5200_v12, %v8489_v48  ;;  %v2839_v54 = vadd.f32 %v2831_v32, %v2649_v36  ;;  %v1321_v35 = vadd.f32 %v1313_v42, %v1131_v21  ;;  %v1883_v50 = vmul.f32 %v5234_v24, %v8490_v57  ;;  %v8494_v46 = vld [vmem:[#allocation74_spill] sm:$0xff]  ;;  %v8495_v42 = vld [vmem:[#allocation61_spill] sm:$0xff]  ;;  %v8496_v57 = vld [vmem:[#allocation140_spill] sm:$0xff] }
 0x16f   :  { %v2073_v25 = vmul.f32 %v5237_v30, %v8491_v58  ;;  %v2270_v56 = vadd.f32 %v2262_v29, %v2080_v1  ;;  %v2263_v19 = vmul.f32 %v5239_v13, %v8492_v55  ;;  %v562_v2 = vadd.f32 %v554_v60, %v372_v11  ;;  %v8497_v1 = vld [vmem:[#allocation42_spill] sm:$0xff] }
 0x170   :  { %v934_v45 = vmul.f32 %v5203_v39, %v8493_v28  ;;  %v3029_v53 = vadd.f32 %v3021_v41, %v2839_v54  ;;  %v1511_v26 = vadd.f32 %v1503_v0, %v1321_v35  ;;  %v2453_v32 = vmul.f32 %v5241_v14, %v8494_v46  ;;  %v8498_v41 = vld [vmem:[#allocation147_spill] sm:$0xff] }
 0x171   :  { %v2643_v36 = vmul.f32 %v5243_v61, %v8495_v42  ;;  %v2460_v21 = vadd.f32 %v2452_v4, %v2270_v56  ;;  %v5452_v58 = vmul.f32 %v5245_v5, %v8496_v57  ;;  %v752_v29 = vadd.f32 %v744_v31, %v562_v2  ;;  %v8499_v2 = vld [vmem:[#allocation141_spill] sm:$0xff]  ;;  %v8501_v57 = vld [vmem:[#allocation148_spill] sm:$0xff] }
 0x172   :  { %v1124_v60 = vmul.f32 %v5210_v51, %v8497_v1  ;;  %v3165_v11 = vadd.f32 %v5275_v59, %v3029_v53  ;;  %v1701_v55 = vadd.f32 %v1693_v3, %v1511_v26  ;;  %v1314_v35 = vmul.f32 %v5217_v23, %v8498_v41 }
 0x173   :  { %v175_v54 = vmul.f32 %v5165_v33, %v5038_v8  ;;  %v2650_v4 = vadd.f32 %v2642_v49, %v2460_v21  ;;  %v942_v0 = vadd.f32 %v934_v45, %v752_v29  ;;  %v365_v31 = vmul.f32 %v5178_v47, %v5047_v63  ;;  %v8500_v33 = vld [vmem:[#allocation53_spill] sm:$0xff] }
 0x174   :  { %v555_v56 = vmul.f32 %v5181_v43, %v5051_v52  ;;  %3174 = vst [vmem:[#allocation12 + $0x58] sm:$0xff] %v3165_v11  ;;  %v1891_v3 = vadd.f32 %v1883_v50, %v1701_v55  ;;  %v3023_v53 = vmul.f32 %v5258_v10, %v8499_v2  ;;  %v1504_v26 = vmul.f32 %v5220_v37, %v8500_v33  ;;  %v8502_v50 = vld [vmem:[#allocation149_spill] sm:$0xff]  ;;  %v8503_v11 = vld [vmem:[#allocation70_spill] sm:$0xff]  ;;  %v8504_v2 = vld [vmem:[#allocation55_spill] sm:$0xff] }
 0x175   :  { %v1694_v49 = vmul.f32 %v5231_v27, %v8501_v57  ;;  %v2840_v47 = vadd.f32 %v2832_v17, %v2650_v4  ;;  %v1132_v45 = vadd.f32 %v1124_v60, %v942_v0  ;;  %v373_v43 = vadd.f32 %v365_v31, %v175_v54 }
 0x176   :  { %v745_v21 = vmul.f32 %v5200_v12, %v5064_v34  ;;  %v2081_v55 = vadd.f32 %v2073_v25, %v1891_v3  ;;  %v1884_v29 = vmul.f32 %v5234_v24, %v8502_v50  ;;  %v2074_v33 = vmul.f32 %v5237_v30, %v8503_v11  ;;  %v8559_v11 = vld [vmem:[#allocation108_spill] sm:$0xff] }
 0x177   :  { %v2264_v57 = vmul.f32 %v5239_v13, %v8504_v2  ;;  %v3030_v52 = vadd.f32 %v3022_v16, %v2840_v47  ;;  %v1322_v17 = vadd.f32 %v1314_v35, %v1132_v45  ;;  %v563_v60 = vadd.f32 %v555_v56, %v373_v43  ;;  %v8505_v56 = vld [vmem:[#allocation32_spill] sm:$0xff] }
 0x178   :  { %v935_v12 = vmul.f32 %v5203_v39, %v5072_v20  ;;  %v2271_v25 = vadd.f32 %v2263_v19, %v2081_v55  ;;  %v2454_v54 = vmul.f32 %v5241_v14, %v5001_v22  ;;  %v2644_v4 = vmul.f32 %v5243_v61, %v5011_v44  ;;  %v8544_v22 = vld [vmem:[#allocation95_spill] sm:$0xff] }
 0x179   :  { %v1125_v0 = vmul.f32 %v5210_v51, %v5081_v9  ;;  %v3166_v16 = vadd.f32 %v5275_v59, %v3030_v52  ;;  %v1512_v35 = vadd.f32 %v1504_v26, %v1322_v17  ;;  %v753_v31 = vadd.f32 %v745_v21, %v563_v60  ;;  %v8506_v26 = vld [vmem:[#allocation28_spill] sm:$0xff] }
 0x17a   :  { %v1315_v39 = vmul.f32 %v5217_v23, %v5086_v15  ;;  %v2461_v19 = vadd.f32 %v2453_v32, %v2271_v25  ;;  %v1505_v3 = vmul.f32 %v5220_v37, %v8505_v56  ;;  %v5507_v47 = vstv %s5461_s21  ;;  %v8507_v23 = vld [vmem:[#allocation30_spill] sm:$0xff]  ;;  %s5896_s21 = sld [smem:[#allocation9 + $0x18b]] }
 0x17b   :  { %v5510_v45 = vstv %s5463_s22  ;;  %3175 = vst [vmem:[#allocation12 + $0x60] sm:$0xff] %v3166_v16  ;;  %v1702_v52 = vadd.f32 %v1694_v49, %v1512_v35  ;;  %v943_v51 = vadd.f32 %v935_v12, %v753_v31  ;;  %v186_v43 = vmul.f32 %v5507_v47, %v8506_v26  ;;  %v8508_v12 = vld [vmem:[#allocation33_spill] sm:$0xff]  ;;  %v8509_v31 = vld [vmem:[#allocation43_spill] sm:$0xff]  ;;  %s5903_s22 = sld [smem:[#allocation9 + $0x18c]] }
 0x17c   :  { %v376_v32 = vmul.f32 %v5510_v45, %v8507_v23  ;;  %v2651_v21 = vadd.f32 %v2643_v36, %v2461_v19  ;;  %v5521_v37 = vstv %s5469_s4  ;;  %v5524_v55 = vstv %s5477_s23  ;;  %v8510_v19 = vld [vmem:[#allocation38_spill] sm:$0xff]  ;;  %s5910_s4 = sld [smem:[#allocation9 + $0x18d]]  ;;  %s5912_s23 = sld [smem:[#allocation9 + $0x18e]] }
 0x17d   :  { %v5527_v17 = vstv %s5479_s24  ;;  %v1892_v60 = vadd.f32 %v1884_v29, %v1702_v52  ;;  %v1133_v49 = vadd.f32 %v1125_v0, %v943_v51  ;;  %v566_v16 = vmul.f32 %v5521_v37, %v8508_v12  ;;  %v8511_v29 = vld [vmem:[#allocation40_spill] sm:$0xff]  ;;  %v8540_v12 = vld [vmem:[#allocation102_spill] sm:$0xff]  ;;  %s5937_s24 = sld [smem:[#allocation9 + $0x18f]] }
 0x17e   :  { %v384_v25 = vadd.f32 %v376_v32, %v186_v43  ;;  %v2841_v35 = vadd.f32 %v5452_v58, %v2651_v21  ;;  %v1695_v36 = vmul.f32 %v5231_v27, %v8509_v31  ;;  %v756_v56 = vmul.f32 %v5524_v55, %v8510_v19  ;;  %v8512_v51 = vld [vmem:[#allocation152_spill] sm:$0xff]  ;;  %v8513_v43 = vld [vmem:[#allocation47_spill] sm:$0xff]  ;;  %v8539_v19 = vld [vmem:[#allocation29_spill] sm:$0xff] }
 0x17f   :  { %v5539_v23 = vstv %s5489_s25  ;;  %v2082_v26 = vadd.f32 %v2074_v33, %v1892_v60  ;;  %v1323_v15 = vadd.f32 %v1315_v39, %v1133_v49  ;;  %v946_v0 = vmul.f32 %v5527_v17, %v8511_v29  ;;  %v8514_v60 = vld [vmem:[#allocation44_spill] sm:$0xff]  ;;  %s5943_s25 = sld [smem:[#allocation10 + $0x3]] }
 0x180   :  { %v574_v9 = vadd.f32 %v566_v16, %v384_v25  ;;  %v3031_v52 = vadd.f32 %v3023_v53, %v2841_v35  ;;  %v2834_v58 = vmul.f32 %v5245_v5, %v8512_v51  ;;  %v1885_v27 = vmul.f32 %v5234_v24, %v8513_v43  ;;  %v8515_v25 = vld [vmem:[#allocation49_spill] sm:$0xff] }
 0x181   :  { %v5548_v32 = vstv %s5499_s26  ;;  %v2272_v33 = vadd.f32 %v2264_v57, %v2082_v26  ;;  %v1513_v39 = vadd.f32 %v1505_v3, %v1323_v15  ;;  %v1136_v49 = vmul.f32 %v5539_v23, %v8514_v60  ;;  %v8517_v26 = vld [vmem:[#allocation24_spill] sm:$0xff]  ;;  %s6160_s26 = sld [smem:[#allocation9 + $0x200]] }
 0x182   :  { %v764_v21 = vadd.f32 %v756_v56, %v574_v9  ;;  %v3167_v53 = vadd.f32 %v5275_v59, %v3031_v52  ;;  %v2075_v24 = vmul.f32 %v5237_v30, %v8515_v25  ;;  %v5562_v16 = vstv %s5512_s27  ;;  %v8516_v9 = vld [vmem:[#allocation50_spill] sm:$0xff]  ;;  %v8518_v52 = vld [vmem:[#allocation52_spill] sm:$0xff]  ;;  %s6162_s27 = sld [smem:[#allocation9 + $0x201]] }
 0x183   :  { %v5565_v35 = vstv %s5514_s28  ;;  %v2462_v57 = vadd.f32 %v2454_v54, %v2272_v33  ;;  %v1703_v15 = vadd.f32 %v1695_v36, %v1513_v39  ;;  %v1326_v56 = vmul.f32 %v5548_v32, %v8516_v9  ;;  %v8520_v39 = vld [vmem:[#allocation54_spill] sm:$0xff]  ;;  %s6168_s28 = sld [smem:[#allocation9 + $0x202]] }
 0x184   :  { %v954_v3 = vadd.f32 %v946_v0, %v764_v21  ;;  %3176 = vst [vmem:[#allocation12 + $0x68] sm:$0xff] %v3167_v53  ;;  %v3024_v60 = vmul.f32 %v5258_v10, %v8517_v26  ;;  %v2265_v43 = vmul.f32 %v5239_v13, %v8518_v52  ;;  %v5576_v30 = vstv %s5529_s2  ;;  %v8519_v0 = vld [vmem:[#allocation56_spill] sm:$0xff]  ;;  %v8521_v53 = vld [vmem:[#allocation57_spill] sm:$0xff]  ;;  %v8523_v26 = vld [vmem:[#allocation59_spill] sm:$0xff]  ;;  %s6174_s2 = sld [smem:[#allocation9 + $0x203]] }
 0x185   :  { %v2652_v25 = vadd.f32 %v2644_v4, %v2462_v57  ;;  %v1893_v54 = vadd.f32 %v1885_v27, %v1703_v15  ;;  %v1516_v33 = vmul.f32 %v5562_v16, %v8519_v0  ;;  %v2455_v21 = vmul.f32 %v5241_v14, %v8520_v39  ;;  %v8522_v13 = vld [vmem:[#allocation60_spill] sm:$0xff] }
 0x186   :  { %v1144_v36 = vadd.f32 %v1136_v49, %v954_v3  ;;  %v2645_v9 = vmul.f32 %v5243_v61, %v8521_v53  ;;  %v2835_v52 = vmul.f32 %v5245_v5, %v8522_v13  ;;  %v1706_v29 = vmul.f32 %v5565_v35, %v8523_v26  ;;  %v8524_v57 = vld [vmem:[#allocation64_spill] sm:$0xff]  ;;  %v8525_v61 = vld [vmem:[#allocation86_spill] sm:$0xff] }
 0x187   :  { %v2842_v4 = vadd.f32 %v2834_v58, %v2652_v25  ;;  %v2083_v27 = vadd.f32 %v2075_v24, %v1893_v54  ;;  %v1896_v15 = vmul.f32 %v5576_v30, %v8524_v57  ;;  %v5595_v14 = vstv %s5550_s29  ;;  %v8526_v5 = vld [vmem:[#allocation88_spill] sm:$0xff]  ;;  %s6180_s29 = sld [smem:[#allocation9 + $0x204]] }
 0x188   :  { %v1334_v49 = vadd.f32 %v1326_v56, %v1144_v36  ;;  %v5598_v3 = vstv %s5552_s30  ;;  %v187_v0 = vmul.f32 %v5507_v47, %v8525_v61  ;;  %v377_v13 = vmul.f32 %v5510_v45, %v8526_v5  ;;  %v8527_v56 = vld [vmem:[#allocation89_spill] sm:$0xff]  ;;  %v8528_v36 = vld [vmem:[#allocation90_spill] sm:$0xff]  ;;  %s6186_s30 = sld [smem:[#allocation9 + $0x205]] }
 0x189   :  { %v3032_v26 = vadd.f32 %v3024_v60, %v2842_v4  ;;  %v2273_v53 = vadd.f32 %v2265_v43, %v2083_v27  ;;  %v5605_v58 = vstv %s5556_s6  ;;  %v5610_v25 = vstv %s5567_s9  ;;  %v8529_v43 = vld [vmem:[#allocation68_spill] sm:$0xff]  ;;  %v8530_v4 = vld [vmem:[#allocation46_spill] sm:$0xff]  ;;  %s6196_s6 = sld [smem:[#allocation9 + $0x206]]  ;;  %s6209_s9 = sld [smem:[#allocation9 + $0x207]] }
 0x18a   :  { %v1524_v39 = vadd.f32 %v1516_v33, %v1334_v49  ;;  %v385_v24 = vadd.f32 %v377_v13, %v187_v0  ;;  %v567_v54 = vmul.f32 %v5521_v37, %v8527_v56  ;;  %v757_v61 = vmul.f32 %v5524_v55, %v8528_v36  ;;  %v8531_v13 = vld [vmem:[#allocation91_spill] sm:$0xff]  ;;  %v8532_v36 = vld [vmem:[#allocation73_spill] sm:$0xff] }
 0x18b   :  { %v3168_v57 = vadd.f32 %v5275_v59, %v3032_v26  ;;  %v2463_v5 = vadd.f32 %v2455_v21, %v2273_v53  ;;  %v2086_v33 = vmul.f32 %v5595_v14, %v8529_v43  ;;  %v3025_v27 = vmul.f32 %v5258_v10, %v8530_v4  ;;  %v8533_v21 = vld [vmem:[#allocation79_spill] sm:$0xff] }
 0x18c   :  { %v1714_v60 = vadd.f32 %v1706_v29, %v1524_v39  ;;  %v5622_v49 = vstv %s5578_s10  ;;  %v575_v0 = vadd.f32 %v567_v54, %v385_v24  ;;  %v947_v56 = vmul.f32 %v5527_v17, %v8531_v13  ;;  %v8534_v39 = vld [vmem:[#allocation84_spill] sm:$0xff]  ;;  %s6218_s10 = sld [smem:[#allocation9 + $0x208]] }
 0x18d   :  { %3177 = vst [vmem:[#allocation12 + $0x70] sm:$0xff] %v3168_v57  ;;  %v2653_v51 = vadd.f32 %v2645_v9, %v2463_v5  ;;  %v2276_v26 = vmul.f32 %v5598_v3, %v8532_v36  ;;  %v2466_v29 = vmul.f32 %v5605_v58, %v8533_v21  ;;  %v2656_v53 = vmul.f32 %v5610_v25, %v8534_v39  ;;  %v8535_v24 = vld [vmem:[#allocation92_spill] sm:$0xff]  ;;  %v8536_v9 = vld [vmem:[#allocation85_spill] sm:$0xff] }
 0x18e   :  { %v1904_v31 = vadd.f32 %v1896_v15, %v1714_v60  ;;  %v5633_v10 = vstv %s5590_s11  ;;  %v765_v43 = vadd.f32 %v757_v61, %v575_v0  ;;  %v1137_v54 = vmul.f32 %v5539_v23, %v8535_v24  ;;  %v8537_v5 = vld [vmem:[#allocation93_spill] sm:$0xff]  ;;  %s6225_s11 = sld [smem:[#allocation9 + $0x209]] }
 0x18f   :  { %v2843_v13 = vadd.f32 %v2835_v52, %v2653_v51  ;;  %v2846_v15 = vmul.f32 %v5622_v49, %v8536_v9  ;;  %v1327_v60 = vmul.f32 %v5548_v32, %v8537_v5  ;;  %v8538_v21 = vld [vmem:[#allocation101_spill] sm:$0xff]  ;;  %v378_v39 = vmul.f32 %v5510_v45, %v8539_v19  ;;  %v8541_v51 = vld [vmem:[#allocation87_spill] sm:$0xff]  ;;  %v8542_v9 = vld [vmem:[#allocation94_spill] sm:$0xff] }
 0x190   :  { %v2094_v57 = vadd.f32 %v2086_v33, %v1904_v31  ;;  %v955_v36 = vadd.f32 %v947_v56, %v765_v43  ;;  %v188_v4 = vmul.f32 %v5507_v47, %v8538_v21  ;;  %v568_v61 = vmul.f32 %v5521_v37, %v8540_v12  ;;  %v8543_v5 = vld [vmem:[#allocation103_spill] sm:$0xff]  ;;  %v8547_v12 = vld [vmem:[#allocation104_spill] sm:$0xff] }
 0x191   :  { %v3033_v0 = vadd.f32 %v3025_v27, %v2843_v13  ;;  %v3036_v31 = vmul.f32 %v5633_v10, %v8541_v51  ;;  %v5650_v52 = vstv %s5607_s12  ;;  %v1517_v56 = vmul.f32 %v5562_v16, %v8542_v9  ;;  %v8545_v13 = vld [vmem:[#allocation96_spill] sm:$0xff]  ;;  %v8546_v51 = vld [vmem:[#allocation97_spill] sm:$0xff]  ;;  %v8555_v9 = vld [vmem:[#allocation111_spill] sm:$0xff]  ;;  %s6241_s12 = sld [smem:[#allocation9 + $0x20a]] }
 0x192   :  { %v2284_v24 = vadd.f32 %v2276_v26, %v2094_v57  ;;  %v1145_v33 = vadd.f32 %v1137_v54, %v955_v36  ;;  %v386_v43 = vadd.f32 %v378_v39, %v188_v4  ;;  %v758_v21 = vmul.f32 %v5524_v55, %v8543_v5  ;;  %v8548_v5 = vld [vmem:[#allocation98_spill] sm:$0xff] }
 0x193   :  { %v3169_v19 = vadd.f32 %v5275_v59, %v3033_v0  ;;  %v1707_v27 = vmul.f32 %v5565_v35, %v8544_v22  ;;  %v1897_v26 = vmul.f32 %v5576_v30, %v8545_v13  ;;  %v2087_v36 = vmul.f32 %v5595_v14, %v8546_v51  ;;  %v8550_v0 = vld [vmem:[#allocation71_spill] sm:$0xff] }
 0x194   :  { %v2474_v44 = vadd.f32 %v2466_v29, %v2284_v24  ;;  %v1335_v57 = vadd.f32 %v1327_v60, %v1145_v33  ;;  %v576_v54 = vadd.f32 %v568_v61, %v386_v43  ;;  %v948_v4 = vmul.f32 %v5527_v17, %v8547_v12  ;;  %v8549_v29 = vld [vmem:[#allocation66_spill] sm:$0xff]  ;;  %v8551_v60 = vld [vmem:[#allocation99_spill] sm:$0xff]  ;;  %v8552_v61 = vld [vmem:[#allocation105_spill] sm:$0xff] }
 0x195   :  { %3178 = vst [vmem:[#allocation12 + $0x78] sm:$0xff] %v3169_v19  ;;  %v2277_v59 = vmul.f32 %v5598_v3, %v8548_v5  ;;  %v2467_v24 = vmul.f32 %v5605_v58, %v8549_v29  ;;  %v2657_v22 = vmul.f32 %v5610_v25, %v8550_v0  ;;  %v2847_v33 = vmul.f32 %v5622_v49, %v8551_v60  ;;  %v8553_v19 = vld [vmem:[#allocation23_spill] sm:$0xff]  ;;  %v8556_v0 = vld [vmem:[#allocation100_spill] sm:$0xff]  ;;  %v8557_v60 = vld [vmem:[#allocation106_spill] sm:$0xff] }
 0x196   :  { %v2664_v39 = vadd.f32 %v2656_v53, %v2474_v44  ;;  %v1525_v13 = vadd.f32 %v1517_v56, %v1335_v57  ;;  %v766_v51 = vadd.f32 %v758_v21, %v576_v54  ;;  %v1138_v43 = vmul.f32 %v5539_v23, %v8552_v61  ;;  %v8554_v53 = vld [vmem:[#allocation81_spill] sm:$0xff]  ;;  %v8558_v61 = vld [vmem:[#allocation107_spill] sm:$0xff] }
 0x197   :  { %v189_v44 = vmul.f32 %v5507_v47, %v8553_v19  ;;  %v379_v5 = vmul.f32 %v5510_v45, %v8554_v53  ;;  %v569_v29 = vmul.f32 %v5521_v37, %v8555_v9  ;;  %v3037_v56 = vmul.f32 %v5633_v10, %v8556_v0 }
 0x198   :  { %v2854_v12 = vadd.f32 %v2846_v15, %v2664_v39  ;;  %v1715_v2 = vadd.f32 %v1707_v27, %v1525_v13  ;;  %v956_v57 = vadd.f32 %v948_v4, %v766_v51  ;;  %v1328_v21 = vmul.f32 %v5548_v32, %v8557_v60  ;;  %v8560_v13 = vld [vmem:[#allocation69_spill] sm:$0xff]  ;;  %v8561_v4 = vld [vmem:[#allocation51_spill] sm:$0xff] }
 0x199   :  { %v1518_v15 = vmul.f32 %v5562_v16, %v8558_v61  ;;  %v387_v39 = vadd.f32 %v379_v5, %v189_v44  ;;  %v759_v19 = vmul.f32 %v5524_v55, %v8442_v7  ;;  %v1708_v27 = vmul.f32 %v5565_v35, %v8559_v11  ;;  %v8562_v60 = vld [vmem:[#allocation35_spill] sm:$0xff]  ;;  %v8563_v7 = vld [vmem:[#allocation109_spill] sm:$0xff] }
 0x19a   :  { %v3044_v54 = vadd.f32 %v3036_v31, %v2854_v12  ;;  %v1905_v53 = vadd.f32 %v1897_v26, %v1715_v2  ;;  %v1146_v20 = vadd.f32 %v1138_v43, %v956_v57  ;;  %v1898_v0 = vmul.f32 %v5576_v30, %v8560_v13  ;;  %v8564_v26 = vld [vmem:[#allocation110_spill] sm:$0xff] }
 0x19b   :  { %v2088_v12 = vmul.f32 %v5595_v14, %v8561_v4  ;;  %v577_v31 = vadd.f32 %v569_v29, %v387_v39  ;;  %v949_v5 = vmul.f32 %v5527_v17, %v8562_v60  ;;  %v2278_v2 = vmul.f32 %v5598_v3, %v8563_v7  ;;  %v8565_v57 = vld [vmem:[#allocation78_spill] sm:$0xff]  ;;  %v8567_v29 = vld [vmem:[#allocation113_spill] sm:$0xff] }
 0x19c   :  { %v3181_v51 = vadd.f32 %v5650_v52, %v3044_v54  ;;  %v2095_v44 = vadd.f32 %v2087_v36, %v1905_v53  ;;  %v1336_v61 = vadd.f32 %v1328_v21, %v1146_v20  ;;  %v2468_v43 = vmul.f32 %v5605_v58, %v8564_v26  ;;  %v8566_v54 = vld [vmem:[#allocation76_spill] sm:$0xff]  ;;  %v8568_v20 = vld [vmem:[#allocation119_spill] sm:$0xff]  ;;  %v8570_v26 = vld [vmem:[#allocation25_spill] sm:$0xff] }
 0x19d   :  { %v2658_v13 = vmul.f32 %v5610_v25, %v8565_v57  ;;  %v2848_v11 = vmul.f32 %v5622_v49, %v8566_v54  ;;  %v767_v4 = vadd.f32 %v759_v19, %v577_v31  ;;  %v1139_v39 = vmul.f32 %v5539_v23, %v8567_v29  ;;  %v8569_v21 = vld [vmem:[#allocation120_spill] sm:$0xff]  ;;  %v8571_v57 = vld [vmem:[#allocation114_spill] sm:$0xff]  ;;  %v8572_v54 = vld [vmem:[#allocation121_spill] sm:$0xff] }
 0x19e   :  { %3190 = vst [vmem:[#allocation12 + $0x80] sm:$0xff] %v3181_v51  ;;  %v2285_v60 = vadd.f32 %v2277_v59, %v2095_v44  ;;  %v1526_v36 = vadd.f32 %v1518_v15, %v1336_v61  ;;  %v190_v53 = vmul.f32 %v5507_v47, %v8568_v20  ;;  %v380_v7 = vmul.f32 %v5510_v45, %v8569_v21  ;;  %v8573_v44 = vld [vmem:[#allocation115_spill] sm:$0xff] }
 0x19f   :  { %v3038_v51 = vmul.f32 %v5633_v10, %v8570_v26  ;;  %v957_v9 = vadd.f32 %v949_v5, %v767_v4  ;;  %v1329_v50 = vmul.f32 %v5548_v32, %v8571_v57  ;;  %v570_v19 = vmul.f32 %v5521_v37, %v8572_v54  ;;  %v8574_v4 = vld [vmem:[#allocation58_spill] sm:$0xff]  ;;  %v8575_v54 = vld [vmem:[#allocation123_spill] sm:$0xff] }
 0x1a0   :  { %v2475_v31 = vadd.f32 %v2467_v24, %v2285_v60  ;;  %v1716_v29 = vadd.f32 %v1708_v27, %v1526_v36  ;;  %v388_v59 = vadd.f32 %v380_v7, %v190_v53  ;;  %v760_v61 = vmul.f32 %v5524_v55, %v8455_v62  ;;  %v8576_v60 = vld [vmem:[#allocation65_spill] sm:$0xff] }
 0x1a1   :  { %v1147_v15 = vadd.f32 %v1139_v39, %v957_v9  ;;  %v1519_v21 = vmul.f32 %v5562_v16, %v8573_v44  ;;  %v1709_v26 = vmul.f32 %v5565_v35, %v8457_v18  ;;  %v1899_v5 = vmul.f32 %v5576_v30, %v8574_v4  ;;  %v8577_v9 = vld [vmem:[#allocation116_spill] sm:$0xff]  ;;  %v8578_v36 = vld [vmem:[#allocation117_spill] sm:$0xff] }
 0x1a2   :  { %v2665_v57 = vadd.f32 %v2657_v22, %v2475_v31  ;;  %v1906_v20 = vadd.f32 %v1898_v0, %v1716_v29  ;;  %v578_v34 = vadd.f32 %v570_v19, %v388_v59  ;;  %v950_v24 = vmul.f32 %v5527_v17, %v8575_v54  ;;  %v8579_v4 = vld [vmem:[#allocation124_spill] sm:$0xff]  ;;  %v8580_v29 = vld [vmem:[#allocation118_spill] sm:$0xff]  ;;  %v8582_v59 = vld [vmem:[#allocation129_spill] sm:$0xff] }
 0x1a3   :  { %v1337_v7 = vadd.f32 %v1329_v50, %v1147_v15  ;;  %v2089_v27 = vmul.f32 %v5595_v14, %v8576_v60  ;;  %v2279_v39 = vmul.f32 %v5598_v3, %v8577_v9  ;;  %v2469_v53 = vmul.f32 %v5605_v58, %v8578_v36  ;;  %v8581_v50 = vld [vmem:[#allocation125_spill] sm:$0xff]  ;;  %v8583_v36 = vld [vmem:[#allocation130_spill] sm:$0xff] }
 0x1a4   :  { %v2855_v18 = vadd.f32 %v2847_v33, %v2665_v57  ;;  %v2096_v44 = vadd.f32 %v2088_v12, %v1906_v20  ;;  %v768_v62 = vadd.f32 %v760_v61, %v578_v34  ;;  %v1140_v22 = vmul.f32 %v5539_v23, %v8579_v4  ;;  %v8584_v12 = vld [vmem:[#allocation37_spill] sm:$0xff]  ;;  %v8585_v20 = vld [vmem:[#allocation131_spill] sm:$0xff] }
 0x1a5   :  { %v1527_v0 = vadd.f32 %v1519_v21, %v1337_v7  ;;  %v2659_v19 = vmul.f32 %v5610_v25, %v8580_v29  ;;  %v1330_v31 = vmul.f32 %v5548_v32, %v8581_v50  ;;  %v191_v15 = vmul.f32 %v5507_v47, %v8582_v59 }
 0x1a6   :  { %v3045_v9 = vadd.f32 %v3037_v56, %v2855_v18  ;;  %v2286_v60 = vadd.f32 %v2278_v2, %v2096_v44  ;;  %v958_v54 = vadd.f32 %v950_v24, %v768_v62  ;;  %v381_v33 = vmul.f32 %v5510_v45, %v8583_v36  ;;  %v8586_v62 = vld [vmem:[#allocation19_spill] sm:$0xff]  ;;  %v8587_v44 = vld [vmem:[#allocation22_spill] sm:$0xff] }
 0x1a7   :  { %v1717_v34 = vadd.f32 %v1709_v26, %v1527_v0  ;;  %v1520_v57 = vmul.f32 %v5562_v16, %v8584_v12  ;;  %v571_v21 = vmul.f32 %v5521_v37, %v8585_v20  ;;  %v761_v61 = vmul.f32 %v5524_v55, %v8472_v40 }
 0x1a8   :  { %v3182_v7 = vadd.f32 %v5650_v52, %v3045_v9  ;;  %v2476_v50 = vadd.f32 %v2468_v43, %v2286_v60  ;;  %v1148_v59 = vadd.f32 %v1140_v22, %v958_v54  ;;  %v389_v18 = vadd.f32 %v381_v33, %v191_v15  ;;  %v8588_v54 = vld [vmem:[#allocation41_spill] sm:$0xff]  ;;  %v8589_v60 = vld [vmem:[#allocation126_spill] sm:$0xff]  ;;  %v8590_v15 = vld [vmem:[#allocation127_spill] sm:$0xff] }
 0x1a9   :  { %v1907_v56 = vadd.f32 %v1899_v5, %v1717_v34  ;;  %v2849_v2 = vmul.f32 %v5622_v49, %v8586_v62  ;;  %v3039_v26 = vmul.f32 %v5633_v10, %v8587_v44  ;;  %v1710_v24 = vmul.f32 %v5565_v35, %v8473_v38 }
 0x1aa   :  { %3191 = vst [vmem:[#allocation12 + $0x88] sm:$0xff] %v3182_v7  ;;  %v2666_v0 = vadd.f32 %v2658_v13, %v2476_v50  ;;  %v1338_v20 = vadd.f32 %v1330_v31, %v1148_v59  ;;  %v579_v12 = vadd.f32 %v571_v21, %v389_v18  ;;  %v951_v9 = vmul.f32 %v5527_v17, %v8475_v6  ;;  %v8591_v7 = vld [vmem:[#allocation45_spill] sm:$0xff]  ;;  %v8592_v31 = vld [vmem:[#allocation128_spill] sm:$0xff]  ;;  %v8594_v18 = vld [vmem:[#allocation134_spill] sm:$0xff] }
 0x1ab   :  { %v2097_v43 = vadd.f32 %v2089_v27, %v1907_v56  ;;  %v1900_v5 = vmul.f32 %v5576_v30, %v8588_v54  ;;  %v2090_v22 = vmul.f32 %v5595_v14, %v8589_v60  ;;  %v2280_v33 = vmul.f32 %v5598_v3, %v8590_v15  ;;  %v8593_v27 = vld [vmem:[#allocation83_spill] sm:$0xff]  ;;  %v8595_v15 = vld [vmem:[#allocation142_spill] sm:$0xff] }
 0x1ac   :  { %v2856_v34 = vadd.f32 %v2848_v11, %v2666_v0  ;;  %v1528_v44 = vadd.f32 %v1520_v57, %v1338_v20  ;;  %v769_v38 = vadd.f32 %v761_v61, %v579_v12  ;;  %v1141_v13 = vmul.f32 %v5539_v23, %v8591_v7  ;;  %v8596_v57 = vld [vmem:[#allocation18_spill] sm:$0xff]  ;;  %v8598_v0 = vld [vmem:[#allocation144_spill] sm:$0xff] }
 0x1ad   :  { %v2287_v50 = vadd.f32 %v2279_v39, %v2097_v43  ;;  %v2470_v59 = vmul.f32 %v5605_v58, %v8592_v31  ;;  %v2660_v21 = vmul.f32 %v5610_v25, %v8593_v27  ;;  %v1331_v56 = vmul.f32 %v5548_v32, %v8594_v18  ;;  %v8597_v39 = vld [vmem:[#allocation143_spill] sm:$0xff] }
 0x1ae   :  { %v3046_v60 = vadd.f32 %v3038_v51, %v2856_v34  ;;  %v1718_v54 = vadd.f32 %v1710_v24, %v1528_v44  ;;  %v959_v6 = vadd.f32 %v951_v9, %v769_v38  ;;  %v192_v11 = vmul.f32 %v5507_v47, %v8595_v15  ;;  %v8599_v51 = vld [vmem:[#allocation135_spill] sm:$0xff]  ;;  %v8600_v24 = vld [vmem:[#allocation20_spill] sm:$0xff] }
 0x1af   :  { %v2477_v12 = vadd.f32 %v2469_v53, %v2287_v50  ;;  %v2850_v20 = vmul.f32 %v5622_v49, %v8596_v57  ;;  %v382_v61 = vmul.f32 %v5510_v45, %v8597_v39  ;;  %v572_v43 = vmul.f32 %v5521_v37, %v8598_v0  ;;  %v8601_v39 = vld [vmem:[#allocation136_spill] sm:$0xff] }
 0x1b0   :  { %v3183_v27 = vadd.f32 %v5650_v52, %v3046_v60  ;;  %v1908_v31 = vadd.f32 %v1900_v5, %v1718_v54  ;;  %v1149_v18 = vadd.f32 %v1141_v13, %v959_v6  ;;  %v1521_v38 = vmul.f32 %v5562_v16, %v8599_v51  ;;  %v8602_v60 = vld [vmem:[#allocation137_spill] sm:$0xff]  ;;  %v8603_v5 = vld [vmem:[#allocation138_spill] sm:$0xff] }
 0x1b1   :  { %v2667_v44 = vadd.f32 %v2659_v19, %v2477_v12  ;;  %v3040_v53 = vmul.f32 %v5633_v10, %v8600_v24  ;;  %v390_v9 = vadd.f32 %v382_v61, %v192_v11  ;;  %v762_v34 = vmul.f32 %v5524_v55, %v8489_v48  ;;  %v8604_v24 = vld [vmem:[#allocation139_spill] sm:$0xff] }
 0x1b2   :  { %3192 = vst [vmem:[#allocation12 + $0x90] sm:$0xff] %v3183_v27  ;;  %v2098_v50 = vadd.f32 %v2090_v22, %v1908_v31  ;;  %v1339_v57 = vadd.f32 %v1331_v56, %v1149_v18  ;;  %v1711_v0 = vmul.f32 %v5565_v35, %v8601_v39  ;;  %v1901_v6 = vmul.f32 %v5576_v30, %v8602_v60 }
 0x1b3   :  { %v2857_v54 = vadd.f32 %v2849_v2, %v2667_v44  ;;  %v2091_v19 = vmul.f32 %v5595_v14, %v8603_v5  ;;  %v580_v13 = vadd.f32 %v572_v43, %v390_v9  ;;  %v952_v11 = vmul.f32 %v5527_v17, %v8493_v28  ;;  %v8689_v5 = vld [vmem:[#allocation115_spill] sm:$0xff] }
 0x1b4   :  { %v2288_v12 = vadd.f32 %v2280_v33, %v2098_v50  ;;  %v1529_v61 = vadd.f32 %v1521_v38, %v1339_v57  ;;  %v2281_v22 = vmul.f32 %v5598_v3, %v8604_v24  ;;  %v2471_v31 = vmul.f32 %v5605_v58, %v8494_v46  ;;  %v8674_v46 = vld [vmem:[#allocation108_spill] sm:$0xff] }
 0x1b5   :  { %v3047_v27 = vadd.f32 %v3039_v26, %v2857_v54  ;;  %v2661_v18 = vmul.f32 %v5610_v25, %v8495_v42  ;;  %v770_v2 = vadd.f32 %v762_v34, %v580_v13  ;;  %v1142_v56 = vmul.f32 %v5539_v23, %v8497_v1  ;;  %v8605_v34 = vld [vmem:[#allocation21_spill] sm:$0xff]  ;;  %v8606_v54 = vld [vmem:[#allocation140_spill] sm:$0xff] }
 0x1b6   :  { %v2478_v43 = vadd.f32 %v2470_v59, %v2288_v12  ;;  %v1719_v44 = vadd.f32 %v1711_v0, %v1529_v61  ;;  %v1332_v33 = vmul.f32 %v5548_v32, %v8498_v41  ;;  %v193_v57 = vmul.f32 %v5507_v47, %v5038_v8  ;;  %v8607_v12 = vld [vmem:[#allocation141_spill] sm:$0xff] }
 0x1b7   :  { %v3184_v38 = vadd.f32 %v5650_v52, %v3047_v27  ;;  %v960_v26 = vadd.f32 %v952_v11, %v770_v2  ;;  %v383_v9 = vmul.f32 %v5510_v45, %v5047_v63  ;;  %v573_v50 = vmul.f32 %v5521_v37, %v8605_v34  ;;  %v8608_v45 = vld [vmem:[#allocation53_spill] sm:$0xff]  ;;  %v8609_v27 = vld [vmem:[#allocation31_spill] sm:$0xff] }
 0x1b8   :  { %v2668_v59 = vadd.f32 %v2660_v21, %v2478_v43  ;;  %v1909_v0 = vadd.f32 %v1901_v6, %v1719_v44  ;;  %v2851_v13 = vmul.f32 %v5622_v49, %v8606_v54  ;;  %v3041_v47 = vmul.f32 %v5633_v10, %v8607_v12  ;;  %v8610_v43 = vld [vmem:[#allocation148_spill] sm:$0xff]  ;;  %v8611_v34 = vld [vmem:[#allocation149_spill] sm:$0xff] }
 0x1b9   :  { %3193 = vst [vmem:[#allocation12 + $0x98] sm:$0xff] %v3184_v38  ;;  %v1150_v11 = vadd.f32 %v1142_v56, %v960_v26  ;;  %v1522_v61 = vmul.f32 %v5562_v16, %v8608_v45  ;;  %v391_v37 = vadd.f32 %v383_v9, %v193_v57  ;;  %v763_v21 = vmul.f32 %v5524_v55, %v8609_v27  ;;  %v8612_v38 = vld [vmem:[#allocation70_spill] sm:$0xff]  ;;  %v8654_v27 = vld [vmem:[#allocation87_spill] sm:$0xff]  ;;  %v8655_v45 = vld [vmem:[#allocation93_spill] sm:$0xff] }
 0x1ba   :  { %v2858_v6 = vadd.f32 %v2850_v20, %v2668_v59  ;;  %v2099_v2 = vadd.f32 %v2091_v19, %v1909_v0  ;;  %v1712_v44 = vmul.f32 %v5565_v35, %v8610_v43  ;;  %v1902_v12 = vmul.f32 %v5576_v30, %v8611_v34  ;;  %v8613_v57 = vld [vmem:[#allocation34_spill] sm:$0xff]  ;;  %v8614_v19 = vld [vmem:[#allocation55_spill] sm:$0xff] }
 0x1bb   :  { %v1340_v54 = vadd.f32 %v1332_v33, %v1150_v11  ;;  %v2092_v56 = vmul.f32 %v5595_v14, %v8612_v38  ;;  %v581_v26 = vadd.f32 %v573_v50, %v391_v37  ;;  %v953_v9 = vmul.f32 %v5527_v17, %v8613_v57  ;;  %v8615_v0 = vld [vmem:[#allocation150_spill] sm:$0xff]  ;;  %v8616_v11 = vld [vmem:[#allocation151_spill] sm:$0xff]  ;;  %v8617_v37 = vld [vmem:[#allocation36_spill] sm:$0xff] }
 0x1bc   :  { %v3048_v55 = vadd.f32 %v3040_v53, %v2858_v6  ;;  %v2289_v20 = vadd.f32 %v2281_v22, %v2099_v2  ;;  %v2282_v59 = vmul.f32 %v5598_v3, %v8614_v19  ;;  %v2472_v34 = vmul.f32 %v5605_v58, %v8615_v0  ;;  %v8618_v6 = vld [vmem:[#allocation39_spill] sm:$0xff]  ;;  %v8619_v0 = vld [vmem:[#allocation28_spill] sm:$0xff] }
 0x1bd   :  { %v1530_v33 = vadd.f32 %v1522_v61, %v1340_v54  ;;  %v2662_v38 = vmul.f32 %v5610_v25, %v8616_v11  ;;  %v771_v50 = vadd.f32 %v763_v21, %v581_v26  ;;  %v1143_v17 = vmul.f32 %v5539_v23, %v8617_v37  ;;  %v8620_v26 = vld [vmem:[#allocation30_spill] sm:$0xff]  ;;  %v8624_v43 = vld [vmem:[#allocation43_spill] sm:$0xff] }
 0x1be   :  { %v3185_v53 = vadd.f32 %v5650_v52, %v3048_v55  ;;  %v2479_v22 = vadd.f32 %v2471_v31, %v2289_v20  ;;  %v1333_v2 = vmul.f32 %v5548_v32, %v8618_v6  ;;  %v5855_v19 = vstv %s5808_s13  ;;  %v8621_v20 = vld [vmem:[#allocation32_spill] sm:$0xff]  ;;  %s6243_s13 = sld [smem:[#allocation9 + $0x20b]] }
 0x1bf   :  { %v1720_v54 = vadd.f32 %v1712_v44, %v1530_v33  ;;  %v961_v61 = vadd.f32 %v953_v9, %v771_v50  ;;  %v204_v11 = vmul.f32 %v5855_v19, %v8619_v0  ;;  %v5860_v21 = vstv %s5815_s14  ;;  %v8622_v50 = vld [vmem:[#allocation33_spill] sm:$0xff]  ;;  %s6250_s14 = sld [smem:[#allocation9 + $0x20c]] }
 0x1c0   :  { %3194 = vst [vmem:[#allocation12 + $0xa0] sm:$0xff] %v3185_v53  ;;  %v2669_v23 = vadd.f32 %v2661_v18, %v2479_v22  ;;  %v394_v31 = vmul.f32 %v5860_v21, %v8620_v26  ;;  %v5867_v55 = vstv %s5821_s15  ;;  %v5870_v32 = vstv %s5823_s16  ;;  %v8623_v26 = vld [vmem:[#allocation38_spill] sm:$0xff]  ;;  %s6257_s15 = sld [smem:[#allocation9 + $0x20d]]  ;;  %s6271_s16 = sld [smem:[#allocation9 + $0x20e]] }
 0x1c1   :  { %v1910_v44 = vadd.f32 %v1902_v12, %v1720_v54  ;;  %v1151_v9 = vadd.f32 %v1143_v17, %v961_v61  ;;  %v1523_v33 = vmul.f32 %v5562_v16, %v8621_v20  ;;  %v584_v18 = vmul.f32 %v5867_v55, %v8622_v50  ;;  %v8625_v16 = vld [vmem:[#allocation152_spill] sm:$0xff] }
 0x1c2   :  { %v2859_v53 = vadd.f32 %v2851_v13, %v2669_v23  ;;  %v402_v22 = vadd.f32 %v394_v31, %v204_v11  ;;  %v774_v0 = vmul.f32 %v5870_v32, %v8623_v26  ;;  %v5883_v6 = vstv %s5833_s17  ;;  %v8626_v13 = vld [vmem:[#allocation40_spill] sm:$0xff]  ;;  %v8627_v23 = vld [vmem:[#allocation47_spill] sm:$0xff]  ;;  %s6284_s17 = sld [smem:[#allocation9 + $0x20f]] }
 0x1c3   :  { %v2100_v37 = vadd.f32 %v2092_v56, %v1910_v44  ;;  %v1341_v57 = vadd.f32 %v1333_v2, %v1151_v9  ;;  %v1713_v12 = vmul.f32 %v5565_v35, %v8624_v43  ;;  %v5888_v17 = vstv %s5839_s18  ;;  %v8628_v44 = vld [vmem:[#allocation24_spill] sm:$0xff]  ;;  %v8645_v43 = vld [vmem:[#allocation73_spill] sm:$0xff]  ;;  %s6290_s18 = sld [smem:[#allocation10 + $0x4]] }
 0x1c4   :  { %v3049_v54 = vadd.f32 %v3041_v47, %v2859_v53  ;;  %v2852_v61 = vmul.f32 %v5622_v49, %v8625_v16  ;;  %v592_v50 = vadd.f32 %v584_v18, %v402_v22  ;;  %v964_v11 = vmul.f32 %v5883_v6, %v8626_v13  ;;  %v8629_v53 = vld [vmem:[#allocation44_spill] sm:$0xff]  ;;  %v8631_v16 = vld [vmem:[#allocation50_spill] sm:$0xff] }
 0x1c5   :  { %v2290_v56 = vadd.f32 %v2282_v59, %v2100_v37  ;;  %v1531_v2 = vadd.f32 %v1523_v33, %v1341_v57  ;;  %v1903_v35 = vmul.f32 %v5576_v30, %v8627_v23  ;;  %v5901_v31 = vstv %s5849_s0  ;;  %v8630_v59 = vld [vmem:[#allocation49_spill] sm:$0xff]  ;;  %v8648_v20 = vld [vmem:[#allocation84_spill] sm:$0xff]  ;;  %s6507_s0 = sld [smem:[#allocation9 + $0x280]] }
 0x1c6   :  { %v3186_v47 = vadd.f32 %v5650_v52, %v3049_v54  ;;  %v3042_v9 = vmul.f32 %v5633_v10, %v8628_v44  ;;  %v782_v18 = vadd.f32 %v774_v0, %v592_v50  ;;  %v1154_v22 = vmul.f32 %v5888_v17, %v8629_v53 }
 0x1c7   :  { %v2480_v30 = vadd.f32 %v2472_v34, %v2290_v56  ;;  %v1721_v57 = vadd.f32 %v1713_v12, %v1531_v2  ;;  %v2093_v37 = vmul.f32 %v5595_v14, %v8630_v59  ;;  %v5917_v33 = vstv %s5862_s1  ;;  %v8632_v34 = vld [vmem:[#allocation52_spill] sm:$0xff]  ;;  %v8633_v56 = vld [vmem:[#allocation54_spill] sm:$0xff]  ;;  %v8634_v2 = vld [vmem:[#allocation57_spill] sm:$0xff]  ;;  %s6509_s1 = sld [smem:[#allocation9 + $0x281]] }
 0x1c8   :  { %3195 = vst [vmem:[#allocation12 + $0xa8] sm:$0xff] %v3186_v47  ;;  %v972_v54 = vadd.f32 %v964_v11, %v782_v18  ;;  %v1344_v44 = vmul.f32 %v5901_v31, %v8631_v16  ;;  %v5922_v0 = vstv %s5872_s3  ;;  %v5925_v50 = vstv %s5874_s19  ;;  %v8635_v47 = vld [vmem:[#allocation60_spill] sm:$0xff]  ;;  %s6517_s3 = sld [smem:[#allocation9 + $0x282]]  ;;  %s6523_s19 = sld [smem:[#allocation9 + $0x283]] }
 0x1c9   :  { %v2670_v53 = vadd.f32 %v2662_v38, %v2480_v30  ;;  %v1911_v23 = vadd.f32 %v1903_v35, %v1721_v57  ;;  %v2283_v12 = vmul.f32 %v5598_v3, %v8632_v34  ;;  %v2473_v14 = vmul.f32 %v5605_v58, %v8633_v56  ;;  %v8636_v59 = vld [vmem:[#allocation56_spill] sm:$0xff]  ;;  %v8637_v35 = vld [vmem:[#allocation59_spill] sm:$0xff] }
 0x1ca   :  { %v2663_v11 = vmul.f32 %v5610_v25, %v8634_v2  ;;  %v2853_v18 = vmul.f32 %v5622_v49, %v8635_v47  ;;  %v1162_v16 = vadd.f32 %v1154_v22, %v972_v54  ;;  %v1534_v13 = vmul.f32 %v5917_v33, %v8636_v59  ;;  %v8638_v30 = vld [vmem:[#allocation64_spill] sm:$0xff]  ;;  %v8639_v54 = vld [vmem:[#allocation86_spill] sm:$0xff] }
 0x1cb   :  { %v2860_v38 = vadd.f32 %v2852_v61, %v2670_v53  ;;  %v2101_v3 = vadd.f32 %v2093_v37, %v1911_v23  ;;  %v1724_v58 = vmul.f32 %v5922_v0, %v8637_v35  ;;  %v1914_v25 = vmul.f32 %v5925_v50, %v8638_v30  ;;  %v8640_v23 = vld [vmem:[#allocation88_spill] sm:$0xff] }
 0x1cc   :  { %v1352_v57 = vadd.f32 %v1344_v44, %v1162_v16  ;;  %v5946_v49 = vstv %s5894_s20  ;;  %v5949_v22 = vstv %s5896_s21  ;;  %v205_v47 = vmul.f32 %v5855_v19, %v8639_v54  ;;  %v8641_v16 = vld [vmem:[#allocation89_spill] sm:$0xff]  ;;  %s6525_s20 = sld [smem:[#allocation9 + $0x284]]  ;;  %s6535_s21 = sld [smem:[#allocation9 + $0x285]] }
 0x1cd   :  { %v3050_v59 = vadd.f32 %v3042_v9, %v2860_v38  ;;  %v2291_v2 = vadd.f32 %v2283_v12, %v2101_v3  ;;  %v5954_v61 = vstv %s5903_s22  ;;  %v395_v53 = vmul.f32 %v5860_v21, %v8640_v23  ;;  %v8642_v9 = vld [vmem:[#allocation90_spill] sm:$0xff]  ;;  %s6545_s22 = sld [smem:[#allocation9 + $0x286]] }
 0x1ce   :  { %v1542_v37 = vadd.f32 %v1534_v13, %v1352_v57  ;;  %v5959_v35 = vstv %s5910_s4  ;;  %v5962_v30 = vstv %s5912_s23  ;;  %v585_v44 = vmul.f32 %v5867_v55, %v8641_v16  ;;  %v8643_v38 = vld [vmem:[#allocation46_spill] sm:$0xff]  ;;  %v8644_v57 = vld [vmem:[#allocation68_spill] sm:$0xff]  ;;  %s6558_s4 = sld [smem:[#allocation9 + $0x287]]  ;;  %s6573_s23 = sld [smem:[#allocation9 + $0x288]] }
 0x1cf   :  { %v3187_v56 = vadd.f32 %v5650_v52, %v3050_v59  ;;  %v2481_v34 = vadd.f32 %v2473_v14, %v2291_v2  ;;  %v403_v54 = vadd.f32 %v395_v53, %v205_v47  ;;  %v775_v12 = vmul.f32 %v5870_v32, %v8642_v9  ;;  %v8646_v59 = vld [vmem:[#allocation79_spill] sm:$0xff] }
 0x1d0   :  { %v3043_v3 = vmul.f32 %v5633_v10, %v8643_v38  ;;  %v1732_v13 = vadd.f32 %v1724_v58, %v1542_v37  ;;  %v2104_v23 = vmul.f32 %v5946_v49, %v8644_v57  ;;  %v2294_v26 = vmul.f32 %v5949_v22, %v8645_v43  ;;  %v8647_v47 = vld [vmem:[#allocation91_spill] sm:$0xff]  ;;  %v8649_v58 = vld [vmem:[#allocation85_spill] sm:$0xff] }
 0x1d1   :  { %3196 = vst [vmem:[#allocation12 + $0xb0] sm:$0xff] %v3187_v56  ;;  %v2671_v16 = vadd.f32 %v2663_v11, %v2481_v34  ;;  %v2484_v14 = vmul.f32 %v5954_v61, %v8646_v59  ;;  %v593_v2 = vadd.f32 %v585_v44, %v403_v54  ;;  %v965_v53 = vmul.f32 %v5883_v6, %v8647_v47  ;;  %v8650_v56 = vld [vmem:[#allocation92_spill] sm:$0xff]  ;;  %v8651_v44 = vld [vmem:[#allocation101_spill] sm:$0xff] }
 0x1d2   :  { %v1922_v9 = vadd.f32 %v1914_v25, %v1732_v13  ;;  %v2674_v10 = vmul.f32 %v5959_v35, %v8648_v20  ;;  %v2864_v37 = vmul.f32 %v5962_v30, %v8649_v58  ;;  %v5984_v57 = vstv %s5937_s24  ;;  %v8652_v25 = vld [vmem:[#allocation29_spill] sm:$0xff]  ;;  %v8653_v20 = vld [vmem:[#allocation102_spill] sm:$0xff]  ;;  %s6575_s24 = sld [smem:[#allocation9 + $0x289]] }
 0x1d3   :  { %v2861_v38 = vadd.f32 %v2853_v18, %v2671_v16  ;;  %v5987_v43 = vstv %s5943_s25  ;;  %v783_v34 = vadd.f32 %v775_v12, %v593_v2  ;;  %v1155_v11 = vmul.f32 %v5888_v17, %v8650_v56  ;;  %v8656_v56 = vld [vmem:[#allocation94_spill] sm:$0xff]  ;;  %s6579_s25 = sld [smem:[#allocation9 + $0x28a]] }
 0x1d4   :  { %v2112_v54 = vadd.f32 %v2104_v23, %v1922_v9  ;;  %v206_v47 = vmul.f32 %v5855_v19, %v8651_v44  ;;  %v396_v13 = vmul.f32 %v5860_v21, %v8652_v25  ;;  %v586_v59 = vmul.f32 %v5867_v55, %v8653_v20  ;;  %v8657_v44 = vld [vmem:[#allocation103_spill] sm:$0xff] }
 0x1d5   :  { %v3051_v58 = vadd.f32 %v3043_v3, %v2861_v38  ;;  %v3054_v18 = vmul.f32 %v5984_v57, %v8654_v27  ;;  %v973_v16 = vadd.f32 %v965_v53, %v783_v34  ;;  %v1345_v12 = vmul.f32 %v5901_v31, %v8655_v45  ;;  %v8658_v20 = vld [vmem:[#allocation95_spill] sm:$0xff]  ;;  %v8659_v3 = vld [vmem:[#allocation96_spill] sm:$0xff]  ;;  %v8660_v27 = vld [vmem:[#allocation97_spill] sm:$0xff] }
 0x1d6   :  { %v2302_v2 = vadd.f32 %v2294_v26, %v2112_v54  ;;  %v1535_v23 = vmul.f32 %v5917_v33, %v8656_v56  ;;  %v404_v9 = vadd.f32 %v396_v13, %v206_v47  ;;  %v776_v63 = vmul.f32 %v5870_v32, %v8657_v44  ;;  %v8661_v45 = vld [vmem:[#allocation104_spill] sm:$0xff]  ;;  %v8662_v56 = vld [vmem:[#allocation98_spill] sm:$0xff]  ;;  %v8669_v44 = vld [vmem:[#allocation111_spill] sm:$0xff] }
 0x1d7   :  { %v3188_v25 = vadd.f32 %v5650_v52, %v3051_v58  ;;  %v1163_v8 = vadd.f32 %v1155_v11, %v973_v16  ;;  %v1725_v38 = vmul.f32 %v5922_v0, %v8658_v20  ;;  %v1915_v53 = vmul.f32 %v5925_v50, %v8659_v3  ;;  %v8663_v58 = vld [vmem:[#allocation66_spill] sm:$0xff]  ;;  %v8664_v16 = vld [vmem:[#allocation71_spill] sm:$0xff] }
 0x1d8   :  { %v2492_v34 = vadd.f32 %v2484_v14, %v2302_v2  ;;  %v2105_v26 = vmul.f32 %v5946_v49, %v8660_v27  ;;  %v594_v54 = vadd.f32 %v586_v59, %v404_v9  ;;  %v966_v47 = vmul.f32 %v5883_v6, %v8661_v45  ;;  %v8665_v14 = vld [vmem:[#allocation99_spill] sm:$0xff]  ;;  %v8666_v59 = vld [vmem:[#allocation105_spill] sm:$0xff] }
 0x1d9   :  { %3197 = vst [vmem:[#allocation12 + $0xb8] sm:$0xff] %v3188_v25  ;;  %v1353_v13 = vadd.f32 %v1345_v12, %v1163_v8  ;;  %v2295_v52 = vmul.f32 %v5949_v22, %v8662_v56  ;;  %v2485_v11 = vmul.f32 %v5954_v61, %v8663_v58  ;;  %v2675_v20 = vmul.f32 %v5959_v35, %v8664_v16  ;;  %v8667_v25 = vld [vmem:[#allocation23_spill] sm:$0xff]  ;;  %v8668_v12 = vld [vmem:[#allocation81_spill] sm:$0xff]  ;;  %v8670_v16 = vld [vmem:[#allocation100_spill] sm:$0xff] }
 0x1da   :  { %v2682_v3 = vadd.f32 %v2674_v10, %v2492_v34  ;;  %v2865_v2 = vmul.f32 %v5962_v30, %v8665_v14  ;;  %v784_v27 = vadd.f32 %v776_v63, %v594_v54  ;;  %v1156_v9 = vmul.f32 %v5888_v17, %v8666_v59  ;;  %v8671_v14 = vld [vmem:[#allocation106_spill] sm:$0xff]  ;;  %v8672_v59 = vld [vmem:[#allocation107_spill] sm:$0xff] }
 0x1db   :  { %v1543_v45 = vadd.f32 %v1535_v23, %v1353_v13  ;;  %v207_v8 = vmul.f32 %v5855_v19, %v8667_v25  ;;  %v397_v56 = vmul.f32 %v5860_v21, %v8668_v12  ;;  %v587_v58 = vmul.f32 %v5867_v55, %v8669_v44  ;;  %v8673_v25 = vld [vmem:[#allocation112_spill] sm:$0xff] }
 0x1dc   :  { %v2872_v41 = vadd.f32 %v2864_v37, %v2682_v3  ;;  %v3055_v10 = vmul.f32 %v5984_v57, %v8670_v16  ;;  %v974_v34 = vadd.f32 %v966_v47, %v784_v27  ;;  %v1346_v63 = vmul.f32 %v5901_v31, %v8671_v14  ;;  %v8675_v3 = vld [vmem:[#allocation69_spill] sm:$0xff]  ;;  %v8676_v47 = vld [vmem:[#allocation51_spill] sm:$0xff] }
 0x1dd   :  { %v1733_v54 = vadd.f32 %v1725_v38, %v1543_v45  ;;  %v1536_v23 = vmul.f32 %v5917_v33, %v8672_v59  ;;  %v405_v13 = vadd.f32 %v397_v56, %v207_v8  ;;  %v777_v42 = vmul.f32 %v5870_v32, %v8673_v25  ;;  %v8677_v38 = vld [vmem:[#allocation35_spill] sm:$0xff]  ;;  %v8678_v25 = vld [vmem:[#allocation109_spill] sm:$0xff] }
 0x1de   :  { %v3062_v12 = vadd.f32 %v3054_v18, %v2872_v41  ;;  %v1164_v1 = vadd.f32 %v1156_v9, %v974_v34  ;;  %v1726_v37 = vmul.f32 %v5922_v0, %v8674_v46  ;;  %v1916_v16 = vmul.f32 %v5925_v50, %v8675_v3  ;;  %v8679_v18 = vld [vmem:[#allocation110_spill] sm:$0xff]  ;;  %v8681_v3 = vld [vmem:[#allocation113_spill] sm:$0xff] }
 0x1df   :  { %v1923_v27 = vadd.f32 %v1915_v53, %v1733_v54  ;;  %v2106_v14 = vmul.f32 %v5946_v49, %v8676_v47  ;;  %v595_v45 = vadd.f32 %v587_v58, %v405_v13  ;;  %v967_v59 = vmul.f32 %v5883_v6, %v8677_v38  ;;  %v8680_v46 = vld [vmem:[#allocation78_spill] sm:$0xff]  ;;  %v8682_v38 = vld [vmem:[#allocation76_spill] sm:$0xff] }
 0x1e0   :  { %v3200_v56 = vadd.f32 %v5987_v43, %v3062_v12  ;;  %v1354_v8 = vadd.f32 %v1346_v63, %v1164_v1  ;;  %v2296_v41 = vmul.f32 %v5949_v22, %v8678_v25  ;;  %v2486_v9 = vmul.f32 %v5954_v61, %v8679_v18  ;;  %v8683_v1 = vld [vmem:[#allocation119_spill] sm:$0xff]  ;;  %v8684_v25 = vld [vmem:[#allocation120_spill] sm:$0xff] }
 0x1e1   :  { %v2113_v34 = vadd.f32 %v2105_v26, %v1923_v27  ;;  %v2676_v53 = vmul.f32 %v5959_v35, %v8680_v46  ;;  %v785_v54 = vadd.f32 %v777_v42, %v595_v45  ;;  %v1157_v58 = vmul.f32 %v5888_v17, %v8681_v3  ;;  %v8685_v27 = vld [vmem:[#allocation114_spill] sm:$0xff]  ;;  %v8686_v42 = vld [vmem:[#allocation121_spill] sm:$0xff] }
 0x1e2   :  { %3209 = vst [vmem:[#allocation12 + $0xc0] sm:$0xff] %v3200_v56  ;;  %v1544_v13 = vadd.f32 %v1536_v23, %v1354_v8  ;;  %v2866_v12 = vmul.f32 %v5962_v30, %v8682_v38  ;;  %v208_v63 = vmul.f32 %v5855_v19, %v8683_v1  ;;  %v398_v47 = vmul.f32 %v5860_v21, %v8684_v25  ;;  %v8687_v56 = vld [vmem:[#allocation25_spill] sm:$0xff]  ;;  %v8688_v38 = vld [vmem:[#allocation122_spill] sm:$0xff] }
 0x1e3   :  { %v2303_v18 = vadd.f32 %v2295_v52, %v2113_v34  ;;  %v975_v26 = vadd.f32 %v967_v59, %v785_v54  ;;  %v1347_v46 = vmul.f32 %v5901_v31, %v8685_v27  ;;  %v588_v45 = vmul.f32 %v5867_v55, %v8686_v42  ;;  %v8690_v59 = vld [vmem:[#allocation62_spill] sm:$0xff]  ;;  %v8693_v27 = vld [vmem:[#allocation65_spill] sm:$0xff] }
 0x1e4   :  { %v1734_v3 = vadd.f32 %v1726_v37, %v1544_v13  ;;  %v3056_v23 = vmul.f32 %v5984_v57, %v8687_v56  ;;  %v406_v8 = vadd.f32 %v398_v47, %v208_v63  ;;  %v778_v44 = vmul.f32 %v5870_v32, %v8688_v38  ;;  %v8691_v25 = vld [vmem:[#allocation58_spill] sm:$0xff]  ;;  %v8692_v13 = vld [vmem:[#allocation123_spill] sm:$0xff]  ;;  %v8695_v38 = vld [vmem:[#allocation117_spill] sm:$0xff] }
 0x1e5   :  { %v2493_v1 = vadd.f32 %v2485_v11, %v2303_v18  ;;  %v1165_v24 = vadd.f32 %v1157_v58, %v975_v26  ;;  %v1537_v52 = vmul.f32 %v5917_v33, %v8689_v5  ;;  %v1727_v34 = vmul.f32 %v5922_v0, %v8690_v59  ;;  %v8694_v18 = vld [vmem:[#allocation116_spill] sm:$0xff] }
 0x1e6   :  { %v1924_v54 = vadd.f32 %v1916_v16, %v1734_v3  ;;  %v1917_v42 = vmul.f32 %v5925_v50, %v8691_v25  ;;  %v596_v37 = vadd.f32 %v588_v45, %v406_v8  ;;  %v968_v56 = vmul.f32 %v5883_v6, %v8692_v13 }
 0x1e7   :  { %v2683_v47 = vadd.f32 %v2675_v20, %v2493_v1  ;;  %v1355_v63 = vadd.f32 %v1347_v46, %v1165_v24  ;;  %v2107_v11 = vmul.f32 %v5946_v49, %v8693_v27  ;;  %v2297_v58 = vmul.f32 %v5949_v22, %v8694_v18  ;;  %v8696_v46 = vld [vmem:[#allocation125_spill] sm:$0xff] }
 0x1e8   :  { %v2114_v26 = vadd.f32 %v2106_v14, %v1924_v54  ;;  %v2487_v59 = vmul.f32 %v5954_v61, %v8695_v38  ;;  %v786_v16 = vadd.f32 %v778_v44, %v596_v37  ;;  %v1158_v3 = vmul.f32 %v5888_v17, %v8579_v4  ;;  %v8697_v27 = vld [vmem:[#allocation129_spill] sm:$0xff] }
 0x1e9   :  { %v2873_v45 = vadd.f32 %v2865_v2, %v2683_v47  ;;  %v1545_v8 = vadd.f32 %v1537_v52, %v1355_v63  ;;  %v2677_v20 = vmul.f32 %v5959_v35, %v8580_v29  ;;  %v1348_v24 = vmul.f32 %v5901_v31, %v8696_v46  ;;  %v8698_v38 = vld [vmem:[#allocation37_spill] sm:$0xff]  ;;  %v8699_v52 = vld [vmem:[#allocation131_spill] sm:$0xff] }
 0x1ea   :  { %v2304_v1 = vadd.f32 %v2296_v41, %v2114_v26  ;;  %v976_v13 = vadd.f32 %v968_v56, %v786_v16  ;;  %v209_v14 = vmul.f32 %v5855_v19, %v8697_v27  ;;  %v399_v54 = vmul.f32 %v5860_v21, %v8583_v36  ;;  %v8701_v46 = vld [vmem:[#allocation133_spill] sm:$0xff] }
 0x1eb   :  { %v3063_v44 = vadd.f32 %v3055_v10, %v2873_v45  ;;  %v1735_v37 = vadd.f32 %v1727_v34, %v1545_v8  ;;  %v1538_v2 = vmul.f32 %v5917_v33, %v8698_v38  ;;  %v589_v47 = vmul.f32 %v5867_v55, %v8699_v52  ;;  %v8700_v10 = vld [vmem:[#allocation48_spill] sm:$0xff] }
 0x1ec   :  { %v2494_v63 = vadd.f32 %v2486_v9, %v2304_v1  ;;  %v1166_v4 = vadd.f32 %v1158_v3, %v976_v13  ;;  %v407_v29 = vadd.f32 %v399_v54, %v209_v14  ;;  %v779_v41 = vmul.f32 %v5870_v32, %v8472_v40  ;;  %v8702_v3 = vld [vmem:[#allocation22_spill] sm:$0xff]  ;;  %v8703_v14 = vld [vmem:[#allocation41_spill] sm:$0xff] }
 0x1ed   :  { %v3201_v56 = vadd.f32 %v5987_v43, %v3063_v44  ;;  %v1925_v26 = vadd.f32 %v1917_v42, %v1735_v37  ;;  %v2867_v16 = vmul.f32 %v5962_v30, %v8586_v62  ;;  %v1728_v34 = vmul.f32 %v5922_v0, %v8700_v10  ;;  %v8704_v54 = vld [vmem:[#allocation126_spill] sm:$0xff] }
 0x1ee   :  { %v2684_v45 = vadd.f32 %v2676_v53, %v2494_v63  ;;  %v1356_v8 = vadd.f32 %v1348_v24, %v1166_v4  ;;  %v597_v38 = vadd.f32 %v589_v47, %v407_v29  ;;  %v969_v9 = vmul.f32 %v5883_v6, %v8701_v46  ;;  %v8705_v53 = vld [vmem:[#allocation127_spill] sm:$0xff] }
 0x1ef   :  { %3210 = vst [vmem:[#allocation12 + $0xc8] sm:$0xff] %v3201_v56  ;;  %v2115_v13 = vadd.f32 %v2107_v11, %v1925_v26  ;;  %v3057_v1 = vmul.f32 %v5984_v57, %v8702_v3  ;;  %v1918_v42 = vmul.f32 %v5925_v50, %v8703_v14  ;;  %v2108_v44 = vmul.f32 %v5946_v49, %v8704_v54  ;;  %v8706_v11 = vld [vmem:[#allocation128_spill] sm:$0xff]  ;;  %v8707_v63 = vld [vmem:[#allocation83_spill] sm:$0xff]  ;;  %v8708_v54 = vld [vmem:[#allocation134_spill] sm:$0xff] }
 0x1f0   :  { %v2874_v37 = vadd.f32 %v2866_v12, %v2684_v45  ;;  %v1546_v40 = vadd.f32 %v1538_v2, %v1356_v8  ;;  %v787_v10 = vadd.f32 %v779_v41, %v597_v38  ;;  %v1159_v4 = vmul.f32 %v5888_v17, %v8591_v7  ;;  %v8710_v45 = vld [vmem:[#allocation144_spill] sm:$0xff] }
 0x1f1   :  { %v2305_v29 = vadd.f32 %v2297_v58, %v2115_v13  ;;  %v2298_v24 = vmul.f32 %v5949_v22, %v8705_v53  ;;  %v2488_v47 = vmul.f32 %v5954_v61, %v8706_v11  ;;  %v2678_v56 = vmul.f32 %v5959_v35, %v8707_v63  ;;  %v8709_v58 = vld [vmem:[#allocation143_spill] sm:$0xff] }
 0x1f2   :  { %v3064_v26 = vadd.f32 %v3056_v23, %v2874_v37  ;;  %v1736_v14 = vadd.f32 %v1728_v34, %v1546_v40  ;;  %v977_v46 = vadd.f32 %v969_v9, %v787_v10  ;;  %v1349_v12 = vmul.f32 %v5901_v31, %v8708_v54  ;;  %v8711_v10 = vld [vmem:[#allocation18_spill] sm:$0xff] }
 0x1f3   :  { %v2495_v38 = vadd.f32 %v2487_v59, %v2305_v29  ;;  %v210_v2 = vmul.f32 %v5855_v19, %v8595_v15  ;;  %v400_v41 = vmul.f32 %v5860_v21, %v8709_v58  ;;  %v590_v8 = vmul.f32 %v5867_v55, %v8710_v45  ;;  %v8712_v29 = vld [vmem:[#allocation20_spill] sm:$0xff] }
 0x1f4   :  { %v3202_v13 = vadd.f32 %v5987_v43, %v3064_v26  ;;  %v1926_v11 = vadd.f32 %v1918_v42, %v1736_v14  ;;  %v1167_v63 = vadd.f32 %v1159_v4, %v977_v46  ;;  %v1539_v40 = vmul.f32 %v5917_v33, %v8599_v51 }
 0x1f5   :  { %v2685_v23 = vadd.f32 %v2677_v20, %v2495_v38  ;;  %v2868_v59 = vmul.f32 %v5962_v30, %v8711_v10  ;;  %v408_v34 = vadd.f32 %v400_v41, %v210_v2  ;;  %v780_v9 = vmul.f32 %v5870_v32, %v8489_v48  ;;  %v8713_v2 = vld [vmem:[#allocation138_spill] sm:$0xff] }
 0x1f6   :  { %3211 = vst [vmem:[#allocation12 + $0xd0] sm:$0xff] %v3202_v13  ;;  %v2116_v37 = vadd.f32 %v2108_v44, %v1926_v11  ;;  %v3058_v45 = vmul.f32 %v5984_v57, %v8712_v29  ;;  %v1357_v58 = vadd.f32 %v1349_v12, %v1167_v63  ;;  %v1729_v46 = vmul.f32 %v5922_v0, %v8601_v39  ;;  %v8714_v11 = vld [vmem:[#allocation139_spill] sm:$0xff]  ;;  %v8715_v12 = vld [vmem:[#allocation74_spill] sm:$0xff]  ;;  %v8717_v39 = vld [vmem:[#allocation61_spill] sm:$0xff] }
 0x1f7   :  { %v2875_v14 = vadd.f32 %v2867_v16, %v2685_v23  ;;  %v1919_v20 = vmul.f32 %v5925_v50, %v8602_v60  ;;  %v598_v42 = vadd.f32 %v590_v8, %v408_v34  ;;  %v970_v4 = vmul.f32 %v5883_v6, %v8493_v28  ;;  %v8716_v23 = vld [vmem:[#allocation42_spill] sm:$0xff] }
 0x1f8   :  { %v2306_v26 = vadd.f32 %v2298_v24, %v2116_v37  ;;  %v1547_v38 = vadd.f32 %v1539_v40, %v1357_v58  ;;  %v2109_v44 = vmul.f32 %v5946_v49, %v8713_v2  ;;  %v2299_v41 = vmul.f32 %v5949_v22, %v8714_v11  ;;  %v8718_v58 = vld [vmem:[#allocation147_spill] sm:$0xff]  ;;  %v8719_v11 = vld [vmem:[#allocation26_spill] sm:$0xff] }
 0x1f9   :  { %v3065_v63 = vadd.f32 %v3057_v1, %v2875_v14  ;;  %v2489_v13 = vmul.f32 %v5954_v61, %v8715_v12  ;;  %v788_v16 = vadd.f32 %v780_v9, %v598_v42  ;;  %v1160_v60 = vmul.f32 %v5888_v17, %v8716_v23  ;;  %v8720_v14 = vld [vmem:[#allocation27_spill] sm:$0xff]  ;;  %v8721_v42 = vld [vmem:[#allocation140_spill] sm:$0xff] }
 0x1fa   :  { %v2496_v8 = vadd.f32 %v2488_v47, %v2306_v26  ;;  %v1737_v34 = vadd.f32 %v1729_v46, %v1547_v38  ;;  %v2679_v24 = vmul.f32 %v5959_v35, %v8717_v39  ;;  %v1350_v40 = vmul.f32 %v5901_v31, %v8718_v58  ;;  %v8722_v38 = vld [vmem:[#allocation21_spill] sm:$0xff] }
 0x1fb   :  { %v3203_v37 = vadd.f32 %v5987_v43, %v3065_v63  ;;  %v978_v2 = vadd.f32 %v970_v4, %v788_v16  ;;  %v211_v1 = vmul.f32 %v5855_v19, %v8719_v11  ;;  %v401_v9 = vmul.f32 %v5860_v21, %v8720_v14  ;;  %v8723_v19 = vld [vmem:[#allocation53_spill] sm:$0xff]  ;;  %v8724_v16 = vld [vmem:[#allocation31_spill] sm:$0xff] }
 0x1fc   :  { %v2686_v47 = vadd.f32 %v2678_v56, %v2496_v8  ;;  %v1927_v46 = vadd.f32 %v1919_v20, %v1737_v34  ;;  %v2869_v26 = vmul.f32 %v5962_v30, %v8721_v42  ;;  %v591_v58 = vmul.f32 %v5867_v55, %v8722_v38  ;;  %v8725_v8 = vld [vmem:[#allocation141_spill] sm:$0xff]  ;;  %v8726_v42 = vld [vmem:[#allocation148_spill] sm:$0xff] }
 0x1fd   :  { %3212 = vst [vmem:[#allocation12 + $0xd8] sm:$0xff] %v3203_v37  ;;  %v1168_v4 = vadd.f32 %v1160_v60, %v978_v2  ;;  %v1540_v63 = vmul.f32 %v5917_v33, %v8723_v19  ;;  %v409_v21 = vadd.f32 %v401_v9, %v211_v1  ;;  %v781_v14 = vmul.f32 %v5870_v32, %v8724_v16  ;;  %v8727_v2 = vld [vmem:[#allocation149_spill] sm:$0xff]  ;;  %v8728_v9 = vld [vmem:[#allocation34_spill] sm:$0xff]  ;;  %v8730_v16 = vld [vmem:[#allocation55_spill] sm:$0xff] }
 0x1fe   :  { %v2876_v56 = vadd.f32 %v2868_v59, %v2686_v47  ;;  %v2117_v20 = vadd.f32 %v2109_v44, %v1927_v46  ;;  %v3059_v34 = vmul.f32 %v5984_v57, %v8725_v8  ;;  %v1730_v55 = vmul.f32 %v5922_v0, %v8726_v42  ;;  %v8729_v47 = vld [vmem:[#allocation70_spill] sm:$0xff]  ;;  %v8767_v38 = vld [vmem:[#allocation101_spill] sm:$0xff] }
 0x1ff   :  { %v1358_v60 = vadd.f32 %v1350_v40, %v1168_v4  ;;  %v1920_v37 = vmul.f32 %v5925_v50, %v8727_v2  ;;  %v599_v1 = vadd.f32 %v591_v58, %v409_v21  ;;  %v971_v32 = vmul.f32 %v5883_v6, %v8728_v9  ;;  %v8731_v4 = vld [vmem:[#allocation150_spill] sm:$0xff]  ;;  %v8732_v21 = vld [vmem:[#allocation36_spill] sm:$0xff] }
 0x200   :  { %v3066_v59 = vadd.f32 %v3058_v45, %v2876_v56  ;;  %v2307_v44 = vadd.f32 %v2299_v41, %v2117_v20  ;;  %v2110_v46 = vmul.f32 %v5946_v49, %v8729_v47  ;;  %v2300_v42 = vmul.f32 %v5949_v22, %v8730_v16  ;;  %v8733_v56 = vld [vmem:[#allocation39_spill] sm:$0xff]  ;;  %v8734_v9 = vld [vmem:[#allocation32_spill] sm:$0xff] }
 0x201   :  { %v1548_v40 = vadd.f32 %v1540_v63, %v1358_v60  ;;  %v2490_v2 = vmul.f32 %v5954_v61, %v8731_v4  ;;  %v789_v58 = vadd.f32 %v781_v14, %v599_v1  ;;  %v1161_v6 = vmul.f32 %v5888_v17, %v8732_v21  ;;  %v8735_v1 = vld [vmem:[#allocation28_spill] sm:$0xff]  ;;  %v8739_v21 = vld [vmem:[#allocation43_spill] sm:$0xff] }
 0x202   :  { %v3204_v45 = vadd.f32 %v5987_v43, %v3066_v59  ;;  %v2497_v41 = vadd.f32 %v2489_v13, %v2307_v44  ;;  %v1351_v20 = vmul.f32 %v5901_v31, %v8733_v56  ;;  %v1541_v63 = vmul.f32 %v5917_v33, %v8734_v9  ;;  %v8736_v59 = vld [vmem:[#allocation30_spill] sm:$0xff] }
 0x203   :  { %v1738_v60 = vadd.f32 %v1730_v55, %v1548_v40  ;;  %v979_v16 = vadd.f32 %v971_v32, %v789_v58  ;;  %v6204_v4 = vstv %s6160_s26  ;;  %v6207_v14 = vstv %s6162_s27  ;;  %v8737_v32 = vld [vmem:[#allocation33_spill] sm:$0xff]  ;;  %s6597_s26 = sld [smem:[#allocation9 + $0x28b]]  ;;  %s6602_s27 = sld [smem:[#allocation9 + $0x28c]] }
 0x204   :  { %3213 = vst [vmem:[#allocation12 + $0xe0] sm:$0xff] %v3204_v45  ;;  %v2687_v17 = vadd.f32 %v2679_v24, %v2497_v41  ;;  %v222_v13 = vmul.f32 %v6204_v4, %v8735_v1  ;;  %v412_v31 = vmul.f32 %v6207_v14, %v8736_v59  ;;  %v6216_v44 = vstv %s6168_s28  ;;  %v8738_v41 = vld [vmem:[#allocation38_spill] sm:$0xff]  ;;  %s6611_s28 = sld [smem:[#allocation9 + $0x28d]] }
 0x205   :  { %v1928_v33 = vadd.f32 %v1920_v37, %v1738_v60  ;;  %v1169_v55 = vadd.f32 %v1161_v6, %v979_v16  ;;  %v602_v40 = vmul.f32 %v6216_v44, %v8737_v32  ;;  %v6223_v58 = vstv %s6174_s2  ;;  %v8740_v60 = vld [vmem:[#allocation151_spill] sm:$0xff]  ;;  %s6613_s2 = sld [smem:[#allocation9 + $0x28e]] }
 0x206   :  { %v2877_v24 = vadd.f32 %v2869_v26, %v2687_v17  ;;  %v420_v45 = vadd.f32 %v412_v31, %v222_v13  ;;  %v792_v1 = vmul.f32 %v6223_v58, %v8738_v41  ;;  %v6230_v59 = vstv %s6180_s29  ;;  %v8741_v26 = vld [vmem:[#allocation40_spill] sm:$0xff]  ;;  %v8742_v13 = vld [vmem:[#allocation47_spill] sm:$0xff]  ;;  %v8760_v41 = vld [vmem:[#allocation90_spill] sm:$0xff]  ;;  %s6627_s29 = sld [smem:[#allocation9 + $0x28f]] }
 0x207   :  { %v2118_v9 = vadd.f32 %v2110_v46, %v1928_v33  ;;  %v1359_v56 = vadd.f32 %v1351_v20, %v1169_v55  ;;  %v1731_v16 = vmul.f32 %v5922_v0, %v8739_v21  ;;  %v6235_v37 = vstv %s6186_s30  ;;  %v8743_v33 = vld [vmem:[#allocation152_spill] sm:$0xff]  ;;  %s6649_s30 = sld [smem:[#allocation10 + $0x5]] }
 0x208   :  { %v3067_v6 = vadd.f32 %v3059_v34, %v2877_v24  ;;  %v2680_v32 = vmul.f32 %v5959_v35, %v8740_v60  ;;  %v610_v47 = vadd.f32 %v602_v40, %v420_v45  ;;  %v982_v17 = vmul.f32 %v6230_v59, %v8741_v26  ;;  %v8744_v24 = vld [vmem:[#allocation44_spill] sm:$0xff] }
 0x209   :  { %v2308_v46 = vadd.f32 %v2300_v42, %v2118_v9  ;;  %v1549_v20 = vadd.f32 %v1541_v63, %v1359_v56  ;;  %v1921_v0 = vmul.f32 %v5925_v50, %v8742_v13  ;;  %v6248_v31 = vstv %s6196_s6  ;;  %v8745_v50 = vld [vmem:[#allocation49_spill] sm:$0xff]  ;;  %v8746_v13 = vld [vmem:[#allocation24_spill] sm:$0xff]  ;;  %s6854_s6 = sld [smem:[#allocation9 + $0x300]] }
 0x20a   :  { %v3205_v34 = vadd.f32 %v5987_v43, %v3067_v6  ;;  %v2870_v55 = vmul.f32 %v5962_v30, %v8743_v33  ;;  %v800_v40 = vadd.f32 %v792_v1, %v610_v47  ;;  %v1172_v45 = vmul.f32 %v6235_v37, %v8744_v24  ;;  %v8747_v33 = vld [vmem:[#allocation50_spill] sm:$0xff] }
 0x20b   :  { %v2498_v42 = vadd.f32 %v2490_v2, %v2308_v46  ;;  %v1739_v9 = vadd.f32 %v1731_v16, %v1549_v20  ;;  %v2111_v56 = vmul.f32 %v5946_v49, %v8745_v50  ;;  %v6262_v63 = vstv %s6209_s9  ;;  %v8748_v16 = vld [vmem:[#allocation52_spill] sm:$0xff]  ;;  %v8749_v20 = vld [vmem:[#allocation54_spill] sm:$0xff]  ;;  %s6856_s9 = sld [smem:[#allocation9 + $0x301]] }
 0x20c   :  { %3214 = vst [vmem:[#allocation12 + $0xe8] sm:$0xff] %v3205_v34  ;;  %v3060_v6 = vmul.f32 %v5984_v57, %v8746_v13  ;;  %v990_v60 = vadd.f32 %v982_v17, %v800_v40  ;;  %v1362_v47 = vmul.f32 %v6248_v31, %v8747_v33  ;;  %v6269_v1 = vstv %s6218_s10  ;;  %v8750_v17 = vld [vmem:[#allocation57_spill] sm:$0xff]  ;;  %v8751_v50 = vld [vmem:[#allocation56_spill] sm:$0xff]  ;;  %s6862_s10 = sld [smem:[#allocation9 + $0x302]] }
 0x20d   :  { %v2688_v24 = vadd.f32 %v2680_v32, %v2498_v42  ;;  %v1929_v2 = vadd.f32 %v1921_v0, %v1739_v9  ;;  %v2301_v49 = vmul.f32 %v5949_v22, %v8748_v16  ;;  %v6276_v46 = vstv %s6225_s11  ;;  %v8752_v42 = vld [vmem:[#allocation60_spill] sm:$0xff]  ;;  %v8753_v9 = vld [vmem:[#allocation59_spill] sm:$0xff]  ;;  %s6870_s11 = sld [smem:[#allocation9 + $0x303]] }
 0x20e   :  { %v2491_v34 = vmul.f32 %v5954_v61, %v8749_v20  ;;  %v2681_v40 = vmul.f32 %v5959_v35, %v8750_v17  ;;  %v1180_v33 = vadd.f32 %v1172_v45, %v990_v60  ;;  %v1552_v13 = vmul.f32 %v6262_v63, %v8751_v50  ;;  %v8754_v20 = vld [vmem:[#allocation64_spill] sm:$0xff] }
 0x20f   :  { %v2878_v32 = vadd.f32 %v2870_v55, %v2688_v24  ;;  %v2119_v0 = vadd.f32 %v2111_v56, %v1929_v2  ;;  %v2871_v22 = vmul.f32 %v5962_v30, %v8752_v42  ;;  %v1742_v16 = vmul.f32 %v6269_v1, %v8753_v9  ;;  %v8755_v56 = vld [vmem:[#allocation86_spill] sm:$0xff]  ;;  %v8756_v42 = vld [vmem:[#allocation88_spill] sm:$0xff] }
 0x210   :  { %v1370_v61 = vadd.f32 %v1362_v47, %v1180_v33  ;;  %v1932_v35 = vmul.f32 %v6276_v46, %v8754_v20  ;;  %v6295_v60 = vstv %s6241_s12  ;;  %v6298_v45 = vstv %s6243_s13  ;;  %v8757_v47 = vld [vmem:[#allocation89_spill] sm:$0xff]  ;;  %s6872_s12 = sld [smem:[#allocation9 + $0x304]]  ;;  %s6884_s13 = sld [smem:[#allocation9 + $0x305]] }
 0x211   :  { %v3068_v17 = vadd.f32 %v3060_v6, %v2878_v32  ;;  %v2309_v55 = vadd.f32 %v2301_v49, %v2119_v0  ;;  %v6301_v24 = vstv %s6250_s14  ;;  %v223_v30 = vmul.f32 %v6204_v4, %v8755_v56  ;;  %v8758_v6 = vld [vmem:[#allocation46_spill] sm:$0xff]  ;;  %v8759_v32 = vld [vmem:[#allocation68_spill] sm:$0xff]  ;;  %s6894_s14 = sld [smem:[#allocation9 + $0x306]] }
 0x212   :  { %v1560_v2 = vadd.f32 %v1552_v13, %v1370_v61  ;;  %v6306_v9 = vstv %s6257_s15  ;;  %v413_v33 = vmul.f32 %v6207_v14, %v8756_v42  ;;  %v603_v20 = vmul.f32 %v6216_v44, %v8757_v47  ;;  %v8761_v47 = vld [vmem:[#allocation73_spill] sm:$0xff]  ;;  %s6907_s15 = sld [smem:[#allocation9 + $0x307]] }
 0x213   :  { %v3206_v50 = vadd.f32 %v5987_v43, %v3068_v17  ;;  %v2499_v26 = vadd.f32 %v2491_v34, %v2309_v55  ;;  %v3061_v49 = vmul.f32 %v5984_v57, %v8758_v6  ;;  %v2122_v0 = vmul.f32 %v6295_v60, %v8759_v32  ;;  %v8762_v34 = vld [vmem:[#allocation79_spill] sm:$0xff]  ;;  %v8763_v57 = vld [vmem:[#allocation84_spill] sm:$0xff] }
 0x214   :  { %v1750_v13 = vadd.f32 %v1742_v16, %v1560_v2  ;;  %v6318_v61 = vstv %s6271_s16  ;;  %v421_v56 = vadd.f32 %v413_v33, %v223_v30  ;;  %v793_v42 = vmul.f32 %v6223_v58, %v8760_v41  ;;  %v8764_v2 = vld [vmem:[#allocation91_spill] sm:$0xff]  ;;  %v8765_v41 = vld [vmem:[#allocation85_spill] sm:$0xff]  ;;  %s6920_s16 = sld [smem:[#allocation9 + $0x308]] }
 0x215   :  { %3215 = vst [vmem:[#allocation12 + $0xf0] sm:$0xff] %v3206_v50  ;;  %v2689_v21 = vadd.f32 %v2681_v40, %v2499_v26  ;;  %v2312_v17 = vmul.f32 %v6298_v45, %v8761_v47  ;;  %v2502_v55 = vmul.f32 %v6301_v24, %v8762_v34  ;;  %v2692_v6 = vmul.f32 %v6306_v9, %v8763_v57  ;;  %v8766_v40 = vld [vmem:[#allocation92_spill] sm:$0xff]  ;;  %v8769_v57 = vld [vmem:[#allocation87_spill] sm:$0xff] }
 0x216   :  { %v1940_v32 = vadd.f32 %v1932_v35, %v1750_v13  ;;  %v6329_v19 = vstv %s6284_s17  ;;  %v611_v16 = vadd.f32 %v603_v20, %v421_v56  ;;  %v983_v30 = vmul.f32 %v6230_v59, %v8764_v2  ;;  %v8768_v13 = vld [vmem:[#allocation29_spill] sm:$0xff]  ;;  %v8771_v2 = vld [vmem:[#allocation102_spill] sm:$0xff]  ;;  %s6922_s17 = sld [smem:[#allocation9 + $0x309]] }
 0x217   :  { %v2879_v33 = vadd.f32 %v2871_v22, %v2689_v21  ;;  %v2882_v26 = vmul.f32 %v6318_v61, %v8765_v41  ;;  %v6336_v50 = vstv %s6290_s18  ;;  %v1173_v47 = vmul.f32 %v6235_v37, %v8766_v40  ;;  %v8770_v22 = vld [vmem:[#allocation93_spill] sm:$0xff]  ;;  %s6941_s18 = sld [smem:[#allocation9 + $0x30a]] }
 0x218   :  { %v2130_v34 = vadd.f32 %v2122_v0, %v1940_v32  ;;  %v801_v8 = vadd.f32 %v793_v42, %v611_v16  ;;  %v224_v35 = vmul.f32 %v6204_v4, %v8767_v38  ;;  %v414_v20 = vmul.f32 %v6207_v14, %v8768_v13  ;;  %v8772_v42 = vld [vmem:[#allocation103_spill] sm:$0xff]  ;;  %v8773_v38 = vld [vmem:[#allocation94_spill] sm:$0xff] }
 0x219   :  { %v3069_v56 = vadd.f32 %v3061_v49, %v2879_v33  ;;  %v3072_v21 = vmul.f32 %v6329_v19, %v8769_v57  ;;  %v1363_v41 = vmul.f32 %v6248_v31, %v8770_v22  ;;  %v604_v11 = vmul.f32 %v6216_v44, %v8771_v2  ;;  %v8774_v33 = vld [vmem:[#allocation95_spill] sm:$0xff]  ;;  %v8775_v57 = vld [vmem:[#allocation96_spill] sm:$0xff] }
 0x21a   :  { %v2320_v39 = vadd.f32 %v2312_v17, %v2130_v34  ;;  %v991_v40 = vadd.f32 %v983_v30, %v801_v8  ;;  %v422_v32 = vadd.f32 %v414_v20, %v224_v35  ;;  %v794_v0 = vmul.f32 %v6223_v58, %v8772_v42  ;;  %v8776_v17 = vld [vmem:[#allocation104_spill] sm:$0xff]  ;;  %v8777_v34 = vld [vmem:[#allocation97_spill] sm:$0xff]  ;;  %v8779_v20 = vld [vmem:[#allocation66_spill] sm:$0xff] }
 0x21b   :  { %v3207_v16 = vadd.f32 %v5987_v43, %v3069_v56  ;;  %v1553_v49 = vmul.f32 %v6262_v63, %v8773_v38  ;;  %v1743_v13 = vmul.f32 %v6269_v1, %v8774_v33  ;;  %v1933_v22 = vmul.f32 %v6276_v46, %v8775_v57  ;;  %v8778_v43 = vld [vmem:[#allocation98_spill] sm:$0xff]  ;;  %v8780_v42 = vld [vmem:[#allocation71_spill] sm:$0xff] }
 0x21c   :  { %v2510_v12 = vadd.f32 %v2502_v55, %v2320_v39  ;;  %v1181_v23 = vadd.f32 %v1173_v47, %v991_v40  ;;  %v612_v2 = vadd.f32 %v604_v11, %v422_v32  ;;  %v984_v8 = vmul.f32 %v6230_v59, %v8776_v17  ;;  %v8781_v11 = vld [vmem:[#allocation105_spill] sm:$0xff]  ;;  %v8782_v40 = vld [vmem:[#allocation99_spill] sm:$0xff] }
 0x21d   :  { %3216 = vst [vmem:[#allocation12 + $0xf8] sm:$0xff] %v3207_v16  ;;  %v2123_v30 = vmul.f32 %v6295_v60, %v8777_v34  ;;  %v2313_v35 = vmul.f32 %v6298_v45, %v8778_v43  ;;  %v2503_v56 = vmul.f32 %v6301_v24, %v8779_v20  ;;  %v2693_v33 = vmul.f32 %v6306_v9, %v8780_v42  ;;  %v8783_v16 = vld [vmem:[#allocation23_spill] sm:$0xff]  ;;  %v8784_v34 = vld [vmem:[#allocation81_spill] sm:$0xff] }
 0x21e   :  { %v2700_v57 = vadd.f32 %v2692_v6, %v2510_v12  ;;  %v1371_v39 = vadd.f32 %v1363_v41, %v1181_v23  ;;  %v802_v47 = vadd.f32 %v794_v0, %v612_v2  ;;  %v1174_v55 = vmul.f32 %v6235_v37, %v8781_v11  ;;  %v8785_v38 = vld [vmem:[#allocation111_spill] sm:$0xff]  ;;  %v8786_v23 = vld [vmem:[#allocation106_spill] sm:$0xff]  ;;  %v8787_v6 = vld [vmem:[#allocation100_spill] sm:$0xff] }
 0x21f   :  { %v2883_v32 = vmul.f32 %v6318_v61, %v8782_v40  ;;  %v225_v17 = vmul.f32 %v6204_v4, %v8783_v16  ;;  %v415_v43 = vmul.f32 %v6207_v14, %v8784_v34  ;;  %v605_v20 = vmul.f32 %v6216_v44, %v8785_v38  ;;  %v8788_v0 = vld [vmem:[#allocation107_spill] sm:$0xff]  ;;  %v8789_v16 = vld [vmem:[#allocation112_spill] sm:$0xff] }
 0x220   :  { %v2890_v28 = vadd.f32 %v2882_v26, %v2700_v57  ;;  %v1561_v42 = vadd.f32 %v1553_v49, %v1371_v39  ;;  %v992_v12 = vadd.f32 %v984_v8, %v802_v47  ;;  %v1364_v41 = vmul.f32 %v6248_v31, %v8786_v23  ;;  %v8790_v38 = vld [vmem:[#allocation108_spill] sm:$0xff]  ;;  %v8791_v26 = vld [vmem:[#allocation69_spill] sm:$0xff]  ;;  %v8792_v8 = vld [vmem:[#allocation51_spill] sm:$0xff] }
 0x221   :  { %v3073_v2 = vmul.f32 %v6329_v19, %v8787_v6  ;;  %v1554_v40 = vmul.f32 %v6262_v63, %v8788_v0  ;;  %v423_v11 = vadd.f32 %v415_v43, %v225_v17  ;;  %v795_v29 = vmul.f32 %v6223_v58, %v8789_v16  ;;  %v8793_v6 = vld [vmem:[#allocation35_spill] sm:$0xff] }
 0x222   :  { %v3080_v34 = vadd.f32 %v3072_v21, %v2890_v28  ;;  %v1751_v10 = vadd.f32 %v1743_v13, %v1561_v42  ;;  %v1182_v48 = vadd.f32 %v1174_v55, %v992_v12  ;;  %v1744_v57 = vmul.f32 %v6269_v1, %v8790_v38  ;;  %v8794_v28 = vld [vmem:[#allocation109_spill] sm:$0xff]  ;;  %v8795_v21 = vld [vmem:[#allocation110_spill] sm:$0xff] }
 0x223   :  { %v1934_v49 = vmul.f32 %v6276_v46, %v8791_v26  ;;  %v2124_v39 = vmul.f32 %v6295_v60, %v8792_v8  ;;  %v613_v47 = vadd.f32 %v605_v20, %v423_v11  ;;  %v985_v0 = vmul.f32 %v6230_v59, %v8793_v6  ;;  %v8796_v55 = vld [vmem:[#allocation78_spill] sm:$0xff]  ;;  %v8797_v38 = vld [vmem:[#allocation113_spill] sm:$0xff]  ;;  %v8798_v6 = vld [vmem:[#allocation76_spill] sm:$0xff] }
 0x224   :  { %v3219_v17 = vadd.f32 %v6336_v50, %v3080_v34  ;;  %v1941_v43 = vadd.f32 %v1933_v22, %v1751_v10  ;;  %v1372_v16 = vadd.f32 %v1364_v41, %v1182_v48  ;;  %v2314_v13 = vmul.f32 %v6298_v45, %v8794_v28  ;;  %v8799_v48 = vld [vmem:[#allocation119_spill] sm:$0xff]  ;;  %v8800_v41 = vld [vmem:[#allocation114_spill] sm:$0xff]  ;;  %v8801_v28 = vld [vmem:[#allocation120_spill] sm:$0xff] }
 0x225   :  { %v2504_v42 = vmul.f32 %v6301_v24, %v8795_v21  ;;  %v2694_v12 = vmul.f32 %v6306_v9, %v8796_v55  ;;  %v803_v26 = vadd.f32 %v795_v29, %v613_v47  ;;  %v1175_v20 = vmul.f32 %v6235_v37, %v8797_v38  ;;  %v8802_v29 = vld [vmem:[#allocation121_spill] sm:$0xff] }
 0x226   :  { %3228 = vst [vmem:[#allocation12 + $0x100] sm:$0xff] %v3219_v17  ;;  %v2131_v11 = vadd.f32 %v2123_v30, %v1941_v43  ;;  %v1562_v8 = vadd.f32 %v1554_v40, %v1372_v16  ;;  %v2884_v10 = vmul.f32 %v6318_v61, %v8798_v6  ;;  %v226_v22 = vmul.f32 %v6204_v4, %v8799_v48  ;;  %v8803_v30 = vld [vmem:[#allocation25_spill] sm:$0xff]  ;;  %v8804_v6 = vld [vmem:[#allocation62_spill] sm:$0xff] }
 0x227   :  { %v993_v34 = vadd.f32 %v985_v0, %v803_v26  ;;  %v1365_v21 = vmul.f32 %v6248_v31, %v8800_v41  ;;  %v416_v55 = vmul.f32 %v6207_v14, %v8801_v28  ;;  %v606_v47 = vmul.f32 %v6216_v44, %v8802_v29  ;;  %v8805_v48 = vld [vmem:[#allocation122_spill] sm:$0xff] }
 0x228   :  { %v2321_v38 = vadd.f32 %v2313_v35, %v2131_v11  ;;  %v1752_v17 = vadd.f32 %v1744_v57, %v1562_v8  ;;  %v3074_v40 = vmul.f32 %v6329_v19, %v8803_v30  ;;  %v1555_v16 = vmul.f32 %v6262_v63, %v8689_v5  ;;  %v8806_v57 = vld [vmem:[#allocation65_spill] sm:$0xff] }
 0x229   :  { %v1183_v43 = vadd.f32 %v1175_v20, %v993_v34  ;;  %v1745_v0 = vmul.f32 %v6269_v1, %v8804_v6  ;;  %v424_v26 = vadd.f32 %v416_v55, %v226_v22  ;;  %v796_v41 = vmul.f32 %v6223_v58, %v8805_v48  ;;  %v8807_v34 = vld [vmem:[#allocation123_spill] sm:$0xff]  ;;  %v8808_v5 = vld [vmem:[#allocation117_spill] sm:$0xff] }
 0x22a   :  { %v2511_v28 = vadd.f32 %v2503_v56, %v2321_v38  ;;  %v1942_v23 = vadd.f32 %v1934_v49, %v1752_v17  ;;  %v1935_v35 = vmul.f32 %v6276_v46, %v8691_v25  ;;  %v2125_v8 = vmul.f32 %v6295_v60, %v8806_v57  ;;  %v8809_v56 = vld [vmem:[#allocation118_spill] sm:$0xff] }
 0x22b   :  { %v1373_v11 = vadd.f32 %v1365_v21, %v1183_v43  ;;  %v2315_v30 = vmul.f32 %v6298_v45, %v8694_v18  ;;  %v614_v20 = vadd.f32 %v606_v47, %v424_v26  ;;  %v986_v6 = vmul.f32 %v6230_v59, %v8807_v34  ;;  %v8810_v43 = vld [vmem:[#allocation124_spill] sm:$0xff] }
 0x22c   :  { %v2701_v55 = vadd.f32 %v2693_v33, %v2511_v28  ;;  %v2132_v22 = vadd.f32 %v2124_v39, %v1942_v23  ;;  %v2505_v38 = vmul.f32 %v6301_v24, %v8808_v5  ;;  %v2695_v49 = vmul.f32 %v6306_v9, %v8809_v56  ;;  %v8811_v5 = vld [vmem:[#allocation125_spill] sm:$0xff]  ;;  %v8812_v56 = vld [vmem:[#allocation132_spill] sm:$0xff] }
 0x22d   :  { %v1563_v17 = vadd.f32 %v1555_v16, %v1373_v11  ;;  %v2885_v57 = vmul.f32 %v6318_v61, %v8586_v62  ;;  %v804_v21 = vadd.f32 %v796_v41, %v614_v20  ;;  %v1176_v18 = vmul.f32 %v6235_v37, %v8810_v43 }
 0x22e   :  { %v2891_v47 = vadd.f32 %v2883_v32, %v2701_v55  ;;  %v2322_v26 = vadd.f32 %v2314_v13, %v2132_v22  ;;  %v227_v33 = vmul.f32 %v6204_v4, %v8697_v27  ;;  %v417_v23 = vmul.f32 %v6207_v14, %v8583_v36  ;;  %v8813_v36 = vld [vmem:[#allocation37_spill] sm:$0xff] }
 0x22f   :  { %v1753_v39 = vadd.f32 %v1745_v0, %v1563_v17  ;;  %v994_v28 = vadd.f32 %v986_v6, %v804_v21  ;;  %v1366_v16 = vmul.f32 %v6248_v31, %v8811_v5  ;;  %v607_v11 = vmul.f32 %v6216_v44, %v8699_v52  ;;  %v8814_v27 = vld [vmem:[#allocation133_spill] sm:$0xff] }
 0x230   :  { %v3081_v41 = vadd.f32 %v3073_v2, %v2891_v47  ;;  %v2512_v20 = vadd.f32 %v2504_v42, %v2322_v26  ;;  %v425_v62 = vadd.f32 %v417_v23, %v227_v33  ;;  %v797_v32 = vmul.f32 %v6223_v58, %v8812_v56  ;;  %v8815_v26 = vld [vmem:[#allocation48_spill] sm:$0xff] }
 0x231   :  { %v1943_v13 = vadd.f32 %v1935_v35, %v1753_v39  ;;  %v3075_v55 = vmul.f32 %v6329_v19, %v8702_v3  ;;  %v1184_v22 = vadd.f32 %v1176_v18, %v994_v28  ;;  %v1556_v6 = vmul.f32 %v6262_v63, %v8813_v36  ;;  %v8816_v35 = vld [vmem:[#allocation41_spill] sm:$0xff]  ;;  %v8817_v39 = vld [vmem:[#allocation126_spill] sm:$0xff] }
 0x232   :  { %v3220_v0 = vadd.f32 %v6336_v50, %v3081_v41  ;;  %v2702_v17 = vadd.f32 %v2694_v12, %v2512_v20  ;;  %v615_v21 = vadd.f32 %v607_v11, %v425_v62  ;;  %v987_v2 = vmul.f32 %v6230_v59, %v8814_v27 }
 0x233   :  { %v2133_v42 = vadd.f32 %v2125_v8, %v1943_v13  ;;  %v1374_v47 = vadd.f32 %v1366_v16, %v1184_v22  ;;  %v1746_v33 = vmul.f32 %v6269_v1, %v8815_v26  ;;  %v1936_v23 = vmul.f32 %v6276_v46, %v8816_v35  ;;  %v8818_v16 = vld [vmem:[#allocation128_spill] sm:$0xff]  ;;  %v8819_v13 = vld [vmem:[#allocation83_spill] sm:$0xff] }
 0x234   :  { %3229 = vst [vmem:[#allocation12 + $0x108] sm:$0xff] %v3220_v0  ;;  %v2892_v18 = vadd.f32 %v2884_v10, %v2702_v17  ;;  %v2126_v28 = vmul.f32 %v6295_v60, %v8817_v39  ;;  %v805_v3 = vadd.f32 %v797_v32, %v615_v21  ;;  %v1177_v62 = vmul.f32 %v6235_v37, %v8591_v7 }
 0x235   :  { %v2323_v12 = vadd.f32 %v2315_v30, %v2133_v42  ;;  %v1564_v11 = vadd.f32 %v1556_v6, %v1374_v47  ;;  %v2316_v8 = vmul.f32 %v6298_v45, %v8705_v53  ;;  %v2506_v41 = vmul.f32 %v6301_v24, %v8818_v16  ;;  %v8820_v6 = vld [vmem:[#allocation143_spill] sm:$0xff] }
 0x236   :  { %v3082_v20 = vadd.f32 %v3074_v40, %v2892_v18  ;;  %v2696_v22 = vmul.f32 %v6306_v9, %v8819_v13  ;;  %v995_v10 = vadd.f32 %v987_v2, %v805_v3  ;;  %v1367_v0 = vmul.f32 %v6248_v31, %v8708_v54  ;;  %v8821_v18 = vld [vmem:[#allocation144_spill] sm:$0xff] }
 0x237   :  { %v2513_v32 = vadd.f32 %v2505_v38, %v2323_v12  ;;  %v1754_v17 = vadd.f32 %v1746_v33, %v1564_v11  ;;  %v228_v30 = vmul.f32 %v6204_v4, %v8595_v15  ;;  %v418_v21 = vmul.f32 %v6207_v14, %v8820_v6  ;;  %v8822_v38 = vld [vmem:[#allocation145_spill] sm:$0xff]  ;;  %v8823_v12 = vld [vmem:[#allocation18_spill] sm:$0xff]  ;;  %v8824_v6 = vld [vmem:[#allocation20_spill] sm:$0xff] }
 0x238   :  { %v3221_v42 = vadd.f32 %v6336_v50, %v3082_v20  ;;  %v1185_v47 = vadd.f32 %v1177_v62, %v995_v10  ;;  %v1557_v40 = vmul.f32 %v6262_v63, %v8599_v51  ;;  %v608_v3 = vmul.f32 %v6216_v44, %v8821_v18  ;;  %v8825_v10 = vld [vmem:[#allocation136_spill] sm:$0xff] }
 0x239   :  { %v2703_v2 = vadd.f32 %v2695_v49, %v2513_v32  ;;  %v1944_v13 = vadd.f32 %v1936_v23, %v1754_v17  ;;  %v426_v54 = vadd.f32 %v418_v21, %v228_v30  ;;  %v798_v33 = vmul.f32 %v6223_v58, %v8822_v38  ;;  %v8826_v49 = vld [vmem:[#allocation146_spill] sm:$0xff]  ;;  %v8827_v17 = vld [vmem:[#allocation137_spill] sm:$0xff] }
 0x23a   :  { %3230 = vst [vmem:[#allocation12 + $0x110] sm:$0xff] %v3221_v42  ;;  %v2886_v11 = vmul.f32 %v6318_v61, %v8823_v12  ;;  %v3076_v20 = vmul.f32 %v6329_v19, %v8824_v6  ;;  %v1375_v62 = vadd.f32 %v1367_v0, %v1185_v47  ;;  %v1747_v51 = vmul.f32 %v6269_v1, %v8825_v10  ;;  %v8828_v21 = vld [vmem:[#allocation138_spill] sm:$0xff]  ;;  %v8829_v12 = vld [vmem:[#allocation139_spill] sm:$0xff] }
 0x23b   :  { %v2893_v15 = vadd.f32 %v2885_v57, %v2703_v2  ;;  %v2134_v16 = vadd.f32 %v2126_v28, %v1944_v13  ;;  %v616_v18 = vadd.f32 %v608_v3, %v426_v54  ;;  %v988_v23 = vmul.f32 %v6230_v59, %v8826_v49  ;;  %v8830_v10 = vld [vmem:[#allocation42_spill] sm:$0xff]  ;;  %v8833_v2 = vld [vmem:[#allocation147_spill] sm:$0xff] }
 0x23c   :  { %v1565_v32 = vadd.f32 %v1557_v40, %v1375_v62  ;;  %v1937_v30 = vmul.f32 %v6276_v46, %v8827_v17  ;;  %v2127_v42 = vmul.f32 %v6295_v60, %v8828_v21  ;;  %v2317_v6 = vmul.f32 %v6298_v45, %v8829_v12  ;;  %v8831_v28 = vld [vmem:[#allocation74_spill] sm:$0xff]  ;;  %v8832_v40 = vld [vmem:[#allocation61_spill] sm:$0xff]  ;;  %v8903_v17 = vld [vmem:[#allocation100_spill] sm:$0xff] }
 0x23d   :  { %v3083_v0 = vadd.f32 %v3075_v55, %v2893_v15  ;;  %v2324_v47 = vadd.f32 %v2316_v8, %v2134_v16  ;;  %v806_v38 = vadd.f32 %v798_v33, %v616_v18  ;;  %v1178_v57 = vmul.f32 %v6235_v37, %v8830_v10  ;;  %v8834_v15 = vld [vmem:[#allocation26_spill] sm:$0xff]  ;;  %v8835_v8 = vld [vmem:[#allocation140_spill] sm:$0xff]  ;;  %v8836_v18 = vld [vmem:[#allocation27_spill] sm:$0xff] }
 0x23e   :  { %v1755_v54 = vadd.f32 %v1747_v51, %v1565_v32  ;;  %v2507_v13 = vmul.f32 %v6301_v24, %v8831_v28  ;;  %v2697_v3 = vmul.f32 %v6306_v9, %v8832_v40  ;;  %v1368_v62 = vmul.f32 %v6248_v31, %v8833_v2  ;;  %v8837_v32 = vld [vmem:[#allocation21_spill] sm:$0xff] }
 0x23f   :  { %v3222_v21 = vadd.f32 %v6336_v50, %v3083_v0  ;;  %v2514_v49 = vadd.f32 %v2506_v41, %v2324_v47  ;;  %v996_v12 = vadd.f32 %v988_v23, %v806_v38  ;;  %v229_v55 = vmul.f32 %v6204_v4, %v8834_v15  ;;  %v8838_v38 = vld [vmem:[#allocation141_spill] sm:$0xff] }
 0x240   :  { %v1945_v51 = vadd.f32 %v1937_v30, %v1755_v54  ;;  %v2887_v16 = vmul.f32 %v6318_v61, %v8835_v8  ;;  %v419_v33 = vmul.f32 %v6207_v14, %v8836_v18  ;;  %v609_v40 = vmul.f32 %v6216_v44, %v8837_v32  ;;  %v8839_v0 = vld [vmem:[#allocation53_spill] sm:$0xff]  ;;  %v8840_v14 = vld [vmem:[#allocation148_spill] sm:$0xff]  ;;  %v8841_v8 = vld [vmem:[#allocation31_spill] sm:$0xff] }
 0x241   :  { %3231 = vst [vmem:[#allocation12 + $0x118] sm:$0xff] %v3222_v21  ;;  %v2704_v41 = vadd.f32 %v2696_v22, %v2514_v49  ;;  %v3077_v4 = vmul.f32 %v6329_v19, %v8838_v38  ;;  %v1186_v23 = vadd.f32 %v1178_v57, %v996_v12  ;;  %v1558_v30 = vmul.f32 %v6262_v63, %v8839_v0  ;;  %v8842_v32 = vld [vmem:[#allocation149_spill] sm:$0xff]  ;;  %v8843_v57 = vld [vmem:[#allocation70_spill] sm:$0xff] }
 0x242   :  { %v2135_v47 = vadd.f32 %v2127_v42, %v1945_v51  ;;  %v1748_v54 = vmul.f32 %v6269_v1, %v8840_v14  ;;  %v427_v44 = vadd.f32 %v419_v33, %v229_v55  ;;  %v799_v21 = vmul.f32 %v6223_v58, %v8841_v8  ;;  %v8844_v42 = vld [vmem:[#allocation55_spill] sm:$0xff]  ;;  %v8845_v33 = vld [vmem:[#allocation34_spill] sm:$0xff] }
 0x243   :  { %v2894_v22 = vadd.f32 %v2886_v11, %v2704_v41  ;;  %v1376_v49 = vadd.f32 %v1368_v62, %v1186_v23  ;;  %v1938_v12 = vmul.f32 %v6276_v46, %v8842_v32  ;;  %v2128_v38 = vmul.f32 %v6295_v60, %v8843_v57  ;;  %v8846_v41 = vld [vmem:[#allocation150_spill] sm:$0xff]  ;;  %v8847_v32 = vld [vmem:[#allocation36_spill] sm:$0xff]  ;;  %v8848_v14 = vld [vmem:[#allocation39_spill] sm:$0xff] }
 0x244   :  { %v2325_v0 = vadd.f32 %v2317_v6, %v2135_v47  ;;  %v2318_v51 = vmul.f32 %v6298_v45, %v8844_v42  ;;  %v617_v55 = vadd.f32 %v609_v40, %v427_v44  ;;  %v989_v58 = vmul.f32 %v6230_v59, %v8845_v33  ;;  %v8849_v44 = vld [vmem:[#allocation32_spill] sm:$0xff]  ;;  %v8877_v8 = vld [vmem:[#allocation91_spill] sm:$0xff] }
 0x245   :  { %v3084_v11 = vadd.f32 %v3076_v20, %v2894_v22  ;;  %v1566_v62 = vadd.f32 %v1558_v30, %v1376_v49  ;;  %v2508_v23 = vmul.f32 %v6301_v24, %v8846_v41  ;;  %v1179_v57 = vmul.f32 %v6235_v37, %v8847_v32 }
 0x246   :  { %v2515_v6 = vadd.f32 %v2507_v13, %v2325_v0  ;;  %v807_v47 = vadd.f32 %v799_v21, %v617_v55  ;;  %v1369_v40 = vmul.f32 %v6248_v31, %v8848_v14  ;;  %v1559_v59 = vmul.f32 %v6262_v63, %v8849_v44  ;;  %v8850_v0 = vld [vmem:[#allocation28_spill] sm:$0xff]  ;;  %v8851_v55 = vld [vmem:[#allocation30_spill] sm:$0xff] }
 0x247   :  { %v3223_v20 = vadd.f32 %v6336_v50, %v3084_v11  ;;  %v1756_v30 = vadd.f32 %v1748_v54, %v1566_v62  ;;  %v6553_v22 = vstv %s6507_s0  ;;  %v6556_v49 = vstv %s6509_s1  ;;  %s6943_s0 = sld [smem:[#allocation9 + $0x30b]]  ;;  %s6949_s1 = sld [smem:[#allocation9 + $0x30c]] }
 0x248   :  { %v2705_v37 = vadd.f32 %v2697_v3, %v2515_v6  ;;  %v997_v13 = vadd.f32 %v989_v58, %v807_v47  ;;  %v240_v21 = vmul.f32 %v6553_v22, %v8850_v0  ;;  %v430_v31 = vmul.f32 %v6556_v49, %v8851_v55  ;;  %v8852_v6 = vld [vmem:[#allocation33_spill] sm:$0xff]  ;;  %v8854_v55 = vld [vmem:[#allocation38_spill] sm:$0xff] }
 0x249   :  { %3232 = vst [vmem:[#allocation12 + $0x120] sm:$0xff] %v3223_v20  ;;  %v1946_v63 = vadd.f32 %v1938_v12, %v1756_v30  ;;  %v6565_v41 = vstv %s6517_s3  ;;  %v6568_v54 = vstv %s6523_s19  ;;  %v6571_v11 = vstv %s6525_s20  ;;  %v8853_v20 = vld [vmem:[#allocation43_spill] sm:$0xff]  ;;  %s6957_s3 = sld [smem:[#allocation9 + $0x30d]]  ;;  %s6959_s19 = sld [smem:[#allocation9 + $0x30e]] }
 0x24a   :  { %v2895_v3 = vadd.f32 %v2887_v16, %v2705_v37  ;;  %v1187_v58 = vadd.f32 %v1179_v57, %v997_v13  ;;  %v438_v62 = vadd.f32 %v430_v31, %v240_v21  ;;  %v620_v47 = vmul.f32 %v6565_v41, %v8852_v6  ;;  %v8855_v57 = vld [vmem:[#allocation40_spill] sm:$0xff]  ;;  %v8856_v21 = vld [vmem:[#allocation151_spill] sm:$0xff]  ;;  %v8874_v6 = vld [vmem:[#allocation90_spill] sm:$0xff]  ;;  %s6978_s20 = sld [smem:[#allocation9 + $0x30f]] }
 0x24b   :  { %v2136_v12 = vadd.f32 %v2128_v38, %v1946_v63  ;;  %v1749_v30 = vmul.f32 %v6269_v1, %v8853_v20  ;;  %v810_v0 = vmul.f32 %v6568_v54, %v8854_v55  ;;  %v6586_v44 = vstv %s6535_s21  ;;  %v8857_v38 = vld [vmem:[#allocation47_spill] sm:$0xff]  ;;  %s6998_s21 = sld [smem:[#allocation10 + $0x6]] }
 0x24c   :  { %v3085_v14 = vadd.f32 %v3077_v4, %v2895_v3  ;;  %v1377_v32 = vadd.f32 %v1369_v40, %v1187_v58  ;;  %v628_v16 = vadd.f32 %v620_v47, %v438_v62  ;;  %v1000_v37 = vmul.f32 %v6571_v11, %v8855_v57  ;;  %v8858_v3 = vld [vmem:[#allocation44_spill] sm:$0xff] }
 0x24d   :  { %v2326_v13 = vadd.f32 %v2318_v51, %v2136_v12  ;;  %v2698_v31 = vmul.f32 %v6306_v9, %v8856_v21  ;;  %v1939_v63 = vmul.f32 %v6276_v46, %v8857_v38  ;;  %v6595_v1 = vstv %s6545_s22  ;;  %v8859_v62 = vld [vmem:[#allocation152_spill] sm:$0xff]  ;;  %s7202_s22 = sld [smem:[#allocation9 + $0x380]] }
 0x24e   :  { %v3224_v55 = vadd.f32 %v6336_v50, %v3085_v14  ;;  %v1567_v4 = vadd.f32 %v1559_v59, %v1377_v32  ;;  %v818_v40 = vadd.f32 %v810_v0, %v628_v16  ;;  %v1190_v58 = vmul.f32 %v6586_v44, %v8858_v3  ;;  %v8860_v46 = vld [vmem:[#allocation24_spill] sm:$0xff]  ;;  %v8861_v14 = vld [vmem:[#allocation49_spill] sm:$0xff] }
 0x24f   :  { %v2516_v51 = vadd.f32 %v2508_v23, %v2326_v13  ;;  %v2888_v47 = vmul.f32 %v6318_v61, %v8859_v62  ;;  %v3078_v12 = vmul.f32 %v6329_v19, %v8860_v46  ;;  %v6609_v57 = vstv %s6558_s4  ;;  %v8862_v23 = vld [vmem:[#allocation50_spill] sm:$0xff]  ;;  %v8863_v3 = vld [vmem:[#allocation52_spill] sm:$0xff]  ;;  %s7209_s4 = sld [smem:[#allocation9 + $0x381]] }
 0x250   :  { %3233 = vst [vmem:[#allocation12 + $0x128] sm:$0xff] %v3224_v55  ;;  %v1757_v32 = vadd.f32 %v1749_v30, %v1567_v4  ;;  %v2129_v59 = vmul.f32 %v6295_v60, %v8861_v14  ;;  %v1008_v0 = vadd.f32 %v1000_v37, %v818_v40  ;;  %v1380_v16 = vmul.f32 %v6595_v1, %v8862_v23  ;;  %v8864_v4 = vld [vmem:[#allocation56_spill] sm:$0xff]  ;;  %v8865_v23 = vld [vmem:[#allocation54_spill] sm:$0xff] }
 0x251   :  { %v2706_v13 = vadd.f32 %v2698_v31, %v2516_v51  ;;  %v2319_v46 = vmul.f32 %v6298_v45, %v8863_v3  ;;  %v6622_v62 = vstv %s6573_s23  ;;  %v6625_v38 = vstv %s6575_s24  ;;  %v8866_v51 = vld [vmem:[#allocation57_spill] sm:$0xff]  ;;  %v8867_v3 = vld [vmem:[#allocation60_spill] sm:$0xff]  ;;  %s7215_s23 = sld [smem:[#allocation9 + $0x382]]  ;;  %s7217_s24 = sld [smem:[#allocation9 + $0x383]] }
 0x252   :  { %v1947_v55 = vadd.f32 %v1939_v63, %v1757_v32  ;;  %v1198_v30 = vadd.f32 %v1190_v58, %v1008_v0  ;;  %v1570_v60 = vmul.f32 %v6609_v57, %v8864_v4  ;;  %v6632_v37 = vstv %s6579_s25  ;;  %v8868_v58 = vld [vmem:[#allocation59_spill] sm:$0xff]  ;;  %v8869_v0 = vld [vmem:[#allocation64_spill] sm:$0xff]  ;;  %s7227_s25 = sld [smem:[#allocation9 + $0x384]] }
 0x253   :  { %v2896_v40 = vadd.f32 %v2888_v47, %v2706_v13  ;;  %v2509_v31 = vmul.f32 %v6301_v24, %v8865_v23  ;;  %v2699_v45 = vmul.f32 %v6306_v9, %v8866_v51  ;;  %v2889_v14 = vmul.f32 %v6318_v61, %v8867_v3  ;;  %v8870_v4 = vld [vmem:[#allocation68_spill] sm:$0xff]  ;;  %v8871_v9 = vld [vmem:[#allocation86_spill] sm:$0xff] }
 0x254   :  { %v2137_v21 = vadd.f32 %v2129_v59, %v1947_v55  ;;  %v1388_v63 = vadd.f32 %v1380_v16, %v1198_v30  ;;  %v1760_v32 = vmul.f32 %v6622_v62, %v8868_v58  ;;  %v1950_v47 = vmul.f32 %v6625_v38, %v8869_v0  ;;  %v8872_v55 = vld [vmem:[#allocation88_spill] sm:$0xff]  ;;  %v8873_v58 = vld [vmem:[#allocation89_spill] sm:$0xff] }
 0x255   :  { %v3086_v13 = vadd.f32 %v3078_v12, %v2896_v40  ;;  %v2140_v24 = vmul.f32 %v6632_v37, %v8870_v4  ;;  %v6647_v23 = vstv %s6597_s26  ;;  %v241_v61 = vmul.f32 %v6553_v22, %v8871_v9  ;;  %s7233_s26 = sld [smem:[#allocation9 + $0x385]] }
 0x256   :  { %v2327_v59 = vadd.f32 %v2319_v46, %v2137_v21  ;;  %v1578_v16 = vadd.f32 %v1570_v60, %v1388_v63  ;;  %v431_v30 = vmul.f32 %v6556_v49, %v8872_v55  ;;  %v621_v0 = vmul.f32 %v6565_v41, %v8873_v58  ;;  %v8875_v46 = vld [vmem:[#allocation46_spill] sm:$0xff]  ;;  %v8876_v63 = vld [vmem:[#allocation73_spill] sm:$0xff] }
 0x257   :  { %v3225_v12 = vadd.f32 %v6336_v50, %v3086_v13  ;;  %v6659_v40 = vstv %s6602_s27  ;;  %v6662_v4 = vstv %s6611_s28  ;;  %v6665_v3 = vstv %s6613_s2  ;;  %s7243_s27 = sld [smem:[#allocation9 + $0x386]]  ;;  %s7256_s28 = sld [smem:[#allocation9 + $0x387]] }
 0x258   :  { %v2517_v51 = vadd.f32 %v2509_v31, %v2327_v59  ;;  %v1768_v20 = vadd.f32 %v1760_v32, %v1578_v16  ;;  %v439_v9 = vadd.f32 %v431_v30, %v241_v61  ;;  %v811_v21 = vmul.f32 %v6568_v54, %v8874_v6  ;;  %v8878_v32 = vld [vmem:[#allocation79_spill] sm:$0xff]  ;;  %v8879_v59 = vld [vmem:[#allocation84_spill] sm:$0xff]  ;;  %v8880_v30 = vld [vmem:[#allocation85_spill] sm:$0xff]  ;;  %s7270_s2 = sld [smem:[#allocation9 + $0x388]] }
 0x259   :  { %3234 = vst [vmem:[#allocation12 + $0x130] sm:$0xff] %v3225_v12  ;;  %v3079_v60 = vmul.f32 %v6329_v19, %v8875_v46  ;;  %v2330_v13 = vmul.f32 %v6647_v23, %v8876_v63  ;;  %v6674_v58 = vstv %s6627_s29  ;;  %v1001_v31 = vmul.f32 %v6571_v11, %v8877_v8  ;;  %v8881_v12 = vld [vmem:[#allocation92_spill] sm:$0xff]  ;;  %v8885_v8 = vld [vmem:[#allocation102_spill] sm:$0xff]  ;;  %s7272_s29 = sld [smem:[#allocation9 + $0x389]] }
 0x25a   :  { %v2707_v55 = vadd.f32 %v2699_v45, %v2517_v51  ;;  %v1958_v42 = vadd.f32 %v1950_v47, %v1768_v20  ;;  %v629_v33 = vadd.f32 %v621_v0, %v439_v9  ;;  %v2520_v61 = vmul.f32 %v6659_v40, %v8878_v32  ;;  %v8882_v20 = vld [vmem:[#allocation101_spill] sm:$0xff]  ;;  %v8883_v0 = vld [vmem:[#allocation87_spill] sm:$0xff] }
 0x25b   :  { %v2710_v16 = vmul.f32 %v6662_v4, %v8879_v59  ;;  %v2900_v19 = vmul.f32 %v6665_v3, %v8880_v30  ;;  %v1191_v63 = vmul.f32 %v6586_v44, %v8881_v12  ;;  %v242_v45 = vmul.f32 %v6553_v22, %v8882_v20  ;;  %v8884_v32 = vld [vmem:[#allocation29_spill] sm:$0xff]  ;;  %v8889_v20 = vld [vmem:[#allocation103_spill] sm:$0xff] }
 0x25c   :  { %v2897_v46 = vadd.f32 %v2889_v14, %v2707_v55  ;;  %v2148_v6 = vadd.f32 %v2140_v24, %v1958_v42  ;;  %v819_v51 = vadd.f32 %v811_v21, %v629_v33  ;;  %v3090_v47 = vmul.f32 %v6674_v58, %v8883_v0  ;;  %v8886_v14 = vld [vmem:[#allocation93_spill] sm:$0xff]  ;;  %v8887_v33 = vld [vmem:[#allocation94_spill] sm:$0xff]  ;;  %v8888_v55 = vld [vmem:[#allocation95_spill] sm:$0xff] }
 0x25d   :  { %v6691_v9 = vstv %s6649_s30  ;;  %v432_v59 = vmul.f32 %v6556_v49, %v8884_v32  ;;  %v622_v30 = vmul.f32 %v6565_v41, %v8885_v8  ;;  %v1381_v42 = vmul.f32 %v6595_v1, %v8886_v14  ;;  %v8893_v14 = vld [vmem:[#allocation104_spill] sm:$0xff]  ;;  %s7293_s30 = sld [smem:[#allocation9 + $0x38a]] }
 0x25e   :  { %v3087_v18 = vadd.f32 %v3079_v60, %v2897_v46  ;;  %v2338_v15 = vadd.f32 %v2330_v13, %v2148_v6  ;;  %v1009_v12 = vadd.f32 %v1001_v31, %v819_v51  ;;  %v1571_v24 = vmul.f32 %v6609_v57, %v8887_v33  ;;  %v8890_v46 = vld [vmem:[#allocation96_spill] sm:$0xff]  ;;  %v8891_v60 = vld [vmem:[#allocation97_spill] sm:$0xff]  ;;  %v8892_v31 = vld [vmem:[#allocation98_spill] sm:$0xff] }
 0x25f   :  { %v1761_v21 = vmul.f32 %v6622_v62, %v8888_v55  ;;  %v440_v0 = vadd.f32 %v432_v59, %v242_v45  ;;  %v812_v2 = vmul.f32 %v6568_v54, %v8889_v20  ;;  %v1951_v6 = vmul.f32 %v6625_v38, %v8890_v46  ;;  %v8894_v20 = vld [vmem:[#allocation66_spill] sm:$0xff] }
 0x260   :  { %v3226_v32 = vadd.f32 %v6336_v50, %v3087_v18  ;;  %v2528_v10 = vadd.f32 %v2520_v61, %v2338_v15  ;;  %v1199_v8 = vadd.f32 %v1191_v63, %v1009_v12  ;;  %v2141_v13 = vmul.f32 %v6632_v37, %v8891_v60  ;;  %v8895_v15 = vld [vmem:[#allocation71_spill] sm:$0xff]  ;;  %v8896_v61 = vld [vmem:[#allocation105_spill] sm:$0xff] }
 0x261   :  { %v2331_v51 = vmul.f32 %v6647_v23, %v8892_v31  ;;  %v630_v33 = vadd.f32 %v622_v30, %v440_v0  ;;  %v1002_v59 = vmul.f32 %v6571_v11, %v8893_v14  ;;  %v2521_v50 = vmul.f32 %v6659_v40, %v8894_v20  ;;  %v8897_v60 = vld [vmem:[#allocation23_spill] sm:$0xff]  ;;  %v8898_v30 = vld [vmem:[#allocation81_spill] sm:$0xff] }
 0x262   :  { %3235 = vst [vmem:[#allocation12 + $0x138] sm:$0xff] %v3226_v32  ;;  %v2718_v45 = vadd.f32 %v2710_v16, %v2528_v10  ;;  %v1389_v55 = vadd.f32 %v1381_v42, %v1199_v8  ;;  %v2711_v18 = vmul.f32 %v6662_v4, %v8895_v15  ;;  %v1192_v12 = vmul.f32 %v6586_v44, %v8896_v61  ;;  %v8899_v10 = vld [vmem:[#allocation99_spill] sm:$0xff]  ;;  %v8901_v15 = vld [vmem:[#allocation106_spill] sm:$0xff]  ;;  %v8902_v61 = vld [vmem:[#allocation112_spill] sm:$0xff] }
 0x263   :  { %v820_v63 = vadd.f32 %v812_v2, %v630_v33  ;;  %v243_v31 = vmul.f32 %v6553_v22, %v8897_v60  ;;  %v433_v0 = vmul.f32 %v6556_v49, %v8898_v30  ;;  %v2901_v8 = vmul.f32 %v6665_v3, %v8899_v10  ;;  %v8900_v16 = vld [vmem:[#allocation111_spill] sm:$0xff]  ;;  %v8905_v30 = vld [vmem:[#allocation108_spill] sm:$0xff] }
 0x264   :  { %v2908_v14 = vadd.f32 %v2900_v19, %v2718_v45  ;;  %v1579_v32 = vadd.f32 %v1571_v24, %v1389_v55  ;;  %v623_v42 = vmul.f32 %v6565_v41, %v8900_v16  ;;  %v1382_v2 = vmul.f32 %v6595_v1, %v8901_v15  ;;  %v8904_v24 = vld [vmem:[#allocation107_spill] sm:$0xff] }
 0x265   :  { %v1010_v20 = vadd.f32 %v1002_v59, %v820_v63  ;;  %v441_v33 = vadd.f32 %v433_v0, %v243_v31  ;;  %v813_v46 = vmul.f32 %v6568_v54, %v8902_v61  ;;  %v3091_v19 = vmul.f32 %v6674_v58, %v8903_v17  ;;  %v8906_v63 = vld [vmem:[#allocation35_spill] sm:$0xff]  ;;  %v8907_v61 = vld [vmem:[#allocation69_spill] sm:$0xff] }
 0x266   :  { %v3098_v60 = vadd.f32 %v3090_v47, %v2908_v14  ;;  %v1769_v28 = vadd.f32 %v1761_v21, %v1579_v32  ;;  %v1572_v55 = vmul.f32 %v6609_v57, %v8904_v24  ;;  %v1762_v16 = vmul.f32 %v6622_v62, %v8905_v30  ;;  %v8908_v14 = vld [vmem:[#allocation51_spill] sm:$0xff]  ;;  %v8909_v17 = vld [vmem:[#allocation109_spill] sm:$0xff] }
 0x267   :  { %v1200_v45 = vadd.f32 %v1192_v12, %v1010_v20  ;;  %v631_v59 = vadd.f32 %v623_v42, %v441_v33  ;;  %v1003_v15 = vmul.f32 %v6571_v11, %v8906_v63  ;;  %v1952_v47 = vmul.f32 %v6625_v38, %v8907_v61  ;;  %v8910_v24 = vld [vmem:[#allocation113_spill] sm:$0xff]  ;;  %v8911_v63 = vld [vmem:[#allocation110_spill] sm:$0xff]  ;;  %v8913_v61 = vld [vmem:[#allocation119_spill] sm:$0xff] }
 0x268   :  { %v3238_v31 = vadd.f32 %v6691_v9, %v3098_v60  ;;  %v1959_v0 = vadd.f32 %v1951_v6, %v1769_v28  ;;  %v2142_v21 = vmul.f32 %v6632_v37, %v8908_v14  ;;  %v2332_v20 = vmul.f32 %v6647_v23, %v8909_v17  ;;  %v8912_v28 = vld [vmem:[#allocation114_spill] sm:$0xff] }
 0x269   :  { %v1390_v32 = vadd.f32 %v1382_v2, %v1200_v45  ;;  %v821_v12 = vadd.f32 %v813_v46, %v631_v59  ;;  %v1193_v42 = vmul.f32 %v6586_v44, %v8910_v24  ;;  %v2522_v60 = vmul.f32 %v6659_v40, %v8911_v63  ;;  %v8914_v45 = vld [vmem:[#allocation120_spill] sm:$0xff]  ;;  %v8917_v63 = vld [vmem:[#allocation115_spill] sm:$0xff] }
 0x26a   :  { %3247 = vst [vmem:[#allocation12 + $0x140] sm:$0xff] %v3238_v31  ;;  %v2149_v33 = vadd.f32 %v2141_v13, %v1959_v0  ;;  %v1383_v6 = vmul.f32 %v6595_v1, %v8912_v28  ;;  %v244_v30 = vmul.f32 %v6553_v22, %v8913_v61  ;;  %v434_v17 = vmul.f32 %v6556_v49, %v8914_v45  ;;  %v8915_v31 = vld [vmem:[#allocation78_spill] sm:$0xff]  ;;  %v8916_v0 = vld [vmem:[#allocation76_spill] sm:$0xff] }
 0x26b   :  { %v1580_v14 = vadd.f32 %v1572_v55, %v1390_v32  ;;  %v1011_v2 = vadd.f32 %v1003_v15, %v821_v12  ;;  %v624_v46 = vmul.f32 %v6565_v41, %v8802_v29  ;;  %v2712_v13 = vmul.f32 %v6662_v4, %v8915_v31  ;;  %v8918_v12 = vld [vmem:[#allocation25_spill] sm:$0xff] }
 0x26c   :  { %v2339_v59 = vadd.f32 %v2331_v51, %v2149_v33  ;;  %v2902_v24 = vmul.f32 %v6665_v3, %v8916_v0  ;;  %v1573_v28 = vmul.f32 %v6609_v57, %v8917_v63  ;;  %v442_v55 = vadd.f32 %v434_v17, %v244_v30  ;;  %v8919_v51 = vld [vmem:[#allocation62_spill] sm:$0xff]  ;;  %v8920_v30 = vld [vmem:[#allocation65_spill] sm:$0xff] }
 0x26d   :  { %v1770_v10 = vadd.f32 %v1762_v16, %v1580_v14  ;;  %v1201_v61 = vadd.f32 %v1193_v42, %v1011_v2  ;;  %v814_v15 = vmul.f32 %v6568_v54, %v8805_v48  ;;  %v3092_v29 = vmul.f32 %v6674_v58, %v8918_v12  ;;  %v8922_v2 = vld [vmem:[#allocation117_spill] sm:$0xff] }
 0x26e   :  { %v2529_v32 = vadd.f32 %v2521_v50, %v2339_v59  ;;  %v1763_v33 = vmul.f32 %v6622_v62, %v8919_v51  ;;  %v1953_v45 = vmul.f32 %v6625_v38, %v8691_v25  ;;  %v632_v53 = vadd.f32 %v624_v46, %v442_v55  ;;  %v8921_v50 = vld [vmem:[#allocation116_spill] sm:$0xff]  ;;  %v8924_v46 = vld [vmem:[#allocation130_spill] sm:$0xff] }
 0x26f   :  { %v1960_v0 = vadd.f32 %v1952_v47, %v1770_v10  ;;  %v1391_v31 = vadd.f32 %v1383_v6, %v1201_v61  ;;  %v1004_v16 = vmul.f32 %v6571_v11, %v8807_v34  ;;  %v2143_v14 = vmul.f32 %v6632_v37, %v8920_v30 }
 0x270   :  { %v2719_v17 = vadd.f32 %v2711_v18, %v2529_v32  ;;  %v2333_v42 = vmul.f32 %v6647_v23, %v8921_v50  ;;  %v2523_v59 = vmul.f32 %v6659_v40, %v8922_v2  ;;  %v822_v48 = vadd.f32 %v814_v15, %v632_v53  ;;  %v8923_v18 = vld [vmem:[#allocation129_spill] sm:$0xff] }
 0x271   :  { %v2150_v51 = vadd.f32 %v2142_v21, %v1960_v0  ;;  %v1581_v63 = vadd.f32 %v1573_v28, %v1391_v31  ;;  %v1194_v61 = vmul.f32 %v6586_v44, %v8810_v43  ;;  %v1384_v47 = vmul.f32 %v6595_v1, %v8811_v5  ;;  %v8925_v28 = vld [vmem:[#allocation118_spill] sm:$0xff] }
 0x272   :  { %v2909_v10 = vadd.f32 %v2901_v8, %v2719_v17  ;;  %v245_v6 = vmul.f32 %v6553_v22, %v8923_v18  ;;  %v435_v55 = vmul.f32 %v6556_v49, %v8924_v46  ;;  %v1012_v30 = vadd.f32 %v1004_v16, %v822_v48  ;;  %v8926_v48 = vld [vmem:[#allocation19_spill] sm:$0xff] }
 0x273   :  { %v2340_v32 = vadd.f32 %v2332_v20, %v2150_v51  ;;  %v1771_v50 = vadd.f32 %v1763_v33, %v1581_v63  ;;  %v625_v21 = vmul.f32 %v6565_v41, %v8699_v52  ;;  %v2713_v31 = vmul.f32 %v6662_v4, %v8925_v28 }
 0x274   :  { %v3099_v53 = vadd.f32 %v3091_v19, %v2909_v10  ;;  %v443_v8 = vadd.f32 %v435_v55, %v245_v6  ;;  %v815_v0 = vmul.f32 %v6568_v54, %v8812_v56  ;;  %v1202_v18 = vadd.f32 %v1194_v61, %v1012_v30 }
 0x275   :  { %v2530_v15 = vadd.f32 %v2522_v60, %v2340_v32  ;;  %v1961_v17 = vadd.f32 %v1953_v45, %v1771_v50  ;;  %v1574_v46 = vmul.f32 %v6609_v57, %v8813_v36  ;;  %v2903_v20 = vmul.f32 %v6665_v3, %v8926_v48  ;;  %v8927_v45 = vld [vmem:[#allocation22_spill] sm:$0xff] }
 0x276   :  { %v3239_v63 = vadd.f32 %v6691_v9, %v3099_v53  ;;  %v633_v51 = vadd.f32 %v625_v21, %v443_v8  ;;  %v1005_v19 = vmul.f32 %v6571_v11, %v8814_v27  ;;  %v1392_v10 = vadd.f32 %v1384_v47, %v1202_v18  ;;  %v8929_v18 = vld [vmem:[#allocation128_spill] sm:$0xff] }
 0x277   :  { %v2720_v33 = vadd.f32 %v2712_v13, %v2530_v15  ;;  %v2151_v16 = vadd.f32 %v2143_v14, %v1961_v17  ;;  %v1764_v60 = vmul.f32 %v6622_v62, %v8815_v26  ;;  %v3093_v30 = vmul.f32 %v6674_v58, %v8927_v45  ;;  %v8928_v14 = vld [vmem:[#allocation127_spill] sm:$0xff]  ;;  %v8930_v15 = vld [vmem:[#allocation134_spill] sm:$0xff] }
 0x278   :  { %3248 = vst [vmem:[#allocation12 + $0x148] sm:$0xff] %v3239_v63  ;;  %v1954_v50 = vmul.f32 %v6625_v38, %v8816_v35  ;;  %v823_v61 = vadd.f32 %v815_v0, %v633_v51  ;;  %v1195_v6 = vmul.f32 %v6586_v44, %v8591_v7  ;;  %v1582_v21 = vadd.f32 %v1574_v46, %v1392_v10  ;;  %v8931_v7 = vld [vmem:[#allocation142_spill] sm:$0xff]  ;;  %v8932_v46 = vld [vmem:[#allocation135_spill] sm:$0xff]  ;;  %v9019_v35 = vld [vmem:[#allocation108_spill] sm:$0xff] }
 0x279   :  { %v2910_v55 = vadd.f32 %v2902_v24, %v2720_v33  ;;  %v2341_v32 = vadd.f32 %v2333_v42, %v2151_v16  ;;  %v2144_v13 = vmul.f32 %v6632_v37, %v8817_v39  ;;  %v2334_v47 = vmul.f32 %v6647_v23, %v8928_v14  ;;  %v8933_v16 = vld [vmem:[#allocation143_spill] sm:$0xff]  ;;  %v8934_v14 = vld [vmem:[#allocation144_spill] sm:$0xff] }
 0x27a   :  { %v2524_v53 = vmul.f32 %v6659_v40, %v8929_v18  ;;  %v1013_v8 = vadd.f32 %v1005_v19, %v823_v61  ;;  %v1385_v17 = vmul.f32 %v6595_v1, %v8930_v15  ;;  %v1772_v51 = vadd.f32 %v1764_v60, %v1582_v21  ;;  %v8937_v21 = vld [vmem:[#allocation145_spill] sm:$0xff]  ;;  %v9033_v45 = vld [vmem:[#allocation115_spill] sm:$0xff] }
 0x27b   :  { %v3100_v0 = vadd.f32 %v3092_v29, %v2910_v55  ;;  %v2531_v63 = vadd.f32 %v2523_v59, %v2341_v32  ;;  %v246_v24 = vmul.f32 %v6553_v22, %v8931_v7  ;;  %v1575_v33 = vmul.f32 %v6609_v57, %v8932_v46  ;;  %v8935_v29 = vld [vmem:[#allocation83_spill] sm:$0xff]  ;;  %v8936_v55 = vld [vmem:[#allocation136_spill] sm:$0xff]  ;;  %v8938_v7 = vld [vmem:[#allocation18_spill] sm:$0xff] }
 0x27c   :  { %v1203_v42 = vadd.f32 %v1195_v6, %v1013_v8  ;;  %v436_v10 = vmul.f32 %v6556_v49, %v8933_v16  ;;  %v626_v18 = vmul.f32 %v6565_v41, %v8934_v14  ;;  %v1962_v15 = vadd.f32 %v1954_v50, %v1772_v51 }
 0x27d   :  { %v3240_v19 = vadd.f32 %v6691_v9, %v3100_v0  ;;  %v2721_v61 = vadd.f32 %v2713_v31, %v2531_v63  ;;  %v2714_v59 = vmul.f32 %v6662_v4, %v8935_v29  ;;  %v1765_v6 = vmul.f32 %v6622_v62, %v8936_v55  ;;  %v8939_v0 = vld [vmem:[#allocation20_spill] sm:$0xff]  ;;  %v8940_v63 = vld [vmem:[#allocation137_spill] sm:$0xff] }
 0x27e   :  { %v1393_v60 = vadd.f32 %v1385_v17, %v1203_v42  ;;  %v444_v32 = vadd.f32 %v436_v10, %v246_v24  ;;  %v816_v8 = vmul.f32 %v6568_v54, %v8937_v21  ;;  %v2152_v16 = vadd.f32 %v2144_v13, %v1962_v15  ;;  %v8941_v42 = vld [vmem:[#allocation146_spill] sm:$0xff]  ;;  %v8943_v13 = vld [vmem:[#allocation139_spill] sm:$0xff] }
 0x27f   :  { %3249 = vst [vmem:[#allocation12 + $0x150] sm:$0xff] %v3240_v19  ;;  %v2911_v46 = vadd.f32 %v2903_v20, %v2721_v61  ;;  %v2904_v14 = vmul.f32 %v6665_v3, %v8938_v7  ;;  %v3094_v31 = vmul.f32 %v6674_v58, %v8939_v0  ;;  %v1955_v17 = vmul.f32 %v6625_v38, %v8940_v63  ;;  %v8942_v21 = vld [vmem:[#allocation138_spill] sm:$0xff] }
 0x280   :  { %v1583_v50 = vadd.f32 %v1575_v33, %v1393_v60  ;;  %v634_v51 = vadd.f32 %v626_v18, %v444_v32  ;;  %v1006_v24 = vmul.f32 %v6571_v11, %v8941_v42  ;;  %v2342_v55 = vadd.f32 %v2334_v47, %v2152_v16  ;;  %v8944_v61 = vld [vmem:[#allocation74_spill] sm:$0xff]  ;;  %v8946_v42 = vld [vmem:[#allocation147_spill] sm:$0xff] }
 0x281   :  { %v3101_v10 = vadd.f32 %v3093_v30, %v2911_v46  ;;  %v2145_v20 = vmul.f32 %v6632_v37, %v8942_v21  ;;  %v2335_v15 = vmul.f32 %v6647_v23, %v8943_v13  ;;  %v2525_v0 = vmul.f32 %v6659_v40, %v8944_v61  ;;  %v8945_v60 = vld [vmem:[#allocation42_spill] sm:$0xff]  ;;  %v9003_v21 = vld [vmem:[#allocation95_spill] sm:$0xff] }
 0x282   :  { %v1773_v19 = vadd.f32 %v1765_v6, %v1583_v50  ;;  %v824_v33 = vadd.f32 %v816_v8, %v634_v51  ;;  %v1196_v63 = vmul.f32 %v6586_v44, %v8945_v60  ;;  %v2532_v32 = vadd.f32 %v2524_v53, %v2342_v55  ;;  %v8947_v47 = vld [vmem:[#allocation26_spill] sm:$0xff]  ;;  %v8948_v50 = vld [vmem:[#allocation27_spill] sm:$0xff]  ;;  %v8949_v51 = vld [vmem:[#allocation21_spill] sm:$0xff] }
 0x283   :  { %v3241_v18 = vadd.f32 %v6691_v9, %v3101_v10  ;;  %v1386_v30 = vmul.f32 %v6595_v1, %v8946_v42  ;;  %v247_v46 = vmul.f32 %v6553_v22, %v8947_v47  ;;  %v437_v8 = vmul.f32 %v6556_v49, %v8948_v50  ;;  %v8950_v55 = vld [vmem:[#allocation61_spill] sm:$0xff]  ;;  %v8951_v22 = vld [vmem:[#allocation140_spill] sm:$0xff] }
 0x284   :  { %v1963_v16 = vadd.f32 %v1955_v17, %v1773_v19  ;;  %v1014_v6 = vadd.f32 %v1006_v24, %v824_v33  ;;  %v627_v60 = vmul.f32 %v6565_v41, %v8949_v51  ;;  %v2722_v53 = vadd.f32 %v2714_v59, %v2532_v32  ;;  %v8952_v42 = vld [vmem:[#allocation53_spill] sm:$0xff]  ;;  %v8953_v19 = vld [vmem:[#allocation31_spill] sm:$0xff] }
 0x285   :  { %3250 = vst [vmem:[#allocation12 + $0x158] sm:$0xff] %v3241_v18  ;;  %v2715_v10 = vmul.f32 %v6662_v4, %v8950_v55  ;;  %v2905_v47 = vmul.f32 %v6665_v3, %v8951_v22  ;;  %v1576_v17 = vmul.f32 %v6609_v57, %v8952_v42  ;;  %v445_v41 = vadd.f32 %v437_v8, %v247_v46  ;;  %v8954_v18 = vld [vmem:[#allocation141_spill] sm:$0xff]  ;;  %v8955_v55 = vld [vmem:[#allocation148_spill] sm:$0xff] }
 0x286   :  { %v2153_v49 = vadd.f32 %v2145_v20, %v1963_v16  ;;  %v1204_v24 = vadd.f32 %v1196_v63, %v1014_v6  ;;  %v817_v33 = vmul.f32 %v6568_v54, %v8953_v19  ;;  %v2912_v59 = vadd.f32 %v2904_v14, %v2722_v53  ;;  %v8956_v51 = vld [vmem:[#allocation149_spill] sm:$0xff]  ;;  %v8957_v63 = vld [vmem:[#allocation34_spill] sm:$0xff]  ;;  %v8959_v6 = vld [vmem:[#allocation55_spill] sm:$0xff] }
 0x287   :  { %v3095_v32 = vmul.f32 %v6674_v58, %v8954_v18  ;;  %v1766_v22 = vmul.f32 %v6622_v62, %v8955_v55  ;;  %v1956_v42 = vmul.f32 %v6625_v38, %v8956_v51  ;;  %v635_v20 = vadd.f32 %v627_v60, %v445_v41  ;;  %v8958_v14 = vld [vmem:[#allocation70_spill] sm:$0xff]  ;;  %v8960_v53 = vld [vmem:[#allocation36_spill] sm:$0xff] }
 0x288   :  { %v2343_v50 = vadd.f32 %v2335_v15, %v2153_v49  ;;  %v1394_v61 = vadd.f32 %v1386_v30, %v1204_v24  ;;  %v1007_v46 = vmul.f32 %v6571_v11, %v8957_v63  ;;  %v3102_v54 = vadd.f32 %v3094_v31, %v2912_v59  ;;  %v8961_v49 = vld [vmem:[#allocation39_spill] sm:$0xff]  ;;  %v8962_v24 = vld [vmem:[#allocation32_spill] sm:$0xff]  ;;  %v8999_v18 = vld [vmem:[#allocation102_spill] sm:$0xff] }
 0x289   :  { %v2146_v16 = vmul.f32 %v6632_v37, %v8958_v14  ;;  %v2336_v8 = vmul.f32 %v6647_v23, %v8959_v6  ;;  %v1197_v51 = vmul.f32 %v6586_v44, %v8960_v53  ;;  %v825_v60 = vadd.f32 %v817_v33, %v635_v20 }
 0x28a   :  { %v2533_v15 = vadd.f32 %v2525_v0, %v2343_v50  ;;  %v1584_v30 = vadd.f32 %v1576_v17, %v1394_v61  ;;  %v1387_v11 = vmul.f32 %v6595_v1, %v8961_v49  ;;  %v3242_v31 = vadd.f32 %v6691_v9, %v3102_v54  ;;  %v8963_v50 = vld [vmem:[#allocation28_spill] sm:$0xff]  ;;  %v8964_v1 = vld [vmem:[#allocation30_spill] sm:$0xff] }
 0x28b   :  { %v1577_v41 = vmul.f32 %v6609_v57, %v8962_v24  ;;  %v6900_v59 = vstv %s6854_s6  ;;  %v6903_v6 = vstv %s6856_s9  ;;  %v1015_v61 = vadd.f32 %v1007_v46, %v825_v60  ;;  %v8966_v60 = vld [vmem:[#allocation150_spill] sm:$0xff]  ;;  %v8967_v24 = vld [vmem:[#allocation43_spill] sm:$0xff]  ;;  %s7300_s6 = sld [smem:[#allocation9 + $0x38b]]  ;;  %s7302_s9 = sld [smem:[#allocation9 + $0x38c]] }
 0x28c   :  { %v2723_v44 = vadd.f32 %v2715_v10, %v2533_v15  ;;  %v1774_v0 = vadd.f32 %v1766_v22, %v1584_v30  ;;  %v258_v17 = vmul.f32 %v6900_v59, %v8963_v50  ;;  %3251 = vst [vmem:[#allocation12 + $0x160] sm:$0xff] %v3242_v31  ;;  %v448_v33 = vmul.f32 %v6903_v6, %v8964_v1  ;;  %v8965_v15 = vld [vmem:[#allocation33_spill] sm:$0xff]  ;;  %v8968_v49 = vld [vmem:[#allocation38_spill] sm:$0xff] }
 0x28d   :  { %v6912_v20 = vstv %s6862_s10  ;;  %v6915_v57 = vstv %s6870_s11  ;;  %v6918_v54 = vstv %s6872_s12  ;;  %v1205_v46 = vadd.f32 %v1197_v51, %v1015_v61  ;;  %s7315_s10 = sld [smem:[#allocation9 + $0x38d]]  ;;  %s7327_s11 = sld [smem:[#allocation9 + $0x38e]] }
 0x28e   :  { %v2913_v10 = vadd.f32 %v2905_v47, %v2723_v44  ;;  %v1964_v22 = vadd.f32 %v1956_v42, %v1774_v0  ;;  %v638_v30 = vmul.f32 %v6912_v20, %v8965_v15  ;;  %v2526_v31 = vmul.f32 %v6659_v40, %v8966_v60  ;;  %v8969_v42 = vld [vmem:[#allocation151_spill] sm:$0xff]  ;;  %v8971_v15 = vld [vmem:[#allocation40_spill] sm:$0xff]  ;;  %s7342_s12 = sld [smem:[#allocation9 + $0x38f]] }
 0x28f   :  { %v1767_v1 = vmul.f32 %v6622_v62, %v8967_v24  ;;  %v456_v50 = vadd.f32 %v448_v33, %v258_v17  ;;  %v828_v53 = vmul.f32 %v6915_v57, %v8968_v49  ;;  %v1395_v55 = vadd.f32 %v1387_v11, %v1205_v46  ;;  %v8970_v44 = vld [vmem:[#allocation47_spill] sm:$0xff]  ;;  %v8973_v33 = vld [vmem:[#allocation24_spill] sm:$0xff] }
 0x290   :  { %v3103_v14 = vadd.f32 %v3095_v32, %v2913_v10  ;;  %v2154_v63 = vadd.f32 %v2146_v16, %v1964_v22  ;;  %v6933_v47 = vstv %s6884_s13  ;;  %v2716_v51 = vmul.f32 %v6662_v4, %v8969_v42  ;;  %v8974_v46 = vld [vmem:[#allocation44_spill] sm:$0xff]  ;;  %s7355_s13 = sld [smem:[#allocation10 + $0x7]] }
 0x291   :  { %v1957_v0 = vmul.f32 %v6625_v38, %v8970_v44  ;;  %v646_v61 = vadd.f32 %v638_v30, %v456_v50  ;;  %v1018_v62 = vmul.f32 %v6918_v54, %v8971_v15  ;;  %v1585_v11 = vadd.f32 %v1577_v41, %v1395_v55  ;;  %v8972_v38 = vld [vmem:[#allocation152_spill] sm:$0xff]  ;;  %v8976_v44 = vld [vmem:[#allocation50_spill] sm:$0xff] }
 0x292   :  { %v3243_v32 = vadd.f32 %v6691_v9, %v3103_v14  ;;  %v2344_v16 = vadd.f32 %v2336_v8, %v2154_v63  ;;  %v6947_v17 = vstv %s6894_s14  ;;  %v2906_v50 = vmul.f32 %v6665_v3, %v8972_v38  ;;  %v8975_v14 = vld [vmem:[#allocation49_spill] sm:$0xff]  ;;  %v8989_v24 = vld [vmem:[#allocation68_spill] sm:$0xff]  ;;  %s3610_s14 = smov [#allocation12]  }
 0x293   :  { %v3096_v10 = vmul.f32 %v6674_v58, %v8973_v33  ;;  %v836_v22 = vadd.f32 %v828_v53, %v646_v61  ;;  %v1208_v30 = vmul.f32 %v6933_v47, %v8974_v46  ;;  %v1775_v63 = vadd.f32 %v1767_v1, %v1585_v11  ;;  %v8980_v11 = vld [vmem:[#allocation60_spill] sm:$0xff] }
 0x294   :  { %3252 = vst [vmem:[#allocation12 + $0x168] sm:$0xff] %v3243_v32  ;;  %v2534_v55 = vadd.f32 %v2526_v31, %v2344_v16  ;;  %v2147_v8 = vmul.f32 %v6632_v37, %v8975_v14  ;;  %v6964_v41 = vstv %s6907_s15  ;;  %v1398_v33 = vmul.f32 %v6947_v17, %v8976_v44  ;;  %v8977_v32 = vld [vmem:[#allocation52_spill] sm:$0xff]  ;;  %v8978_v31 = vld [vmem:[#allocation54_spill] sm:$0xff]  ;;  %s3298_s15 = sshll.u32 %s3610_s14, 4  ;;  %s3299_s15 = int_to_ptr.vmem [resolvable:$true] %s3298_s15 }
 0x295   :  { %v1026_v38 = vadd.f32 %v1018_v62, %v836_v22  ;;  %v6969_v53 = vstv %s6920_s16  ;;  %v6972_v61 = vstv %s6922_s17  ;;  %v1965_v15 = vadd.f32 %v1957_v0, %v1775_v63  ;;  %v8979_v62 = vld [vmem:[#allocation57_spill] sm:$0xff]  ;;  %v8981_v14 = vld [vmem:[#allocation56_spill] sm:$0xff]  ;;  %s3571_s16 = scalar_lea.vmem %s3299_s15, 8192  ;;  %p3576_p1 = scmp.lt.s32.totalorder %s3299_s15, %s3299_s15 }
 0x296   :  { %v2724_v46 = vadd.f32 %v2716_v51, %v2534_v55  ;;  %v2337_v1 = vmul.f32 %v6647_v23, %v8977_v32  ;;  %v2527_v37 = vmul.f32 %v6659_v40, %v8978_v31  ;;  %v2717_v16 = vmul.f32 %v6662_v4, %v8979_v62  ;;  %v8982_v55 = vld [vmem:[#allocation59_spill] sm:$0xff]  ;;  %v8983_v63 = vld [vmem:[#allocation64_spill] sm:$0xff]  ;;  %p3572_p0 = scmp.ne.s32.totalorder %s3299_s15, %s3571_s16  ;;  %p3577_p2 = scmp.lt.s32.totalorder %s3571_s16, %s3571_s16 }
 0x297   :  { %v2907_v22 = vmul.f32 %v6665_v3, %v8980_v11  ;;  %v1216_v44 = vadd.f32 %v1208_v30, %v1026_v38  ;;  %v1588_v51 = vmul.f32 %v6964_v41, %v8981_v14  ;;  %v2155_v23 = vadd.f32 %v2147_v8, %v1965_v15  ;;  %v8984_v3 = vld [vmem:[#allocation86_spill] sm:$0xff] }
 0x298   :  { %v2914_v0 = vadd.f32 %v2906_v50, %v2724_v46  ;;  %v1778_v40 = vmul.f32 %v6969_v53, %v8982_v55  ;;  %v1968_v31 = vmul.f32 %v6972_v61, %v8983_v63  ;;  %v6991_v4 = vstv %s6941_s18  ;;  %v8985_v50 = vld [vmem:[#allocation88_spill] sm:$0xff]  ;;  %v8986_v46 = vld [vmem:[#allocation89_spill] sm:$0xff]  ;;  %v8988_v14 = vld [vmem:[#allocation46_spill] sm:$0xff]  ;;  %p3578_p3 = por %p3577_p2, %p3576_p1 }
 0x299   :  { %v1406_v32 = vadd.f32 %v1398_v33, %v1216_v44  ;;  %v6994_v62 = vstv %s6943_s0  ;;  %v259_v38 = vmul.f32 %v6900_v59, %v8984_v3  ;;  %v2345_v11 = vadd.f32 %v2337_v1, %v2155_v23 }
 0x29a   :  { %v3104_v30 = vadd.f32 %v3096_v10, %v2914_v0  ;;  %v449_v15 = vmul.f32 %v6903_v6, %v8985_v50  ;;  %v639_v8 = vmul.f32 %v6912_v20, %v8986_v46  ;;  %v7005_v44 = vstv %s6949_s1  ;;  %v8987_v0 = vld [vmem:[#allocation90_spill] sm:$0xff]  ;;  %p3579_p4 = pnand %p3578_p3, %p3572_p0 }
 0x29b   :  { %v1596_v63 = vadd.f32 %v1588_v51, %v1406_v32  ;;  %v7008_v33 = vstv %s6957_s3  ;;  %v7011_v55 = vstv %s6959_s19  ;;  %v2535_v10 = vadd.f32 %v2527_v37, %v2345_v11  ;;  %v8990_v51 = vld [vmem:[#allocation73_spill] sm:$0xff]  ;;  %v8991_v11 = vld [vmem:[#allocation91_spill] sm:$0xff] }
 0x29c   :  { %v3244_v3 = vadd.f32 %v6691_v9, %v3104_v30  ;;  %v457_v1 = vadd.f32 %v449_v15, %v259_v38  ;;  %v829_v23 = vmul.f32 %v6915_v57, %v8987_v0  ;;  %v3097_v50 = vmul.f32 %v6674_v58, %v8988_v14  ;;  %v8992_v15 = vld [vmem:[#allocation79_spill] sm:$0xff]  ;;  %v8994_v14 = vld [vmem:[#allocation85_spill] sm:$0xff] }
 0x29d   :  { %v1786_v42 = vadd.f32 %v1778_v40, %v1596_v63  ;;  %v2158_v32 = vmul.f32 %v6991_v4, %v8989_v24  ;;  %v2348_v46 = vmul.f32 %v6994_v62, %v8990_v51  ;;  %v2725_v49 = vadd.f32 %v2717_v16, %v2535_v10  ;;  %v8993_v40 = vld [vmem:[#allocation84_spill] sm:$0xff]  ;;  %v8996_v0 = vld [vmem:[#allocation101_spill] sm:$0xff] }
 0x29e   :  { %3253 = vst [vmem:[#allocation12 + $0x170] sm:$0xff] %v3244_v3  ;;  %v7023_v60 = vstv %s6978_s20  ;;  %v647_v37 = vadd.f32 %v639_v8, %v457_v1  ;;  %v1019_v38 = vmul.f32 %v6918_v54, %v8991_v11  ;;  %v2538_v58 = vmul.f32 %v7005_v44, %v8992_v15  ;;  %v8995_v16 = vld [vmem:[#allocation92_spill] sm:$0xff]  ;;  %v8997_v11 = vld [vmem:[#allocation87_spill] sm:$0xff] }
 0x29f   :  { %v1976_v30 = vadd.f32 %v1968_v31, %v1786_v42  ;;  %v2728_v63 = vmul.f32 %v7008_v33, %v8993_v40  ;;  %v2918_v24 = vmul.f32 %v7011_v55, %v8994_v14  ;;  %v2915_v51 = vadd.f32 %v2907_v22, %v2725_v49  ;;  %v8998_v31 = vld [vmem:[#allocation29_spill] sm:$0xff] }
 0x2a0   :  { %v837_v3 = vadd.f32 %v829_v23, %v647_v37  ;;  %v1209_v10 = vmul.f32 %v6933_v47, %v8995_v16  ;;  %v260_v8 = vmul.f32 %v6900_v59, %v8996_v0  ;;  %v3108_v42 = vmul.f32 %v7023_v60, %v8997_v11  ;;  %v9000_v22 = vld [vmem:[#allocation93_spill] sm:$0xff]  ;;  %v9001_v16 = vld [vmem:[#allocation94_spill] sm:$0xff]  ;;  %v9002_v0 = vld [vmem:[#allocation103_spill] sm:$0xff] }
 0x2a1   :  { %v2166_v1 = vadd.f32 %v2158_v32, %v1976_v30  ;;  %v450_v15 = vmul.f32 %v6903_v6, %v8998_v31  ;;  %v640_v40 = vmul.f32 %v6912_v20, %v8999_v18  ;;  %v3105_v19 = vadd.f32 %v3097_v50, %v2915_v51  ;;  %v9004_v51 = vld [vmem:[#allocation96_spill] sm:$0xff]  ;;  %v9005_v18 = vld [vmem:[#allocation97_spill] sm:$0xff] }
 0x2a2   :  { %v7044_v14 = vstv %s6998_s21  ;;  %v1027_v49 = vadd.f32 %v1019_v38, %v837_v3  ;;  %v1399_v23 = vmul.f32 %v6947_v17, %v9000_v22  ;;  %v1589_v32 = vmul.f32 %v6964_v41, %v9001_v16  ;;  %v9006_v22 = vld [vmem:[#allocation104_spill] sm:$0xff]  ;;  %v9007_v16 = vld [vmem:[#allocation98_spill] sm:$0xff] }
 0x2a3   :  { %v2356_v37 = vadd.f32 %v2348_v46, %v2166_v1  ;;  %v458_v30 = vadd.f32 %v450_v15, %v260_v8  ;;  %v830_v11 = vmul.f32 %v6915_v57, %v9002_v0  ;;  %v3245_v31 = vadd.f32 %v6691_v9, %v3105_v19  ;;  %v9008_v19 = vld [vmem:[#allocation66_spill] sm:$0xff]  ;;  %v9014_v0 = vld [vmem:[#allocation111_spill] sm:$0xff] }
 0x2a4   :  { %v1217_v13 = vadd.f32 %v1209_v10, %v1027_v49  ;;  %v1779_v50 = vmul.f32 %v6969_v53, %v9003_v21  ;;  %v1969_v38 = vmul.f32 %v6972_v61, %v9004_v51  ;;  %v2159_v46 = vmul.f32 %v6991_v4, %v9005_v18  ;;  %v9009_v49 = vld [vmem:[#allocation71_spill] sm:$0xff] }
 0x2a5   :  { %v2546_v3 = vadd.f32 %v2538_v58, %v2356_v37  ;;  %v648_v1 = vadd.f32 %v640_v40, %v458_v30  ;;  %v1020_v15 = vmul.f32 %v6918_v54, %v9006_v22  ;;  %3254 = vst [vmem:[#allocation12 + $0x178] sm:$0xff] %v3245_v31  ;;  %v2349_v9 = vmul.f32 %v6994_v62, %v9007_v16  ;;  %v9010_v37 = vld [vmem:[#allocation105_spill] sm:$0xff]  ;;  %v9011_v40 = vld [vmem:[#allocation23_spill] sm:$0xff] }
 0x2a6   :  { %v1407_v8 = vadd.f32 %v1399_v23, %v1217_v13  ;;  %v2539_v10 = vmul.f32 %v7005_v44, %v9008_v19  ;;  %v2729_v21 = vmul.f32 %v7008_v33, %v9009_v49  ;;  %v1210_v18 = vmul.f32 %v6933_v47, %v9010_v37  ;;  %v9012_v31 = vld [vmem:[#allocation99_spill] sm:$0xff]  ;;  %v9013_v23 = vld [vmem:[#allocation81_spill] sm:$0xff]  ;;  %v9015_v49 = vld [vmem:[#allocation100_spill] sm:$0xff] }
 0x2a7   :  { %v2736_v51 = vadd.f32 %v2728_v63, %v2546_v3  ;;  %v838_v58 = vadd.f32 %v830_v11, %v648_v1  ;;  %v261_v30 = vmul.f32 %v6900_v59, %v9011_v40  ;;  %v2919_v13 = vmul.f32 %v7011_v55, %v9012_v31  ;;  %v9016_v3 = vld [vmem:[#allocation106_spill] sm:$0xff]  ;;  %v9017_v40 = vld [vmem:[#allocation107_spill] sm:$0xff]  ;;  %v9018_v31 = vld [vmem:[#allocation112_spill] sm:$0xff] }
 0x2a8   :  { %v1597_v22 = vadd.f32 %v1589_v32, %v1407_v8  ;;  %v451_v16 = vmul.f32 %v6903_v6, %v9013_v23  ;;  %v641_v19 = vmul.f32 %v6912_v20, %v9014_v0  ;;  %v3109_v11 = vmul.f32 %v7023_v60, %v9015_v49 }
 0x2a9   :  { %v2926_v7 = vadd.f32 %v2918_v24, %v2736_v51  ;;  %v1028_v63 = vadd.f32 %v1020_v15, %v838_v58  ;;  %v1400_v1 = vmul.f32 %v6947_v17, %v9016_v3  ;;  %v1590_v32 = vmul.f32 %v6964_v41, %v9017_v40  ;;  %v9020_v51 = vld [vmem:[#allocation69_spill] sm:$0xff]  ;;  %v9021_v58 = vld [vmem:[#allocation51_spill] sm:$0xff] }
 0x2aa   :  { %v1787_v37 = vadd.f32 %v1779_v50, %v1597_v22  ;;  %v459_v8 = vadd.f32 %v451_v16, %v261_v30  ;;  %v831_v29 = vmul.f32 %v6915_v57, %v9018_v31  ;;  %v1780_v24 = vmul.f32 %v6969_v53, %v9019_v35  ;;  %v9022_v50 = vld [vmem:[#allocation35_spill] sm:$0xff]  ;;  %v9023_v31 = vld [vmem:[#allocation109_spill] sm:$0xff]  ;;  %v9025_v35 = vld [vmem:[#allocation78_spill] sm:$0xff] }
 0x2ab   :  { %v3116_v23 = vadd.f32 %v3108_v42, %v2926_v7  ;;  %v1218_v39 = vadd.f32 %v1210_v18, %v1028_v63  ;;  %v1970_v49 = vmul.f32 %v6972_v61, %v9020_v51  ;;  %v2160_v3 = vmul.f32 %v6991_v4, %v9021_v58  ;;  %v9024_v18 = vld [vmem:[#allocation110_spill] sm:$0xff]  ;;  %v9026_v51 = vld [vmem:[#allocation113_spill] sm:$0xff]  ;;  %v9027_v58 = vld [vmem:[#allocation119_spill] sm:$0xff] }
 0x2ac   :  { %v1977_v15 = vadd.f32 %v1969_v38, %v1787_v37  ;;  %v649_v22 = vadd.f32 %v641_v19, %v459_v8  ;;  %v1021_v40 = vmul.f32 %v6918_v54, %v9022_v50  ;;  %v2350_v7 = vmul.f32 %v6994_v62, %v9023_v31  ;;  %v9029_v31 = vld [vmem:[#allocation121_spill] sm:$0xff] }
 0x2ad   :  { %v3257_v16 = vadd.f32 %v7044_v14, %v3116_v23  ;;  %v1408_v30 = vadd.f32 %v1400_v1, %v1218_v39  ;;  %v2540_v42 = vmul.f32 %v7005_v44, %v9024_v18  ;;  %v2730_v38 = vmul.f32 %v7008_v33, %v9025_v35  ;;  %v9028_v39 = vld [vmem:[#allocation120_spill] sm:$0xff] }
 0x2ae   :  { %v2167_v63 = vadd.f32 %v2159_v46, %v1977_v15  ;;  %v839_v37 = vadd.f32 %v831_v29, %v649_v22  ;;  %v1211_v19 = vmul.f32 %v6933_v47, %v9026_v51  ;;  %v262_v23 = vmul.f32 %v6900_v59, %v9027_v58  ;;  %v9030_v46 = vld [vmem:[#allocation76_spill] sm:$0xff]  ;;  %v9031_v29 = vld [vmem:[#allocation114_spill] sm:$0xff] }
 0x2af   :  { %3266 = vst [vmem:[#allocation12 + $0x180] sm:$0xff] %v3257_v16  ;;  %v1598_v8 = vadd.f32 %v1590_v32, %v1408_v30  ;;  %v452_v1 = vmul.f32 %v6903_v6, %v9028_v39  ;;  %v642_v50 = vmul.f32 %v6912_v20, %v9029_v31  ;;  %v2920_v15 = vmul.f32 %v7011_v55, %v9030_v46  ;;  %v9032_v30 = vld [vmem:[#allocation122_spill] sm:$0xff] }
 0x2b0   :  { %v2357_v18 = vadd.f32 %v2349_v9, %v2167_v63  ;;  %v1029_v35 = vadd.f32 %v1021_v40, %v839_v37  ;;  %v1401_v22 = vmul.f32 %v6947_v17, %v9031_v29  ;;  %v3110_v32 = vmul.f32 %v7023_v60, %v8918_v12  ;;  %v9034_v63 = vld [vmem:[#allocation62_spill] sm:$0xff]  ;;  %v9035_v12 = vld [vmem:[#allocation65_spill] sm:$0xff] }
 0x2b1   :  { %v1788_v51 = vadd.f32 %v1780_v24, %v1598_v8  ;;  %v460_v16 = vadd.f32 %v452_v1, %v262_v23  ;;  %v832_v58 = vmul.f32 %v6915_v57, %v9032_v30  ;;  %v1591_v9 = vmul.f32 %v6964_v41, %v9033_v45 }
 0x2b2   :  { %v2547_v39 = vadd.f32 %v2539_v10, %v2357_v18  ;;  %v1219_v0 = vadd.f32 %v1211_v19, %v1029_v35  ;;  %v1781_v46 = vmul.f32 %v6969_v53, %v9034_v63  ;;  %v1971_v37 = vmul.f32 %v6972_v61, %v8691_v25  ;;  %v9036_v35 = vld [vmem:[#allocation116_spill] sm:$0xff]  ;;  %v9038_v25 = vld [vmem:[#allocation130_spill] sm:$0xff] }
 0x2b3   :  { %v1978_v40 = vadd.f32 %v1970_v49, %v1788_v51  ;;  %v650_v24 = vadd.f32 %v642_v50, %v460_v16  ;;  %v1022_v8 = vmul.f32 %v6918_v54, %v8807_v34  ;;  %v2161_v10 = vmul.f32 %v6991_v4, %v9035_v12 }
 0x2b4   :  { %v2737_v23 = vadd.f32 %v2729_v21, %v2547_v39  ;;  %v1409_v1 = vadd.f32 %v1401_v22, %v1219_v0  ;;  %v2351_v18 = vmul.f32 %v6994_v62, %v9036_v35  ;;  %v2541_v63 = vmul.f32 %v7005_v44, %v8922_v2  ;;  %v9037_v0 = vld [vmem:[#allocation129_spill] sm:$0xff] }
 0x2b5   :  { %v2168_v19 = vadd.f32 %v2160_v3, %v1978_v40  ;;  %v840_v49 = vadd.f32 %v832_v58, %v650_v24  ;;  %v1212_v51 = vmul.f32 %v6933_v47, %v8810_v43  ;;  %v1402_v21 = vmul.f32 %v6947_v17, %v8811_v5 }
 0x2b6   :  { %v2927_v50 = vadd.f32 %v2919_v13, %v2737_v23  ;;  %v1599_v16 = vadd.f32 %v1591_v9, %v1409_v1  ;;  %v263_v39 = vmul.f32 %v6900_v59, %v9037_v0  ;;  %v453_v3 = vmul.f32 %v6903_v6, %v9038_v25 }
 0x2b7   :  { %v2358_v22 = vadd.f32 %v2350_v7, %v2168_v19  ;;  %v1030_v12 = vadd.f32 %v1022_v8, %v840_v49  ;;  %v643_v40 = vmul.f32 %v6912_v20, %v8699_v52  ;;  %v2731_v13 = vmul.f32 %v7008_v33, %v8925_v28 }
 0x2b8   :  { %v3117_v58 = vadd.f32 %v3109_v11, %v2927_v50  ;;  %v1789_v24 = vadd.f32 %v1781_v46, %v1599_v16  ;;  %v1592_v9 = vmul.f32 %v6964_v41, %v8813_v36  ;;  %v461_v2 = vadd.f32 %v453_v3, %v263_v39  ;;  %v9041_v3 = vld [vmem:[#allocation126_spill] sm:$0xff] }
 0x2b9   :  { %v2548_v23 = vadd.f32 %v2540_v42, %v2358_v22  ;;  %v1220_v1 = vadd.f32 %v1212_v51, %v1030_v12  ;;  %v833_v7 = vmul.f32 %v6915_v57, %v8812_v56  ;;  %v2921_v49 = vmul.f32 %v7011_v55, %v8926_v48  ;;  %v9039_v51 = vld [vmem:[#allocation22_spill] sm:$0xff]  ;;  %v9040_v22 = vld [vmem:[#allocation41_spill] sm:$0xff] }
 0x2ba   :  { %v3258_v8 = vadd.f32 %v7044_v14, %v3117_v58  ;;  %v1979_v19 = vadd.f32 %v1971_v37, %v1789_v24  ;;  %v1782_v11 = vmul.f32 %v6969_v53, %v8815_v26  ;;  %v651_v16 = vadd.f32 %v643_v40, %v461_v2  ;;  %v9043_v40 = vld [vmem:[#allocation127_spill] sm:$0xff] }
 0x2bb   :  { %v2738_v46 = vadd.f32 %v2730_v38, %v2548_v23  ;;  %v1410_v50 = vadd.f32 %v1402_v21, %v1220_v1  ;;  %v1023_v42 = vmul.f32 %v6918_v54, %v8814_v27  ;;  %v3111_v39 = vmul.f32 %v7023_v60, %v9039_v51  ;;  %v9042_v38 = vld [vmem:[#allocation45_spill] sm:$0xff] }
 0x2bc   :  { %3267 = vst [vmem:[#allocation12 + $0x188] sm:$0xff] %v3258_v8  ;;  %v2169_v12 = vadd.f32 %v2161_v10, %v1979_v19  ;;  %v1972_v37 = vmul.f32 %v6972_v61, %v9040_v22  ;;  %v2162_v58 = vmul.f32 %v6991_v4, %v9041_v3  ;;  %v841_v28 = vadd.f32 %v833_v7, %v651_v16  ;;  %v9044_v10 = vld [vmem:[#allocation128_spill] sm:$0xff]  ;;  %v9045_v8 = vld [vmem:[#allocation134_spill] sm:$0xff]  ;;  %v9047_v7 = vld [vmem:[#allocation83_spill] sm:$0xff] }
 0x2bd   :  { %v2928_v24 = vadd.f32 %v2920_v15, %v2738_v46  ;;  %v1600_v48 = vadd.f32 %v1592_v9, %v1410_v50  ;;  %v1213_v2 = vmul.f32 %v6933_v47, %v9042_v38  ;;  %v2352_v23 = vmul.f32 %v6994_v62, %v9043_v40  ;;  %v9046_v3 = vld [vmem:[#allocation142_spill] sm:$0xff]  ;;  %v9049_v16 = vld [vmem:[#allocation144_spill] sm:$0xff] }
 0x2be   :  { %v2359_v21 = vadd.f32 %v2351_v18, %v2169_v12  ;;  %v2542_v1 = vmul.f32 %v7005_v44, %v9044_v10  ;;  %v1403_v19 = vmul.f32 %v6947_v17, %v9045_v8  ;;  %v1031_v27 = vadd.f32 %v1023_v42, %v841_v28  ;;  %v9048_v18 = vld [vmem:[#allocation143_spill] sm:$0xff] }
 0x2bf   :  { %v3118_v51 = vadd.f32 %v3110_v32, %v2928_v24  ;;  %v1790_v22 = vadd.f32 %v1782_v11, %v1600_v48  ;;  %v264_v15 = vmul.f32 %v6900_v59, %v9046_v3  ;;  %v2732_v46 = vmul.f32 %v7008_v33, %v9047_v7  ;;  %v9050_v32 = vld [vmem:[#allocation135_spill] sm:$0xff]  ;;  %v9051_v11 = vld [vmem:[#allocation18_spill] sm:$0xff]  ;;  %v9052_v24 = vld [vmem:[#allocation145_spill] sm:$0xff] }
 0x2c0   :  { %v2549_v9 = vadd.f32 %v2541_v63, %v2359_v21  ;;  %v454_v50 = vmul.f32 %v6903_v6, %v9048_v18  ;;  %v644_v12 = vmul.f32 %v6912_v20, %v9049_v16  ;;  %v1221_v8 = vadd.f32 %v1213_v2, %v1031_v27  ;;  %v9053_v18 = vld [vmem:[#allocation20_spill] sm:$0xff] }
 0x2c1   :  { %v3259_v10 = vadd.f32 %v7044_v14, %v3118_v51  ;;  %v1980_v40 = vadd.f32 %v1972_v37, %v1790_v22  ;;  %v1593_v28 = vmul.f32 %v6964_v41, %v9050_v32  ;;  %v2922_v63 = vmul.f32 %v7011_v55, %v9051_v11  ;;  %v9054_v51 = vld [vmem:[#allocation136_spill] sm:$0xff]  ;;  %v9055_v37 = vld [vmem:[#allocation137_spill] sm:$0xff] }
 0x2c2   :  { %v2739_v48 = vadd.f32 %v2731_v13, %v2549_v9  ;;  %v462_v42 = vadd.f32 %v454_v50, %v264_v15  ;;  %v834_v21 = vmul.f32 %v6915_v57, %v9052_v24  ;;  %v3112_v16 = vmul.f32 %v7023_v60, %v9053_v18  ;;  %v9056_v9 = vld [vmem:[#allocation146_spill] sm:$0xff] }
 0x2c3   :  { %3268 = vst [vmem:[#allocation12 + $0x190] sm:$0xff] %v3259_v10  ;;  %v2170_v7 = vadd.f32 %v2162_v58, %v1980_v40  ;;  %v1411_v3 = vadd.f32 %v1403_v19, %v1221_v8  ;;  %v1783_v27 = vmul.f32 %v6969_v53, %v9054_v51  ;;  %v1973_v13 = vmul.f32 %v6972_v61, %v9055_v37  ;;  %v9057_v24 = vld [vmem:[#allocation138_spill] sm:$0xff]  ;;  %v9058_v40 = vld [vmem:[#allocation139_spill] sm:$0xff] }
 0x2c4   :  { %v2929_v22 = vadd.f32 %v2921_v49, %v2739_v48  ;;  %v652_v2 = vadd.f32 %v644_v12, %v462_v42  ;;  %v1024_v15 = vmul.f32 %v6918_v54, %v9056_v9  ;;  %v2163_v58 = vmul.f32 %v6991_v4, %v9057_v24  ;;  %v9059_v19 = vld [vmem:[#allocation74_spill] sm:$0xff]  ;;  %v9061_v51 = vld [vmem:[#allocation147_spill] sm:$0xff] }
 0x2c5   :  { %v2360_v50 = vadd.f32 %v2352_v23, %v2170_v7  ;;  %v1601_v11 = vadd.f32 %v1593_v28, %v1411_v3  ;;  %v2353_v10 = vmul.f32 %v6994_v62, %v9058_v40  ;;  %v2543_v18 = vmul.f32 %v7005_v44, %v9059_v19  ;;  %v9060_v48 = vld [vmem:[#allocation42_spill] sm:$0xff]  ;;  %v9066_v40 = vld [vmem:[#allocation140_spill] sm:$0xff]  ;;  %v9131_v24 = vld [vmem:[#allocation99_spill] sm:$0xff] }
 0x2c6   :  { %v3119_v8 = vadd.f32 %v3111_v39, %v2929_v22  ;;  %v842_v49 = vadd.f32 %v834_v21, %v652_v2  ;;  %v1214_v37 = vmul.f32 %v6933_v47, %v9060_v48  ;;  %v1404_v23 = vmul.f32 %v6947_v17, %v9061_v51  ;;  %v9062_v3 = vld [vmem:[#allocation26_spill] sm:$0xff]  ;;  %v9063_v22 = vld [vmem:[#allocation27_spill] sm:$0xff]  ;;  %v9064_v21 = vld [vmem:[#allocation21_spill] sm:$0xff] }
 0x2c7   :  { %v2550_v12 = vadd.f32 %v2542_v1, %v2360_v50  ;;  %v1791_v42 = vadd.f32 %v1783_v27, %v1601_v11  ;;  %v265_v7 = vmul.f32 %v6900_v59, %v9062_v3  ;;  %v455_v19 = vmul.f32 %v6903_v6, %v9063_v22  ;;  %v9065_v27 = vld [vmem:[#allocation61_spill] sm:$0xff] }
 0x2c8   :  { %v3260_v28 = vadd.f32 %v7044_v14, %v3119_v8  ;;  %v1032_v39 = vadd.f32 %v1024_v15, %v842_v49  ;;  %v645_v2 = vmul.f32 %v6912_v20, %v9064_v21  ;;  %v2733_v50 = vmul.f32 %v7008_v33, %v9065_v27  ;;  %v9067_v6 = vld [vmem:[#allocation53_spill] sm:$0xff]  ;;  %v9068_v49 = vld [vmem:[#allocation31_spill] sm:$0xff]  ;;  %v9070_v21 = vld [vmem:[#allocation148_spill] sm:$0xff] }
 0x2c9   :  { %v2740_v1 = vadd.f32 %v2732_v46, %v2550_v12  ;;  %v1981_v11 = vadd.f32 %v1973_v13, %v1791_v42  ;;  %v2923_v59 = vmul.f32 %v7011_v55, %v9066_v40  ;;  %v1594_v8 = vmul.f32 %v6964_v41, %v9067_v6  ;;  %v9069_v42 = vld [vmem:[#allocation141_spill] sm:$0xff]  ;;  %v9126_v6 = vld [vmem:[#allocation111_spill] sm:$0xff] }
 0x2ca   :  { %3269 = vst [vmem:[#allocation12 + $0x198] sm:$0xff] %v3260_v28  ;;  %v1222_v15 = vadd.f32 %v1214_v37, %v1032_v39  ;;  %v463_v20 = vadd.f32 %v455_v19, %v265_v7  ;;  %v835_v46 = vmul.f32 %v6915_v57, %v9068_v49  ;;  %v3113_v27 = vmul.f32 %v7023_v60, %v9069_v42  ;;  %v9071_v28 = vld [vmem:[#allocation149_spill] sm:$0xff]  ;;  %v9072_v19 = vld [vmem:[#allocation34_spill] sm:$0xff] }
 0x2cb   :  { %v2930_v13 = vadd.f32 %v2922_v63, %v2740_v1  ;;  %v2171_v12 = vadd.f32 %v2163_v58, %v1981_v11  ;;  %v1784_v40 = vmul.f32 %v6969_v53, %v9070_v21  ;;  %v1974_v37 = vmul.f32 %v6972_v61, %v9071_v28  ;;  %v9073_v58 = vld [vmem:[#allocation70_spill] sm:$0xff]  ;;  %v9074_v11 = vld [vmem:[#allocation55_spill] sm:$0xff]  ;;  %v9085_v21 = vld [vmem:[#allocation40_spill] sm:$0xff] }
 0x2cc   :  { %v1412_v22 = vadd.f32 %v1404_v23, %v1222_v15  ;;  %v653_v39 = vadd.f32 %v645_v2, %v463_v20  ;;  %v1025_v7 = vmul.f32 %v6918_v54, %v9072_v19  ;;  %v2164_v1 = vmul.f32 %v6991_v4, %v9073_v58  ;;  %v9075_v15 = vld [vmem:[#allocation150_spill] sm:$0xff]  ;;  %v9076_v20 = vld [vmem:[#allocation36_spill] sm:$0xff] }
 0x2cd   :  { %v3120_v57 = vadd.f32 %v3112_v16, %v2930_v13  ;;  %v2361_v63 = vadd.f32 %v2353_v10, %v2171_v12  ;;  %v2354_v42 = vmul.f32 %v6994_v62, %v9074_v11  ;;  %v2544_v28 = vmul.f32 %v7005_v44, %v9075_v15  ;;  %v9077_v13 = vld [vmem:[#allocation39_spill] sm:$0xff]  ;;  %v9078_v11 = vld [vmem:[#allocation28_spill] sm:$0xff] }
 0x2ce   :  { %v1602_v23 = vadd.f32 %v1594_v8, %v1412_v22  ;;  %v843_v2 = vadd.f32 %v835_v46, %v653_v39  ;;  %v1215_v54 = vmul.f32 %v6933_v47, %v9076_v20  ;;  %v1405_v12 = vmul.f32 %v6947_v17, %v9077_v13  ;;  %v9079_v39 = vld [vmem:[#allocation30_spill] sm:$0xff] }
 0x2cf   :  { %v3261_v16 = vadd.f32 %v7044_v14, %v3120_v57  ;;  %v2551_v10 = vadd.f32 %v2543_v18, %v2361_v63  ;;  %v7249_v58 = vstv %s7202_s22  ;;  %v7254_v46 = vstv %s7209_s4  ;;  %v9080_v63 = vld [vmem:[#allocation32_spill] sm:$0xff] }
 0x2d0   :  { %v1792_v22 = vadd.f32 %v1784_v40, %v1602_v23  ;;  %v1033_v8 = vadd.f32 %v1025_v7, %v843_v2  ;;  %v276_v15 = vmul.f32 %v7249_v58, %v9078_v11  ;;  %v466_v18 = vmul.f32 %v7254_v46, %v9079_v39  ;;  %v9081_v23 = vld [vmem:[#allocation33_spill] sm:$0xff] }
 0x2d1   :  { %3270 = vst [vmem:[#allocation12 + $0x1a0] sm:$0xff] %v3261_v16  ;;  %v2741_v47 = vadd.f32 %v2733_v50, %v2551_v10  ;;  %v7261_v57 = vstv %s7215_s23  ;;  %v7264_v17 = vstv %s7217_s24  ;;  %v1595_v11 = vmul.f32 %v6964_v41, %v9080_v63  ;;  %v9082_v10 = vld [vmem:[#allocation38_spill] sm:$0xff]  ;;  %v9084_v63 = vld [vmem:[#allocation151_spill] sm:$0xff] }
 0x2d2   :  { %v1982_v40 = vadd.f32 %v1974_v37, %v1792_v22  ;;  %v1223_v7 = vadd.f32 %v1215_v54, %v1033_v8  ;;  %v656_v2 = vmul.f32 %v7261_v57, %v9081_v23  ;;  %v474_v16 = vadd.f32 %v466_v18, %v276_v15  ;;  %v9083_v22 = vld [vmem:[#allocation43_spill] sm:$0xff] }
 0x2d3   :  { %v2931_v50 = vadd.f32 %v2923_v59, %v2741_v47  ;;  %v846_v39 = vmul.f32 %v7264_v17, %v9082_v10  ;;  %v7277_v13 = vstv %s7227_s25  ;;  %v1785_v41 = vmul.f32 %v6969_v53, %v9083_v22  ;;  %v9086_v18 = vld [vmem:[#allocation47_spill] sm:$0xff]  ;;  %v9090_v10 = vld [vmem:[#allocation24_spill] sm:$0xff]  ;;  %v9114_v22 = vld [vmem:[#allocation85_spill] sm:$0xff] }
 0x2d4   :  { %v2172_v37 = vadd.f32 %v2164_v1, %v1982_v40  ;;  %v1413_v54 = vadd.f32 %v1405_v12, %v1223_v7  ;;  %v7282_v8 = vstv %s7233_s26  ;;  %v2734_v20 = vmul.f32 %v7008_v33, %v9084_v63 }
 0x2d5   :  { %v3121_v23 = vadd.f32 %v3113_v27, %v2931_v50  ;;  %v664_v19 = vadd.f32 %v656_v2, %v474_v16  ;;  %v1036_v59 = vmul.f32 %v7277_v13, %v9085_v21  ;;  %v1975_v1 = vmul.f32 %v6972_v61, %v9086_v18  ;;  %v9087_v27 = vld [vmem:[#allocation152_spill] sm:$0xff] }
 0x2d6   :  { %v2362_v15 = vadd.f32 %v2354_v42, %v2172_v37  ;;  %v1603_v47 = vadd.f32 %v1595_v11, %v1413_v54  ;;  %v7291_v12 = vstv %s7243_s27  ;;  %v2924_v40 = vmul.f32 %v7011_v55, %v9087_v27  ;;  %v9088_v2 = vld [vmem:[#allocation44_spill] sm:$0xff]  ;;  %v9089_v42 = vld [vmem:[#allocation49_spill] sm:$0xff] }
 0x2d7   :  { %v3262_v53 = vadd.f32 %v7044_v14, %v3121_v23  ;;  %v854_v7 = vadd.f32 %v846_v39, %v664_v19  ;;  %v1226_v50 = vmul.f32 %v7282_v8, %v9088_v2  ;;  %v2165_v11 = vmul.f32 %v6991_v4, %v9089_v42  ;;  %v9091_v39 = vld [vmem:[#allocation52_spill] sm:$0xff]  ;;  %v9092_v23 = vld [vmem:[#allocation50_spill] sm:$0xff] }
 0x2d8   :  { %v2552_v61 = vadd.f32 %v2544_v28, %v2362_v15  ;;  %v1793_v21 = vadd.f32 %v1785_v41, %v1603_v47  ;;  %v7307_v16 = vstv %s7256_s28  ;;  %v3114_v19 = vmul.f32 %v7023_v60, %v9090_v10  ;;  %v9093_v47 = vld [vmem:[#allocation54_spill] sm:$0xff]  ;;  %v9094_v42 = vld [vmem:[#allocation56_spill] sm:$0xff] }
 0x2d9   :  { %3271 = vst [vmem:[#allocation12 + $0x1a8] sm:$0xff] %v3262_v53  ;;  %v2355_v37 = vmul.f32 %v6994_v62, %v9091_v39  ;;  %v1044_v54 = vadd.f32 %v1036_v59, %v854_v7  ;;  %v1416_v2 = vmul.f32 %v7291_v12, %v9092_v23  ;;  %v7318_v15 = vstv %s7270_s2  ;;  %v9097_v39 = vld [vmem:[#allocation59_spill] sm:$0xff] }
 0x2da   :  { %v2742_v28 = vadd.f32 %v2734_v20, %v2552_v61  ;;  %v1983_v41 = vadd.f32 %v1975_v1, %v1793_v21  ;;  %v7321_v4 = vstv %s7272_s29  ;;  %v2545_v53 = vmul.f32 %v7005_v44, %v9093_v47  ;;  %v9095_v20 = vld [vmem:[#allocation57_spill] sm:$0xff]  ;;  %v9096_v61 = vld [vmem:[#allocation60_spill] sm:$0xff] }
 0x2db   :  { %v1234_v10 = vadd.f32 %v1226_v50, %v1044_v54  ;;  %v1606_v62 = vmul.f32 %v7307_v16, %v9094_v42  ;;  %v2735_v1 = vmul.f32 %v7008_v33, %v9095_v20  ;;  %v2925_v21 = vmul.f32 %v7011_v55, %v9096_v61  ;;  %v9098_v50 = vld [vmem:[#allocation64_spill] sm:$0xff]  ;;  %v9099_v42 = vld [vmem:[#allocation86_spill] sm:$0xff] }
 0x2dc   :  { %v2932_v59 = vadd.f32 %v2924_v40, %v2742_v28  ;;  %v2173_v7 = vadd.f32 %v2165_v11, %v1983_v41  ;;  %v1796_v44 = vmul.f32 %v7318_v15, %v9097_v39  ;;  %v1986_v54 = vmul.f32 %v7321_v4, %v9098_v50  ;;  %v9100_v33 = vld [vmem:[#allocation88_spill] sm:$0xff]  ;;  %v9101_v28 = vld [vmem:[#allocation89_spill] sm:$0xff]  ;;  %v9104_v20 = vld [vmem:[#allocation46_spill] sm:$0xff] }
 0x2dd   :  { %v1424_v23 = vadd.f32 %v1416_v2, %v1234_v10  ;;  %v277_v47 = vmul.f32 %v7249_v58, %v9099_v42  ;;  %v7340_v11 = vstv %s7293_s30  ;;  %v467_v55 = vmul.f32 %v7254_v46, %v9100_v33  ;;  %v9103_v33 = vld [vmem:[#allocation68_spill] sm:$0xff] }
 0x2de   :  { %v3122_v27 = vadd.f32 %v3114_v19, %v2932_v59  ;;  %v2363_v40 = vadd.f32 %v2355_v37, %v2173_v7  ;;  %v7347_v2 = vstv %s7300_s6  ;;  %v7350_v39 = vstv %s7302_s9  ;;  %v9102_v59 = vld [vmem:[#allocation90_spill] sm:$0xff] }
 0x2df   :  { %v1614_v10 = vadd.f32 %v1606_v62, %v1424_v23  ;;  %v657_v41 = vmul.f32 %v7261_v57, %v9101_v28  ;;  %v475_v37 = vadd.f32 %v467_v55, %v277_v47  ;;  %v847_v7 = vmul.f32 %v7264_v17, %v9102_v59  ;;  %v9106_v55 = vld [vmem:[#allocation73_spill] sm:$0xff] }
 0x2e0   :  { %v3263_v50 = vadd.f32 %v7044_v14, %v3122_v27  ;;  %v2553_v19 = vadd.f32 %v2545_v53, %v2363_v40  ;;  %v2176_v62 = vmul.f32 %v7340_v11, %v9103_v33  ;;  %v7362_v23 = vstv %s7315_s10  ;;  %v9105_v53 = vld [vmem:[#allocation91_spill] sm:$0xff] }
 0x2e1   :  { %v1804_v42 = vadd.f32 %v1796_v44, %v1614_v10  ;;  %v3115_v28 = vmul.f32 %v7023_v60, %v9104_v20  ;;  %v665_v27 = vadd.f32 %v657_v41, %v475_v37  ;;  %v1037_v40 = vmul.f32 %v7277_v13, %v9105_v53  ;;  %v9107_v44 = vld [vmem:[#allocation79_spill] sm:$0xff]  ;;  %v9110_v53 = vld [vmem:[#allocation101_spill] sm:$0xff]  ;;  %v9112_v20 = vld [vmem:[#allocation102_spill] sm:$0xff] }
 0x2e2   :  { %3272 = vst [vmem:[#allocation12 + $0x1b0] sm:$0xff] %v3263_v50  ;;  %v2743_v61 = vadd.f32 %v2735_v1, %v2553_v19  ;;  %v2366_v59 = vmul.f32 %v7347_v2, %v9106_v55  ;;  %v2556_v10 = vmul.f32 %v7350_v39, %v9107_v44  ;;  %v7373_v33 = vstv %s7327_s11  ;;  %v9108_v50 = vld [vmem:[#allocation84_spill] sm:$0xff] }
 0x2e3   :  { %v1994_v47 = vadd.f32 %v1986_v54, %v1804_v42  ;;  %v2746_v1 = vmul.f32 %v7362_v23, %v9108_v50  ;;  %v855_v60 = vadd.f32 %v847_v7, %v665_v27  ;;  %v9109_v19 = vld [vmem:[#allocation92_spill] sm:$0xff]  ;;  %v278_v54 = vmul.f32 %v7249_v58, %v9110_v53  ;;  %v9111_v42 = vld [vmem:[#allocation29_spill] sm:$0xff] }
 0x2e4   :  { %v2933_v18 = vadd.f32 %v2925_v21, %v2743_v61  ;;  %v1227_v41 = vmul.f32 %v7282_v8, %v9109_v19  ;;  %v468_v55 = vmul.f32 %v7254_v46, %v9111_v42  ;;  %v658_v44 = vmul.f32 %v7261_v57, %v9112_v20  ;;  %v9113_v50 = vld [vmem:[#allocation93_spill] sm:$0xff]  ;;  %v9115_v19 = vld [vmem:[#allocation103_spill] sm:$0xff] }
 0x2e5   :  { %v2184_v37 = vadd.f32 %v2176_v62, %v1994_v47  ;;  %v7386_v61 = vstv %s7342_s12  ;;  %v1045_v21 = vadd.f32 %v1037_v40, %v855_v60  ;;  %v1417_v7 = vmul.f32 %v7291_v12, %v9113_v50  ;;  %v9117_v60 = vld [vmem:[#allocation87_spill] sm:$0xff] }
 0x2e6   :  { %v3123_v63 = vadd.f32 %v3115_v28, %v2933_v18  ;;  %v2936_v62 = vmul.f32 %v7373_v33, %v9114_v22  ;;  %v476_v47 = vadd.f32 %v468_v55, %v278_v54  ;;  %v848_v53 = vmul.f32 %v7264_v17, %v9115_v19  ;;  %v9116_v18 = vld [vmem:[#allocation94_spill] sm:$0xff]  ;;  %v9119_v55 = vld [vmem:[#allocation95_spill] sm:$0xff] }
 0x2e7   :  { %v2374_v27 = vadd.f32 %v2366_v59, %v2184_v37  ;;  %v7396_v49 = vstv %s7355_s13  ;;  %v1235_v20 = vadd.f32 %v1227_v41, %v1045_v21  ;;  %v1607_v28 = vmul.f32 %v7307_v16, %v9116_v18  ;;  %v9118_v37 = vld [vmem:[#allocation104_spill] sm:$0xff]  ;;  %v9121_v41 = vld [vmem:[#allocation97_spill] sm:$0xff] }
 0x2e8   :  { %v3264_v42 = vadd.f32 %v7044_v14, %v3123_v63  ;;  %v3126_v50 = vmul.f32 %v7386_v61, %v9117_v60  ;;  %v666_v59 = vadd.f32 %v658_v44, %v476_v47  ;;  %v1038_v22 = vmul.f32 %v7277_v13, %v9118_v37  ;;  %v9120_v14 = vld [vmem:[#allocation96_spill] sm:$0xff]  ;;  %v9123_v44 = vld [vmem:[#allocation105_spill] sm:$0xff] }
 0x2e9   :  { %v2564_v40 = vadd.f32 %v2556_v10, %v2374_v27  ;;  %v1425_v54 = vadd.f32 %v1417_v7, %v1235_v20  ;;  %v1797_v19 = vmul.f32 %v7318_v15, %v9119_v55  ;;  %v1987_v63 = vmul.f32 %v7321_v4, %v9120_v14  ;;  %v9122_v10 = vld [vmem:[#allocation98_spill] sm:$0xff]  ;;  %v9125_v20 = vld [vmem:[#allocation81_spill] sm:$0xff] }
 0x2ea   :  { %3273 = vst [vmem:[#allocation12 + $0x1b8] sm:$0xff] %v3264_v42  ;;  %v2177_v21 = vmul.f32 %v7340_v11, %v9121_v41  ;;  %v2367_v27 = vmul.f32 %v7347_v2, %v9122_v10  ;;  %v856_v60 = vadd.f32 %v848_v53, %v666_v59  ;;  %v1228_v47 = vmul.f32 %v7282_v8, %v9123_v44  ;;  %v9124_v42 = vld [vmem:[#allocation23_spill] sm:$0xff]  ;;  %v9127_v41 = vld [vmem:[#allocation66_spill] sm:$0xff] }
 0x2eb   :  { %v2754_v18 = vadd.f32 %v2746_v1, %v2564_v40  ;;  %v1615_v37 = vadd.f32 %v1607_v28, %v1425_v54  ;;  %v279_v7 = vmul.f32 %v7249_v58, %v9124_v42  ;;  %v469_v55 = vmul.f32 %v7254_v46, %v9125_v20  ;;  %v9128_v10 = vld [vmem:[#allocation106_spill] sm:$0xff]  ;;  %v9129_v44 = vld [vmem:[#allocation71_spill] sm:$0xff]  ;;  %v9130_v42 = vld [vmem:[#allocation112_spill] sm:$0xff] }
 0x2ec   :  { %v659_v14 = vmul.f32 %v7261_v57, %v9126_v6  ;;  %v2557_v1 = vmul.f32 %v7350_v39, %v9127_v41  ;;  %v1046_v40 = vadd.f32 %v1038_v22, %v856_v60  ;;  %v1418_v53 = vmul.f32 %v7291_v12, %v9128_v10  ;;  %v9133_v60 = vld [vmem:[#allocation100_spill] sm:$0xff] }
 0x2ed   :  { %v2944_v3 = vadd.f32 %v2936_v62, %v2754_v18  ;;  %v1805_v59 = vadd.f32 %v1797_v19, %v1615_v37  ;;  %v2747_v28 = vmul.f32 %v7362_v23, %v9129_v44  ;;  %v477_v54 = vadd.f32 %v469_v55, %v279_v7  ;;  %v9132_v18 = vld [vmem:[#allocation107_spill] sm:$0xff] }
 0x2ee   :  { %v849_v51 = vmul.f32 %v7264_v17, %v9130_v42  ;;  %v2937_v6 = vmul.f32 %v7373_v33, %v9131_v24  ;;  %v1236_v62 = vadd.f32 %v1228_v47, %v1046_v40  ;;  %v1608_v41 = vmul.f32 %v7307_v16, %v9132_v18  ;;  %v9134_v37 = vld [vmem:[#allocation35_spill] sm:$0xff]  ;;  %v9135_v42 = vld [vmem:[#allocation108_spill] sm:$0xff]  ;;  %v9138_v18 = vld [vmem:[#allocation113_spill] sm:$0xff] }
 0x2ef   :  { %v3134_v20 = vadd.f32 %v3126_v50, %v2944_v3  ;;  %v1995_v22 = vadd.f32 %v1987_v63, %v1805_v59  ;;  %v3127_v10 = vmul.f32 %v7386_v61, %v9133_v60  ;;  %v667_v19 = vadd.f32 %v659_v14, %v477_v54  ;;  %v9136_v50 = vld [vmem:[#allocation69_spill] sm:$0xff]  ;;  %v9137_v40 = vld [vmem:[#allocation51_spill] sm:$0xff] }
 0x2f0   :  { %v1039_v44 = vmul.f32 %v7277_v13, %v9134_v37  ;;  %v1426_v55 = vadd.f32 %v1418_v53, %v1236_v62  ;;  %v1798_v3 = vmul.f32 %v7318_v15, %v9135_v42  ;;  %v1988_v24 = vmul.f32 %v7321_v4, %v9136_v50  ;;  %v9139_v60 = vld [vmem:[#allocation109_spill] sm:$0xff]  ;;  %v9140_v53 = vld [vmem:[#allocation119_spill] sm:$0xff]  ;;  %v9141_v37 = vld [vmem:[#allocation120_spill] sm:$0xff] }
 0x2f1   :  { %v3276_v7 = vadd.f32 %v7396_v49, %v3134_v20  ;;  %v2185_v47 = vadd.f32 %v2177_v21, %v1995_v22  ;;  %v2178_v63 = vmul.f32 %v7340_v11, %v9137_v40  ;;  %v857_v59 = vadd.f32 %v849_v51, %v667_v19 }
 0x2f2   :  { %v1229_v14 = vmul.f32 %v7282_v8, %v9138_v18  ;;  %v1616_v54 = vadd.f32 %v1608_v41, %v1426_v55  ;;  %v2368_v20 = vmul.f32 %v7347_v2, %v9139_v60  ;;  %v280_v62 = vmul.f32 %v7249_v58, %v9140_v53  ;;  %v9143_v60 = vld [vmem:[#allocation78_spill] sm:$0xff] }
 0x2f3   :  { %3285 = vst [vmem:[#allocation12 + $0x1c0] sm:$0xff] %v3276_v7  ;;  %v470_v42 = vmul.f32 %v7254_v46, %v9141_v37  ;;  %v2375_v50 = vadd.f32 %v2367_v27, %v2185_v47  ;;  %v1047_v21 = vadd.f32 %v1039_v44, %v857_v59  ;;  %v1419_v22 = vmul.f32 %v7291_v12, %v9031_v29  ;;  %v9142_v7 = vld [vmem:[#allocation110_spill] sm:$0xff]  ;;  %v9144_v47 = vld [vmem:[#allocation76_spill] sm:$0xff] }
 0x2f4   :  { %v660_v51 = vmul.f32 %v7261_v57, %v9029_v31  ;;  %v1806_v19 = vadd.f32 %v1798_v3, %v1616_v54  ;;  %v2558_v41 = vmul.f32 %v7350_v39, %v9142_v7  ;;  %v850_v40 = vmul.f32 %v7264_v17, %v9032_v30  ;;  %v9146_v37 = vld [vmem:[#allocation62_spill] sm:$0xff]  ;;  %v9148_v7 = vld [vmem:[#allocation65_spill] sm:$0xff] }
 0x2f5   :  { %v478_v55 = vadd.f32 %v470_v42, %v280_v62  ;;  %v2565_v18 = vadd.f32 %v2557_v1, %v2375_v50  ;;  %v2748_v53 = vmul.f32 %v7362_v23, %v9143_v60  ;;  %v1237_v27 = vadd.f32 %v1229_v14, %v1047_v21  ;;  %v9145_v62 = vld [vmem:[#allocation25_spill] sm:$0xff]  ;;  %v9147_v50 = vld [vmem:[#allocation58_spill] sm:$0xff] }
 0x2f6   :  { %v1609_v44 = vmul.f32 %v7307_v16, %v9033_v45  ;;  %v1996_v29 = vadd.f32 %v1988_v24, %v1806_v19  ;;  %v2938_v31 = vmul.f32 %v7373_v33, %v9144_v47  ;;  %v1040_v59 = vmul.f32 %v7277_v13, %v8807_v34 }
 0x2f7   :  { %v668_v3 = vadd.f32 %v660_v51, %v478_v55  ;;  %v2755_v54 = vadd.f32 %v2747_v28, %v2565_v18  ;;  %v3128_v30 = vmul.f32 %v7386_v61, %v9145_v62  ;;  %v1427_v1 = vadd.f32 %v1419_v22, %v1237_v27  ;;  %v9151_v62 = vld [vmem:[#allocation118_spill] sm:$0xff] }
 0x2f8   :  { %v1799_v42 = vmul.f32 %v7318_v15, %v9146_v37  ;;  %v2186_v14 = vadd.f32 %v2178_v63, %v1996_v29  ;;  %v1989_v45 = vmul.f32 %v7321_v4, %v9147_v50  ;;  %v1230_v21 = vmul.f32 %v7282_v8, %v8810_v43  ;;  %v9152_v37 = vld [vmem:[#allocation41_spill] sm:$0xff] }
 0x2f9   :  { %v858_v24 = vadd.f32 %v850_v40, %v668_v3  ;;  %v2945_v51 = vadd.f32 %v2937_v6, %v2755_v54  ;;  %v1617_v19 = vadd.f32 %v1609_v44, %v1427_v1  ;;  %v2179_v34 = vmul.f32 %v7340_v11, %v9148_v7  ;;  %v9150_v54 = vld [vmem:[#allocation117_spill] sm:$0xff] }
 0x2fa   :  { %v1420_v28 = vmul.f32 %v7291_v12, %v8811_v5  ;;  %v2376_v22 = vadd.f32 %v2368_v20, %v2186_v14  ;;  %v281_v63 = vmul.f32 %v7249_v58, %v9037_v0  ;;  %v471_v18 = vmul.f32 %v7254_v46, %v9038_v25 }
 0x2fb   :  { %v1048_v55 = vadd.f32 %v1040_v59, %v858_v24  ;;  %v3135_v40 = vadd.f32 %v3127_v10, %v2945_v51  ;;  %v1807_v60 = vadd.f32 %v1799_v42, %v1617_v19  ;;  %v1610_v43 = vmul.f32 %v7307_v16, %v8813_v36  ;;  %v9149_v59 = vld [vmem:[#allocation133_spill] sm:$0xff]  ;;  %v9155_v19 = vld [vmem:[#allocation127_spill] sm:$0xff] }
 0x2fc   :  { %v661_v6 = vmul.f32 %v7261_v57, %v8699_v52  ;;  %v2566_v27 = vadd.f32 %v2558_v41, %v2376_v22  ;;  %v479_v29 = vadd.f32 %v471_v18, %v281_v63  ;;  %v851_v5 = vmul.f32 %v7264_v17, %v8812_v56  ;;  %v9157_v18 = vld [vmem:[#allocation142_spill] sm:$0xff] }
 0x2fd   :  { %v1238_v44 = vadd.f32 %v1230_v21, %v1048_v55  ;;  %v3277_v20 = vadd.f32 %v7396_v49, %v3135_v40  ;;  %v1997_v0 = vadd.f32 %v1989_v45, %v1807_v60  ;;  %v2369_v25 = vmul.f32 %v7347_v2, %v9036_v35  ;;  %v9153_v45 = vld [vmem:[#allocation19_spill] sm:$0xff]  ;;  %v9154_v21 = vld [vmem:[#allocation126_spill] sm:$0xff] }
 0x2fe   :  { %v1800_v10 = vmul.f32 %v7318_v15, %v8815_v26  ;;  %v2756_v47 = vadd.f32 %v2748_v53, %v2566_v27  ;;  %v669_v3 = vadd.f32 %v661_v6, %v479_v29  ;;  %v1041_v52 = vmul.f32 %v7277_v13, %v9149_v59  ;;  %v9156_v55 = vld [vmem:[#allocation134_spill] sm:$0xff]  ;;  %v9158_v40 = vld [vmem:[#allocation143_spill] sm:$0xff] }
 0x2ff   :  { %v1428_v36 = vadd.f32 %v1420_v28, %v1238_v44  ;;  %3286 = vst [vmem:[#allocation12 + $0x1c8] sm:$0xff] %v3277_v20  ;;  %v2187_v41 = vadd.f32 %v2179_v34, %v1997_v0  ;;  %v2559_v56 = vmul.f32 %v7350_v39, %v9150_v54  ;;  %v2749_v1 = vmul.f32 %v7362_v23, %v9151_v62  ;;  %v9160_v20 = vld [vmem:[#allocation22_spill] sm:$0xff]  ;;  %v9164_v62 = vld [vmem:[#allocation83_spill] sm:$0xff] }
 0x300   :  { %v1990_v35 = vmul.f32 %v7321_v4, %v9152_v37  ;;  %v2946_v42 = vadd.f32 %v2938_v31, %v2756_v47  ;;  %v859_v26 = vadd.f32 %v851_v5, %v669_v3  ;;  %v1231_v53 = vmul.f32 %v7282_v8, %v9042_v38  ;;  %v9162_v3 = vld [vmem:[#allocation128_spill] sm:$0xff] }
 0x301   :  { %v1618_v14 = vadd.f32 %v1610_v43, %v1428_v36  ;;  %v2377_v50 = vadd.f32 %v2369_v25, %v2187_v41  ;;  %v2939_v24 = vmul.f32 %v7373_v33, %v9153_v45  ;;  %v2180_v51 = vmul.f32 %v7340_v11, %v9154_v21  ;;  %v9159_v43 = vld [vmem:[#allocation144_spill] sm:$0xff] }
 0x302   :  { %v2370_v7 = vmul.f32 %v7347_v2, %v9155_v19  ;;  %v3136_v34 = vadd.f32 %v3128_v30, %v2946_v42  ;;  %v1049_v22 = vadd.f32 %v1041_v52, %v859_v26  ;;  %v1421_v31 = vmul.f32 %v7291_v12, %v9156_v55  ;;  %v9163_v41 = vld [vmem:[#allocation136_spill] sm:$0xff]  ;;  %v9165_v42 = vld [vmem:[#allocation18_spill] sm:$0xff] }
 0x303   :  { %v1808_v28 = vadd.f32 %v1800_v10, %v1618_v14  ;;  %v2567_v63 = vadd.f32 %v2559_v56, %v2377_v50  ;;  %v282_v38 = vmul.f32 %v7249_v58, %v9157_v18  ;;  %v472_v60 = vmul.f32 %v7254_v46, %v9158_v40  ;;  %v9161_v10 = vld [vmem:[#allocation145_spill] sm:$0xff]  ;;  %v9167_v21 = vld [vmem:[#allocation20_spill] sm:$0xff]  ;;  %v9170_v18 = vld [vmem:[#allocation26_spill] sm:$0xff] }
 0x304   :  { %v662_v6 = vmul.f32 %v7261_v57, %v9159_v43  ;;  %v3278_v27 = vadd.f32 %v7396_v49, %v3136_v34  ;;  %v1239_v29 = vadd.f32 %v1231_v53, %v1049_v22  ;;  %v1611_v30 = vmul.f32 %v7307_v16, %v9050_v32  ;;  %v9166_v53 = vld [vmem:[#allocation137_spill] sm:$0xff]  ;;  %v9168_v22 = vld [vmem:[#allocation138_spill] sm:$0xff]  ;;  %v9171_v40 = vld [vmem:[#allocation27_spill] sm:$0xff] }
 0x305   :  { %v1998_v44 = vadd.f32 %v1990_v35, %v1808_v28  ;;  %v2757_v5 = vadd.f32 %v2749_v1, %v2567_v63  ;;  %v3129_v0 = vmul.f32 %v7386_v61, %v9160_v20  ;;  %v480_v25 = vadd.f32 %v472_v60, %v282_v38 }
 0x306   :  { %v852_v47 = vmul.f32 %v7264_v17, %v9161_v10  ;;  %3287 = vst [vmem:[#allocation12 + $0x1d0] sm:$0xff] %v3278_v27  ;;  %v2560_v59 = vmul.f32 %v7350_v39, %v9162_v3  ;;  %v1429_v52 = vadd.f32 %v1421_v31, %v1239_v29  ;;  %v1801_v54 = vmul.f32 %v7318_v15, %v9163_v41 }
 0x307   :  { %v2188_v36 = vadd.f32 %v2180_v51, %v1998_v44  ;;  %v2947_v56 = vadd.f32 %v2939_v24, %v2757_v5  ;;  %v2750_v32 = vmul.f32 %v7362_v23, %v9164_v62  ;;  %v670_v1 = vadd.f32 %v662_v6, %v480_v25  ;;  %v9173_v44 = vld [vmem:[#allocation21_spill] sm:$0xff]  ;;  %v9175_v25 = vld [vmem:[#allocation31_spill] sm:$0xff] }
 0x308   :  { %v1042_v37 = vmul.f32 %v7277_v13, %v9056_v9  ;;  %v2940_v14 = vmul.f32 %v7373_v33, %v9165_v42  ;;  %v1619_v26 = vadd.f32 %v1611_v30, %v1429_v52  ;;  %v1991_v50 = vmul.f32 %v7321_v4, %v9166_v53  ;;  %v9174_v5 = vld [vmem:[#allocation53_spill] sm:$0xff] }
 0x309   :  { %v2378_v35 = vadd.f32 %v2370_v7, %v2188_v36  ;;  %v3137_v45 = vadd.f32 %v3129_v0, %v2947_v56  ;;  %v3130_v51 = vmul.f32 %v7386_v61, %v9167_v21  ;;  %v860_v24 = vadd.f32 %v852_v47, %v670_v1  ;;  %v9169_v7 = vld [vmem:[#allocation147_spill] sm:$0xff] }
 0x30a   :  { %v1232_v19 = vmul.f32 %v7282_v8, %v9060_v48  ;;  %v1809_v28 = vadd.f32 %v1801_v54, %v1619_v26  ;;  %v2181_v9 = vmul.f32 %v7340_v11, %v9168_v22  ;;  %v1422_v55 = vmul.f32 %v7291_v12, %v9169_v7  ;;  %v9172_v48 = vld [vmem:[#allocation139_spill] sm:$0xff] }
 0x30b   :  { %v2568_v34 = vadd.f32 %v2560_v59, %v2378_v35  ;;  %v3279_v31 = vadd.f32 %v7396_v49, %v3137_v45  ;;  %v1050_v63 = vadd.f32 %v1042_v37, %v860_v24  ;;  %v283_v38 = vmul.f32 %v7249_v58, %v9170_v18  ;;  %v9177_v59 = vld [vmem:[#allocation148_spill] sm:$0xff] }
 0x30c   :  { %v473_v60 = vmul.f32 %v7254_v46, %v9171_v40  ;;  %v1999_v6 = vadd.f32 %v1991_v50, %v1809_v28  ;;  %v2371_v27 = vmul.f32 %v7347_v2, %v9172_v48  ;;  %v663_v29 = vmul.f32 %v7261_v57, %v9173_v44  ;;  %v9176_v46 = vld [vmem:[#allocation74_spill] sm:$0xff]  ;;  %v9182_v45 = vld [vmem:[#allocation140_spill] sm:$0xff] }
 0x30d   :  { %v2758_v43 = vadd.f32 %v2750_v32, %v2568_v34  ;;  %3288 = vst [vmem:[#allocation12 + $0x1d8] sm:$0xff] %v3279_v31  ;;  %v1240_v30 = vadd.f32 %v1232_v19, %v1050_v63  ;;  %v1612_v20 = vmul.f32 %v7307_v16, %v9174_v5  ;;  %v853_v58 = vmul.f32 %v7264_v17, %v9175_v25  ;;  %v9178_v57 = vld [vmem:[#allocation34_spill] sm:$0xff]  ;;  %v9179_v32 = vld [vmem:[#allocation61_spill] sm:$0xff]  ;;  %v9184_v34 = vld [vmem:[#allocation39_spill] sm:$0xff] }
 0x30e   :  { %v481_v0 = vadd.f32 %v473_v60, %v283_v38  ;;  %v2189_v47 = vadd.f32 %v2181_v9, %v1999_v6  ;;  %v2561_v36 = vmul.f32 %v7350_v39, %v9176_v46  ;;  %v1802_v52 = vmul.f32 %v7318_v15, %v9177_v59  ;;  %v9180_v17 = vld [vmem:[#allocation149_spill] sm:$0xff]  ;;  %v9187_v18 = vld [vmem:[#allocation32_spill] sm:$0xff] }
 0x30f   :  { %v2948_v10 = vadd.f32 %v2940_v14, %v2758_v43  ;;  %v1430_v3 = vadd.f32 %v1422_v55, %v1240_v30  ;;  %v1043_v54 = vmul.f32 %v7277_v13, %v9178_v57  ;;  %v2751_v1 = vmul.f32 %v7362_v23, %v9179_v32  ;;  %v9181_v14 = vld [vmem:[#allocation36_spill] sm:$0xff]  ;;  %v9185_v9 = vld [vmem:[#allocation141_spill] sm:$0xff]  ;;  %v9186_v55 = vld [vmem:[#allocation55_spill] sm:$0xff] }
 0x310   :  { %v671_v41 = vadd.f32 %v663_v29, %v481_v0  ;;  %v2379_v62 = vadd.f32 %v2371_v27, %v2189_v47  ;;  %v1992_v35 = vmul.f32 %v7321_v4, %v9180_v17  ;;  %v1233_v26 = vmul.f32 %v7282_v8, %v9181_v14  ;;  %v9188_v43 = vld [vmem:[#allocation150_spill] sm:$0xff]  ;;  %v9190_v30 = vld [vmem:[#allocation151_spill] sm:$0xff]  ;;  %v9194_v59 = vld [vmem:[#allocation24_spill] sm:$0xff] }
 0x311   :  { %v3138_v56 = vadd.f32 %v3130_v51, %v2948_v10  ;;  %v1620_v37 = vadd.f32 %v1612_v20, %v1430_v3  ;;  %v2941_v21 = vmul.f32 %v7373_v33, %v9182_v45  ;;  %v9183_v51 = vld [vmem:[#allocation70_spill] sm:$0xff]  ;;  %v1423_v28 = vmul.f32 %v7291_v12, %v9184_v34  ;;  %v9189_v12 = vld [vmem:[#allocation43_spill] sm:$0xff]  ;;  %v9192_v10 = vld [vmem:[#allocation152_spill] sm:$0xff] }
 0x312   :  { %v861_v42 = vadd.f32 %v853_v58, %v671_v41  ;;  %v2569_v50 = vadd.f32 %v2561_v36, %v2379_v62  ;;  %v2182_v24 = vmul.f32 %v7340_v11, %v9183_v51  ;;  %v3131_v7 = vmul.f32 %v7386_v61, %v9185_v9  ;;  %v9191_v0 = vld [vmem:[#allocation47_spill] sm:$0xff]  ;;  %v9193_v36 = vld [vmem:[#allocation49_spill] sm:$0xff]  ;;  %v9195_v57 = vld [vmem:[#allocation52_spill] sm:$0xff] }
 0x313   :  { %v3280_v53 = vadd.f32 %v7396_v49, %v3138_v56  ;;  %v1810_v13 = vadd.f32 %v1802_v52, %v1620_v37  ;;  %v2372_v31 = vmul.f32 %v7347_v2, %v9186_v55  ;;  %v1613_v38 = vmul.f32 %v7307_v16, %v9187_v18  ;;  %v9196_v62 = vld [vmem:[#allocation54_spill] sm:$0xff]  ;;  %v9197_v17 = vld [vmem:[#allocation57_spill] sm:$0xff]  ;;  %v9198_v14 = vld [vmem:[#allocation60_spill] sm:$0xff] }
 0x314   :  { %v1051_v19 = vadd.f32 %v1043_v54, %v861_v42  ;;  %v2759_v22 = vadd.f32 %v2751_v1, %v2569_v50  ;;  %v2562_v6 = vmul.f32 %v7350_v39, %v9188_v43  ;;  %v1803_v27 = vmul.f32 %v7318_v15, %v9189_v12  ;;  %v9199_v50 = vld [vmem:[#allocation46_spill] sm:$0xff] }
 0x315   :  { %3289 = vst [vmem:[#allocation12 + $0x1e0] sm:$0xff] %v3280_v53  ;;  %v2000_v8 = vadd.f32 %v1992_v35, %v1810_v13  ;;  %v2752_v5 = vmul.f32 %v7362_v23, %v9190_v30  ;;  %v1993_v25 = vmul.f32 %v7321_v4, %v9191_v0  ;;  %v2942_v47 = vmul.f32 %v7373_v33, %v9192_v10 }
 0x316   :  { %v1241_v63 = vadd.f32 %v1233_v26, %v1051_v19  ;;  %v2949_v40 = vadd.f32 %v2941_v21, %v2759_v22  ;;  %v2183_v3 = vmul.f32 %v7340_v11, %v9193_v36  ;;  %v3132_v52 = vmul.f32 %v7386_v61, %v9194_v59 }
 0x317   :  { %v2190_v60 = vadd.f32 %v2182_v24, %v2000_v8  ;;  %v2373_v54 = vmul.f32 %v7347_v2, %v9195_v57  ;;  %v2563_v32 = vmul.f32 %v7350_v39, %v9196_v62  ;;  %v2753_v35 = vmul.f32 %v7362_v23, %v9197_v17 }
 0x318   :  { %v1431_v48 = vadd.f32 %v1423_v28, %v1241_v63  ;;  %v3139_v44 = vadd.f32 %v3131_v7, %v2949_v40  ;;  %v2943_v26 = vmul.f32 %v7373_v33, %v9198_v14  ;;  %v3133_v2 = vmul.f32 %v7386_v61, %v9199_v50 }
 0x319   :  { %v2380_v29 = vadd.f32 %v2372_v31, %v2190_v60 }
 0x31a   :  { %v1621_v20 = vadd.f32 %v1613_v38, %v1431_v48  ;;  %v3281_v16 = vadd.f32 %v7396_v49, %v3139_v44 }
 0x31b   :  { %v2570_v58 = vadd.f32 %v2562_v6, %v2380_v29 }
 0x31c   :  { %v1811_v46 = vadd.f32 %v1803_v27, %v1621_v20  ;;  %3290 = vst [vmem:[#allocation12 + $0x1e8] sm:$0xff] %v3281_v16 }
 0x31d   :  { %v2760_v15 = vadd.f32 %v2752_v5, %v2570_v58 }
 0x31e   :  { %v2001_v41 = vadd.f32 %v1993_v25, %v1811_v46 }
 0x31f   :  { %v2950_v4 = vadd.f32 %v2942_v47, %v2760_v15 }
 0x320   :  { %v2191_v56 = vadd.f32 %v2183_v3, %v2001_v41 }
 0x321   :  { %v3140_v1 = vadd.f32 %v3132_v52, %v2950_v4 }
 0x322   :  { %v2381_v37 = vadd.f32 %v2373_v54, %v2191_v56 }
 0x323   :  { %v3282_v11 = vadd.f32 %v7396_v49, %v3140_v1 }
 0x324   :  { %v2571_v42 = vadd.f32 %v2563_v32, %v2381_v37 }
 0x325   :  { %3291 = vst [vmem:[#allocation12 + $0x1f0] sm:$0xff] %v3282_v11 }
 0x326   :  { %v2761_v53 = vadd.f32 %v2753_v35, %v2571_v42 }
 0x328   :  { %v2951_v45 = vadd.f32 %v2943_v26, %v2761_v53 }
 0x32a   :  { %v3141_v39 = vadd.f32 %v3133_v2, %v2951_v45 }
 0x32c   :  { %v3283_v21 = vadd.f32 %v7396_v49, %v3141_v39 }
 0x32e   :  { %3292 = vst [vmem:[#allocation12 + $0x1f8] sm:$0xff] %v3283_v21 }
 0x32f   :  { %3582 = shalt.err (!%p3579_p4)
}
 0x330   :  { %s3583_s0 = scalar_lea.hbm %s7630_s5, 8192 }
 0x331   :  { %p3584_p5 = scmp.ne.s32.totalorder %s7630_s5, %s3583_s0  ;;  %p3587_p6 = scmp.lt.u32.totalorder %s3583_s0, %s7630_s5 }
 0x333   :  { %p3589_p7 = pnand %p3587_p6, %p3584_p5 }
 0x335   :  { %3592 = shalt.err (!%p3589_p7)
}
 0x336   :  { %3304 = dma.vmem_to_hbm [thread:$0]  %s3299_s15, 8192, %s7630_s5, [#allocation4], %s3605_s7, %s3605_s7, %s3606_s8  }
 0x337   :  { %3601 = dma.done.wait [#allocation4], 8192  }
 0x338   :  { %3602 = vsyncadd [#allocation4], 4294959104 }
 0x339   :  { %3308 = vsyncpa [#allocation3], 1 }
 0x33a   :  { %3309 = vsyncpa [#allocation4], 1 }
 0x33b   :  { %3310 = vsyncpa [#allocation5], 1 }
 0x33c   :  { %3311 = vsyncpa [#allocation8], 1 }
 0x33d   :  { %3312 = vsyncpa [#allocation11], 1 }

</bundles_post_ra>
